<compile_context>
chip_gen: v7x
topology: tpu7x:2x2x1
jax: 0.10.0
libtpu: 0.0.40
codegen_flags: <defaults>
</compile_context>

<pallas_src>
import math

import jax
import jax.numpy as jnp
from jax.experimental import pallas as pl
from jax.experimental.pallas import tpu as pltpu

KMAX = 9                       # largest tail kernel (k9); others zero-embedded
BRANCH_KS = (3, 5, 7, 9)


# --------------------------- fused AWMS kernel ------------------------------

def _make_awms_kernel(H, W, Cout):
    WC = W * Cout                                     # lane width of one branch

    def kernel(xp_ref, wban_ref, bias_ref, scale_ref, slope_ref, o_ref):
        xp = xp_ref[0]                                # (Hp, Wp*Cin), lane-packed
        # Seed the accumulator with the bias row (saves a separate VALU add).
        acc = jnp.broadcast_to(bias_ref[...], (H, 4 * WC))
        for ky in range(KMAX):                        # 9 deep MXU matmuls
            acc = acc + jnp.dot(xp[ky:ky + H, :], wban_ref[ky],
                                preferred_element_type=jnp.float32)
        t = acc * scale_ref[...]                      # per-branch Scale(0.25)
        a = slope_ref[0, 0]                           # shared PReLU slope (SMEM)
        z = jnp.where(t >= 0.0, t, a * t)             # PReLU
        out = (z[:, 0 * WC:1 * WC] + z[:, 1 * WC:2 * WC]   # sum the 4 branches
               + z[:, 2 * WC:3 * WC] + z[:, 3 * WC:4 * WC])
        o_ref[...] = out.reshape(1, H, WC)            # lane-dense (16, 256) store

    return kernel


# ------------------- banded-weight construction (glue) ----------------------

def _build_banded(params, Cin, Cout, W, Wp):
    """Turn the four conv weights into per-ky banded matmul weights.

    Returns:
      wban:      (KMAX, Wp*Cin, 4*W*Cout) f32, column j = br*(W*Cout)+x*Cout+oc
      bias_row:  (1, 4*W*Cout) f32
      scale_row: (1, 4*W*Cout) f32
    """
    WC = W * Cout

    def embed(w, K):                  # center the KxK taps in the 9x9 footprint
        off = (KMAX - K) // 2
        return jnp.pad(w, ((off, KMAX - K - off), (off, KMAX - K - off),
                           (0, 0), (0, 0)))

    def banded(w_emb):                # (9,9,Cin,Cout) -> (9, Wp*Cin, W*Cout)
        wf = w_emb.reshape(KMAX, KMAX * Cin, Cout).astype(jnp.float32)
        out = jnp.zeros((KMAX, Wp * Cin, WC), jnp.float32)
        for x in range(W):            # static diagonal-band fill (one-time glue)
            out = out.at[:, x * Cin:(x + KMAX) * Cin,
                         x * Cout:(x + 1) * Cout].set(wf)
        return out

    wb, brow, srow = [], [], []
    for K in BRANCH_KS:
        wb.append(banded(embed(params[f"w{K}"], K)))
        brow.append(jnp.tile(params[f"b{K}"], W))
        srow.append(jnp.broadcast_to(params[f"s{K}"], (WC,)))
    wban = jnp.concatenate(wb, axis=2)
    bias_row = jnp.concatenate(brow)[None, :].astype(jnp.float32)
    scale_row = jnp.concatenate(srow)[None, :].astype(jnp.float32)
    return wban, bias_row, scale_row


# --------------------------------- forward ----------------------------------

@jax.jit
def awms_forward(x_nchw, params):
    """AWMS forward. x_nchw: (N, n_feats, H, W) f32 -> (N, out_feats, H, W)."""
    N, Cin, H, W = x_nchw.shape
    Cout = params["b3"].shape[0]
    P = KMAX // 2
    Hp, Wp = H + 2 * P, W + 2 * P

    x = jnp.transpose(x_nchw, (0, 2, 3, 1))              # NHWC (channels on lanes)
    xp = jnp.pad(x, ((0, 0), (P, P), (P, P), (0, 0)))    # one shared pad (k=9)
    xp = xp.reshape(N, Hp, Wp * Cin)                     # lane-packed rows

    # TODO(synk): weight_norm reparam (g * v/||v||) is folded; at init it equals
    # the raw conv weight, which is what these params are.
    wban, bias_row, scale_row = _build_banded(params, Cin, Cout, W, Wp)
    slope = params["prelu_a"].reshape(1, 1).astype(jnp.float32)

    WC4 = 4 * W * Cout
    out = pl.pallas_call(
        _make_awms_kernel(H, W, Cout),
        out_shape=jax.ShapeDtypeStruct((N, H, W * Cout), jnp.float32),
        grid=(N,),
        in_specs=[
            pl.BlockSpec((1, Hp, Wp * Cin), lambda n: (n, 0, 0)),
            pl.BlockSpec((KMAX, Wp * Cin, WC4), lambda n: (0, 0, 0)),
            pl.BlockSpec((1, WC4), lambda n: (0, 0)),
            pl.BlockSpec((1, WC4), lambda n: (0, 0)),
            pl.BlockSpec((1, 1), lambda n: (0, 0),
                         memory_space=pltpu.MemorySpace.SMEM),
        ],
        out_specs=pl.BlockSpec((1, H, W * Cout), lambda n: (n, 0, 0)),
        compiler_params=pltpu.CompilerParams(
            dimension_semantics=("parallel",),          # v7x: one image per TC
            vmem_limit_bytes=32 * 1024 * 1024),         # banded weights ~7MB x2
    )(xp, wban, bias_row, scale_row, slope)

    out = out.reshape(N, H, W, Cout)
    return jnp.transpose(out, (0, 3, 1, 2))              # back to NCHW


# ---------------- parameter init (deterministic, PyTorch-like) --------------

def _conv_init(key, k, cin, cout):
    kw, kb = jax.random.split(key)
    bound = 1.0 / math.sqrt(cin * k * k)
    w = jax.random.uniform(kw, (k, k, cin, cout), jnp.float32, -bound, bound)
    b = jax.random.uniform(kb, (cout,), jnp.float32, -bound, bound)
    return w, b


def init_awms_params(key, n_feats, out_feats):
    keys = jax.random.split(key, 4)
    p = {}
    for kk, K in zip(keys, BRANCH_KS):
        w, b = _conv_init(kk, K, n_feats, out_feats)
        p[f"w{K}"], p[f"b{K}"] = w, b
        p[f"s{K}"] = jnp.array([0.25], jnp.float32)      # Scale(0.25)
    p["prelu_a"] = jnp.array([0.2], jnp.float32)         # PReLU(1, 0.2), shared
    return p


# ---------------- pure-JAX reference (for a correctness check) --------------

def _awms_ref(x_nchw, p):
    a = p["prelu_a"][0]

    def branch(K):
        y = jax.lax.conv_general_dilated(
            x_nchw, p[f"w{K}"], (1, 1), "SAME",
            dimension_numbers=("NCHW", "HWIO", "NCHW"))
        t = (y + p[f"b{K}"][None, :, None, None]) * p[f"s{K}"][0]
        return jnp.where(t >= 0, t, a * t)

    return branch(3) + branch(5) + branch(7) + branch(9)


if __name__ == "__main__":
    key = jax.random.PRNGKey(0)
    k_x, k_p = jax.random.split(key)

    N, H, W = 2, 16, 16
    n_feats = 8
    up_scale, nweight = 2, 4                       # out_feats = scale*scale*NWEIGT
    out_feats = up_scale * up_scale * nweight      # 16

    x = jax.random.normal(k_x, (N, n_feats, H, W), jnp.float32)   # NCHW, as PyTorch
    params = init_awms_params(k_p, n_feats, out_feats)

    out = jax.block_until_ready(awms_forward(x, params))
    ref = jax.block_until_ready(_awms_ref(x, params))

    assert out.shape == (N, out_feats, H, W)
    assert jnp.allclose(out, ref, atol=1e-2, rtol=1e-2), "mismatch vs reference"

    print("KERNEL_OK")
</pallas_src>

<mosaic_0001>
module attributes {stable_mosaic.version = 11 : i64} {
  func.func @kernel(%arg0: i32, %arg1: memref<1x24x192xf32, #tpu.memory_space<vmem>>, %arg2: memref<9x192x1024xf32, #tpu.memory_space<vmem>>, %arg3: memref<1x1024xf32, #tpu.memory_space<vmem>>, %arg4: memref<1x1024xf32, #tpu.memory_space<vmem>>, %arg5: memref<1x1xf32, #tpu.memory_space<smem>>, %arg6: memref<1x16x256xf32, #tpu.memory_space<vmem>>) attributes {dimension_semantics = [#tpu.dimension_semantics<parallel>], iteration_bounds = array<i64: 2>, scalar_prefetch = 0 : i64, scratch_operands = 0 : i64, tpu.core_type = #tpu.core_type<tc>, window_params = [{transform_indices = @transform_0, window_bounds = array<i64: 1, 24, 192>}, {pipeline_mode = #tpu.pipeline_mode<synchronous>, transform_indices = @transform_1, window_bounds = array<i64: 9, 192, 1024>}, {pipeline_mode = #tpu.pipeline_mode<synchronous>, transform_indices = @transform_2, window_bounds = array<i64: 1, 1024>}, {pipeline_mode = #tpu.pipeline_mode<synchronous>, transform_indices = @transform_3, window_bounds = array<i64: 1, 1024>}, {transform_indices = @transform_4, window_bounds = array<i64: 1, 1>}, {transform_indices = @transform_5, window_bounds = array<i64: 1, 16, 256>}]} {
    %c0 = arith.constant 0 : index
    %c0_0 = arith.constant 0 : index
    %c0_1 = arith.constant 0 : index
    %0 = vector.load %arg1[%c0, %c0_0, %c0_1] : memref<1x24x192xf32, #tpu.memory_space<vmem>>, vector<1x24x192xf32>
    %1 = vector.shape_cast %0 : vector<1x24x192xf32> to vector<24x192xf32>
    %c0_2 = arith.constant 0 : index
    %c0_3 = arith.constant 0 : index
    %2 = vector.load %arg3[%c0_2, %c0_3] : memref<1x1024xf32, #tpu.memory_space<vmem>>, vector<1x1024xf32>
    %3 = vector.shape_cast %2 : vector<1x1024xf32> to vector<1x1024xf32>
    %4 = vector.broadcast %3 : vector<1x1024xf32> to vector<16x1024xf32>
    %5 = vector.extract_strided_slice %1 {offsets = [0, 0], sizes = [16, 192], strides = [1, 1]} : vector<24x192xf32> to vector<16x192xf32>
    %c0_4 = arith.constant 0 : index
    %c0_5 = arith.constant 0 : index
    %c0_6 = arith.constant 0 : index
    %6 = vector.load %arg2[%c0_4, %c0_5, %c0_6] : memref<9x192x1024xf32, #tpu.memory_space<vmem>>, vector<1x192x1024xf32>
    %7 = vector.shape_cast %6 : vector<1x192x1024xf32> to vector<192x1024xf32>
    %cst = arith.constant dense<0.000000e+00> : vector<16x1024xf32>
    %8 = tpu.matmul %5, %7, %cst {dimension_numbers = #tpu.dot_dimension_numbers<[1], [0], [0], [1], [0, 0, 1, 1], [], []>} : vector<16x192xf32>, vector<192x1024xf32>, vector<16x1024xf32> -> vector<16x1024xf32>
    %9 = arith.addf %4, %8 : vector<16x1024xf32>
    %10 = vector.extract_strided_slice %1 {offsets = [1, 0], sizes = [16, 192], strides = [1, 1]} : vector<24x192xf32> to vector<16x192xf32>
    %c1 = arith.constant 1 : index
    %c0_7 = arith.constant 0 : index
    %c0_8 = arith.constant 0 : index
    %11 = vector.load %arg2[%c1, %c0_7, %c0_8] : memref<9x192x1024xf32, #tpu.memory_space<vmem>>, vector<1x192x1024xf32>
    %12 = vector.shape_cast %11 : vector<1x192x1024xf32> to vector<192x1024xf32>
    %cst_9 = arith.constant dense<0.000000e+00> : vector<16x1024xf32>
    %13 = tpu.matmul %10, %12, %cst_9 {dimension_numbers = #tpu.dot_dimension_numbers<[1], [0], [0], [1], [0, 0, 1, 1], [], []>} : vector<16x192xf32>, vector<192x1024xf32>, vector<16x1024xf32> -> vector<16x1024xf32>
    %14 = arith.addf %9, %13 : vector<16x1024xf32>
    %15 = vector.extract_strided_slice %1 {offsets = [2, 0], sizes = [16, 192], strides = [1, 1]} : vector<24x192xf32> to vector<16x192xf32>
    %c2 = arith.constant 2 : index
    %c0_10 = arith.constant 0 : index
    %c0_11 = arith.constant 0 : index
    %16 = vector.load %arg2[%c2, %c0_10, %c0_11] : memref<9x192x1024xf32, #tpu.memory_space<vmem>>, vector<1x192x1024xf32>
    %17 = vector.shape_cast %16 : vector<1x192x1024xf32> to vector<192x1024xf32>
    %cst_12 = arith.constant dense<0.000000e+00> : vector<16x1024xf32>
    %18 = tpu.matmul %15, %17, %cst_12 {dimension_numbers = #tpu.dot_dimension_numbers<[1], [0], [0], [1], [0, 0, 1, 1], [], []>} : vector<16x192xf32>, vector<192x1024xf32>, vector<16x1024xf32> -> vector<16x1024xf32>
    %19 = arith.addf %14, %18 : vector<16x1024xf32>
    %20 = vector.extract_strided_slice %1 {offsets = [3, 0], sizes = [16, 192], strides = [1, 1]} : vector<24x192xf32> to vector<16x192xf32>
    %c3 = arith.constant 3 : index
    %c0_13 = arith.constant 0 : index
    %c0_14 = arith.constant 0 : index
    %21 = vector.load %arg2[%c3, %c0_13, %c0_14] : memref<9x192x1024xf32, #tpu.memory_space<vmem>>, vector<1x192x1024xf32>
    %22 = vector.shape_cast %21 : vector<1x192x1024xf32> to vector<192x1024xf32>
    %cst_15 = arith.constant dense<0.000000e+00> : vector<16x1024xf32>
    %23 = tpu.matmul %20, %22, %cst_15 {dimension_numbers = #tpu.dot_dimension_numbers<[1], [0], [0], [1], [0, 0, 1, 1], [], []>} : vector<16x192xf32>, vector<192x1024xf32>, vector<16x1024xf32> -> vector<16x1024xf32>
    %24 = arith.addf %19, %23 : vector<16x1024xf32>
    %25 = vector.extract_strided_slice %1 {offsets = [4, 0], sizes = [16, 192], strides = [1, 1]} : vector<24x192xf32> to vector<16x192xf32>
    %c4 = arith.constant 4 : index
    %c0_16 = arith.constant 0 : index
    %c0_17 = arith.constant 0 : index
    %26 = vector.load %arg2[%c4, %c0_16, %c0_17] : memref<9x192x1024xf32, #tpu.memory_space<vmem>>, vector<1x192x1024xf32>
    %27 = vector.shape_cast %26 : vector<1x192x1024xf32> to vector<192x1024xf32>
    %cst_18 = arith.constant dense<0.000000e+00> : vector<16x1024xf32>
    %28 = tpu.matmul %25, %27, %cst_18 {dimension_numbers = #tpu.dot_dimension_numbers<[1], [0], [0], [1], [0, 0, 1, 1], [], []>} : vector<16x192xf32>, vector<192x1024xf32>, vector<16x1024xf32> -> vector<16x1024xf32>
    %29 = arith.addf %24, %28 : vector<16x1024xf32>
    %30 = vector.extract_strided_slice %1 {offsets = [5, 0], sizes = [16, 192], strides = [1, 1]} : vector<24x192xf32> to vector<16x192xf32>
    %c5 = arith.constant 5 : index
    %c0_19 = arith.constant 0 : index
    %c0_20 = arith.constant 0 : index
    %31 = vector.load %arg2[%c5, %c0_19, %c0_20] : memref<9x192x1024xf32, #tpu.memory_space<vmem>>, vector<1x192x1024xf32>
    %32 = vector.shape_cast %31 : vector<1x192x1024xf32> to vector<192x1024xf32>
    %cst_21 = arith.constant dense<0.000000e+00> : vector<16x1024xf32>
    %33 = tpu.matmul %30, %32, %cst_21 {dimension_numbers = #tpu.dot_dimension_numbers<[1], [0], [0], [1], [0, 0, 1, 1], [], []>} : vector<16x192xf32>, vector<192x1024xf32>, vector<16x1024xf32> -> vector<16x1024xf32>
    %34 = arith.addf %29, %33 : vector<16x1024xf32>
    %35 = vector.extract_strided_slice %1 {offsets = [6, 0], sizes = [16, 192], strides = [1, 1]} : vector<24x192xf32> to vector<16x192xf32>
    %c6 = arith.constant 6 : index
    %c0_22 = arith.constant 0 : index
    %c0_23 = arith.constant 0 : index
    %36 = vector.load %arg2[%c6, %c0_22, %c0_23] : memref<9x192x1024xf32, #tpu.memory_space<vmem>>, vector<1x192x1024xf32>
    %37 = vector.shape_cast %36 : vector<1x192x1024xf32> to vector<192x1024xf32>
    %cst_24 = arith.constant dense<0.000000e+00> : vector<16x1024xf32>
    %38 = tpu.matmul %35, %37, %cst_24 {dimension_numbers = #tpu.dot_dimension_numbers<[1], [0], [0], [1], [0, 0, 1, 1], [], []>} : vector<16x192xf32>, vector<192x1024xf32>, vector<16x1024xf32> -> vector<16x1024xf32>
    %39 = arith.addf %34, %38 : vector<16x1024xf32>
    %40 = vector.extract_strided_slice %1 {offsets = [7, 0], sizes = [16, 192], strides = [1, 1]} : vector<24x192xf32> to vector<16x192xf32>
    %c7 = arith.constant 7 : index
    %c0_25 = arith.constant 0 : index
    %c0_26 = arith.constant 0 : index
    %41 = vector.load %arg2[%c7, %c0_25, %c0_26] : memref<9x192x1024xf32, #tpu.memory_space<vmem>>, vector<1x192x1024xf32>
    %42 = vector.shape_cast %41 : vector<1x192x1024xf32> to vector<192x1024xf32>
    %cst_27 = arith.constant dense<0.000000e+00> : vector<16x1024xf32>
    %43 = tpu.matmul %40, %42, %cst_27 {dimension_numbers = #tpu.dot_dimension_numbers<[1], [0], [0], [1], [0, 0, 1, 1], [], []>} : vector<16x192xf32>, vector<192x1024xf32>, vector<16x1024xf32> -> vector<16x1024xf32>
    %44 = arith.addf %39, %43 : vector<16x1024xf32>
    %45 = vector.extract_strided_slice %1 {offsets = [8, 0], sizes = [16, 192], strides = [1, 1]} : vector<24x192xf32> to vector<16x192xf32>
    %c8 = arith.constant 8 : index
    %c0_28 = arith.constant 0 : index
    %c0_29 = arith.constant 0 : index
    %46 = vector.load %arg2[%c8, %c0_28, %c0_29] : memref<9x192x1024xf32, #tpu.memory_space<vmem>>, vector<1x192x1024xf32>
    %47 = vector.shape_cast %46 : vector<1x192x1024xf32> to vector<192x1024xf32>
    %cst_30 = arith.constant dense<0.000000e+00> : vector<16x1024xf32>
    %48 = tpu.matmul %45, %47, %cst_30 {dimension_numbers = #tpu.dot_dimension_numbers<[1], [0], [0], [1], [0, 0, 1, 1], [], []>} : vector<16x192xf32>, vector<192x1024xf32>, vector<16x1024xf32> -> vector<16x1024xf32>
    %49 = arith.addf %44, %48 : vector<16x1024xf32>
    %c0_31 = arith.constant 0 : index
    %c0_32 = arith.constant 0 : index
    %50 = vector.load %arg4[%c0_31, %c0_32] : memref<1x1024xf32, #tpu.memory_space<vmem>>, vector<1x1024xf32>
    %51 = vector.broadcast %50 : vector<1x1024xf32> to vector<16x1024xf32>
    %52 = arith.mulf %49, %51 : vector<16x1024xf32>
    %c0_33 = arith.constant 0 : index
    %c0_34 = arith.constant 0 : index
    %53 = memref.load %arg5[%c0_33, %c0_34] : memref<1x1xf32, #tpu.memory_space<smem>>
    %cst_35 = arith.constant 0.000000e+00 : f32
    %54 = vector.broadcast %cst_35 : f32 to vector<16x1024xf32>
    %55 = arith.cmpf oge, %52, %54 : vector<16x1024xf32>
    %56 = vector.broadcast %53 : f32 to vector<16x1024xf32>
    %57 = arith.mulf %56, %52 : vector<16x1024xf32>
    %58 = arith.select %55, %52, %57 : vector<16x1024xi1>, vector<16x1024xf32>
    %59 = vector.extract_strided_slice %58 {offsets = [0, 0], sizes = [16, 256], strides = [1, 1]} : vector<16x1024xf32> to vector<16x256xf32>
    %60 = vector.extract_strided_slice %58 {offsets = [0, 256], sizes = [16, 256], strides = [1, 1]} : vector<16x1024xf32> to vector<16x256xf32>
    %61 = arith.addf %59, %60 : vector<16x256xf32>
    %62 = vector.extract_strided_slice %58 {offsets = [0, 512], sizes = [16, 256], strides = [1, 1]} : vector<16x1024xf32> to vector<16x256xf32>
    %63 = arith.addf %61, %62 : vector<16x256xf32>
    %64 = vector.extract_strided_slice %58 {offsets = [0, 768], sizes = [16, 256], strides = [1, 1]} : vector<16x1024xf32> to vector<16x256xf32>
    %65 = arith.addf %63, %64 : vector<16x256xf32>
    %66 = vector.shape_cast %65 : vector<16x256xf32> to vector<1x16x256xf32>
    %c0_36 = arith.constant 0 : index
    %c0_37 = arith.constant 0 : index
    %c0_38 = arith.constant 0 : index
    %67 = vector.load %arg6[%c0_36, %c0_37, %c0_38] : memref<1x16x256xf32, #tpu.memory_space<vmem>>, vector<1x16x256xf32>
    tpu.vector_store %arg6[%c0_36, %c0_37, %c0_38], %66 {strides = array<i32>} : memref<1x16x256xf32, #tpu.memory_space<vmem>>, vector<1x16x256xf32>,
    return
  }
  func.func @transform_0(%arg0: i32) -> (i32, i32, i32) {
    %c0_i32 = arith.constant 0 : i32
    %c0_i32_0 = arith.constant 0 : i32
    %c0_i32_1 = arith.constant 0 : i32
    return %arg0, %c0_i32, %c0_i32_0 : i32, i32, i32
  }
  func.func @transform_1(%arg0: i32) -> (i32, i32, i32) {
    %c0_i32 = arith.constant 0 : i32
    %c0_i32_0 = arith.constant 0 : i32
    %c0_i32_1 = arith.constant 0 : i32
    %c0_i32_2 = arith.constant 0 : i32
    return %c0_i32, %c0_i32_0, %c0_i32_1 : i32, i32, i32
  }
  func.func @transform_2(%arg0: i32) -> (i32, i32) {
    %c0_i32 = arith.constant 0 : i32
    %c0_i32_0 = arith.constant 0 : i32
    %c0_i32_1 = arith.constant 0 : i32
    return %c0_i32, %c0_i32_0 : i32, i32
  }
  func.func @transform_3(%arg0: i32) -> (i32, i32) {
    %c0_i32 = arith.constant 0 : i32
    %c0_i32_0 = arith.constant 0 : i32
    %c0_i32_1 = arith.constant 0 : i32
    return %c0_i32, %c0_i32_0 : i32, i32
  }
  func.func @transform_4(%arg0: i32) -> (i32, i32) {
    %c0_i32 = arith.constant 0 : i32
    %c0_i32_0 = arith.constant 0 : i32
    %c0_i32_1 = arith.constant 0 : i32
    return %c0_i32, %c0_i32_0 : i32, i32
  }
  func.func @transform_5(%arg0: i32) -> (i32, i32, i32) {
    %c0_i32 = arith.constant 0 : i32
    %c0_i32_0 = arith.constant 0 : i32
    %c0_i32_1 = arith.constant 0 : i32
    return %arg0, %c0_i32, %c0_i32_0 : i32, i32, i32
  }
}

</mosaic_0001>

<bundles_post_ra>
// kernel: tile.23
= control target key start
LH: loop header
LB: loop body
LE: loop exit
PB: predicated region body
PF: predicated region fallthrough
CT: control target
= control target key end

     0   :  { %s28_s0 = inlined_call_operand.vmem [shape: f32[16], index: 0, kind: input, shape index: {}]   ;;  %s29_s1 = inlined_call_operand.vmem [shape: f32[16,16], index: 1, kind: output, shape index: {}]  }
   0x1   :  { %v4_v0 = vld [vmem:[%s28_s0] ss:$0 sm:$0xff] }
   0x2   :  { %5 = vst [vmem:[%s29_s1] sm:$0xff] %v4_v0  ;;  %8 = vst [vmem:[%s29_s1 + $0x8] sm:$0xff] %v4_v0 }

// kernel: tile.24
= control target key start
LH: loop header
LB: loop body
LE: loop exit
PB: predicated region body
PF: predicated region fallthrough
CT: control target
= control target key end

     0   :  { %s7_s6 = smov 3  ;;  %s21_s9 = smov 3  ;;  %vm4_vm0 = vcmask 130048   ;;  %vm11_vm1 = vcmask 1048448   ;;  %vm18_vm2 = vcmask 917248   ;;  %vm25_vm3 = vcmask 786048   ;;  %s119_s0 = inlined_call_operand.vmem [shape: f32[16,16], index: 0, kind: input, shape index: {}]   ;;  %s120_s1 = inlined_call_operand.vmem [shape: f32[256], index: 1, kind: output, shape index: {}]  }
   0x1   :  { %v61_v0 = vld [vmem:[%s119_s0 + $0x7] ss:$8 sm:%s7_s6]   ;;  %s75_s10 = smov 112   ;;  %v63_v1 = vld [vmem:[%s119_s0 + $0x5] ss:$8 sm:%s21_s9]   ;;  %s14_s13 = smov 3 }
   0x2   :  { %9 = vrot.lane.b32.xlu0 %v61_v0, %s75_s10  ;;  %s76_s14 = smov 80   ;;  %v62_v2 = vld [vmem:[%s119_s0 + $0x6] ss:$8 sm:%s14_s13]   ;;  %s28_s17 = smov 3  ;;  %vm32_vm4 = vcmask 654848   ;;  %vm39_vm5 = vcmask 523648  }
   0x3   :  { %23 = vrot.lane.b32.xlu1 %v63_v1, %s76_s14  ;;  %v64_v3 = vld [vmem:[%s119_s0 + $0x4] ss:$8 sm:%s28_s17]   ;;  %s35_s20 = smov 3  ;;  %s42_s21 = smov 3  ;;  %vm46_vm6 = vcmask 392448   ;;  %vm53_vm7 = vcmask 261248  }
   0x4   :  { %s77_s22 = smov 96   ;;  %s78_s23 = smov 64   ;;  %v65_v4 = vld [vmem:[%s119_s0 + $0x3] ss:$8 sm:%s35_s20]   ;;  %v66_v5 = vld [vmem:[%s119_s0 + $0x2] ss:$8 sm:%s42_s21]  }
   0x5   :  { %s2_s26 = smov 3  ;;  %s49_s29 = smov 3 }
   0x6   :  { %16 = vrot.lane.b32.xlu0 %v62_v2, %s77_s22  ;;  %v3_v6 = vld [vmem:[%s119_s0] ss:$8 sm:%s2_s26]   ;;  %s79_s3 = smov 48   ;;  %s80_s4 = smov 32  }
   0x7   :  { %30 = vrot.lane.b32.xlu1 %v64_v3, %s78_s23  ;;  %5 = vst.msk [vmem:[#allocation0] sm:$0x3] %vm4_vm0, %v3_v6   ;;  %v67_v7 = vld [vmem:[%s119_s0 + $0x1] ss:$8 sm:%s49_s29]   ;;  %s81_s0 = smov 16  }
   0xa   :  { %37 = vrot.lane.b32.xlu0 %v65_v4, %s79_s3 }
   0xb   :  { %44 = vrot.lane.b32.xlu1 %v66_v5, %s80_s4 }
   0xe   :  { %51 = vrot.lane.b32.xlu0 %v67_v7, %s81_s0 }
  0x74   :  { %v10_v8 = vpop.permute.xlu0 %9  }
  0x75   :  { %12 = vst.msk [vmem:[#allocation0] sm:$0x3] %vm11_vm1, %v10_v8   ;;  %v24_v9 = vpop.permute.xlu1 %23  }
  0x78   :  { %v17_v10 = vpop.permute.xlu0 %16  }
  0x79   :  { %19 = vst.msk [vmem:[#allocation0] sm:$0x3] %vm18_vm2, %v17_v10   ;;  %v31_v11 = vpop.permute.xlu1 %30  }
  0x7a   :  { %26 = vst.msk [vmem:[#allocation0] sm:$0x3] %vm25_vm3, %v24_v9  }
  0x7b   :  { %33 = vst.msk [vmem:[#allocation0] sm:$0x3] %vm32_vm4, %v31_v11  }
  0x7c   :  { %v38_v12 = vpop.permute.xlu0 %37  }
  0x7d   :  { %40 = vst.msk [vmem:[#allocation0] sm:$0x3] %vm39_vm5, %v38_v12   ;;  %v45_v13 = vpop.permute.xlu1 %44  }
  0x7e   :  { %47 = vst.msk [vmem:[#allocation0] sm:$0x3] %vm46_vm6, %v45_v13  }
  0x80   :  { %v52_v14 = vpop.permute.xlu0 %51  }
  0x81   :  { %54 = vst.msk [vmem:[#allocation0] sm:$0x3] %vm53_vm7, %v52_v14  }
  0x88   :  { %v58_v15 = vld [vmem:[#allocation0] sm:$0x3] }
  0x89   :  { %60 = vst [vmem:[%s120_s1] sm:$0x3] %v58_v15 }

// kernel: awms_forward.1
= control target key start
LH: loop header
LB: loop body
LE: loop exit
PB: predicated region body
PF: predicated region fallthrough
CT: control target
= control target key end

     0   :  { %s8800_s20 = smov 0   ;;  %s14520_s0 = inlined_call_operand.vmem [shape: f32[2,24,192], index: 0, kind: input, shape index: {}]   ;;  %s14521_s1 = inlined_call_operand.vmem [shape: f32[9,192,1024], index: 1, kind: input, shape index: {}]   ;;  %s14522_s2 = inlined_call_operand.vmem [shape: f32[1,1024], index: 2, kind: input, shape index: {}]   ;;  %s14523_s3 = inlined_call_operand.vmem [shape: f32[1,1024], index: 3, kind: input, shape index: {}]   ;;  %s14524_s4 = inlined_call_operand.<no memory space> [shape: f32[1,1], index: 4, kind: input, shape index: {}]   ;;  %s14525_s5 = inlined_call_operand.vmem [shape: f32[2,16,256], index: 5, kind: output, shape index: {}]  }
   0x1   :  { %10 = sst [smem:[#allocation2]] %s14524_s4 }
   0x2 LB: > { %s5237_s21 = sadd.s32 4294967295, %s8765_s20   ;;  %p5241_p0 = scmp.ge.s32.totalorder %s8765_s20, 1  ;;  %s8765_s20 = sphi %s8800_s20, %s16_s20  }
   0x3   : > { %p188_p1 = scmp.lt.s32.totalorder %s8765_s20, 3 }
   0x5   : > { %p189_p2 = pnand %p5241_p0, %p188_p1 }
   0x6   : > { %v275_v0 = vld [vmem:[%s14521_s1 + $0x8] sm:$0xff] (!%p189_p2)  ;;  %v277_v2 = vld [vmem:[%s14521_s1 + $0x18] sm:$0xff] (!%p189_p2)  ;;  %v274_v5 = vld [vmem:[%s14521_s1] sm:$0xff] (!%p189_p2)  ;;  %p8951_p3 = scmp.lt.s32.totalorder (!%p189_p2), %s5237_s21, 1  ;;  %vm466_vm0 = vcmask (!%p189_p2), 523264   ;;  %vm994_vm1 = vcmask (!%p189_p2), 1046528  }
   0x7   : > { %192 = sbr.rel (%p189_p2) target bundleno = 1107 (0x453), region = 40  ;;  %v283_v1 = vld [vmem:[%s14521_s1 + $0x48] sm:$0xff] (!%p189_p2)  ;;  %v285_v4 = vld [vmem:[%s14521_s1 + $0x58] sm:$0xff] (!%p189_p2)  ;;  %v282_v6 = vld [vmem:[%s14521_s1 + $0x40] sm:$0xff] (!%p189_p2)  ;;  %vm1528_vm2 = vcmask (!%p189_p2), 1045504   ;;  %vm2062_vm3 = vcmask (!%p189_p2), 1044480  }
   0x8   : > { %v6856_v3 = vpack.c.bf16 (!%p189_p2), %v283_v1, %v275_v0  ;;  %v6904_v7 = vpack.c.bf16 (!%p189_p2), %v285_v4, %v277_v2  ;;  %v6858_v8 = vpack.c.bf16 (!%p189_p2), %v282_v6, %v274_v5  ;;  %v276_v9 = vld [vmem:[%s14521_s1 + $0x10] sm:$0xff] (!%p189_p2)  ;;  %v291_v11 = vld [vmem:[%s14521_s1 + $0x88] sm:$0xff] (!%p189_p2)  ;;  %v293_v14 = vld [vmem:[%s14521_s1 + $0x98] sm:$0xff] (!%p189_p2)  ;;  %vm2596_vm4 = vcmask (!%p189_p2), 1043456   ;;  %s5116_s29 = sld [smem:[#allocation2]] (!%p189_p2) }
   0x9   : > { %v284_v10 = vld [vmem:[%s14521_s1 + $0x50] sm:$0xff] (!%p189_p2)  ;;  %v299_v13 = vld [vmem:[%s14521_s1 + $0xc8] sm:$0xff] (!%p189_p2)  ;;  %v301_v15 = vld [vmem:[%s14521_s1 + $0xd8] sm:$0xff] (!%p189_p2)  ;;  %vm3130_vm5 = vcmask (!%p189_p2), 1042432   ;;  %vm3664_vm6 = vcmask (!%p189_p2), 1041408   ;;  %vm4198_vm7 = vcmask (!%p189_p2), 1040384  }
   0xa   : > { %6857 = vmatprep.subr.bf16.mxu0 (!%p189_p2), %v6856_v3  ;;  %v6906_v12 = vpack.c.bf16 (!%p189_p2), %v284_v10, %v276_v9  ;;  %6905 = vmatprep.subr.bf16.mxu1 (!%p189_p2), %v6904_v7  ;;  %v6860_v16 = vpack.c.bf16 (!%p189_p2), %v299_v13, %v291_v11  ;;  %v6908_v17 = vpack.c.bf16 (!%p189_p2), %v301_v15, %v293_v14  ;;  %v290_v18 = vld [vmem:[%s14521_s1 + $0x80] sm:$0xff] (!%p189_p2)  ;;  %v292_v20 = vld [vmem:[%s14521_s1 + $0x90] sm:$0xff] (!%p189_p2)  ;;  %v307_v23 = vld [vmem:[%s14521_s1 + $0x108] sm:$0xff] (!%p189_p2) }
   0xb   : > { %6859 = vmatpush1.bf16.msra.mxu0 (!%p189_p2), %v6858_v8  ;;  %v298_v19 = vld [vmem:[%s14521_s1 + $0xc0] sm:$0xff] (!%p189_p2)  ;;  %v300_v22 = vld [vmem:[%s14521_s1 + $0xd0] sm:$0xff] (!%p189_p2)  ;;  %v315_v24 = vld [vmem:[%s14521_s1 + $0x148] sm:$0xff] (!%p189_p2) }
   0xc   : > { %6907 = vmatpush1.bf16.msra.mxu1 (!%p189_p2), %v6906_v12  ;;  %v6862_v21 = vpack.c.bf16 (!%p189_p2), %v298_v19, %v290_v18  ;;  %6861 = vmatprep.subr.bf16.mxu0 (!%p189_p2), %v6860_v16  ;;  %v6910_v25 = vpack.c.bf16 (!%p189_p2), %v300_v22, %v292_v20  ;;  %v6864_v26 = vpack.c.bf16 (!%p189_p2), %v315_v24, %v307_v23  ;;  %v309_v27 = vld [vmem:[%s14521_s1 + $0x118] sm:$0xff] (!%p189_p2)  ;;  %v306_v29 = vld [vmem:[%s14521_s1 + $0x100] sm:$0xff] (!%p189_p2)  ;;  %v308_v32 = vld [vmem:[%s14521_s1 + $0x110] sm:$0xff] (!%p189_p2) }
   0xd   : > { %6909 = vmatprep.subr.bf16.mxu1 (!%p189_p2), %v6908_v17  ;;  %v317_v28 = vld [vmem:[%s14521_s1 + $0x158] sm:$0xff] (!%p189_p2)  ;;  %v314_v31 = vld [vmem:[%s14521_s1 + $0x140] sm:$0xff] (!%p189_p2)  ;;  %v316_v33 = vld [vmem:[%s14521_s1 + $0x150] sm:$0xff] (!%p189_p2) }
   0xe   : > { %v6912_v30 = vpack.c.bf16 %v317_v28, %v309_v27  ;;  %v6866_v34 = vpack.c.bf16 %v314_v31, %v306_v29  ;;  %v323_v35 = vld [vmem:[%s14521_s1 + $0x188] sm:$0xff]  ;;  %v325_v37 = vld [vmem:[%s14521_s1 + $0x198] sm:$0xff]  ;;  %v6914_v38 = vpack.c.bf16 %v316_v33, %v308_v32  ;;  %v322_v41 = vld [vmem:[%s14521_s1 + $0x180] sm:$0xff]  ;;  %s14528_s21 = smov (!%p8951_p3, %s5237_s21), 1 }
   0xf   : > { %6863 = vmatpush1.bf16.msra.mxu0 %v6862_v21  ;;  %v331_v36 = vld [vmem:[%s14521_s1 + $0x1c8] sm:$0xff]  ;;  %v333_v40 = vld [vmem:[%s14521_s1 + $0x1d8] sm:$0xff]  ;;  %v330_v42 = vld [vmem:[%s14521_s1 + $0x1c0] sm:$0xff]  ;;  %s8728_s28 = smul.u32 48, %s14528_s21  ;;  %s6855_s6 = sshll.u32 %s14528_s21, 5 }
  0x10   : > { %6911 = vmatpush1.bf16.msra.mxu1 %v6910_v25  ;;  %6865 = vmatprep.subr.bf16.mxu0 %v6864_v26  ;;  %v6868_v39 = vpack.c.bf16 %v331_v36, %v323_v35  ;;  %v6916_v43 = vpack.c.bf16 %v333_v40, %v325_v37  ;;  %v324_v44 = vld [vmem:[%s14521_s1 + $0x190] sm:$0xff]  ;;  %v339_v46 = vld [vmem:[%s14521_s1 + $0x208] sm:$0xff]  ;;  %v341_v48 = vld [vmem:[%s14521_s1 + $0x218] sm:$0xff]  ;;  %v6870_v50 = vpack.c.bf16 %v330_v42, %v322_v41  ;;  %s225_s21 = scalar_lea.vmem %s14525_s5, %s6855_s6 }
  0x11   : > { %6913 = vmatprep.subr.bf16.mxu1 %v6912_v30  ;;  %v332_v45 = vld [vmem:[%s14521_s1 + $0x1d0] sm:$0xff]  ;;  %v347_v47 = vld [vmem:[%s14521_s1 + $0x248] sm:$0xff]  ;;  %v349_v49 = vld [vmem:[%s14521_s1 + $0x258] sm:$0xff]  ;;  %s9037_s4 = scalar_lea.vmem %s14520_s0, %s8728_s28 }
  0x12   : > { %v6918_v51 = vpack.c.bf16 %v332_v45, %v324_v44  ;;  %v6872_v52 = vpack.c.bf16 %v347_v47, %v339_v46  ;;  %v338_v53 = vld [vmem:[%s14521_s1 + $0x200] sm:$0xff]  ;;  %v340_v55 = vld [vmem:[%s14521_s1 + $0x210] sm:$0xff]  ;;  %v6920_v56 = vpack.c.bf16 %v349_v49, %v341_v48  ;;  %v355_v58 = vld [vmem:[%s14521_s1 + $0x288] sm:$0xff] }
  0x13   : > { %6867 = vmatpush1.bf16.msra.mxu0 %v6866_v34  ;;  %v346_v54 = vld [vmem:[%s14521_s1 + $0x240] sm:$0xff]  ;;  %v348_v57 = vld [vmem:[%s14521_s1 + $0x250] sm:$0xff]  ;;  %v363_v59 = vld [vmem:[%s14521_s1 + $0x2c8] sm:$0xff] }
  0x14   : > { %6915 = vmatpush1.bf16.msra.mxu1 %v6914_v38  ;;  %6869 = vmatprep.subr.bf16.mxu0 %v6868_v39  ;;  %v357_v60 = vld [vmem:[%s14521_s1 + $0x298] sm:$0xff]  ;;  %v6874_v62 = vpack.c.bf16 %v346_v54, %v338_v53  ;;  %v6922_v63 = vpack.c.bf16 %v348_v57, %v340_v55  ;;  %v6876_v0 = vpack.c.bf16 %v363_v59, %v355_v58  ;;  %v354_v1 = vld [vmem:[%s14521_s1 + $0x280] sm:$0xff]  ;;  %v356_v3 = vld [vmem:[%s14521_s1 + $0x290] sm:$0xff] }
  0x15   : > { %6917 = vmatprep.subr.bf16.mxu1 %v6916_v43  ;;  %v365_v61 = vld [vmem:[%s14521_s1 + $0x2d8] sm:$0xff]  ;;  %v362_v2 = vld [vmem:[%s14521_s1 + $0x2c0] sm:$0xff]  ;;  %v364_v5 = vld [vmem:[%s14521_s1 + $0x2d0] sm:$0xff] }
  0x16   : > { %v6924_v4 = vpack.c.bf16 %v365_v61, %v357_v60  ;;  %v371_v6 = vld [vmem:[%s14521_s1 + $0x308] sm:$0xff]  ;;  %v373_v8 = vld [vmem:[%s14521_s1 + $0x318] sm:$0xff]  ;;  %v6878_v10 = vpack.c.bf16 %v362_v2, %v354_v1  ;;  %v6926_v11 = vpack.c.bf16 %v364_v5, %v356_v3  ;;  %v370_v13 = vld [vmem:[%s14521_s1 + $0x300] sm:$0xff] }
  0x17   : > { %6871 = vmatpush1.bf16.msra.mxu0 %v6870_v50  ;;  %v379_v7 = vld [vmem:[%s14521_s1 + $0x348] sm:$0xff]  ;;  %v381_v9 = vld [vmem:[%s14521_s1 + $0x358] sm:$0xff]  ;;  %v378_v14 = vld [vmem:[%s14521_s1 + $0x340] sm:$0xff] }
  0x18   : > { %6919 = vmatpush1.bf16.msra.mxu1 %v6918_v51  ;;  %6873 = vmatprep.subr.bf16.mxu0 %v6872_v52  ;;  %v6880_v12 = vpack.c.bf16 %v379_v7, %v371_v6  ;;  %v372_v15 = vld [vmem:[%s14521_s1 + $0x310] sm:$0xff]  ;;  %v6928_v16 = vpack.c.bf16 %v381_v9, %v373_v8  ;;  %v387_v18 = vld [vmem:[%s14521_s1 + $0x388] sm:$0xff]  ;;  %v389_v20 = vld [vmem:[%s14521_s1 + $0x398] sm:$0xff]  ;;  %v6882_v22 = vpack.c.bf16 %v378_v14, %v370_v13 }
  0x19   : > { %6921 = vmatprep.subr.bf16.mxu1 %v6920_v56  ;;  %v380_v17 = vld [vmem:[%s14521_s1 + $0x350] sm:$0xff]  ;;  %v395_v19 = vld [vmem:[%s14521_s1 + $0x3c8] sm:$0xff]  ;;  %v397_v21 = vld [vmem:[%s14521_s1 + $0x3d8] sm:$0xff] }
  0x1a   : > { %v6930_v23 = vpack.c.bf16 %v380_v17, %v372_v15  ;;  %v6884_v24 = vpack.c.bf16 %v395_v19, %v387_v18  ;;  %v386_v25 = vld [vmem:[%s14521_s1 + $0x380] sm:$0xff]  ;;  %v388_v27 = vld [vmem:[%s14521_s1 + $0x390] sm:$0xff]  ;;  %v6932_v28 = vpack.c.bf16 %v397_v21, %v389_v20  ;;  %v403_v30 = vld [vmem:[%s14521_s1 + $0x408] sm:$0xff] }
  0x1b   : > { %6875 = vmatpush1.bf16.msra.mxu0 %v6874_v62  ;;  %v394_v26 = vld [vmem:[%s14521_s1 + $0x3c0] sm:$0xff]  ;;  %v396_v29 = vld [vmem:[%s14521_s1 + $0x3d0] sm:$0xff]  ;;  %v411_v31 = vld [vmem:[%s14521_s1 + $0x448] sm:$0xff] }
  0x1c   : > { %6923 = vmatpush1.bf16.msra.mxu1 %v6922_v63  ;;  %6877 = vmatprep.subr.bf16.mxu0 %v6876_v0  ;;  %v405_v32 = vld [vmem:[%s14521_s1 + $0x418] sm:$0xff]  ;;  %v6886_v34 = vpack.c.bf16 %v394_v26, %v386_v25  ;;  %v6934_v35 = vpack.c.bf16 %v396_v29, %v388_v27  ;;  %v6888_v36 = vpack.c.bf16 %v411_v31, %v403_v30  ;;  %v402_v37 = vld [vmem:[%s14521_s1 + $0x400] sm:$0xff]  ;;  %v404_v39 = vld [vmem:[%s14521_s1 + $0x410] sm:$0xff] }
  0x1d   : > { %6925 = vmatprep.subr.bf16.mxu1 %v6924_v4  ;;  %v413_v33 = vld [vmem:[%s14521_s1 + $0x458] sm:$0xff]  ;;  %v410_v38 = vld [vmem:[%s14521_s1 + $0x440] sm:$0xff]  ;;  %v412_v41 = vld [vmem:[%s14521_s1 + $0x450] sm:$0xff] }
  0x1e   : > { %v6936_v40 = vpack.c.bf16 %v413_v33, %v405_v32  ;;  %v419_v42 = vld [vmem:[%s14521_s1 + $0x488] sm:$0xff]  ;;  %v421_v44 = vld [vmem:[%s14521_s1 + $0x498] sm:$0xff]  ;;  %v6890_v46 = vpack.c.bf16 %v410_v38, %v402_v37  ;;  %v6938_v48 = vpack.c.bf16 %v412_v41, %v404_v39  ;;  %v418_v50 = vld [vmem:[%s14521_s1 + $0x480] sm:$0xff] }
  0x1f   : > { %6879 = vmatpush1.bf16.msra.mxu0 %v6878_v10  ;;  %v427_v43 = vld [vmem:[%s14521_s1 + $0x4c8] sm:$0xff]  ;;  %v429_v45 = vld [vmem:[%s14521_s1 + $0x4d8] sm:$0xff]  ;;  %v426_v51 = vld [vmem:[%s14521_s1 + $0x4c0] sm:$0xff] }
  0x20   : > { %6927 = vmatpush1.bf16.msra.mxu1 %v6926_v11  ;;  %6881 = vmatprep.subr.bf16.mxu0 %v6880_v12  ;;  %v9055_v47 = vld [vmem:[%s9037_s4 + $0x8] sm:$0xff]  ;;  %v6892_v49 = vpack.c.bf16 %v427_v43, %v419_v42  ;;  %v420_v52 = vld [vmem:[%s14521_s1 + $0x490] sm:$0xff]  ;;  %v6940_v53 = vpack.c.bf16 %v429_v45, %v421_v44  ;;  %v437_v57 = vld [vmem:[%s14521_s1 + $0x518] sm:$0xff]  ;;  %v6894_v59 = vpack.c.bf16 %v426_v51, %v418_v50 }
  0x21   : > { %6929 = vmatprep.subr.bf16.mxu1 %v6928_v16  ;;  %v428_v54 = vld [vmem:[%s14521_s1 + $0x4d0] sm:$0xff]  ;;  %v435_v55 = vld [vmem:[%s14521_s1 + $0x508] sm:$0xff]  ;;  %5245 = vmatprep.mubr.msk.f32.mxu0 %vm466_vm0, %v9055_v47  ;;  %v445_v58 = vld [vmem:[%s14521_s1 + $0x558] sm:$0xff] }
  0x22   : > { %v443_v56 = vld [vmem:[%s14521_s1 + $0x548] sm:$0xff]  ;;  %5247 = vmatprep.mubr.msk.f32.mxu1 %vm466_vm0, %v9055_v47  ;;  %v6942_v60 = vpack.c.bf16 %v428_v54, %v420_v52  ;;  %v434_v62 = vld [vmem:[%s14521_s1 + $0x500] sm:$0xff]  ;;  %v436_v0 = vld [vmem:[%s14521_s1 + $0x510] sm:$0xff]  ;;  %v6944_v1 = vpack.c.bf16 %v445_v58, %v437_v57 }
  0x23   : > { %6883 = vmatpush1.bf16.msra.mxu0 %v6882_v22  ;;  %v6896_v61 = vpack.c.bf16 %v443_v56, %v435_v55  ;;  %v442_v63 = vld [vmem:[%s14521_s1 + $0x540] sm:$0xff]  ;;  %v444_v2 = vld [vmem:[%s14521_s1 + $0x550] sm:$0xff]  ;;  %v451_v3 = vld [vmem:[%s14521_s1 + $0x588] sm:$0xff] }
  0x24   : > { %6931 = vmatpush1.bf16.msra.mxu1 %v6930_v23  ;;  %6885 = vmatprep.subr.bf16.mxu0 %v6884_v24  ;;  %v459_v4 = vld [vmem:[%s14521_s1 + $0x5c8] sm:$0xff]  ;;  %v453_v5 = vld [vmem:[%s14521_s1 + $0x598] sm:$0xff]  ;;  %v6898_v7 = vpack.c.bf16 %v442_v63, %v434_v62  ;;  %v6946_v8 = vpack.c.bf16 %v444_v2, %v436_v0  ;;  %v450_v10 = vld [vmem:[%s14521_s1 + $0x580] sm:$0xff] }
  0x25   : > { %6933 = vmatprep.subr.bf16.mxu1 %v6932_v28  ;;  %v461_v6 = vld [vmem:[%s14521_s1 + $0x5d8] sm:$0xff]  ;;  %v6900_v9 = vpack.c.bf16 %v459_v4, %v451_v3  ;;  %v458_v11 = vld [vmem:[%s14521_s1 + $0x5c0] sm:$0xff]  ;;  %v452_v12 = vld [vmem:[%s14521_s1 + $0x590] sm:$0xff] }
  0x26   : > { %v6948_v13 = vpack.c.bf16 %v461_v6, %v453_v5  ;;  %v460_v14 = vld [vmem:[%s14521_s1 + $0x5d0] sm:$0xff]  ;;  %v279_v15 = vld [vmem:[%s14521_s1 + $0x28] sm:$0xff]  ;;  %v281_v17 = vld [vmem:[%s14521_s1 + $0x38] sm:$0xff]  ;;  %v6902_v19 = vpack.c.bf16 %v458_v11, %v450_v10 }
  0x27   : > { %6887 = vmatpush1.bf16.msra.mxu0 %v6886_v34  ;;  %v287_v16 = vld [vmem:[%s14521_s1 + $0x68] sm:$0xff]  ;;  %v289_v18 = vld [vmem:[%s14521_s1 + $0x78] sm:$0xff]  ;;  %v6950_v20 = vpack.c.bf16 %v460_v14, %v452_v12  ;;  %v278_v22 = vld [vmem:[%s14521_s1 + $0x20] sm:$0xff] }
  0x28   : > { %6935 = vmatpush1.bf16.msra.mxu1 %v6934_v35  ;;  %6889 = vmatprep.subr.bf16.mxu0 %v6888_v36  ;;  %v6952_v21 = vpack.c.bf16 %v287_v16, %v279_v15  ;;  %v286_v23 = vld [vmem:[%s14521_s1 + $0x60] sm:$0xff]  ;;  %v280_v24 = vld [vmem:[%s14521_s1 + $0x30] sm:$0xff]  ;;  %v7000_v25 = vpack.c.bf16 %v289_v18, %v281_v17  ;;  %v295_v27 = vld [vmem:[%s14521_s1 + $0xa8] sm:$0xff] }
  0x29   : > { %6937 = vmatprep.subr.bf16.mxu1 %v6936_v40  ;;  %v288_v26 = vld [vmem:[%s14521_s1 + $0x70] sm:$0xff]  ;;  %v303_v28 = vld [vmem:[%s14521_s1 + $0xe8] sm:$0xff]  ;;  %v297_v29 = vld [vmem:[%s14521_s1 + $0xb8] sm:$0xff]  ;;  %v6954_v32 = vpack.c.bf16 %v286_v23, %v278_v22 }
  0x2a   : > { %v305_v30 = vld [vmem:[%s14521_s1 + $0xf8] sm:$0xff]  ;;  %v9158_v31 = vld [vmem:[%s9037_s4] sm:$0xff]  ;;  %v7002_v33 = vpack.c.bf16 %v288_v26, %v280_v24  ;;  %v6956_v34 = vpack.c.bf16 %v303_v28, %v295_v27  ;;  %v296_v37 = vld [vmem:[%s14521_s1 + $0xb0] sm:$0xff] }
  0x2b   : > { %6891 = vmatpush1.bf16.msra.mxu0 %v6890_v46  ;;  %v294_v35 = vld [vmem:[%s14521_s1 + $0xa0] sm:$0xff]  ;;  %v7004_v38 = vpack.c.bf16 %v305_v30, %v297_v29  ;;  %v304_v39 = vld [vmem:[%s14521_s1 + $0xf0] sm:$0xff]  ;;  %v311_v40 = vld [vmem:[%s14521_s1 + $0x128] sm:$0xff] }
  0x2c   : > { %6939 = vmatpush1.bf16.msra.mxu1 %v6938_v48  ;;  %6893 = vmatprep.subr.bf16.mxu0 %v6892_v49  ;;  %v302_v36 = vld [vmem:[%s14521_s1 + $0xe0] sm:$0xff]  ;;  %v319_v41 = vld [vmem:[%s14521_s1 + $0x168] sm:$0xff]  ;;  %v9179_v42 = vld [vmem:[%s9037_s4 + $0x18] sm:$0xff]  ;;  %v7006_v48 = vpack.c.bf16 %v304_v39, %v296_v37 }
  0x2d   : > { %6941 = vmatprep.subr.bf16.mxu1 %v6940_v53  ;;  %v313_v43 = vld [vmem:[%s14521_s1 + $0x138] sm:$0xff]  ;;  %v9189_v45 = vld [vmem:[%s9037_s4 + $0x10] sm:$0xff]  ;;  %v6958_v46 = vpack.c.bf16 %v302_v36, %v294_v35  ;;  %v6960_v49 = vpack.c.bf16 %v319_v41, %v311_v40  ;;  %v310_v50 = vld [vmem:[%s14521_s1 + $0x120] sm:$0xff] }
  0x2e   : > { %v321_v44 = vld [vmem:[%s14521_s1 + $0x178] sm:$0xff]  ;;  %v318_v51 = vld [vmem:[%s14521_s1 + $0x160] sm:$0xff]  ;;  %v312_v52 = vld [vmem:[%s14521_s1 + $0x130] sm:$0xff] }
  0x2f   : > { %6895 = vmatpush1.bf16.msra.mxu0 %v6894_v59  ;;  %v7008_v53 = vpack.c.bf16 %v321_v44, %v313_v43  ;;  %v320_v54 = vld [vmem:[%s14521_s1 + $0x170] sm:$0xff]  ;;  %v327_v55 = vld [vmem:[%s14521_s1 + $0x1a8] sm:$0xff]  ;;  %v329_v57 = vld [vmem:[%s14521_s1 + $0x1b8] sm:$0xff]  ;;  %v6962_v59 = vpack.c.bf16 %v318_v51, %v310_v50 }
  0x30   : > { %6943 = vmatpush1.bf16.msra.mxu1 %v6942_v60  ;;  %6897 = vmatprep.subr.bf16.mxu0 %v6896_v61  ;;  %v335_v56 = vld [vmem:[%s14521_s1 + $0x1e8] sm:$0xff]  ;;  %v337_v58 = vld [vmem:[%s14521_s1 + $0x1f8] sm:$0xff]  ;;  %v7010_v60 = vpack.c.bf16 %v320_v54, %v312_v52  ;;  %v326_v62 = vld [vmem:[%s14521_s1 + $0x1a0] sm:$0xff] }
  0x31   : > { %6945 = vmatprep.subr.bf16.mxu1 %v6944_v1  ;;  %v6964_v61 = vpack.c.bf16 %v335_v56, %v327_v55  ;;  %v334_v63 = vld [vmem:[%s14521_s1 + $0x1e0] sm:$0xff]  ;;  %v328_v0 = vld [vmem:[%s14521_s1 + $0x1b0] sm:$0xff]  ;;  %v7012_v1 = vpack.c.bf16 %v337_v58, %v329_v57  ;;  %v343_v3 = vld [vmem:[%s14521_s1 + $0x228] sm:$0xff] }
  0x32   : > { %v336_v2 = vld [vmem:[%s14521_s1 + $0x1f0] sm:$0xff]  ;;  %v351_v4 = vld [vmem:[%s14521_s1 + $0x268] sm:$0xff]  ;;  %v345_v5 = vld [vmem:[%s14521_s1 + $0x238] sm:$0xff] }
  0x33   : > { %6899 = vmatpush1.bf16.msra.mxu0 %v6898_v7  ;;  %v353_v6 = vld [vmem:[%s14521_s1 + $0x278] sm:$0xff]  ;;  %v6966_v7 = vpack.c.bf16 %v334_v63, %v326_v62  ;;  %v342_v10 = vld [vmem:[%s14521_s1 + $0x220] sm:$0xff]  ;;  %v344_v12 = vld [vmem:[%s14521_s1 + $0x230] sm:$0xff] }
  0x34   : > { %6947 = vmatpush1.bf16.msra.mxu1 %v6946_v8  ;;  %6901 = vmatprep.subr.bf16.mxu0 %v6900_v9  ;;  %v7014_v8 = vpack.c.bf16 %v336_v2, %v328_v0  ;;  %v6968_v9 = vpack.c.bf16 %v351_v4, %v343_v3  ;;  %v350_v11 = vld [vmem:[%s14521_s1 + $0x260] sm:$0xff]  ;;  %v352_v14 = vld [vmem:[%s14521_s1 + $0x270] sm:$0xff]  ;;  %v359_v15 = vld [vmem:[%s14521_s1 + $0x2a8] sm:$0xff] }
  0x35   : > { %6949 = vmatprep.subr.bf16.mxu1 %v6948_v13  ;;  %v7016_v13 = vpack.c.bf16 %v353_v6, %v345_v5  ;;  %v367_v16 = vld [vmem:[%s14521_s1 + $0x2e8] sm:$0xff]  ;;  %v361_v17 = vld [vmem:[%s14521_s1 + $0x2b8] sm:$0xff]  ;;  %v358_v22 = vld [vmem:[%s14521_s1 + $0x2a0] sm:$0xff] }
  0x36   : > { %v369_v18 = vld [vmem:[%s14521_s1 + $0x2f8] sm:$0xff]  ;;  %v366_v23 = vld [vmem:[%s14521_s1 + $0x2e0] sm:$0xff]  ;;  %v360_v24 = vld [vmem:[%s14521_s1 + $0x2b0] sm:$0xff] }
  0x37   : > { %6903 = vmatpush1.bf16.msra.mxu0 %v6902_v19  ;;  %v6970_v19 = vpack.c.bf16 %v350_v11, %v342_v10  ;;  %v368_v26 = vld [vmem:[%s14521_s1 + $0x2f0] sm:$0xff]  ;;  %v375_v27 = vld [vmem:[%s14521_s1 + $0x328] sm:$0xff]  ;;  %v377_v29 = vld [vmem:[%s14521_s1 + $0x338] sm:$0xff] }
  0x38   : > { %6951 = vmatpush1.bf16.msra.mxu1 %v6950_v20  ;;  %6953 = vmatprep.subr.bf16.mxu0 %v6952_v21  ;;  %v7018_v20 = vpack.c.bf16 %v352_v14, %v344_v12  ;;  %v6972_v21 = vpack.c.bf16 %v367_v16, %v359_v15  ;;  %v383_v28 = vld [vmem:[%s14521_s1 + $0x368] sm:$0xff]  ;;  %v385_v30 = vld [vmem:[%s14521_s1 + $0x378] sm:$0xff]  ;;  %v374_v35 = vld [vmem:[%s14521_s1 + $0x320] sm:$0xff] }
  0x39   : > { %7001 = vmatprep.subr.bf16.mxu1 %v7000_v25  ;;  %v7020_v25 = vpack.c.bf16 %v369_v18, %v361_v17  ;;  %v382_v36 = vld [vmem:[%s14521_s1 + $0x360] sm:$0xff]  ;;  %v376_v37 = vld [vmem:[%s14521_s1 + $0x330] sm:$0xff]  ;;  %v391_v40 = vld [vmem:[%s14521_s1 + $0x3a8] sm:$0xff] }
  0x3a   : > { %538 = vmatmul.mubr.f32.vlgmr.msra.gmra.mrb[0].mxu0 %v9158_v31  ;;  %v384_v39 = vld [vmem:[%s14521_s1 + $0x370] sm:$0xff]  ;;  %v399_v41 = vld [vmem:[%s14521_s1 + $0x3e8] sm:$0xff]  ;;  %v393_v43 = vld [vmem:[%s14521_s1 + $0x3b8] sm:$0xff] }
  0x3b   : > { %615 = vmatmul.mubr.f32.vlgmr.msra.gmra.mrb[0].mxu1 %v9158_v31  ;;  %6955 = vmatpush1.bf16.msra.mxu0 %v6954_v32  ;;  %v6974_v32 = vpack.c.bf16 %v366_v23, %v358_v22  ;;  %v401_v44 = vld [vmem:[%s14521_s1 + $0x3f8] sm:$0xff]  ;;  %v390_v50 = vld [vmem:[%s14521_s1 + $0x3a0] sm:$0xff]  ;;  %v392_v52 = vld [vmem:[%s14521_s1 + $0x3b0] sm:$0xff] }
  0x3c   : > { %7003 = vmatpush1.bf16.msra.mxu1 %v7002_v33  ;;  %6957 = vmatprep.subr.bf16.mxu0 %v6956_v34  ;;  %v7022_v33 = vpack.c.bf16 %v368_v26, %v360_v24  ;;  %v6976_v34 = vpack.c.bf16 %v383_v28, %v375_v27  ;;  %v398_v51 = vld [vmem:[%s14521_s1 + $0x3e0] sm:$0xff]  ;;  %v400_v54 = vld [vmem:[%s14521_s1 + $0x3f0] sm:$0xff]  ;;  %v407_v55 = vld [vmem:[%s14521_s1 + $0x428] sm:$0xff] }
  0x3d   : > { %7005 = vmatprep.subr.bf16.mxu1 %v7004_v38  ;;  %5246 = vmatprep.mubr.msk.f32.mxu0 %vm466_vm0, %v9179_v42  ;;  %v7024_v38 = vpack.c.bf16 %v385_v30, %v377_v29  ;;  %v415_v56 = vld [vmem:[%s14521_s1 + $0x468] sm:$0xff]  ;;  %v409_v57 = vld [vmem:[%s14521_s1 + $0x438] sm:$0xff]  ;;  %v406_v62 = vld [vmem:[%s14521_s1 + $0x420] sm:$0xff] }
  0x3e   : > { %5248 = vmatprep.mubr.msk.f32.mxu1 %vm466_vm0, %v9179_v42  ;;  %544 = vmatmul.mubr.f32.gmra.mrb[2].mxu0 %v9189_v45  ;;  %v417_v58 = vld [vmem:[%s14521_s1 + $0x478] sm:$0xff]  ;;  %v414_v63 = vld [vmem:[%s14521_s1 + $0x460] sm:$0xff]  ;;  %v408_v0 = vld [vmem:[%s14521_s1 + $0x430] sm:$0xff] }
  0x3f   : > { %6959 = vmatpush1.bf16.msra.mxu0 %v6958_v46  ;;  %621 = vmatmul.mubr.f32.gmra.mrb[2].mxu1 %v9189_v45  ;;  %v6978_v46 = vpack.c.bf16 %v382_v36, %v374_v35  ;;  %v416_v2 = vld [vmem:[%s14521_s1 + $0x470] sm:$0xff]  ;;  %v423_v3 = vld [vmem:[%s14521_s1 + $0x4a8] sm:$0xff]  ;;  %v425_v5 = vld [vmem:[%s14521_s1 + $0x4b8] sm:$0xff] }
  0x40   : > { %7007 = vmatpush1.bf16.msra.mxu1 %v7006_v48  ;;  %6961 = vmatprep.subr.bf16.mxu0 %v6960_v49  ;;  %v7026_v48 = vpack.c.bf16 %v384_v39, %v376_v37  ;;  %v6980_v49 = vpack.c.bf16 %v399_v41, %v391_v40  ;;  %v431_v4 = vld [vmem:[%s14521_s1 + $0x4e8] sm:$0xff]  ;;  %v433_v6 = vld [vmem:[%s14521_s1 + $0x4f8] sm:$0xff]  ;;  %v422_v10 = vld [vmem:[%s14521_s1 + $0x4a0] sm:$0xff] }
  0x41   : > { %7009 = vmatprep.subr.bf16.mxu1 %v7008_v53  ;;  %5249 = vmatprep.mubr.msk.f32.mxu0 %vm466_vm0, %v9055_v47  ;;  %v7028_v53 = vpack.c.bf16 %v401_v44, %v393_v43  ;;  %v430_v11 = vld [vmem:[%s14521_s1 + $0x4e0] sm:$0xff]  ;;  %v424_v12 = vld [vmem:[%s14521_s1 + $0x4b0] sm:$0xff]  ;;  %v439_v15 = vld [vmem:[%s14521_s1 + $0x528] sm:$0xff] }
  0x42   : > { %5251 = vmatprep.mubr.msk.f32.mxu1 %vm466_vm0, %v9055_v47  ;;  %v432_v14 = vld [vmem:[%s14521_s1 + $0x4f0] sm:$0xff]  ;;  %v447_v16 = vld [vmem:[%s14521_s1 + $0x568] sm:$0xff]  ;;  %v441_v17 = vld [vmem:[%s14521_s1 + $0x538] sm:$0xff] }
  0x43   : > { %6963 = vmatpush1.bf16.msra.mxu0 %v6962_v59  ;;  %v6982_v59 = vpack.c.bf16 %v398_v51, %v390_v50  ;;  %v449_v18 = vld [vmem:[%s14521_s1 + $0x578] sm:$0xff]  ;;  %v438_v22 = vld [vmem:[%s14521_s1 + $0x520] sm:$0xff]  ;;  %v440_v24 = vld [vmem:[%s14521_s1 + $0x530] sm:$0xff] }
  0x44   : > { %7011 = vmatpush1.bf16.msra.mxu1 %v7010_v60  ;;  %6965 = vmatprep.subr.bf16.mxu0 %v6964_v61  ;;  %v7030_v60 = vpack.c.bf16 %v400_v54, %v392_v52  ;;  %v6984_v61 = vpack.c.bf16 %v415_v56, %v407_v55  ;;  %v446_v23 = vld [vmem:[%s14521_s1 + $0x560] sm:$0xff]  ;;  %v448_v26 = vld [vmem:[%s14521_s1 + $0x570] sm:$0xff]  ;;  %v455_v27 = vld [vmem:[%s14521_s1 + $0x5a8] sm:$0xff] }
  0x45   : > { %7013 = vmatprep.subr.bf16.mxu1 %v7012_v1  ;;  %v7032_v1 = vpack.c.bf16 %v417_v58, %v409_v57  ;;  %v463_v28 = vld [vmem:[%s14521_s1 + $0x5e8] sm:$0xff]  ;;  %v457_v29 = vld [vmem:[%s14521_s1 + $0x5b8] sm:$0xff]  ;;  %v454_v35 = vld [vmem:[%s14521_s1 + $0x5a0] sm:$0xff] }
  0x46   : > { %v465_v30 = vld [vmem:[%s14521_s1 + $0x5f8] sm:$0xff]  ;;  %v462_v36 = vld [vmem:[%s14521_s1 + $0x5e0] sm:$0xff]  ;;  %v456_v37 = vld [vmem:[%s14521_s1 + $0x5b0] sm:$0xff] }
  0x47   : > { %6967 = vmatpush1.bf16.msra.mxu0 %v6966_v7  ;;  %v6986_v7 = vpack.c.bf16 %v414_v63, %v406_v62  ;;  %v464_v39 = vld [vmem:[%s14521_s1 + $0x5f0] sm:$0xff]  ;;  %v5254_v40 = vld [vmem:[%s14521_s1 + $0x608] sm:$0xff]  ;;  %v5256_v43 = vld [vmem:[%s14521_s1 + $0x618] sm:$0xff] }
  0x48   : > { %7015 = vmatpush1.bf16.msra.mxu1 %v7014_v8  ;;  %6969 = vmatprep.subr.bf16.mxu0 %v6968_v9  ;;  %v7034_v8 = vpack.c.bf16 %v416_v2, %v408_v0  ;;  %v6988_v9 = vpack.c.bf16 %v431_v4, %v423_v3  ;;  %v5262_v41 = vld [vmem:[%s14521_s1 + $0x648] sm:$0xff]  ;;  %v5264_v44 = vld [vmem:[%s14521_s1 + $0x658] sm:$0xff]  ;;  %v5253_v50 = vld [vmem:[%s14521_s1 + $0x600] sm:$0xff] }
  0x49   : > { %7017 = vmatprep.subr.bf16.mxu1 %v7016_v13  ;;  %v7036_v13 = vpack.c.bf16 %v433_v6, %v425_v5  ;;  %v5261_v51 = vld [vmem:[%s14521_s1 + $0x640] sm:$0xff]  ;;  %v5255_v52 = vld [vmem:[%s14521_s1 + $0x610] sm:$0xff]  ;;  %v5270_v55 = vld [vmem:[%s14521_s1 + $0x688] sm:$0xff] }
  0x4a   : > { %v5263_v54 = vld [vmem:[%s14521_s1 + $0x650] sm:$0xff]  ;;  %v5278_v56 = vld [vmem:[%s14521_s1 + $0x6c8] sm:$0xff]  ;;  %v5272_v57 = vld [vmem:[%s14521_s1 + $0x698] sm:$0xff] }
  0x4b   : > { %6971 = vmatpush1.bf16.msra.mxu0 %v6970_v19  ;;  %v6990_v19 = vpack.c.bf16 %v430_v11, %v422_v10  ;;  %v5280_v58 = vld [vmem:[%s14521_s1 + $0x6d8] sm:$0xff]  ;;  %v5269_v62 = vld [vmem:[%s14521_s1 + $0x680] sm:$0xff]  ;;  %v5271_v0 = vld [vmem:[%s14521_s1 + $0x690] sm:$0xff] }
  0x4c   : > { %7019 = vmatpush1.bf16.msra.mxu1 %v7018_v20  ;;  %6973 = vmatprep.subr.bf16.mxu0 %v6972_v21  ;;  %v7038_v20 = vpack.c.bf16 %v432_v14, %v424_v12  ;;  %v6992_v21 = vpack.c.bf16 %v447_v16, %v439_v15  ;;  %v5277_v63 = vld [vmem:[%s14521_s1 + $0x6c0] sm:$0xff]  ;;  %v5279_v2 = vld [vmem:[%s14521_s1 + $0x6d0] sm:$0xff]  ;;  %v5286_v3 = vld [vmem:[%s14521_s1 + $0x708] sm:$0xff] }
  0x4d   : > { %7021 = vmatprep.subr.bf16.mxu1 %v7020_v25  ;;  %v7040_v25 = vpack.c.bf16 %v449_v18, %v441_v17  ;;  %v5294_v4 = vld [vmem:[%s14521_s1 + $0x748] sm:$0xff]  ;;  %v5288_v5 = vld [vmem:[%s14521_s1 + $0x718] sm:$0xff]  ;;  %v7102_v10 = vpack.c.bf16 %v5279_v2, %v5271_v0  ;;  %v5285_v12 = vld [vmem:[%s14521_s1 + $0x700] sm:$0xff] }
  0x4e   : > { %v5296_v6 = vld [vmem:[%s14521_s1 + $0x758] sm:$0xff]  ;;  %v7056_v11 = vpack.c.bf16 %v5294_v4, %v5286_v3  ;;  %v5295_v15 = vld [vmem:[%s14521_s1 + $0x750] sm:$0xff]  ;;  %v5302_v16 = vld [vmem:[%s14521_s1 + $0x788] sm:$0xff] }
  0x4f   : > { %6975 = vmatpush1.bf16.msra.mxu0 %v6974_v32  ;;  %v6994_v32 = vpack.c.bf16 %v446_v23, %v438_v22  ;;  %v7104_v14 = vpack.c.bf16 %v5296_v6, %v5288_v5  ;;  %v5310_v17 = vld [vmem:[%s14521_s1 + $0x7c8] sm:$0xff]  ;;  %v5304_v18 = vld [vmem:[%s14521_s1 + $0x798] sm:$0xff]  ;;  %v5349_v0 = vld [vmem:[%s14521_s1 + $0x900] sm:$0xff] }
  0x50   : > { %7023 = vmatpush1.bf16.msra.mxu1 %v7022_v33  ;;  %6977 = vmatprep.subr.bf16.mxu0 %v6976_v34  ;;  %v7042_v33 = vpack.c.bf16 %v448_v26, %v440_v24  ;;  %v6996_v34 = vpack.c.bf16 %v463_v28, %v455_v27  ;;  %v7060_v23 = vpack.c.bf16 %v5310_v17, %v5302_v16  ;;  %v5301_v24 = vld [vmem:[%s14521_s1 + $0x780] sm:$0xff]  ;;  %v5303_v26 = vld [vmem:[%s14521_s1 + $0x790] sm:$0xff]  ;;  %v5366_v5 = vld [vmem:[%s14521_s1 + $0x988] sm:$0xff] }
  0x51   : > { %7025 = vmatprep.subr.bf16.mxu1 %v7024_v38  ;;  %v7044_v38 = vpack.c.bf16 %v465_v30, %v457_v29  ;;  %v5311_v28 = vld [vmem:[%s14521_s1 + $0x7d0] sm:$0xff]  ;;  %v5318_v29 = vld [vmem:[%s14521_s1 + $0x808] sm:$0xff] }
  0x52   : > { %v5326_v30 = vld [vmem:[%s14521_s1 + $0x848] sm:$0xff]  ;;  %v5351_v2 = vld [vmem:[%s14521_s1 + $0x910] sm:$0xff] }
  0x53   : > { %6979 = vmatpush1.bf16.msra.mxu0 %v6978_v46  ;;  %v6998_v46 = vpack.c.bf16 %v462_v36, %v454_v35  ;;  %v7110_v35 = vpack.c.bf16 %v5311_v28, %v5303_v26  ;;  %v7064_v36 = vpack.c.bf16 %v5326_v30, %v5318_v29  ;;  %v5359_v4 = vld [vmem:[%s14521_s1 + $0x950] sm:$0xff]  ;;  %v5374_v6 = vld [vmem:[%s14521_s1 + $0x9c8] sm:$0xff]  ;;  %v5389_v26 = vld [vmem:[%s14521_s1 + $0xa40] sm:$0xff] }
  0x54   : > { %7027 = vmatpush1.bf16.msra.mxu1 %v7026_v48  ;;  %6981 = vmatprep.subr.bf16.mxu0 %v6980_v49  ;;  %v7046_v48 = vpack.c.bf16 %v464_v39, %v456_v37  ;;  %v7048_v49 = vpack.c.bf16 %v5262_v41, %v5254_v40  ;;  %v5317_v37 = vld [vmem:[%s14521_s1 + $0x800] sm:$0xff]  ;;  %v5319_v39 = vld [vmem:[%s14521_s1 + $0x810] sm:$0xff]  ;;  %v5382_v17 = vld [vmem:[%s14521_s1 + $0xa08] sm:$0xff] }
  0x55   : > { %7029 = vmatprep.subr.bf16.mxu1 %v7028_v53  ;;  %v7096_v53 = vpack.c.bf16 %v5264_v44, %v5256_v43  ;;  %v5327_v41 = vld [vmem:[%s14521_s1 + $0x850] sm:$0xff]  ;;  %v5334_v43 = vld [vmem:[%s14521_s1 + $0x888] sm:$0xff] }
  0x56   : > { %v5342_v44 = vld [vmem:[%s14521_s1 + $0x8c8] sm:$0xff]  ;;  %v5375_v16 = vld [vmem:[%s14521_s1 + $0x9d0] sm:$0xff] }
  0x57   : > { %6983 = vmatpush1.bf16.msra.mxu0 %v6982_v59  ;;  %v7050_v59 = vpack.c.bf16 %v5261_v51, %v5253_v50  ;;  %v7114_v50 = vpack.c.bf16 %v5327_v41, %v5319_v39  ;;  %v7068_v51 = vpack.c.bf16 %v5342_v44, %v5334_v43  ;;  %v5391_v29 = vld [vmem:[%s14521_s1 + $0xa50] sm:$0xff]  ;;  %v5398_v30 = vld [vmem:[%s14521_s1 + $0xa88] sm:$0xff]  ;;  %v5405_v39 = vld [vmem:[%s14521_s1 + $0xac0] sm:$0xff] }
  0x58   : > { %7031 = vmatpush1.bf16.msra.mxu1 %v7030_v60  ;;  %6985 = vmatprep.subr.bf16.mxu0 %v6984_v61  ;;  %v7098_v60 = vpack.c.bf16 %v5263_v54, %v5255_v52  ;;  %v7052_v61 = vpack.c.bf16 %v5278_v56, %v5270_v55  ;;  %v5333_v52 = vld [vmem:[%s14521_s1 + $0x880] sm:$0xff]  ;;  %v5335_v54 = vld [vmem:[%s14521_s1 + $0x890] sm:$0xff]  ;;  %v5414_v44 = vld [vmem:[%s14521_s1 + $0xb08] sm:$0xff] }
  0x59   : > { %7033 = vmatprep.subr.bf16.mxu1 %v7032_v1  ;;  %v7100_v1 = vpack.c.bf16 %v5280_v58, %v5272_v57  ;;  %v5343_v56 = vld [vmem:[%s14521_s1 + $0x8d0] sm:$0xff]  ;;  %v5350_v57 = vld [vmem:[%s14521_s1 + $0x908] sm:$0xff] }
  0x5a   : > { %v5358_v58 = vld [vmem:[%s14521_s1 + $0x948] sm:$0xff]  ;;  %v5407_v43 = vld [vmem:[%s14521_s1 + $0xad0] sm:$0xff] }
  0x5b   : > { %6987 = vmatpush1.bf16.msra.mxu0 %v6986_v7  ;;  %v998_v7 = vrot.slane %v9055_v47, 1  ;;  %v5287_v47 = vld [vmem:[%s14521_s1 + $0x710] sm:$0xff] }
  0x5c   : > { %7035 = vmatpush1.bf16.msra.mxu1 %v7034_v8  ;;  %6989 = vmatprep.subr.bf16.mxu0 %v6988_v9  ;;  %v999_v8 = vrot.slane %v9179_v42, 1  ;;  %v7054_v9 = vpack.c.bf16 %v5277_v63, %v5269_v62  ;;  %v7106_v22 = vpack.c.bf16 %v5295_v15, %v5287_v47  ;;  %v7118_v62 = vpack.c.bf16 %v5343_v56, %v5335_v54  ;;  %v5373_v47 = vld [vmem:[%s14521_s1 + $0x9c0] sm:$0xff] }
  0x5d   : > { %7037 = vmatprep.subr.bf16.mxu1 %v7036_v13  ;;  %v5293_v13 = vld [vmem:[%s14521_s1 + $0x740] sm:$0xff]  ;;  %v7072_v63 = vpack.c.bf16 %v5358_v58, %v5350_v57  ;;  %v5423_v57 = vld [vmem:[%s14521_s1 + $0xb50] sm:$0xff]  ;;  %v5430_v58 = vld [vmem:[%s14521_s1 + $0xb88] sm:$0xff] }
  0x5e   : > { %v5421_v54 = vld [vmem:[%s14521_s1 + $0xb40] sm:$0xff] }
  0x5f   : > { %6991 = vmatpush1.bf16.msra.mxu0 %v6990_v19  ;;  %v5312_v19 = vld [vmem:[%s14521_s1 + $0x7d8] sm:$0xff] }
  0x60   : > { %7039 = vmatpush1.bf16.msra.mxu1 %v7038_v20  ;;  %6993 = vmatprep.subr.bf16.mxu0 %v6992_v21  ;;  %v9526_v20 = vsel %vm994_vm1, %v998_v7, %v999_v8  ;;  %v7058_v21 = vpack.c.bf16 %v5293_v13, %v5285_v12  ;;  %v7108_v27 = vpack.c.bf16 %v5312_v19, %v5304_v18  ;;  %v5368_v7 = vld [vmem:[%s14521_s1 + $0x998] sm:$0xff]  ;;  %v5365_v13 = vld [vmem:[%s14521_s1 + $0x980] sm:$0xff]  ;;  %v5390_v18 = vld [vmem:[%s14521_s1 + $0xa48] sm:$0xff] }
  0x61   : > { %7041 = vmatprep.subr.bf16.mxu1 %v7040_v25  ;;  %v5309_v25 = vld [vmem:[%s14521_s1 + $0x7c0] sm:$0xff]  ;;  %v7076_v12 = vpack.c.bf16 %v5374_v6, %v5366_v5  ;;  %v5384_v19 = vld [vmem:[%s14521_s1 + $0xa18] sm:$0xff]  ;;  %v5439_v5 = vld [vmem:[%s14521_s1 + $0xbd0] sm:$0xff] }
  0x62   : > { %v5258_v6 = vld [vmem:[%s14521_s1 + $0x628] sm:$0xff] }
  0x63   : > { %6995 = vmatpush1.bf16.msra.mxu0 %v6994_v32  ;;  %v5320_v32 = vld [vmem:[%s14521_s1 + $0x818] sm:$0xff] }
  0x64   : > { %7043 = vmatpush1.bf16.msra.mxu1 %v7042_v33  ;;  %6997 = vmatprep.subr.bf16.mxu0 %v6996_v34  ;;  %v5328_v33 = vld [vmem:[%s14521_s1 + $0x858] sm:$0xff]  ;;  %v7062_v34 = vpack.c.bf16 %v5309_v25, %v5301_v24  ;;  %v7080_v24 = vpack.c.bf16 %v5390_v18, %v5382_v17  ;;  %v5381_v25 = vld [vmem:[%s14521_s1 + $0xa00] sm:$0xff] }
  0x65   : > { %7045 = vmatprep.subr.bf16.mxu1 %v7044_v38  ;;  %v5325_v38 = vld [vmem:[%s14521_s1 + $0x840] sm:$0xff]  ;;  %v7112_v40 = vpack.c.bf16 %v5328_v33, %v5320_v32  ;;  %v5406_v32 = vld [vmem:[%s14521_s1 + $0xac8] sm:$0xff]  ;;  %v5400_v33 = vld [vmem:[%s14521_s1 + $0xa98] sm:$0xff] }
  0x66   : > { %v5265_v17 = vld [vmem:[%s14521_s1 + $0x660] sm:$0xff] }
  0x67   : > { %6999 = vmatpush1.bf16.msra.mxu0 %v6998_v46  ;;  %v5336_v46 = vld [vmem:[%s14521_s1 + $0x898] sm:$0xff]  ;;  %v9764_v18 = vld [vmem:[%s9037_s4 + $0x20] sm:$0xff] }
  0x68   : > { %7047 = vmatpush1.bf16.msra.mxu1 %v7046_v48  ;;  %7049 = vmatprep.subr.bf16.mxu0 %v7048_v49  ;;  %v5344_v48 = vld [vmem:[%s14521_s1 + $0x8d8] sm:$0xff]  ;;  %v7066_v49 = vpack.c.bf16 %v5325_v38, %v5317_v37  ;;  %v7084_v37 = vpack.c.bf16 %v5406_v32, %v5398_v30  ;;  %v5397_v38 = vld [vmem:[%s14521_s1 + $0xa80] sm:$0xff] }
  0x69   : > { %7097 = vmatprep.subr.bf16.mxu1 %v7096_v53  ;;  %v5341_v53 = vld [vmem:[%s14521_s1 + $0x8c0] sm:$0xff]  ;;  %v7116_v55 = vpack.c.bf16 %v5344_v48, %v5336_v46  ;;  %v5422_v46 = vld [vmem:[%s14521_s1 + $0xb48] sm:$0xff]  ;;  %v5416_v48 = vld [vmem:[%s14521_s1 + $0xb18] sm:$0xff] }
  0x6a   : > { %692 = vmatmul.mubr.f32.vlgmr.msra.gmra.mrb[4].mxu0 %v9158_v31  ;;  %v5273_v32 = vld [vmem:[%s14521_s1 + $0x6a0] sm:$0xff] }
  0x6b   : > { %769 = vmatmul.mubr.f32.vlgmr.msra.gmra.mrb[4].mxu1 %v9158_v31  ;;  %7051 = vmatpush1.bf16.msra.mxu0 %v7050_v59  ;;  %v5352_v59 = vld [vmem:[%s14521_s1 + $0x918] sm:$0xff] }
  0x6c   : > { %7099 = vmatpush1.bf16.msra.mxu1 %v7098_v60  ;;  %7053 = vmatprep.subr.bf16.mxu0 %v7052_v61  ;;  %v5360_v60 = vld [vmem:[%s14521_s1 + $0x958] sm:$0xff]  ;;  %v7070_v61 = vpack.c.bf16 %v5341_v53, %v5333_v52  ;;  %v7088_v52 = vpack.c.bf16 %v5422_v46, %v5414_v44  ;;  %v5413_v53 = vld [vmem:[%s14521_s1 + $0xb00] sm:$0xff] }
  0x6d   : > { %7101 = vmatprep.subr.bf16.mxu1 %v7100_v1  ;;  %5250 = vmatprep.mubr.msk.f32.mxu0 %vm466_vm0, %v9179_v42  ;;  %v5357_v1 = vld [vmem:[%s14521_s1 + $0x940] sm:$0xff]  ;;  %v7120_v3 = vpack.c.bf16 %v5360_v60, %v5352_v59  ;;  %v5438_v59 = vld [vmem:[%s14521_s1 + $0xbc8] sm:$0xff]  ;;  %v5432_v60 = vld [vmem:[%s14521_s1 + $0xb98] sm:$0xff] }
  0x6e   : > { %5252 = vmatprep.mubr.msk.f32.mxu1 %vm466_vm0, %v9179_v42  ;;  %698 = vmatmul.mubr.f32.gmra.mrb[6].mxu0 %v9189_v45  ;;  %v5297_v42 = vld [vmem:[%s14521_s1 + $0x760] sm:$0xff] }
  0x6f   : > { %7055 = vmatpush1.bf16.msra.mxu0 %v7054_v9  ;;  %775 = vmatmul.mubr.f32.gmra.mrb[6].mxu1 %v9189_v45  ;;  %v5376_v9 = vld [vmem:[%s14521_s1 + $0x9d8] sm:$0xff] }
  0x70   : > { %7103 = vmatpush1.bf16.msra.mxu1 %v7102_v10  ;;  %7057 = vmatprep.subr.bf16.mxu0 %v7056_v11  ;;  %v7074_v10 = vpack.c.bf16 %v5357_v1, %v5349_v0  ;;  %v7122_v11 = vpack.c.bf16 %v5359_v4, %v5351_v2  ;;  %v7124_v15 = vpack.c.bf16 %v5376_v9, %v5368_v7  ;;  %v5429_v1 = vld [vmem:[%s14521_s1 + $0xb80] sm:$0xff]  ;;  %v5266_v7 = vld [vmem:[%s14521_s1 + $0x668] sm:$0xff]  ;;  %v5260_v9 = vld [vmem:[%s14521_s1 + $0x638] sm:$0xff] }
  0x71   : > { %7105 = vmatprep.subr.bf16.mxu1 %v7104_v14  ;;  %5445 = vmatprep.mubr.msk.f32.mxu0 %vm466_vm0, %v9526_v20  ;;  %v5367_v14 = vld [vmem:[%s14521_s1 + $0x990] sm:$0xff]  ;;  %v7092_v0 = vpack.c.bf16 %v5438_v59, %v5430_v58  ;;  %v5437_v2 = vld [vmem:[%s14521_s1 + $0xbc0] sm:$0xff] }
  0x72   : > { %5447 = vmatprep.mubr.msk.f32.mxu1 %vm466_vm0, %v9526_v20  ;;  %v5305_v59 = vld [vmem:[%s14521_s1 + $0x7a0] sm:$0xff] }
  0x73   : > { %7059 = vmatpush1.bf16.msra.mxu0 %v7058_v21  ;;  %v5392_v21 = vld [vmem:[%s14521_s1 + $0xa58] sm:$0xff] }
  0x74   : > { %7107 = vmatpush1.bf16.msra.mxu1 %v7106_v22  ;;  %7061 = vmatprep.subr.bf16.mxu0 %v7060_v23  ;;  %v7078_v22 = vpack.c.bf16 %v5373_v47, %v5365_v13  ;;  %v7126_v23 = vpack.c.bf16 %v5375_v16, %v5367_v14  ;;  %v7128_v28 = vpack.c.bf16 %v5392_v21, %v5384_v19  ;;  %v996_v13 = vrot.slane %v9189_v45, 1  ;;  %v5257_v47 = vld [vmem:[%s14521_s1 + $0x620] sm:$0xff]  ;;  %v9755_v14 = vld [vmem:[%s9037_s4 + $0x28] sm:$0xff]  ;;  %v5267_v19 = vld [vmem:[%s14521_s1 + $0x670] sm:$0xff] }
  0x75   : > { %7109 = vmatprep.subr.bf16.mxu1 %v7108_v27  ;;  %v5383_v27 = vld [vmem:[%s14521_s1 + $0xa10] sm:$0xff]  ;;  %v7144_v16 = vpack.c.bf16 %v5266_v7, %v5258_v6  ;;  %v5274_v21 = vld [vmem:[%s14521_s1 + $0x6a8] sm:$0xff]  ;;  %v5321_v7 = vld [vmem:[%s14521_s1 + $0x820] sm:$0xff] }
  0x77   : > { %7063 = vmatpush1.bf16.msra.mxu0 %v7062_v34  ;;  %v5408_v34 = vld [vmem:[%s14521_s1 + $0xad8] sm:$0xff] }
  0x78   : > { %7111 = vmatpush1.bf16.msra.mxu1 %v7110_v35  ;;  %7065 = vmatprep.subr.bf16.mxu0 %v7064_v36  ;;  %v7082_v35 = vpack.c.bf16 %v5389_v26, %v5381_v25  ;;  %v7130_v36 = vpack.c.bf16 %v5391_v29, %v5383_v27  ;;  %v7132_v41 = vpack.c.bf16 %v5408_v34, %v5400_v33  ;;  %v1003_v25 = vrot.slane %v9755_v14, 1  ;;  %v5281_v33 = vld [vmem:[%s14521_s1 + $0x6e0] sm:$0xff]  ;;  %v5275_v34 = vld [vmem:[%s14521_s1 + $0x6b0] sm:$0xff] }
  0x79   : > { %7113 = vmatprep.subr.bf16.mxu1 %v7112_v40  ;;  %v5399_v40 = vld [vmem:[%s14521_s1 + $0xa90] sm:$0xff]  ;;  %v7146_v27 = vpack.c.bf16 %v5265_v17, %v5257_v47  ;;  %v5340_v47 = vld [vmem:[%s14521_s1 + $0x8b8] sm:$0xff] }
  0x7b   : > { %7067 = vmatpush1.bf16.msra.mxu0 %v7066_v49  ;;  %v5424_v49 = vld [vmem:[%s14521_s1 + $0xb58] sm:$0xff] }
  0x7c   : > { %7115 = vmatpush1.bf16.msra.mxu1 %v7114_v50  ;;  %7069 = vmatprep.subr.bf16.mxu0 %v7068_v51  ;;  %v7086_v50 = vpack.c.bf16 %v5405_v39, %v5397_v38  ;;  %v7134_v51 = vpack.c.bf16 %v5407_v43, %v5399_v40  ;;  %v7136_v56 = vpack.c.bf16 %v5424_v49, %v5416_v48  ;;  %v5298_v38 = vld [vmem:[%s14521_s1 + $0x768] sm:$0xff]  ;;  %v5292_v39 = vld [vmem:[%s14521_s1 + $0x738] sm:$0xff]  ;;  %v5289_v49 = vld [vmem:[%s14521_s1 + $0x720] sm:$0xff] }
  0x7d   : > { %7117 = vmatprep.subr.bf16.mxu1 %v7116_v55  ;;  %v5415_v55 = vld [vmem:[%s14521_s1 + $0xb10] sm:$0xff]  ;;  %v5300_v40 = vld [vmem:[%s14521_s1 + $0x778] sm:$0xff]  ;;  %v7150_v43 = vpack.c.bf16 %v5281_v33, %v5273_v32  ;;  %v5353_v33 = vld [vmem:[%s14521_s1 + $0x920] sm:$0xff] }
  0x7f   : > { %7071 = vmatpush1.bf16.msra.mxu0 %v7070_v61  ;;  %v5440_v61 = vld [vmem:[%s14521_s1 + $0xbd8] sm:$0xff] }
  0x80   : > { %7119 = vmatpush1.bf16.msra.mxu1 %v7118_v62  ;;  %7073 = vmatprep.subr.bf16.mxu0 %v7072_v63  ;;  %v7090_v62 = vpack.c.bf16 %v5421_v54, %v5413_v53  ;;  %v7138_v63 = vpack.c.bf16 %v5423_v57, %v5415_v55  ;;  %v7140_v4 = vpack.c.bf16 %v5440_v61, %v5432_v60  ;;  %v5314_v53 = vld [vmem:[%s14521_s1 + $0x7e8] sm:$0xff]  ;;  %v5308_v54 = vld [vmem:[%s14521_s1 + $0x7b8] sm:$0xff]  ;;  %v5313_v60 = vld [vmem:[%s14521_s1 + $0x7e0] sm:$0xff] }
  0x81   : > { %7121 = vmatprep.subr.bf16.mxu1 %v7120_v3  ;;  %v5431_v3 = vld [vmem:[%s14521_s1 + $0xb90] sm:$0xff]  ;;  %v5316_v55 = vld [vmem:[%s14521_s1 + $0x7f8] sm:$0xff] }
  0x82   : > { %v5307_v61 = vld [vmem:[%s14521_s1 + $0x7b0] sm:$0xff] }
  0x83   : > { %7075 = vmatpush1.bf16.msra.mxu0 %v7074_v10  ;;  %v5268_v10 = vld [vmem:[%s14521_s1 + $0x678] sm:$0xff] }
  0x84   : > { %7123 = vmatpush1.bf16.msra.mxu1 %v7122_v11  ;;  %7077 = vmatprep.subr.bf16.mxu0 %v7076_v12  ;;  %v7094_v11 = vpack.c.bf16 %v5437_v2, %v5429_v1  ;;  %v995_v12 = vrot.slane %v9158_v31, 1  ;;  %v5259_v31 = vld [vmem:[%s14521_s1 + $0x630] sm:$0xff]  ;;  %v7192_v45 = vpack.c.bf16 %v5268_v10, %v5260_v9  ;;  %v5330_v1 = vld [vmem:[%s14521_s1 + $0x868] sm:$0xff]  ;;  %v5324_v2 = vld [vmem:[%s14521_s1 + $0x838] sm:$0xff] }
  0x85   : > { %7125 = vmatprep.subr.bf16.mxu1 %v7124_v15  ;;  %v7142_v15 = vpack.c.bf16 %v5439_v5, %v5431_v3  ;;  %v7194_v29 = vpack.c.bf16 %v5267_v19, %v5259_v31  ;;  %v5332_v3 = vld [vmem:[%s14521_s1 + $0x878] sm:$0xff]  ;;  %v5329_v9 = vld [vmem:[%s14521_s1 + $0x860] sm:$0xff]  ;;  %v5323_v10 = vld [vmem:[%s14521_s1 + $0x830] sm:$0xff] }
  0x86   : > { %v9783_v26 = vsel %vm994_vm1, %v995_v12, %v996_v13  ;;  %v5338_v12 = vld [vmem:[%s14521_s1 + $0x8a8] sm:$0xff]  ;;  %v5345_v19 = vld [vmem:[%s14521_s1 + $0x8e0] sm:$0xff] }
  0x87   : > { %7079 = vmatpush1.bf16.msra.mxu0 %v7078_v22  ;;  %v5282_v22 = vld [vmem:[%s14521_s1 + $0x6e8] sm:$0xff] }
  0x88   : > { %7127 = vmatpush1.bf16.msra.mxu1 %v7126_v23  ;;  %7081 = vmatprep.subr.bf16.mxu0 %v7080_v24  ;;  %v5276_v23 = vld [vmem:[%s14521_s1 + $0x6b8] sm:$0xff]  ;;  %v7148_v30 = vpack.c.bf16 %v5282_v22, %v5274_v21  ;;  %v5339_v21 = vld [vmem:[%s14521_s1 + $0x8b0] sm:$0xff] }
  0x89   : > { %7129 = vmatprep.subr.bf16.mxu1 %v7128_v28  ;;  %v5284_v24 = vld [vmem:[%s14521_s1 + $0x6f8] sm:$0xff]  ;;  %v1001_v28 = vrot.slane %v9764_v18, 1 }
  0x8b   : > { %7083 = vmatpush1.bf16.msra.mxu0 %v7082_v35  ;;  %v7196_v35 = vpack.c.bf16 %v5284_v24, %v5276_v23  ;;  %v9818_v44 = vsel %vm994_vm1, %v996_v13, %v1001_v28  ;;  %v5346_v13 = vld [vmem:[%s14521_s1 + $0x8e8] sm:$0xff]  ;;  %v5347_v23 = vld [vmem:[%s14521_s1 + $0x8f0] sm:$0xff]  ;;  %v5364_v28 = vld [vmem:[%s14521_s1 + $0x978] sm:$0xff] }
  0x8c   : > { %7131 = vmatpush1.bf16.msra.mxu1 %v7130_v36  ;;  %7085 = vmatprep.subr.bf16.mxu0 %v7084_v37  ;;  %v5283_v36 = vld [vmem:[%s14521_s1 + $0x6f0] sm:$0xff]  ;;  %v5290_v37 = vld [vmem:[%s14521_s1 + $0x728] sm:$0xff]  ;;  %v7164_v31 = vpack.c.bf16 %v5346_v13, %v5338_v12 }
  0x8d   : > { %7133 = vmatprep.subr.bf16.mxu1 %v7132_v41  ;;  %v9814_v41 = vsel %vm994_vm1, %v999_v8, %v1003_v25  ;;  %v7198_v46 = vpack.c.bf16 %v5283_v36, %v5275_v34  ;;  %v7152_v48 = vpack.c.bf16 %v5298_v38, %v5290_v37  ;;  %v5291_v8 = vld [vmem:[%s14521_s1 + $0x730] sm:$0xff]  ;;  %v5354_v24 = vld [vmem:[%s14521_s1 + $0x928] sm:$0xff]  ;;  %v5361_v34 = vld [vmem:[%s14521_s1 + $0x960] sm:$0xff] }
  0x8e   : > { %v5362_v25 = vld [vmem:[%s14521_s1 + $0x968] sm:$0xff]  ;;  %v5363_v37 = vld [vmem:[%s14521_s1 + $0x970] sm:$0xff] }
  0x8f   : > { %7087 = vmatpush1.bf16.msra.mxu0 %v7086_v50  ;;  %v7200_v50 = vpack.c.bf16 %v5300_v40, %v5292_v39  ;;  %v7168_v32 = vpack.c.bf16 %v5362_v25, %v5354_v24  ;;  %v5370_v38 = vld [vmem:[%s14521_s1 + $0x9a8] sm:$0xff]  ;;  %v5372_v40 = vld [vmem:[%s14521_s1 + $0x9b8] sm:$0xff]  ;;  %v5411_v12 = vld [vmem:[%s14521_s1 + $0xaf0] sm:$0xff] }
  0x90   : > { %7135 = vmatpush1.bf16.msra.mxu1 %v7134_v51  ;;  %7089 = vmatprep.subr.bf16.mxu0 %v7088_v52  ;;  %v5299_v51 = vld [vmem:[%s14521_s1 + $0x770] sm:$0xff]  ;;  %v5306_v52 = vld [vmem:[%s14521_s1 + $0x7a8] sm:$0xff] }
  0x91   : > { %7137 = vmatprep.subr.bf16.mxu1 %v7136_v56  ;;  %v7154_v56 = vpack.c.bf16 %v5297_v42, %v5289_v49  ;;  %v7202_v57 = vpack.c.bf16 %v5299_v51, %v5291_v8  ;;  %v7156_v58 = vpack.c.bf16 %v5314_v53, %v5306_v52  ;;  %v5378_v39 = vld [vmem:[%s14521_s1 + $0x9e8] sm:$0xff]  ;;  %v5369_v42 = vld [vmem:[%s14521_s1 + $0x9a0] sm:$0xff]  ;;  %v5379_v52 = vld [vmem:[%s14521_s1 + $0x9f0] sm:$0xff] }
  0x92   : > { %v7172_v49 = vpack.c.bf16 %v5378_v39, %v5370_v38  ;;  %v5377_v8 = vld [vmem:[%s14521_s1 + $0x9e0] sm:$0xff]  ;;  %v5386_v53 = vld [vmem:[%s14521_s1 + $0xa28] sm:$0xff]  ;;  %v5427_v24 = vld [vmem:[%s14521_s1 + $0xb70] sm:$0xff] }
  0x93   : > { %7091 = vmatpush1.bf16.msra.mxu0 %v7090_v62  ;;  %v7204_v62 = vpack.c.bf16 %v5316_v55, %v5308_v54  ;;  %v5394_v54 = vld [vmem:[%s14521_s1 + $0xa68] sm:$0xff]  ;;  %v5388_v55 = vld [vmem:[%s14521_s1 + $0xa38] sm:$0xff]  ;;  %v5443_v38 = vld [vmem:[%s14521_s1 + $0xbf0] sm:$0xff] }
  0x94   : > { %7139 = vmatpush1.bf16.msra.mxu1 %v7138_v63  ;;  %7093 = vmatprep.subr.bf16.mxu0 %v7092_v0  ;;  %v5315_v63 = vld [vmem:[%s14521_s1 + $0x7f0] sm:$0xff]  ;;  %v5322_v0 = vld [vmem:[%s14521_s1 + $0x828] sm:$0xff] }
  0x95   : > { %7141 = vmatprep.subr.bf16.mxu1 %v7140_v4  ;;  %v7158_v4 = vpack.c.bf16 %v5313_v60, %v5305_v59  ;;  %v7206_v5 = vpack.c.bf16 %v5315_v63, %v5307_v61  ;;  %v7160_v6 = vpack.c.bf16 %v5330_v1, %v5322_v0  ;;  %v7176_v59 = vpack.c.bf16 %v5394_v54, %v5386_v53  ;;  %v5385_v60 = vld [vmem:[%s14521_s1 + $0xa20] sm:$0xff]  ;;  %v5395_v0 = vld [vmem:[%s14521_s1 + $0xa70] sm:$0xff]  ;;  %v5402_v1 = vld [vmem:[%s14521_s1 + $0xaa8] sm:$0xff] }
  0x96   : > { %v5393_v61 = vld [vmem:[%s14521_s1 + $0xa60] sm:$0xff]  ;;  %v5418_v13 = vld [vmem:[%s14521_s1 + $0xb28] sm:$0xff]  ;;  %v5463_v53 = vld [vmem:[%s14521_s1 + $0xc50] sm:$0xff] }
  0x97   : > { %7095 = vmatpush1.bf16.msra.mxu0 %v7094_v11  ;;  %v5331_v11 = vld [vmem:[%s14521_s1 + $0x870] sm:$0xff]  ;;  %v5434_v25 = vld [vmem:[%s14521_s1 + $0xba8] sm:$0xff] }
  0x98   : > { %7143 = vmatpush1.bf16.msra.mxu1 %v7142_v15  ;;  %7145 = vmatprep.subr.bf16.mxu0 %v7144_v16  ;;  %v5348_v15 = vld [vmem:[%s14521_s1 + $0x8f8] sm:$0xff]  ;;  %v7162_v16 = vpack.c.bf16 %v5329_v9, %v5321_v7  ;;  %v7210_v17 = vpack.c.bf16 %v5331_v11, %v5323_v10  ;;  %v5401_v9 = vld [vmem:[%s14521_s1 + $0xaa0] sm:$0xff]  ;;  %v5454_v39 = vld [vmem:[%s14521_s1 + $0xc08] sm:$0xff] }
  0x99   : > { %7193 = vmatprep.subr.bf16.mxu1 %v7192_v45  ;;  %v5337_v45 = vld [vmem:[%s14521_s1 + $0x8a0] sm:$0xff]  ;;  %v7212_v22 = vpack.c.bf16 %v5348_v15, %v5340_v47  ;;  %v5426_v47 = vld [vmem:[%s14521_s1 + $0xb68] sm:$0xff]  ;;  %v5420_v15 = vld [vmem:[%s14521_s1 + $0xb38] sm:$0xff] }
  0x9a   : > { %1076 = vmatmul.mubr.f32.vlgmr.msra.gmra.mrb[0].mxu0 %v9783_v26  ;;  %v5409_v10 = vld [vmem:[%s14521_s1 + $0xae0] sm:$0xff]  ;;  %v5470_v54 = vld [vmem:[%s14521_s1 + $0xc88] sm:$0xff] }
  0x9b   : > { %1153 = vmatmul.mubr.f32.vlgmr.msra.gmra.mrb[0].mxu1 %v9783_v26  ;;  %7147 = vmatpush1.bf16.msra.mxu0 %v7146_v27  ;;  %v5356_v27 = vld [vmem:[%s14521_s1 + $0x938] sm:$0xff] }
  0x9c   : > { %7195 = vmatpush1.bf16.msra.mxu1 %v7194_v29  ;;  %7149 = vmatprep.subr.bf16.mxu0 %v7148_v30  ;;  %v7166_v29 = vpack.c.bf16 %v5345_v19, %v5337_v45  ;;  %v7214_v30 = vpack.c.bf16 %v5347_v23, %v5339_v21  ;;  %v7216_v36 = vpack.c.bf16 %v5364_v28, %v5356_v27  ;;  %v5417_v19 = vld [vmem:[%s14521_s1 + $0xb20] sm:$0xff]  ;;  %v5442_v27 = vld [vmem:[%s14521_s1 + $0xbe8] sm:$0xff]  ;;  %v5436_v28 = vld [vmem:[%s14521_s1 + $0xbb8] sm:$0xff] }
  0x9d   : > { %7197 = vmatprep.subr.bf16.mxu1 %v7196_v35  ;;  %5446 = vmatprep.mubr.msk.f32.mxu0 %vm466_vm0, %v9814_v41  ;;  %v5355_v35 = vld [vmem:[%s14521_s1 + $0x930] sm:$0xff]  ;;  %v7184_v45 = vpack.c.bf16 %v5426_v47, %v5418_v13  ;;  %v5425_v21 = vld [vmem:[%s14521_s1 + $0xb60] sm:$0xff] }
  0x9e   : > { %5448 = vmatprep.mubr.msk.f32.mxu1 %vm466_vm0, %v9814_v41  ;;  %1082 = vmatmul.mubr.f32.gmra.mrb[2].mxu0 %v9818_v44  ;;  %v5485_v13 = vld [vmem:[%s14521_s1 + $0xd00] sm:$0xff] }
  0x9f   : > { %7151 = vmatpush1.bf16.msra.mxu0 %v7150_v43  ;;  %1159 = vmatmul.mubr.f32.gmra.mrb[2].mxu1 %v9818_v44  ;;  %v5380_v43 = vld [vmem:[%s14521_s1 + $0x9f8] sm:$0xff]  ;;  %v5493_v47 = vld [vmem:[%s14521_s1 + $0xd40] sm:$0xff] }
  0xa0   : > { %7199 = vmatpush1.bf16.msra.mxu1 %v7198_v46  ;;  %7153 = vmatprep.subr.bf16.mxu0 %v7152_v48  ;;  %v7170_v46 = vpack.c.bf16 %v5361_v34, %v5353_v33  ;;  %v7218_v48 = vpack.c.bf16 %v5363_v37, %v5355_v35  ;;  %v7220_v51 = vpack.c.bf16 %v5380_v43, %v5372_v40  ;;  %v5433_v34 = vld [vmem:[%s14521_s1 + $0xba0] sm:$0xff]  ;;  %v5462_v40 = vld [vmem:[%s14521_s1 + $0xc48] sm:$0xff]  ;;  %v5456_v43 = vld [vmem:[%s14521_s1 + $0xc18] sm:$0xff] }
  0xa1   : > { %7201 = vmatprep.subr.bf16.mxu1 %v7200_v50  ;;  %5449 = vmatprep.mubr.msk.f32.mxu0 %vm466_vm0, %v9526_v20  ;;  %v5371_v50 = vld [vmem:[%s14521_s1 + $0x9b0] sm:$0xff]  ;;  %v7188_v33 = vpack.c.bf16 %v5442_v27, %v5434_v25  ;;  %v5441_v35 = vld [vmem:[%s14521_s1 + $0xbe0] sm:$0xff] }
  0xa2   : > { %5451 = vmatprep.mubr.msk.f32.mxu1 %vm466_vm0, %v9526_v20  ;;  %v7208_v20 = vpack.c.bf16 %v5332_v3, %v5324_v2  ;;  %v5410_v2 = vld [vmem:[%s14521_s1 + $0xae8] sm:$0xff]  ;;  %v5404_v3 = vld [vmem:[%s14521_s1 + $0xab8] sm:$0xff]  ;;  %v5501_v25 = vld [vmem:[%s14521_s1 + $0xd80] sm:$0xff] }
  0xa3   : > { %7155 = vmatpush1.bf16.msra.mxu0 %v7154_v56  ;;  %v5396_v56 = vld [vmem:[%s14521_s1 + $0xa78] sm:$0xff]  ;;  %v7180_v7 = vpack.c.bf16 %v5410_v2, %v5402_v1  ;;  %v5479_v1 = vld [vmem:[%s14521_s1 + $0xcd0] sm:$0xff]  ;;  %v5486_v2 = vld [vmem:[%s14521_s1 + $0xd08] sm:$0xff] }
  0xa4   : > { %7203 = vmatpush1.bf16.msra.mxu1 %v7202_v57  ;;  %7157 = vmatprep.subr.bf16.mxu0 %v7156_v58  ;;  %v7174_v57 = vpack.c.bf16 %v5377_v8, %v5369_v42  ;;  %v7222_v58 = vpack.c.bf16 %v5379_v52, %v5371_v50  ;;  %v7224_v63 = vpack.c.bf16 %v5396_v56, %v5388_v55  ;;  %v5453_v8 = vld [vmem:[%s14521_s1 + $0xc00] sm:$0xff]  ;;  %v5478_v55 = vld [vmem:[%s14521_s1 + $0xcc8] sm:$0xff]  ;;  %v5472_v56 = vld [vmem:[%s14521_s1 + $0xc98] sm:$0xff] }
  0xa5   : > { %7205 = vmatprep.subr.bf16.mxu1 %v7204_v62  ;;  %v5387_v62 = vld [vmem:[%s14521_s1 + $0xa30] sm:$0xff]  ;;  %v7240_v42 = vpack.c.bf16 %v5462_v40, %v5454_v39  ;;  %v5461_v50 = vld [vmem:[%s14521_s1 + $0xc40] sm:$0xff] }
  0xa6   : > { %v5503_v27 = vld [vmem:[%s14521_s1 + $0xd90] sm:$0xff] }
  0xa7   : > { %7159 = vmatpush1.bf16.msra.mxu0 %v7158_v4  ;;  %v5412_v4 = vld [vmem:[%s14521_s1 + $0xaf8] sm:$0xff]  ;;  %v5519_v39 = vld [vmem:[%s14521_s1 + $0xe10] sm:$0xff] }
  0xa8   : > { %7207 = vmatpush1.bf16.msra.mxu1 %v7206_v5  ;;  %7161 = vmatprep.subr.bf16.mxu0 %v7160_v6  ;;  %v7178_v5 = vpack.c.bf16 %v5393_v61, %v5385_v60  ;;  %v7226_v6 = vpack.c.bf16 %v5395_v0, %v5387_v62  ;;  %v7228_v11 = vpack.c.bf16 %v5412_v4, %v5404_v3  ;;  %v5469_v61 = vld [vmem:[%s14521_s1 + $0xc80] sm:$0xff]  ;;  %v5494_v3 = vld [vmem:[%s14521_s1 + $0xd48] sm:$0xff]  ;;  %v5488_v4 = vld [vmem:[%s14521_s1 + $0xd18] sm:$0xff] }
  0xa9   : > { %7209 = vmatprep.subr.bf16.mxu1 %v7208_v20  ;;  %v5403_v20 = vld [vmem:[%s14521_s1 + $0xab0] sm:$0xff]  ;;  %v7244_v60 = vpack.c.bf16 %v5478_v55, %v5470_v54  ;;  %v5477_v62 = vld [vmem:[%s14521_s1 + $0xcc0] sm:$0xff] }
  0xaa   : > { %v5535_v54 = vld [vmem:[%s14521_s1 + $0xe90] sm:$0xff] }
  0xab   : > { %7163 = vmatpush1.bf16.msra.mxu0 %v7162_v16  ;;  %v5428_v16 = vld [vmem:[%s14521_s1 + $0xb78] sm:$0xff] }
  0xac   : > { %7211 = vmatpush1.bf16.msra.mxu1 %v7210_v17  ;;  %7165 = vmatprep.subr.bf16.mxu0 %v7164_v31  ;;  %v7182_v17 = vpack.c.bf16 %v5409_v10, %v5401_v9  ;;  %v7230_v31 = vpack.c.bf16 %v5411_v12, %v5403_v20  ;;  %v7232_v23 = vpack.c.bf16 %v5428_v16, %v5420_v15  ;;  %v10124_v9 = vld [vmem:[%s9037_s4 + $0x18] sm:$0xff]  ;;  %v5487_v15 = vld [vmem:[%s14521_s1 + $0xd10] sm:$0xff] }
  0xad   : > { %7213 = vmatprep.subr.bf16.mxu1 %v7212_v22  ;;  %v5419_v22 = vld [vmem:[%s14521_s1 + $0xb30] sm:$0xff]  ;;  %v1533_v10 = vrot.slane %v10124_v9, 2  ;;  %v7246_v20 = vpack.c.bf16 %v5477_v62, %v5469_v61  ;;  %v7248_v12 = vpack.c.bf16 %v5494_v3, %v5486_v2 }
  0xae   : > { %v5495_v16 = vld [vmem:[%s14521_s1 + $0xd50] sm:$0xff] }
  0xaf   : > { %7167 = vmatpush1.bf16.msra.mxu0 %v7166_v29  ;;  %v5444_v29 = vld [vmem:[%s14521_s1 + $0xbf8] sm:$0xff]  ;;  %v5551_v2 = vld [vmem:[%s14521_s1 + $0xf10] sm:$0xff] }
  0xb0   : > { %7215 = vmatpush1.bf16.msra.mxu1 %v7214_v30  ;;  %7169 = vmatprep.subr.bf16.mxu0 %v7168_v32  ;;  %v7186_v30 = vpack.c.bf16 %v5425_v21, %v5417_v19  ;;  %v7234_v32 = vpack.c.bf16 %v5427_v24, %v5419_v22  ;;  %v7236_v37 = vpack.c.bf16 %v5444_v29, %v5436_v28  ;;  %v5512_v19 = vld [vmem:[%s14521_s1 + $0xdd8] sm:$0xff]  ;;  %v5518_v29 = vld [vmem:[%s14521_s1 + $0xe08] sm:$0xff] }
  0xb1   : > { %7217 = vmatprep.subr.bf16.mxu1 %v7216_v36  ;;  %v5435_v36 = vld [vmem:[%s14521_s1 + $0xbb0] sm:$0xff]  ;;  %v7250_v22 = vpack.c.bf16 %v5493_v47, %v5485_v13 }
  0xb3   : > { %7171 = vmatpush1.bf16.msra.mxu0 %v7170_v46  ;;  %v5464_v46 = vld [vmem:[%s14521_s1 + $0xc58] sm:$0xff] }
  0xb4   : > { %7219 = vmatpush1.bf16.msra.mxu1 %v7218_v48  ;;  %7173 = vmatprep.subr.bf16.mxu0 %v7172_v49  ;;  %v7190_v48 = vpack.c.bf16 %v5441_v35, %v5433_v34  ;;  %v7238_v49 = vpack.c.bf16 %v5443_v38, %v5435_v36  ;;  %v7288_v52 = vpack.c.bf16 %v5464_v46, %v5456_v43  ;;  %v5525_v38 = vld [vmem:[%s14521_s1 + $0xe40] sm:$0xff]  ;;  %v5527_v43 = vld [vmem:[%s14521_s1 + $0xe50] sm:$0xff]  ;;  %v5534_v46 = vld [vmem:[%s14521_s1 + $0xe88] sm:$0xff] }
  0xb5   : > { %7221 = vmatprep.subr.bf16.mxu1 %v7220_v51  ;;  %v5455_v51 = vld [vmem:[%s14521_s1 + $0xc10] sm:$0xff] }
  0xb7   : > { %7175 = vmatpush1.bf16.msra.mxu0 %v7174_v57  ;;  %v5480_v57 = vld [vmem:[%s14521_s1 + $0xcd8] sm:$0xff] }
  0xb8   : > { %7223 = vmatpush1.bf16.msra.mxu1 %v7222_v58  ;;  %7177 = vmatprep.subr.bf16.mxu0 %v7176_v59  ;;  %v7242_v58 = vpack.c.bf16 %v5461_v50, %v5453_v8  ;;  %v7290_v59 = vpack.c.bf16 %v5463_v53, %v5455_v51  ;;  %v7292_v0 = vpack.c.bf16 %v5480_v57, %v5472_v56  ;;  %v5541_v53 = vld [vmem:[%s14521_s1 + $0xec0] sm:$0xff]  ;;  %v5543_v56 = vld [vmem:[%s14521_s1 + $0xed0] sm:$0xff]  ;;  %v5550_v57 = vld [vmem:[%s14521_s1 + $0xf08] sm:$0xff] }
  0xb9   : > { %7225 = vmatprep.subr.bf16.mxu1 %v7224_v63  ;;  %v5471_v63 = vld [vmem:[%s14521_s1 + $0xc90] sm:$0xff]  ;;  %v7306_v50 = vpack.c.bf16 %v5527_v43, %v5519_v39  ;;  %v7310_v62 = vpack.c.bf16 %v5543_v56, %v5535_v54  ;;  %v5597_v39 = vld [vmem:[%s14521_s1 + $0x1080] sm:$0xff] }
  0xba   : > { %v5599_v43 = vld [vmem:[%s14521_s1 + $0x1090] sm:$0xff]  ;;  %v5613_v54 = vld [vmem:[%s14521_s1 + $0x1100] sm:$0xff] }
  0xbb   : > { %7179 = vmatpush1.bf16.msra.mxu0 %v7178_v5  ;;  %v5496_v5 = vld [vmem:[%s14521_s1 + $0xd58] sm:$0xff]  ;;  %v5615_v56 = vld [vmem:[%s14521_s1 + $0x1110] sm:$0xff] }
  0xbc   : > { %7227 = vmatpush1.bf16.msra.mxu1 %v7226_v6  ;;  %7181 = vmatprep.subr.bf16.mxu0 %v7180_v7  ;;  %v10120_v6 = vld [vmem:[%s9037_s4 + $0x8] sm:$0xff] }
  0xbd   : > { %7229 = vmatprep.subr.bf16.mxu1 %v7228_v11  ;;  %v1532_v7 = vrot.slane %v10120_v6, 2  ;;  %v7294_v11 = vpack.c.bf16 %v5479_v1, %v5471_v63  ;;  %v5557_v1 = vld [vmem:[%s14521_s1 + $0xf40] sm:$0xff] }
  0xbf   : > { %7183 = vmatpush1.bf16.msra.mxu0 %v7182_v17  ;;  %v5502_v17 = vld [vmem:[%s14521_s1 + $0xd88] sm:$0xff]  ;;  %v10160_v21 = vsel %vm1528_vm2, %v1532_v7, %v1533_v10 }
  0xc0   : > { %7231 = vmatpush1.bf16.msra.mxu1 %v7230_v31  ;;  %7185 = vmatprep.subr.bf16.mxu0 %v7184_v45  ;;  %v5510_v31 = vld [vmem:[%s14521_s1 + $0xdc8] sm:$0xff]  ;;  %v5504_v45 = vld [vmem:[%s14521_s1 + $0xd98] sm:$0xff] }
  0xc1   : > { %7233 = vmatprep.subr.bf16.mxu1 %v7232_v23  ;;  %v7298_v23 = vpack.c.bf16 %v5495_v16, %v5487_v15  ;;  %v7252_v24 = vpack.c.bf16 %v5510_v31, %v5502_v17  ;;  %v7300_v28 = vpack.c.bf16 %v5512_v19, %v5504_v45  ;;  %v5574_v7 = vld [vmem:[%s14521_s1 + $0xfc8] sm:$0xff]  ;;  %v5565_v15 = vld [vmem:[%s14521_s1 + $0xf80] sm:$0xff]  ;;  %v5567_v16 = vld [vmem:[%s14521_s1 + $0xf90] sm:$0xff] }
  0xc2   : > { %v5575_v31 = vld [vmem:[%s14521_s1 + $0xfd0] sm:$0xff]  ;;  %v5582_v45 = vld [vmem:[%s14521_s1 + $0x1008] sm:$0xff] }
  0xc3   : > { %7187 = vmatpush1.bf16.msra.mxu0 %v7186_v30  ;;  %v5526_v30 = vld [vmem:[%s14521_s1 + $0xe48] sm:$0xff] }
  0xc4   : > { %7235 = vmatpush1.bf16.msra.mxu1 %v7234_v32  ;;  %7189 = vmatprep.subr.bf16.mxu0 %v7188_v33  ;;  %v5520_v32 = vld [vmem:[%s14521_s1 + $0xe18] sm:$0xff]  ;;  %v7256_v36 = vpack.c.bf16 %v5526_v30, %v5518_v29  ;;  %v5590_v19 = vld [vmem:[%s14521_s1 + $0x1048] sm:$0xff]  ;;  %v5591_v30 = vld [vmem:[%s14521_s1 + $0x1050] sm:$0xff] }
  0xc5   : > { %7237 = vmatprep.subr.bf16.mxu1 %v7236_v37  ;;  %v5528_v33 = vld [vmem:[%s14521_s1 + $0xe58] sm:$0xff]  ;;  %v5517_v37 = vld [vmem:[%s14521_s1 + $0xe00] sm:$0xff] }
  0xc6   : > { %v7304_v40 = vpack.c.bf16 %v5528_v33, %v5520_v32  ;;  %v7258_v8 = vpack.c.bf16 %v5525_v38, %v5517_v37  ;;  %v5598_v32 = vld [vmem:[%s14521_s1 + $0x1088] sm:$0xff] }
  0xc7   : > { %7191 = vmatpush1.bf16.msra.mxu0 %v7190_v48  ;;  %v5542_v48 = vld [vmem:[%s14521_s1 + $0xec8] sm:$0xff] }
  0xc8   : > { %7239 = vmatpush1.bf16.msra.mxu1 %v7238_v49  ;;  %7241 = vmatprep.subr.bf16.mxu0 %v7240_v42  ;;  %v5536_v49 = vld [vmem:[%s14521_s1 + $0xe98] sm:$0xff]  ;;  %v7260_v51 = vpack.c.bf16 %v5542_v48, %v5534_v46  ;;  %v5606_v33 = vld [vmem:[%s14521_s1 + $0x10c8] sm:$0xff]  ;;  %v5607_v48 = vld [vmem:[%s14521_s1 + $0x10d0] sm:$0xff] }
  0xc9   : > { %7289 = vmatprep.subr.bf16.mxu1 %v7288_v52  ;;  %v5544_v42 = vld [vmem:[%s14521_s1 + $0xed8] sm:$0xff]  ;;  %v5533_v52 = vld [vmem:[%s14521_s1 + $0xe80] sm:$0xff]  ;;  %v7276_v38 = vpack.c.bf16 %v5606_v33, %v5598_v32  ;;  %v1535_v33 = vrot.slane %v9764_v18, 2  ;;  %v5483_v18 = vld [vmem:[%s14521_s1 + $0xcf0] sm:$0xff] }
  0xca   : > { %1230 = vmatmul.mubr.f32.vlgmr.msra.gmra.mrb[4].mxu0 %v9783_v26  ;;  %v7308_v55 = vpack.c.bf16 %v5544_v42, %v5536_v49  ;;  %v7262_v61 = vpack.c.bf16 %v5541_v53, %v5533_v52  ;;  %v5614_v49 = vld [vmem:[%s14521_s1 + $0x1108] sm:$0xff]  ;;  %v7326_v52 = vpack.c.bf16 %v5607_v48, %v5599_v43  ;;  %v5492_v43 = vld [vmem:[%s14521_s1 + $0xd38] sm:$0xff] }
  0xcb   : > { %1307 = vmatmul.mubr.f32.vlgmr.msra.gmra.mrb[4].mxu1 %v9783_v26  ;;  %7243 = vmatpush1.bf16.msra.mxu0 %v7242_v58  ;;  %v7296_v26 = vpack.c.bf16 %v5496_v5, %v5488_v4  ;;  %v5558_v58 = vld [vmem:[%s14521_s1 + $0xf48] sm:$0xff]  ;;  %v5559_v4 = vld [vmem:[%s14521_s1 + $0xf50] sm:$0xff] }
  0xcc   : > { %7291 = vmatpush1.bf16.msra.mxu1 %v7290_v59  ;;  %7245 = vmatprep.subr.bf16.mxu0 %v7244_v60  ;;  %v5552_v59 = vld [vmem:[%s14521_s1 + $0xf18] sm:$0xff]  ;;  %v7264_v63 = vpack.c.bf16 %v5558_v58, %v5550_v57  ;;  %v5566_v5 = vld [vmem:[%s14521_s1 + $0xf88] sm:$0xff]  ;;  %v7314_v13 = vpack.c.bf16 %v5559_v4, %v5551_v2  ;;  %v5623_v58 = vld [vmem:[%s14521_s1 + $0x1150] sm:$0xff] }
  0xcd   : > { %7293 = vmatprep.subr.bf16.mxu1 %v7292_v0  ;;  %5450 = vmatprep.mubr.msk.f32.mxu0 %vm466_vm0, %v9814_v41  ;;  %v5560_v60 = vld [vmem:[%s14521_s1 + $0xf58] sm:$0xff]  ;;  %v5549_v0 = vld [vmem:[%s14521_s1 + $0xf00] sm:$0xff]  ;;  %v7268_v47 = vpack.c.bf16 %v5574_v7, %v5566_v5  ;;  %v5622_v42 = vld [vmem:[%s14521_s1 + $0x1148] sm:$0xff] }
  0xce   : > { %5452 = vmatprep.mubr.msk.f32.mxu1 %vm466_vm0, %v9814_v41  ;;  %1236 = vmatmul.mubr.f32.gmra.mrb[6].mxu0 %v9818_v44  ;;  %v5509_v41 = vld [vmem:[%s14521_s1 + $0xdc0] sm:$0xff]  ;;  %v7312_v3 = vpack.c.bf16 %v5560_v60, %v5552_v59  ;;  %v7280_v53 = vpack.c.bf16 %v5622_v42, %v5614_v49  ;;  %v5630_v59 = vld [vmem:[%s14521_s1 + $0x1188] sm:$0xff]  ;;  %v5631_v4 = vld [vmem:[%s14521_s1 + $0x1190] sm:$0xff] }
  0xcf   : > { %7247 = vmatpush1.bf16.msra.mxu0 %v7246_v20  ;;  %1313 = vmatmul.mubr.f32.gmra.mrb[6].mxu1 %v9818_v44  ;;  %v5511_v44 = vld [vmem:[%s14521_s1 + $0xdd0] sm:$0xff]  ;;  %v7254_v34 = vpack.c.bf16 %v5509_v41, %v5501_v25  ;;  %v5568_v20 = vld [vmem:[%s14521_s1 + $0xf98] sm:$0xff]  ;;  %v7318_v25 = vpack.c.bf16 %v5575_v31, %v5567_v16  ;;  %v7272_v41 = vpack.c.bf16 %v5590_v19, %v5582_v45  ;;  %v5638_v60 = vld [vmem:[%s14521_s1 + $0x11c8] sm:$0xff] }
  0xd0   : > { %7295 = vmatpush1.bf16.msra.mxu1 %v7294_v11  ;;  %7249 = vmatprep.subr.bf16.mxu0 %v7248_v12  ;;  %v7302_v35 = vpack.c.bf16 %v5511_v44, %v5503_v27  ;;  %v5576_v11 = vld [vmem:[%s14521_s1 + $0xfd8] sm:$0xff]  ;;  %v7266_v12 = vpack.c.bf16 %v5557_v1, %v5549_v0  ;;  %v5581_v27 = vld [vmem:[%s14521_s1 + $0x1000] sm:$0xff]  ;;  %v5583_v44 = vld [vmem:[%s14521_s1 + $0x1010] sm:$0xff]  ;;  %v7330_v0 = vpack.c.bf16 %v5623_v58, %v5615_v56 }
  0xd1   : > { %7297 = vmatprep.subr.bf16.mxu1 %v7296_v26  ;;  %5645 = vmatprep.mubr.msk.f32.mxu0 %vm466_vm0, %v10160_v21  ;;  %v5573_v26 = vld [vmem:[%s14521_s1 + $0xfc0] sm:$0xff]  ;;  %v7316_v17 = vpack.c.bf16 %v5576_v11, %v5568_v20  ;;  %v7322_v37 = vpack.c.bf16 %v5591_v30, %v5583_v44  ;;  %v7284_v1 = vpack.c.bf16 %v5638_v60, %v5630_v59  ;;  %v5639_v7 = vld [vmem:[%s14521_s1 + $0x11d0] sm:$0xff]  ;;  %v5458_v20 = vld [vmem:[%s14521_s1 + $0xc28] sm:$0xff] }
  0xd2   : > { %5647 = vmatprep.mubr.msk.f32.mxu1 %vm466_vm0, %v10160_v21  ;;  %v5629_v2 = vld [vmem:[%s14521_s1 + $0x1180] sm:$0xff]  ;;  %v5466_v11 = vld [vmem:[%s14521_s1 + $0xc68] sm:$0xff]  ;;  %v10388_v16 = vld [vmem:[%s9037_s4 + $0x10] sm:$0xff]  ;;  %v7334_v31 = vpack.c.bf16 %v5639_v7, %v5631_v4 }
  0xd3   : > { %7251 = vmatpush1.bf16.msra.mxu0 %v7250_v22  ;;  %v5584_v22 = vld [vmem:[%s14521_s1 + $0x1018] sm:$0xff]  ;;  %v7336_v45 = vpack.c.bf16 %v5466_v11, %v5458_v20  ;;  %v5457_v19 = vld [vmem:[%s14521_s1 + $0xc20] sm:$0xff]  ;;  %v5514_v56 = vld [vmem:[%s14521_s1 + $0xde8] sm:$0xff] }
  0xd4   : > { %7299 = vmatpush1.bf16.msra.mxu1 %v7298_v23  ;;  %7253 = vmatprep.subr.bf16.mxu0 %v7252_v24  ;;  %v5592_v23 = vld [vmem:[%s14521_s1 + $0x1058] sm:$0xff]  ;;  %v7270_v24 = vpack.c.bf16 %v5573_v26, %v5565_v15  ;;  %v10384_v15 = vld [vmem:[%s9037_s4] sm:$0xff]  ;;  %v5530_v4 = vld [vmem:[%s14521_s1 + $0xe68] sm:$0xff] }
  0xd5   : > { %7301 = vmatprep.subr.bf16.mxu1 %v7300_v28  ;;  %v5589_v28 = vld [vmem:[%s14521_s1 + $0x1040] sm:$0xff]  ;;  %v7320_v29 = vpack.c.bf16 %v5592_v23, %v5584_v22  ;;  %v1529_v26 = vrot.slane %v10384_v15, 2  ;;  %v5459_v23 = vld [vmem:[%s14521_s1 + $0xc30] sm:$0xff]  ;;  %v5484_v44 = vld [vmem:[%s14521_s1 + $0xcf8] sm:$0xff] }
  0xd6   : > { %v5465_v22 = vld [vmem:[%s14521_s1 + $0xc60] sm:$0xff]  ;;  %v5516_v58 = vld [vmem:[%s14521_s1 + $0xdf8] sm:$0xff] }
  0xd7   : > { %7255 = vmatpush1.bf16.msra.mxu0 %v7254_v34  ;;  %v5600_v34 = vld [vmem:[%s14521_s1 + $0x1098] sm:$0xff]  ;;  %v7338_v32 = vpack.c.bf16 %v5465_v22, %v5457_v19 }
  0xd8   : > { %7303 = vmatpush1.bf16.msra.mxu1 %v7302_v35  ;;  %7257 = vmatprep.subr.bf16.mxu0 %v7256_v36  ;;  %v5608_v35 = vld [vmem:[%s14521_s1 + $0x10d8] sm:$0xff]  ;;  %v7274_v36 = vpack.c.bf16 %v5589_v28, %v5581_v27  ;;  %v5482_v27 = vld [vmem:[%s14521_s1 + $0xce8] sm:$0xff] }
  0xd9   : > { %7305 = vmatprep.subr.bf16.mxu1 %v7304_v40  ;;  %v5605_v40 = vld [vmem:[%s14521_s1 + $0x10c0] sm:$0xff]  ;;  %v7324_v46 = vpack.c.bf16 %v5608_v35, %v5600_v34  ;;  %v5476_v28 = vld [vmem:[%s14521_s1 + $0xcb8] sm:$0xff] }
  0xda   : > { %v5532_v7 = vld [vmem:[%s14521_s1 + $0xe78] sm:$0xff] }
  0xdb   : > { %7259 = vmatpush1.bf16.msra.mxu0 %v7258_v8  ;;  %v5616_v8 = vld [vmem:[%s14521_s1 + $0x1118] sm:$0xff] }
  0xdc   : > { %7307 = vmatpush1.bf16.msra.mxu1 %v7306_v50  ;;  %7261 = vmatprep.subr.bf16.mxu0 %v7260_v51  ;;  %v5624_v50 = vld [vmem:[%s14521_s1 + $0x1158] sm:$0xff]  ;;  %v7278_v51 = vpack.c.bf16 %v5605_v40, %v5597_v39  ;;  %v5490_v39 = vld [vmem:[%s14521_s1 + $0xd28] sm:$0xff] }
  0xdd   : > { %7309 = vmatprep.subr.bf16.mxu1 %v7308_v55  ;;  %v5621_v55 = vld [vmem:[%s14521_s1 + $0x1140] sm:$0xff]  ;;  %v7328_v57 = vpack.c.bf16 %v5624_v50, %v5616_v8  ;;  %v5498_v40 = vld [vmem:[%s14521_s1 + $0xd68] sm:$0xff]  ;;  %v5540_v19 = vld [vmem:[%s14521_s1 + $0xeb8] sm:$0xff] }
  0xde   : > { %v7344_v50 = vpack.c.bf16 %v5498_v40, %v5490_v39  ;;  %v5548_v22 = vld [vmem:[%s14521_s1 + $0xef8] sm:$0xff]  ;;  %v5555_v39 = vld [vmem:[%s14521_s1 + $0xf30] sm:$0xff] }
  0xdf   : > { %7263 = vmatpush1.bf16.msra.mxu0 %v7262_v61  ;;  %v5632_v61 = vld [vmem:[%s14521_s1 + $0x1198] sm:$0xff] }
  0xe0   : > { %7311 = vmatpush1.bf16.msra.mxu1 %v7310_v62  ;;  %7265 = vmatprep.subr.bf16.mxu0 %v7264_v63  ;;  %v5640_v62 = vld [vmem:[%s14521_s1 + $0x11d8] sm:$0xff]  ;;  %v7282_v63 = vpack.c.bf16 %v5621_v55, %v5613_v54  ;;  %v5499_v54 = vld [vmem:[%s14521_s1 + $0xd70] sm:$0xff]  ;;  %v5506_v55 = vld [vmem:[%s14521_s1 + $0xda8] sm:$0xff] }
  0xe1   : > { %7313 = vmatprep.subr.bf16.mxu1 %v7312_v3  ;;  %v5637_v3 = vld [vmem:[%s14521_s1 + $0x11c0] sm:$0xff]  ;;  %v7332_v5 = vpack.c.bf16 %v5640_v62, %v5632_v61  ;;  %v7348_v61 = vpack.c.bf16 %v5514_v56, %v5506_v55  ;;  %v5571_v55 = vld [vmem:[%s14521_s1 + $0xfb0] sm:$0xff] }
  0xe2   : > { %v5505_v62 = vld [vmem:[%s14521_s1 + $0xda0] sm:$0xff] }
  0xe3   : > { %7267 = vmatpush1.bf16.msra.mxu0 %v7266_v12  ;;  %v5460_v12 = vld [vmem:[%s14521_s1 + $0xc38] sm:$0xff] }
  0xe4   : > { %7315 = vmatpush1.bf16.msra.mxu1 %v7314_v13  ;;  %7269 = vmatprep.subr.bf16.mxu0 %v7268_v47  ;;  %v5468_v13 = vld [vmem:[%s14521_s1 + $0xc78] sm:$0xff]  ;;  %v7286_v47 = vpack.c.bf16 %v5637_v3, %v5629_v2  ;;  %v5515_v2 = vld [vmem:[%s14521_s1 + $0xdf0] sm:$0xff]  ;;  %v5522_v3 = vld [vmem:[%s14521_s1 + $0xe28] sm:$0xff] }
  0xe5   : > { %7317 = vmatprep.subr.bf16.mxu1 %v7316_v17  ;;  %v1530_v17 = vrot.slane %v10388_v16, 2 }
  0xe7   : > { %7271 = vmatpush1.bf16.msra.mxu0 %v7270_v24  ;;  %v7384_v24 = vpack.c.bf16 %v5468_v13, %v5460_v12  ;;  %v10417_v30 = vsel %vm1528_vm2, %v1529_v26, %v1530_v17  ;;  %v10452_v42 = vsel %vm1528_vm2, %v1530_v17, %v1535_v33  ;;  %v7352_v12 = vpack.c.bf16 %v5530_v4, %v5522_v3  ;;  %v5521_v13 = vld [vmem:[%s14521_s1 + $0xe20] sm:$0xff]  ;;  %v5523_v26 = vld [vmem:[%s14521_s1 + $0xe30] sm:$0xff]  ;;  %v5562_v33 = vld [vmem:[%s14521_s1 + $0xf68] sm:$0xff] }
  0xe8   : > { %7319 = vmatpush1.bf16.msra.mxu1 %v7318_v25  ;;  %7273 = vmatprep.subr.bf16.mxu0 %v7272_v41  ;;  %v5467_v25 = vld [vmem:[%s14521_s1 + $0xc70] sm:$0xff]  ;;  %v5474_v41 = vld [vmem:[%s14521_s1 + $0xca8] sm:$0xff] }
  0xe9   : > { %7321 = vmatprep.subr.bf16.mxu1 %v7320_v29  ;;  %v1537_v29 = vrot.slane %v9755_v14, 2  ;;  %v7386_v34 = vpack.c.bf16 %v5467_v25, %v5459_v23  ;;  %v7340_v35 = vpack.c.bf16 %v5482_v27, %v5474_v41  ;;  %v5475_v14 = vld [vmem:[%s14521_s1 + $0xcb0] sm:$0xff]  ;;  %v5537_v41 = vld [vmem:[%s14521_s1 + $0xea0] sm:$0xff] }
  0xea   : > { %v7390_v8 = vpack.c.bf16 %v5483_v18, %v5475_v14  ;;  %v5531_v17 = vld [vmem:[%s14521_s1 + $0xe70] sm:$0xff]  ;;  %v5545_v27 = vld [vmem:[%s14521_s1 + $0xee0] sm:$0xff] }
  0xeb   : > { %7275 = vmatpush1.bf16.msra.mxu0 %v7274_v36  ;;  %v5473_v36 = vld [vmem:[%s14521_s1 + $0xca0] sm:$0xff]  ;;  %v10448_v48 = vsel %vm1528_vm2, %v1533_v10, %v1537_v29  ;;  %v5547_v29 = vld [vmem:[%s14521_s1 + $0xef0] sm:$0xff] }
  0xec   : > { %7323 = vmatpush1.bf16.msra.mxu1 %v7322_v37  ;;  %7277 = vmatprep.subr.bf16.mxu0 %v7276_v38  ;;  %v5481_v37 = vld [vmem:[%s14521_s1 + $0xce0] sm:$0xff]  ;;  %v7388_v38 = vpack.c.bf16 %v5484_v44, %v5476_v28  ;;  %v5539_v28 = vld [vmem:[%s14521_s1 + $0xeb0] sm:$0xff]  ;;  %v7404_v44 = vpack.c.bf16 %v5548_v22, %v5540_v19  ;;  %v5618_v22 = vld [vmem:[%s14521_s1 + $0x1128] sm:$0xff] }
  0xed   : > { %7325 = vmatprep.subr.bf16.mxu1 %v7324_v46  ;;  %v5500_v46 = vld [vmem:[%s14521_s1 + $0xd78] sm:$0xff]  ;;  %v7342_v49 = vpack.c.bf16 %v5481_v37, %v5473_v36  ;;  %v5497_v10 = vld [vmem:[%s14521_s1 + $0xd60] sm:$0xff]  ;;  %v7358_v36 = vpack.c.bf16 %v5545_v27, %v5537_v41  ;;  %v7406_v37 = vpack.c.bf16 %v5547_v29, %v5539_v28  ;;  %v5587_v3 = vld [vmem:[%s14521_s1 + $0x1030] sm:$0xff] }
  0xee   : > { %v5561_v18 = vld [vmem:[%s14521_s1 + $0xf60] sm:$0xff]  ;;  %v5611_v19 = vld [vmem:[%s14521_s1 + $0x10f0] sm:$0xff] }
  0xef   : > { %7279 = vmatpush1.bf16.msra.mxu0 %v7278_v51  ;;  %v5489_v51 = vld [vmem:[%s14521_s1 + $0xd20] sm:$0xff] }
  0xf0   : > { %7327 = vmatpush1.bf16.msra.mxu1 %v7326_v52  ;;  %7281 = vmatprep.subr.bf16.mxu0 %v7280_v53  ;;  %v5491_v52 = vld [vmem:[%s14521_s1 + $0xd30] sm:$0xff]  ;;  %v7392_v53 = vpack.c.bf16 %v5500_v46, %v5492_v43  ;;  %v7346_v59 = vpack.c.bf16 %v5497_v10, %v5489_v51  ;;  %v5570_v46 = vld [vmem:[%s14521_s1 + $0xfa8] sm:$0xff]  ;;  %v5625_v29 = vld [vmem:[%s14521_s1 + $0x1160] sm:$0xff] }
  0xf1   : > { %7329 = vmatprep.subr.bf16.mxu1 %v7328_v57  ;;  %v5508_v57 = vld [vmem:[%s14521_s1 + $0xdb8] sm:$0xff]  ;;  %v7394_v60 = vpack.c.bf16 %v5499_v54, %v5491_v52  ;;  %v5563_v43 = vld [vmem:[%s14521_s1 + $0xf70] sm:$0xff]  ;;  %v5577_v54 = vld [vmem:[%s14521_s1 + $0xfe0] sm:$0xff] }
  0xf2   : > { %v7410_v10 = vpack.c.bf16 %v5563_v43, %v5555_v39  ;;  %v5641_v43 = vld [vmem:[%s14521_s1 + $0x11e0] sm:$0xff] }
  0xf3   : > { %7283 = vmatpush1.bf16.msra.mxu0 %v7282_v63  ;;  %v5513_v63 = vld [vmem:[%s14521_s1 + $0xde0] sm:$0xff] }
  0xf4   : > { %7331 = vmatpush1.bf16.msra.mxu1 %v7330_v0  ;;  %7285 = vmatprep.subr.bf16.mxu0 %v7284_v1  ;;  %v5507_v0 = vld [vmem:[%s14521_s1 + $0xdb0] sm:$0xff]  ;;  %v7396_v1 = vpack.c.bf16 %v5516_v58, %v5508_v57  ;;  %v7350_v20 = vpack.c.bf16 %v5513_v63, %v5505_v62  ;;  %v5586_v58 = vld [vmem:[%s14521_s1 + $0x1028] sm:$0xff] }
  0xf5   : > { %7333 = vmatprep.subr.bf16.mxu1 %v7332_v5  ;;  %v5524_v5 = vld [vmem:[%s14521_s1 + $0xe38] sm:$0xff]  ;;  %v7398_v11 = vpack.c.bf16 %v5515_v2, %v5507_v0  ;;  %v5579_v57 = vld [vmem:[%s14521_s1 + $0xff0] sm:$0xff]  ;;  %v5593_v2 = vld [vmem:[%s14521_s1 + $0x1060] sm:$0xff] }
  0xf6   : > { %v7414_v63 = vpack.c.bf16 %v5579_v57, %v5571_v55  ;;  %v5661_v57 = vld [vmem:[%s14521_s1 + $0x1240] sm:$0xff] }
  0xf7   : > { %7287 = vmatpush1.bf16.msra.mxu0 %v7286_v47  ;;  %v5529_v47 = vld [vmem:[%s14521_s1 + $0xe60] sm:$0xff] }
  0xf8   : > { %7335 = vmatpush1.bf16.msra.mxu1 %v7334_v31  ;;  %7337 = vmatprep.subr.bf16.mxu0 %v7336_v45  ;;  %v5538_v31 = vld [vmem:[%s14521_s1 + $0xea8] sm:$0xff]  ;;  %v7354_v23 = vpack.c.bf16 %v5529_v47, %v5521_v13 }
  0xf9   : > { %7385 = vmatprep.subr.bf16.mxu1 %v7384_v24  ;;  %v5546_v45 = vld [vmem:[%s14521_s1 + $0xee8] sm:$0xff]  ;;  %v7402_v24 = vpack.c.bf16 %v5531_v17, %v5523_v26  ;;  %v5609_v17 = vld [vmem:[%s14521_s1 + $0x10e0] sm:$0xff] }
  0xfa   : > { %1610 = vmatmul.mubr.f32.vlgmr.msra.gmra.mrb[0].mxu0 %v10417_v30  ;;  %v7356_v25 = vpack.c.bf16 %v5546_v45, %v5538_v31  ;;  %v5603_v31 = vld [vmem:[%s14521_s1 + $0x10b0] sm:$0xff] }
  0xfb   : > { %1687 = vmatmul.mubr.f32.vlgmr.msra.gmra.mrb[0].mxu1 %v10417_v30  ;;  %7339 = vmatpush1.bf16.msra.mxu0 %v7338_v32  ;;  %v5554_v32 = vld [vmem:[%s14521_s1 + $0xf28] sm:$0xff]  ;;  %v7422_v27 = vpack.c.bf16 %v5611_v19, %v5603_v31 }
  0xfc   : > { %7387 = vmatpush1.bf16.msra.mxu1 %v7386_v34  ;;  %7341 = vmatprep.subr.bf16.mxu0 %v7340_v35  ;;  %v5556_v34 = vld [vmem:[%s14521_s1 + $0xf38] sm:$0xff]  ;;  %v7360_v14 = vpack.c.bf16 %v5562_v33, %v5554_v32  ;;  %v5619_v32 = vld [vmem:[%s14521_s1 + $0x1130] sm:$0xff] }
  0xfd   : > { %7389 = vmatprep.subr.bf16.mxu1 %v7388_v38  ;;  %5646 = vmatprep.mubr.msk.f32.mxu0 %vm466_vm0, %v10448_v48  ;;  %v5564_v35 = vld [vmem:[%s14521_s1 + $0xf78] sm:$0xff]  ;;  %v5553_v38 = vld [vmem:[%s14521_s1 + $0xf20] sm:$0xff] }
  0xfe   : > { %5648 = vmatprep.mubr.msk.f32.mxu1 %vm466_vm0, %v10448_v48  ;;  %1616 = vmatmul.mubr.f32.gmra.mrb[2].mxu0 %v10452_v42  ;;  %v7408_v40 = vpack.c.bf16 %v5564_v35, %v5556_v34  ;;  %v7362_v51 = vpack.c.bf16 %v5561_v18, %v5553_v38  ;;  %v5627_v34 = vld [vmem:[%s14521_s1 + $0x1170] sm:$0xff]  ;;  %v5634_v35 = vld [vmem:[%s14521_s1 + $0x11a8] sm:$0xff] }
  0xff   : > { %7343 = vmatpush1.bf16.msra.mxu0 %v7342_v49  ;;  %1693 = vmatmul.mubr.f32.gmra.mrb[2].mxu1 %v10452_v42  ;;  %v5578_v49 = vld [vmem:[%s14521_s1 + $0xfe8] sm:$0xff]  ;;  %v7426_v18 = vpack.c.bf16 %v5627_v34, %v5619_v32  ;;  %v5701_v34 = vld [vmem:[%s14521_s1 + $0x1380] sm:$0xff] }
 0x100   : > { %7391 = vmatpush1.bf16.msra.mxu1 %v7390_v8  ;;  %7345 = vmatprep.subr.bf16.mxu0 %v7344_v50  ;;  %v5572_v8 = vld [vmem:[%s14521_s1 + $0xfb8] sm:$0xff]  ;;  %v7364_v52 = vpack.c.bf16 %v5578_v49, %v5570_v46  ;;  %v5635_v46 = vld [vmem:[%s14521_s1 + $0x11b0] sm:$0xff] }
 0x101   : > { %7393 = vmatprep.subr.bf16.mxu1 %v7392_v53  ;;  %5649 = vmatprep.mubr.msk.f32.mxu0 %vm466_vm0, %v10160_v21  ;;  %v5580_v50 = vld [vmem:[%s14521_s1 + $0xff8] sm:$0xff]  ;;  %v5569_v53 = vld [vmem:[%s14521_s1 + $0xfa0] sm:$0xff] }
 0x102   : > { %5651 = vmatprep.mubr.msk.f32.mxu1 %vm466_vm0, %v10160_v21  ;;  %v7400_v21 = vpack.c.bf16 %v5532_v7, %v5524_v5  ;;  %v7412_v56 = vpack.c.bf16 %v5580_v50, %v5572_v8  ;;  %v7366_v62 = vpack.c.bf16 %v5577_v54, %v5569_v53  ;;  %v5595_v5 = vld [vmem:[%s14521_s1 + $0x1070] sm:$0xff]  ;;  %v5602_v7 = vld [vmem:[%s14521_s1 + $0x10a8] sm:$0xff] }
 0x103   : > { %7347 = vmatpush1.bf16.msra.mxu0 %v7346_v59  ;;  %v5594_v59 = vld [vmem:[%s14521_s1 + $0x1068] sm:$0xff]  ;;  %v7418_v47 = vpack.c.bf16 %v5595_v5, %v5587_v3  ;;  %v5643_v8 = vld [vmem:[%s14521_s1 + $0x11f0] sm:$0xff]  ;;  %v5677_v5 = vld [vmem:[%s14521_s1 + $0x12c0] sm:$0xff] }
 0x104   : > { %7395 = vmatpush1.bf16.msra.mxu1 %v7394_v60  ;;  %7349 = vmatprep.subr.bf16.mxu0 %v7348_v61  ;;  %v5588_v60 = vld [vmem:[%s14521_s1 + $0x1038] sm:$0xff]  ;;  %v7368_v0 = vpack.c.bf16 %v5594_v59, %v5586_v58  ;;  %v5654_v50 = vld [vmem:[%s14521_s1 + $0x1208] sm:$0xff]  ;;  %v7430_v54 = vpack.c.bf16 %v5643_v8, %v5635_v46  ;;  %v5655_v58 = vld [vmem:[%s14521_s1 + $0x1210] sm:$0xff] }
 0x105   : > { %7397 = vmatprep.subr.bf16.mxu1 %v7396_v1  ;;  %v5596_v61 = vld [vmem:[%s14521_s1 + $0x1078] sm:$0xff]  ;;  %v5585_v1 = vld [vmem:[%s14521_s1 + $0x1020] sm:$0xff]  ;;  %v5719_v8 = vld [vmem:[%s14521_s1 + $0x1410] sm:$0xff] }
 0x106   : > { %v7416_v4 = vpack.c.bf16 %v5596_v61, %v5588_v60  ;;  %v7370_v13 = vpack.c.bf16 %v5593_v2, %v5585_v1  ;;  %v5663_v60 = vld [vmem:[%s14521_s1 + $0x1250] sm:$0xff]  ;;  %v5670_v61 = vld [vmem:[%s14521_s1 + $0x1288] sm:$0xff]  ;;  %v5717_v46 = vld [vmem:[%s14521_s1 + $0x1400] sm:$0xff] }
 0x107   : > { %7351 = vmatpush1.bf16.msra.mxu0 %v7350_v20  ;;  %v5610_v20 = vld [vmem:[%s14521_s1 + $0x10e8] sm:$0xff]  ;;  %v7482_v2 = vpack.c.bf16 %v5663_v60, %v5655_v58  ;;  %v5733_v58 = vld [vmem:[%s14521_s1 + $0x1480] sm:$0xff]  ;;  %v5735_v60 = vld [vmem:[%s14521_s1 + $0x1490] sm:$0xff] }
 0x108   : > { %7399 = vmatpush1.bf16.msra.mxu1 %v7398_v11  ;;  %7353 = vmatprep.subr.bf16.mxu0 %v7352_v12  ;;  %v5604_v11 = vld [vmem:[%s14521_s1 + $0x10b8] sm:$0xff]  ;;  %v7372_v26 = vpack.c.bf16 %v5610_v20, %v5602_v7  ;;  %v5671_v7 = vld [vmem:[%s14521_s1 + $0x1290] sm:$0xff] }
 0x109   : > { %7401 = vmatprep.subr.bf16.mxu1 %v7400_v21  ;;  %v5612_v12 = vld [vmem:[%s14521_s1 + $0x10f8] sm:$0xff]  ;;  %v5601_v21 = vld [vmem:[%s14521_s1 + $0x10a0] sm:$0xff] }
 0x10a   : > { %v7420_v45 = vpack.c.bf16 %v5612_v12, %v5604_v11  ;;  %v7374_v41 = vpack.c.bf16 %v5609_v17, %v5601_v21  ;;  %v5679_v11 = vld [vmem:[%s14521_s1 + $0x12d0] sm:$0xff]  ;;  %v5686_v12 = vld [vmem:[%s14521_s1 + $0x1308] sm:$0xff]  ;;  %v2066_v21 = vrot.slane %v10120_v6, 3  ;;  %v2067_v17 = vrot.slane %v10124_v9, 3  ;;  %v5697_v9 = vld [vmem:[%s14521_s1 + $0x1360] sm:$0xff] }
 0x10b   : > { %7355 = vmatpush1.bf16.msra.mxu0 %v7354_v23  ;;  %v5626_v23 = vld [vmem:[%s14521_s1 + $0x1168] sm:$0xff]  ;;  %v5687_v6 = vld [vmem:[%s14521_s1 + $0x1310] sm:$0xff] }
 0x10c   : > { %7403 = vmatpush1.bf16.msra.mxu1 %v7402_v24  ;;  %7357 = vmatprep.subr.bf16.mxu0 %v7356_v25  ;;  %v5620_v24 = vld [vmem:[%s14521_s1 + $0x1138] sm:$0xff]  ;;  %v7376_v28 = vpack.c.bf16 %v5626_v23, %v5618_v22  ;;  %v5685_v22 = vld [vmem:[%s14521_s1 + $0x1300] sm:$0xff] }
 0x10d   : > { %7405 = vmatprep.subr.bf16.mxu1 %v7404_v44  ;;  %v5628_v25 = vld [vmem:[%s14521_s1 + $0x1178] sm:$0xff]  ;;  %v5617_v44 = vld [vmem:[%s14521_s1 + $0x1120] sm:$0xff] }
 0x10e   : > { %v7424_v33 = vpack.c.bf16 %v5628_v25, %v5620_v24  ;;  %v7378_v38 = vpack.c.bf16 %v5625_v29, %v5617_v44  ;;  %v5693_v23 = vld [vmem:[%s14521_s1 + $0x1340] sm:$0xff]  ;;  %v5695_v24 = vld [vmem:[%s14521_s1 + $0x1350] sm:$0xff]  ;;  %v5702_v25 = vld [vmem:[%s14521_s1 + $0x1388] sm:$0xff]  ;;  %v10788_v44 = vsel %vm2062_vm3, %v2066_v21, %v2067_v17 }
 0x10f   : > { %7359 = vmatpush1.bf16.msra.mxu0 %v7358_v36  ;;  %v5642_v36 = vld [vmem:[%s14521_s1 + $0x11e8] sm:$0xff]  ;;  %v7442_v29 = vpack.c.bf16 %v5693_v23, %v5685_v22  ;;  %v7490_v32 = vpack.c.bf16 %v5695_v24, %v5687_v6  ;;  %v5768_v21 = vld [vmem:[%s14521_s1 + $0x1598] sm:$0xff]  ;;  %v5765_v23 = vld [vmem:[%s14521_s1 + $0x1580] sm:$0xff] }
 0x110   : > { %7407 = vmatpush1.bf16.msra.mxu1 %v7406_v37  ;;  %7361 = vmatprep.subr.bf16.mxu0 %v7360_v14  ;;  %v5636_v37 = vld [vmem:[%s14521_s1 + $0x11b8] sm:$0xff]  ;;  %v7380_v39 = vpack.c.bf16 %v5642_v36, %v5634_v35  ;;  %v5703_v35 = vld [vmem:[%s14521_s1 + $0x1390] sm:$0xff]  ;;  %v5773_v6 = vld [vmem:[%s14521_s1 + $0x15c0] sm:$0xff] }
 0x111   : > { %7409 = vmatprep.subr.bf16.mxu1 %v7408_v40  ;;  %v5644_v14 = vld [vmem:[%s14521_s1 + $0x11f8] sm:$0xff]  ;;  %v5633_v40 = vld [vmem:[%s14521_s1 + $0x11a0] sm:$0xff] }
 0x112   : > { %v7428_v49 = vpack.c.bf16 %v5644_v14, %v5636_v37  ;;  %v7382_v53 = vpack.c.bf16 %v5641_v43, %v5633_v40  ;;  %v5718_v37 = vld [vmem:[%s14521_s1 + $0x1408] sm:$0xff] }
 0x113   : > { %7363 = vmatpush1.bf16.msra.mxu0 %v7362_v51  ;;  %v5662_v51 = vld [vmem:[%s14521_s1 + $0x1248] sm:$0xff] }
 0x114   : > { %7411 = vmatpush1.bf16.msra.mxu1 %v7410_v10  ;;  %7365 = vmatprep.subr.bf16.mxu0 %v7364_v52  ;;  %v5656_v10 = vld [vmem:[%s14521_s1 + $0x1218] sm:$0xff]  ;;  %v7432_v55 = vpack.c.bf16 %v5662_v51, %v5654_v50  ;;  %v5726_v14 = vld [vmem:[%s14521_s1 + $0x1448] sm:$0xff]  ;;  %v5727_v51 = vld [vmem:[%s14521_s1 + $0x1450] sm:$0xff] }
 0x115   : > { %7413 = vmatprep.subr.bf16.mxu1 %v7412_v56  ;;  %v5664_v52 = vld [vmem:[%s14521_s1 + $0x1258] sm:$0xff]  ;;  %v5653_v56 = vld [vmem:[%s14521_s1 + $0x1200] sm:$0xff]  ;;  %v7448_v43 = vpack.c.bf16 %v5726_v14, %v5718_v37  ;;  %v5791_v37 = vld [vmem:[%s14521_s1 + $0x1650] sm:$0xff] }
 0x116   : > { %v7480_v59 = vpack.c.bf16 %v5664_v52, %v5656_v10  ;;  %v7434_v1 = vpack.c.bf16 %v5661_v57, %v5653_v56  ;;  %v5734_v10 = vld [vmem:[%s14521_s1 + $0x1488] sm:$0xff]  ;;  %v7498_v56 = vpack.c.bf16 %v5727_v51, %v5719_v8  ;;  %v5805_v8 = vld [vmem:[%s14521_s1 + $0x16c0] sm:$0xff] }
 0x117   : > { %7367 = vmatpush1.bf16.msra.mxu0 %v7366_v62  ;;  %v5678_v62 = vld [vmem:[%s14521_s1 + $0x12c8] sm:$0xff] }
 0x118   : > { %7415 = vmatpush1.bf16.msra.mxu1 %v7414_v63  ;;  %7369 = vmatprep.subr.bf16.mxu0 %v7368_v0  ;;  %v5672_v63 = vld [vmem:[%s14521_s1 + $0x1298] sm:$0xff]  ;;  %v7436_v3 = vpack.c.bf16 %v5678_v62, %v5670_v61  ;;  %v5742_v52 = vld [vmem:[%s14521_s1 + $0x14c8] sm:$0xff]  ;;  %v5743_v62 = vld [vmem:[%s14521_s1 + $0x14d0] sm:$0xff] }
 0x119   : > { %7417 = vmatprep.subr.bf16.mxu1 %v7416_v4  ;;  %v5680_v0 = vld [vmem:[%s14521_s1 + $0x12d8] sm:$0xff]  ;;  %v5669_v4 = vld [vmem:[%s14521_s1 + $0x1280] sm:$0xff]  ;;  %v7452_v57 = vpack.c.bf16 %v5742_v52, %v5734_v10  ;;  %v5798_v14 = vld [vmem:[%s14521_s1 + $0x1688] sm:$0xff] }
 0x11a   : > { %v7484_v20 = vpack.c.bf16 %v5680_v0, %v5672_v63  ;;  %v7438_v31 = vpack.c.bf16 %v5677_v5, %v5669_v4  ;;  %v5750_v63 = vld [vmem:[%s14521_s1 + $0x1508] sm:$0xff]  ;;  %v7502_v4 = vpack.c.bf16 %v5743_v62, %v5735_v60  ;;  %v5807_v10 = vld [vmem:[%s14521_s1 + $0x16d0] sm:$0xff]  ;;  %v5821_v60 = vld [vmem:[%s14521_s1 + $0x1740] sm:$0xff] }
 0x11b   : > { %7371 = vmatpush1.bf16.msra.mxu0 %v7370_v13  ;;  %v5694_v13 = vld [vmem:[%s14521_s1 + $0x1348] sm:$0xff] }
 0x11c   : > { %7419 = vmatpush1.bf16.msra.mxu1 %v7418_v47  ;;  %7373 = vmatprep.subr.bf16.mxu0 %v7372_v26  ;;  %v5688_v47 = vld [vmem:[%s14521_s1 + $0x1318] sm:$0xff]  ;;  %v7440_v19 = vpack.c.bf16 %v5694_v13, %v5686_v12  ;;  %v5758_v0 = vld [vmem:[%s14521_s1 + $0x1548] sm:$0xff]  ;;  %v5759_v13 = vld [vmem:[%s14521_s1 + $0x1550] sm:$0xff] }
 0x11d   : > { %7421 = vmatprep.subr.bf16.mxu1 %v7420_v45  ;;  %v5696_v26 = vld [vmem:[%s14521_s1 + $0x1358] sm:$0xff]  ;;  %v7486_v45 = vpack.c.bf16 %v5679_v11, %v5671_v7  ;;  %v7456_v5 = vpack.c.bf16 %v5758_v0, %v5750_v63  ;;  %v5749_v7 = vld [vmem:[%s14521_s1 + $0x1500] sm:$0xff]  ;;  %v5751_v11 = vld [vmem:[%s14521_s1 + $0x1510] sm:$0xff] }
 0x11e   : > { %v5814_v52 = vld [vmem:[%s14521_s1 + $0x1708] sm:$0xff]  ;;  %v5823_v63 = vld [vmem:[%s14521_s1 + $0x1750] sm:$0xff] }
 0x11f   : > { %7375 = vmatpush1.bf16.msra.mxu0 %v7374_v41  ;;  %v5710_v41 = vld [vmem:[%s14521_s1 + $0x13c8] sm:$0xff] }
 0x120   : > { %7423 = vmatpush1.bf16.msra.mxu1 %v7422_v27  ;;  %7377 = vmatprep.subr.bf16.mxu0 %v7376_v28  ;;  %v5704_v27 = vld [vmem:[%s14521_s1 + $0x1398] sm:$0xff]  ;;  %v5830_v0 = vld [vmem:[%s14521_s1 + $0x1788] sm:$0xff] }
 0x121   : > { %7425 = vmatprep.subr.bf16.mxu1 %v7424_v33  ;;  %v5712_v28 = vld [vmem:[%s14521_s1 + $0x13d8] sm:$0xff]  ;;  %v7444_v33 = vpack.c.bf16 %v5710_v41, %v5702_v25  ;;  %v5775_v25 = vld [vmem:[%s14521_s1 + $0x15d0] sm:$0xff]  ;;  %v5782_v41 = vld [vmem:[%s14521_s1 + $0x1608] sm:$0xff] }
 0x122   : > { %v7492_v36 = vpack.c.bf16 %v5712_v28, %v5704_v27  ;;  %v5790_v27 = vld [vmem:[%s14521_s1 + $0x1648] sm:$0xff]  ;;  %v5784_v28 = vld [vmem:[%s14521_s1 + $0x1618] sm:$0xff] }
 0x123   : > { %7379 = vmatpush1.bf16.msra.mxu0 %v7378_v38  ;;  %v5720_v38 = vld [vmem:[%s14521_s1 + $0x1418] sm:$0xff] }
 0x124   : > { %7427 = vmatpush1.bf16.msra.mxu1 %v7426_v18  ;;  %7381 = vmatprep.subr.bf16.mxu0 %v7380_v39  ;;  %v5728_v18 = vld [vmem:[%s14521_s1 + $0x1458] sm:$0xff] }
 0x125   : > { %7429 = vmatprep.subr.bf16.mxu1 %v7428_v49  ;;  %v5725_v49 = vld [vmem:[%s14521_s1 + $0x1440] sm:$0xff]  ;;  %v7496_v50 = vpack.c.bf16 %v5728_v18, %v5720_v38  ;;  %v5806_v38 = vld [vmem:[%s14521_s1 + $0x16c8] sm:$0xff]  ;;  %v5800_v18 = vld [vmem:[%s14521_s1 + $0x1698] sm:$0xff] }
 0x127   : > { %7383 = vmatpush1.bf16.msra.mxu0 %v7382_v53  ;;  %v5736_v53 = vld [vmem:[%s14521_s1 + $0x1498] sm:$0xff] }
 0x128   : > { %7431 = vmatpush1.bf16.msra.mxu1 %v7430_v54  ;;  %7433 = vmatprep.subr.bf16.mxu0 %v7432_v55  ;;  %v5744_v54 = vld [vmem:[%s14521_s1 + $0x14d8] sm:$0xff]  ;;  %v7450_v55 = vpack.c.bf16 %v5725_v49, %v5717_v46  ;;  %v7468_v46 = vpack.c.bf16 %v5806_v38, %v5798_v14  ;;  %v5797_v49 = vld [vmem:[%s14521_s1 + $0x1680] sm:$0xff] }
 0x129   : > { %7481 = vmatprep.subr.bf16.mxu1 %v7480_v59  ;;  %v5741_v59 = vld [vmem:[%s14521_s1 + $0x14c0] sm:$0xff]  ;;  %v7500_v61 = vpack.c.bf16 %v5744_v54, %v5736_v53  ;;  %v5822_v53 = vld [vmem:[%s14521_s1 + $0x1748] sm:$0xff]  ;;  %v5816_v54 = vld [vmem:[%s14521_s1 + $0x1718] sm:$0xff] }
 0x12a   : > { %1764 = vmatmul.mubr.f32.vlgmr.msra.gmra.mrb[4].mxu0 %v10417_v30  ;;  %v5673_v38 = vld [vmem:[%s14521_s1 + $0x12a0] sm:$0xff] }
 0x12b   : > { %1841 = vmatmul.mubr.f32.vlgmr.msra.gmra.mrb[4].mxu1 %v10417_v30  ;;  %7435 = vmatpush1.bf16.msra.mxu0 %v7434_v1  ;;  %v7488_v30 = vpack.c.bf16 %v5696_v26, %v5688_v47  ;;  %v5752_v1 = vld [vmem:[%s14521_s1 + $0x1518] sm:$0xff]  ;;  %v5766_v47 = vld [vmem:[%s14521_s1 + $0x1588] sm:$0xff] }
 0x12c   : > { %7483 = vmatpush1.bf16.msra.mxu1 %v7482_v2  ;;  %7437 = vmatprep.subr.bf16.mxu0 %v7436_v3  ;;  %v5760_v2 = vld [vmem:[%s14521_s1 + $0x1558] sm:$0xff]  ;;  %v7454_v3 = vpack.c.bf16 %v5741_v59, %v5733_v58  ;;  %v5774_v26 = vld [vmem:[%s14521_s1 + $0x15c8] sm:$0xff]  ;;  %v7472_v58 = vpack.c.bf16 %v5822_v53, %v5814_v52  ;;  %v5813_v59 = vld [vmem:[%s14521_s1 + $0x1700] sm:$0xff] }
 0x12d   : > { %7485 = vmatprep.subr.bf16.mxu1 %v7484_v20  ;;  %5650 = vmatprep.mubr.msk.f32.mxu0 %vm466_vm0, %v10448_v48  ;;  %v5757_v20 = vld [vmem:[%s14521_s1 + $0x1540] sm:$0xff]  ;;  %v7504_v12 = vpack.c.bf16 %v5760_v2, %v5752_v1  ;;  %v7460_v22 = vpack.c.bf16 %v5774_v26, %v5766_v47  ;;  %v5838_v1 = vld [vmem:[%s14521_s1 + $0x17c8] sm:$0xff]  ;;  %v5832_v2 = vld [vmem:[%s14521_s1 + $0x1798] sm:$0xff] }
 0x12e   : > { %5652 = vmatprep.mubr.msk.f32.mxu1 %vm466_vm0, %v10448_v48  ;;  %1770 = vmatmul.mubr.f32.gmra.mrb[6].mxu0 %v10452_v42  ;;  %v5709_v48 = vld [vmem:[%s14521_s1 + $0x13c0] sm:$0xff]  ;;  %v5839_v47 = vld [vmem:[%s14521_s1 + $0x17d0] sm:$0xff]  ;;  %v5658_v26 = vld [vmem:[%s14521_s1 + $0x1228] sm:$0xff] }
 0x12f   : > { %7439 = vmatpush1.bf16.msra.mxu0 %v7438_v31  ;;  %1847 = vmatmul.mubr.f32.gmra.mrb[6].mxu1 %v10452_v42  ;;  %v5711_v42 = vld [vmem:[%s14521_s1 + $0x13d0] sm:$0xff]  ;;  %v7446_v39 = vpack.c.bf16 %v5709_v48, %v5701_v34  ;;  %v5776_v31 = vld [vmem:[%s14521_s1 + $0x15d8] sm:$0xff]  ;;  %v7464_v34 = vpack.c.bf16 %v5790_v27, %v5782_v41  ;;  %v5781_v48 = vld [vmem:[%s14521_s1 + $0x1600] sm:$0xff] }
 0x130   : > { %7487 = vmatpush1.bf16.msra.mxu1 %v7486_v45  ;;  %7441 = vmatprep.subr.bf16.mxu0 %v7440_v19  ;;  %v7494_v40 = vpack.c.bf16 %v5711_v42, %v5703_v35  ;;  %v7458_v45 = vpack.c.bf16 %v5757_v20, %v5749_v7  ;;  %v7506_v19 = vpack.c.bf16 %v5759_v13, %v5751_v11  ;;  %v5789_v35 = vld [vmem:[%s14521_s1 + $0x1640] sm:$0xff]  ;;  %v5674_v27 = vld [vmem:[%s14521_s1 + $0x12a8] sm:$0xff] }
 0x131   : > { %7489 = vmatprep.subr.bf16.mxu1 %v7488_v30  ;;  %5845 = vmatprep.mubr.msk.f32.mxu0 %vm466_vm0, %v10788_v44  ;;  %v5767_v30 = vld [vmem:[%s14521_s1 + $0x1590] sm:$0xff]  ;;  %v7508_v24 = vpack.c.bf16 %v5776_v31, %v5768_v21  ;;  %v7476_v7 = vpack.c.bf16 %v5838_v1, %v5830_v0  ;;  %v5829_v20 = vld [vmem:[%s14521_s1 + $0x1780] sm:$0xff]  ;;  %v5666_v21 = vld [vmem:[%s14521_s1 + $0x1268] sm:$0xff] }
 0x132   : > { %5847 = vmatprep.mubr.msk.f32.mxu1 %vm466_vm0, %v10788_v44  ;;  %v5837_v11 = vld [vmem:[%s14521_s1 + $0x17c0] sm:$0xff]  ;;  %v5660_v31 = vld [vmem:[%s14521_s1 + $0x1238] sm:$0xff] }
 0x133   : > { %7443 = vmatpush1.bf16.msra.mxu0 %v7442_v29  ;;  %v5792_v29 = vld [vmem:[%s14521_s1 + $0x1658] sm:$0xff]  ;;  %v5705_v1 = vld [vmem:[%s14521_s1 + $0x13a0] sm:$0xff] }
 0x134   : > { %7491 = vmatpush1.bf16.msra.mxu1 %v7490_v32  ;;  %7445 = vmatprep.subr.bf16.mxu0 %v7444_v33  ;;  %v7462_v32 = vpack.c.bf16 %v5773_v6, %v5765_v23  ;;  %v7510_v33 = vpack.c.bf16 %v5775_v25, %v5767_v30  ;;  %v7512_v42 = vpack.c.bf16 %v5792_v29, %v5784_v28  ;;  %v2064_v23 = vrot.slane %v10388_v16, 3  ;;  %v5665_v25 = vld [vmem:[%s14521_s1 + $0x1260] sm:$0xff]  ;;  %v5667_v16 = vld [vmem:[%s14521_s1 + $0x1270] sm:$0xff]  ;;  %v5682_v28 = vld [vmem:[%s14521_s1 + $0x12e8] sm:$0xff] }
 0x135   : > { %7493 = vmatprep.subr.bf16.mxu1 %v7492_v36  ;;  %v5783_v36 = vld [vmem:[%s14521_s1 + $0x1610] sm:$0xff]  ;;  %v7528_v30 = vpack.c.bf16 %v5666_v21, %v5658_v26  ;;  %v5676_v29 = vld [vmem:[%s14521_s1 + $0x12b8] sm:$0xff]  ;;  %v7532_v14 = vpack.c.bf16 %v5682_v28, %v5674_v27  ;;  %v5721_v21 = vld [vmem:[%s14521_s1 + $0x1420] sm:$0xff] }
 0x136   : > { %v5739_v27 = vld [vmem:[%s14521_s1 + $0x14b0] sm:$0xff] }
 0x137   : > { %7447 = vmatpush1.bf16.msra.mxu0 %v7446_v39  ;;  %v5808_v39 = vld [vmem:[%s14521_s1 + $0x16d8] sm:$0xff] }
 0x138   : > { %7495 = vmatpush1.bf16.msra.mxu1 %v7494_v40  ;;  %7449 = vmatprep.subr.bf16.mxu0 %v7448_v43  ;;  %v7466_v40 = vpack.c.bf16 %v5789_v35, %v5781_v48  ;;  %v7514_v43 = vpack.c.bf16 %v5791_v37, %v5783_v36  ;;  %v7516_v51 = vpack.c.bf16 %v5808_v39, %v5800_v18  ;;  %v11045_v36 = vld [vmem:[%s9037_s4 + $0x20] sm:$0xff]  ;;  %v5675_v39 = vld [vmem:[%s14521_s1 + $0x12b0] sm:$0xff] }
 0x139   : > { %7497 = vmatprep.subr.bf16.mxu1 %v7496_v50  ;;  %v5799_v50 = vld [vmem:[%s14521_s1 + $0x1690] sm:$0xff]  ;;  %v5681_v18 = vld [vmem:[%s14521_s1 + $0x12e0] sm:$0xff] }
 0x13b   : > { %7451 = vmatpush1.bf16.msra.mxu0 %v7450_v55  ;;  %v5824_v55 = vld [vmem:[%s14521_s1 + $0x1758] sm:$0xff] }
 0x13c   : > { %7499 = vmatpush1.bf16.msra.mxu1 %v7498_v56  ;;  %7453 = vmatprep.subr.bf16.mxu0 %v7452_v57  ;;  %v7470_v56 = vpack.c.bf16 %v5805_v8, %v5797_v49  ;;  %v7518_v57 = vpack.c.bf16 %v5807_v10, %v5799_v50  ;;  %v7520_v62 = vpack.c.bf16 %v5824_v55, %v5816_v54  ;;  %v5698_v49 = vld [vmem:[%s14521_s1 + $0x1368] sm:$0xff]  ;;  %v5692_v8 = vld [vmem:[%s14521_s1 + $0x1338] sm:$0xff]  ;;  %v5689_v55 = vld [vmem:[%s14521_s1 + $0x1320] sm:$0xff] }
 0x13d   : > { %7501 = vmatprep.subr.bf16.mxu1 %v7500_v61  ;;  %v5815_v61 = vld [vmem:[%s14521_s1 + $0x1710] sm:$0xff]  ;;  %v5700_v50 = vld [vmem:[%s14521_s1 + $0x1378] sm:$0xff]  ;;  %v7534_v10 = vpack.c.bf16 %v5681_v18, %v5673_v38  ;;  %v5753_v18 = vld [vmem:[%s14521_s1 + $0x1520] sm:$0xff] }
 0x13f   : > { %7455 = vmatpush1.bf16.msra.mxu0 %v7454_v3  ;;  %v5840_v3 = vld [vmem:[%s14521_s1 + $0x17d8] sm:$0xff] }
 0x140   : > { %7503 = vmatpush1.bf16.msra.mxu1 %v7502_v4  ;;  %7457 = vmatprep.subr.bf16.mxu0 %v7456_v5  ;;  %v7474_v4 = vpack.c.bf16 %v5821_v60, %v5813_v59  ;;  %v7522_v5 = vpack.c.bf16 %v5823_v63, %v5815_v61  ;;  %v7524_v13 = vpack.c.bf16 %v5840_v3, %v5832_v2  ;;  %v5714_v59 = vld [vmem:[%s14521_s1 + $0x13e8] sm:$0xff]  ;;  %v5708_v60 = vld [vmem:[%s14521_s1 + $0x13b8] sm:$0xff]  ;;  %v5713_v2 = vld [vmem:[%s14521_s1 + $0x13e0] sm:$0xff] }
 0x141   : > { %7505 = vmatprep.subr.bf16.mxu1 %v7504_v12  ;;  %v5831_v12 = vld [vmem:[%s14521_s1 + $0x1790] sm:$0xff]  ;;  %v5716_v61 = vld [vmem:[%s14521_s1 + $0x13f8] sm:$0xff] }
 0x142   : > { %v7526_v6 = vpack.c.bf16 %v5839_v47, %v5831_v12  ;;  %v5707_v3 = vld [vmem:[%s14521_s1 + $0x13b0] sm:$0xff]  ;;  %v5732_v12 = vld [vmem:[%s14521_s1 + $0x1478] sm:$0xff] }
 0x143   : > { %7459 = vmatpush1.bf16.msra.mxu0 %v7458_v45  ;;  %v5668_v45 = vld [vmem:[%s14521_s1 + $0x1278] sm:$0xff] }
 0x144   : > { %7507 = vmatpush1.bf16.msra.mxu1 %v7506_v19  ;;  %7461 = vmatprep.subr.bf16.mxu0 %v7460_v22  ;;  %v7478_v19 = vpack.c.bf16 %v5837_v11, %v5829_v20  ;;  %v2063_v22 = vrot.slane %v10384_v15, 3  ;;  %v5659_v15 = vld [vmem:[%s14521_s1 + $0x1230] sm:$0xff]  ;;  %v7576_v41 = vpack.c.bf16 %v5668_v45, %v5660_v31  ;;  %v5730_v20 = vld [vmem:[%s14521_s1 + $0x1468] sm:$0xff]  ;;  %v5724_v11 = vld [vmem:[%s14521_s1 + $0x1438] sm:$0xff] }
 0x145   : > { %7509 = vmatprep.subr.bf16.mxu1 %v7508_v24  ;;  %v5657_v24 = vld [vmem:[%s14521_s1 + $0x1220] sm:$0xff]  ;;  %v7578_v37 = vpack.c.bf16 %v5667_v16, %v5659_v15  ;;  %v5723_v45 = vld [vmem:[%s14521_s1 + $0x1430] sm:$0xff] }
 0x146   : > { %v11042_v48 = vsel %vm2062_vm3, %v2063_v22, %v2064_v23  ;;  %v7530_v35 = vpack.c.bf16 %v5665_v25, %v5657_v24  ;;  %v5729_v31 = vld [vmem:[%s14521_s1 + $0x1460] sm:$0xff]  ;;  %v5738_v22 = vld [vmem:[%s14521_s1 + $0x14a8] sm:$0xff] }
 0x147   : > { %7463 = vmatpush1.bf16.msra.mxu0 %v7462_v32  ;;  %v5684_v32 = vld [vmem:[%s14521_s1 + $0x12f8] sm:$0xff]  ;;  %v7546_v24 = vpack.c.bf16 %v5729_v31, %v5721_v21  ;;  %v5745_v16 = vld [vmem:[%s14521_s1 + $0x14e0] sm:$0xff] }
 0x148   : > { %7511 = vmatpush1.bf16.msra.mxu1 %v7510_v33  ;;  %7465 = vmatprep.subr.bf16.mxu0 %v7464_v34  ;;  %v11038_v33 = vld [vmem:[%s9037_s4 + $0x28] sm:$0xff]  ;;  %v5801_v31 = vld [vmem:[%s14521_s1 + $0x16a0] sm:$0xff] }
 0x149   : > { %7513 = vmatprep.subr.bf16.mxu1 %v7512_v42  ;;  %v2071_v34 = vrot.slane %v11038_v33, 3  ;;  %v2069_v42 = vrot.slane %v11045_v36, 3 }
 0x14b   : > { %7467 = vmatpush1.bf16.msra.mxu0 %v7466_v40  ;;  %v7580_v40 = vpack.c.bf16 %v5684_v32, %v5676_v29  ;;  %v11080_v52 = vsel %vm2062_vm3, %v2064_v23, %v2069_v42  ;;  %v5746_v23 = vld [vmem:[%s14521_s1 + $0x14e8] sm:$0xff]  ;;  %v5747_v29 = vld [vmem:[%s14521_s1 + $0x14f0] sm:$0xff]  ;;  %v5764_v42 = vld [vmem:[%s14521_s1 + $0x1578] sm:$0xff] }
 0x14c   : > { %7515 = vmatpush1.bf16.msra.mxu1 %v7514_v43  ;;  %7469 = vmatprep.subr.bf16.mxu0 %v7468_v46  ;;  %v5683_v43 = vld [vmem:[%s14521_s1 + $0x12f0] sm:$0xff]  ;;  %v5690_v46 = vld [vmem:[%s14521_s1 + $0x1328] sm:$0xff]  ;;  %v7548_v15 = vpack.c.bf16 %v5746_v23, %v5738_v22 }
 0x14d   : > { %7517 = vmatprep.subr.bf16.mxu1 %v7516_v51  ;;  %v11076_v51 = vsel %vm2062_vm3, %v2067_v17, %v2071_v34  ;;  %v7582_v53 = vpack.c.bf16 %v5683_v43, %v5675_v39  ;;  %v7536_v54 = vpack.c.bf16 %v5698_v49, %v5690_v46  ;;  %v5691_v17 = vld [vmem:[%s14521_s1 + $0x1330] sm:$0xff]  ;;  %v5754_v32 = vld [vmem:[%s14521_s1 + $0x1528] sm:$0xff]  ;;  %v5761_v39 = vld [vmem:[%s14521_s1 + $0x1560] sm:$0xff] }
 0x14e   : > { %v5762_v34 = vld [vmem:[%s14521_s1 + $0x1568] sm:$0xff]  ;;  %v5763_v46 = vld [vmem:[%s14521_s1 + $0x1570] sm:$0xff] }
 0x14f   : > { %7471 = vmatpush1.bf16.msra.mxu0 %v7470_v56  ;;  %v7584_v56 = vpack.c.bf16 %v5700_v50, %v5692_v8  ;;  %v7552_v38 = vpack.c.bf16 %v5762_v34, %v5754_v32  ;;  %v5770_v49 = vld [vmem:[%s14521_s1 + $0x15a8] sm:$0xff]  ;;  %v5772_v50 = vld [vmem:[%s14521_s1 + $0x15b8] sm:$0xff]  ;;  %v5811_v22 = vld [vmem:[%s14521_s1 + $0x16f0] sm:$0xff] }
 0x150   : > { %7519 = vmatpush1.bf16.msra.mxu1 %v7518_v57  ;;  %7473 = vmatprep.subr.bf16.mxu0 %v7472_v58  ;;  %v5699_v57 = vld [vmem:[%s14521_s1 + $0x1370] sm:$0xff]  ;;  %v5706_v58 = vld [vmem:[%s14521_s1 + $0x13a8] sm:$0xff] }
 0x151   : > { %7521 = vmatprep.subr.bf16.mxu1 %v7520_v62  ;;  %v7538_v62 = vpack.c.bf16 %v5697_v9, %v5689_v55  ;;  %v7586_v63 = vpack.c.bf16 %v5699_v57, %v5691_v17  ;;  %v7540_v0 = vpack.c.bf16 %v5714_v59, %v5706_v58  ;;  %v5778_v8 = vld [vmem:[%s14521_s1 + $0x15e8] sm:$0xff]  ;;  %v5769_v9 = vld [vmem:[%s14521_s1 + $0x15a0] sm:$0xff]  ;;  %v5779_v58 = vld [vmem:[%s14521_s1 + $0x15f0] sm:$0xff] }
 0x152   : > { %v7556_v55 = vpack.c.bf16 %v5778_v8, %v5770_v49  ;;  %v5777_v17 = vld [vmem:[%s14521_s1 + $0x15e0] sm:$0xff]  ;;  %v5786_v59 = vld [vmem:[%s14521_s1 + $0x1628] sm:$0xff]  ;;  %v5827_v32 = vld [vmem:[%s14521_s1 + $0x1770] sm:$0xff] }
 0x153   : > { %7475 = vmatpush1.bf16.msra.mxu0 %v7474_v4  ;;  %v7588_v4 = vpack.c.bf16 %v5716_v61, %v5708_v60  ;;  %v5794_v60 = vld [vmem:[%s14521_s1 + $0x1668] sm:$0xff]  ;;  %v5788_v61 = vld [vmem:[%s14521_s1 + $0x1638] sm:$0xff]  ;;  %v5843_v49 = vld [vmem:[%s14521_s1 + $0x17f0] sm:$0xff] }
 0x154   : > { %7523 = vmatpush1.bf16.msra.mxu1 %v7522_v5  ;;  %7477 = vmatprep.subr.bf16.mxu0 %v7476_v7  ;;  %v5715_v5 = vld [vmem:[%s14521_s1 + $0x13f0] sm:$0xff]  ;;  %v5722_v7 = vld [vmem:[%s14521_s1 + $0x1428] sm:$0xff] }
 0x155   : > { %7525 = vmatprep.subr.bf16.mxu1 %v7524_v13  ;;  %v7542_v13 = vpack.c.bf16 %v5713_v2, %v5705_v1  ;;  %v7590_v47 = vpack.c.bf16 %v5715_v5, %v5707_v3  ;;  %v7544_v26 = vpack.c.bf16 %v5730_v20, %v5722_v7  ;;  %v7560_v1 = vpack.c.bf16 %v5794_v60, %v5786_v59  ;;  %v5785_v2 = vld [vmem:[%s14521_s1 + $0x1620] sm:$0xff]  ;;  %v5795_v7 = vld [vmem:[%s14521_s1 + $0x1670] sm:$0xff]  ;;  %v5802_v20 = vld [vmem:[%s14521_s1 + $0x16a8] sm:$0xff] }
 0x156   : > { %v5793_v3 = vld [vmem:[%s14521_s1 + $0x1660] sm:$0xff]  ;;  %v5818_v23 = vld [vmem:[%s14521_s1 + $0x1728] sm:$0xff]  ;;  %v5863_v59 = vld [vmem:[%s14521_s1 + $0x1850] sm:$0xff] }
 0x157   : > { %7479 = vmatpush1.bf16.msra.mxu0 %v7478_v19  ;;  %v5731_v19 = vld [vmem:[%s14521_s1 + $0x1470] sm:$0xff]  ;;  %v5834_v34 = vld [vmem:[%s14521_s1 + $0x17a8] sm:$0xff] }
 0x158   : > { %7527 = vmatpush1.bf16.msra.mxu1 %v7526_v6  ;;  %7529 = vmatprep.subr.bf16.mxu0 %v7528_v30  ;;  %v5740_v6 = vld [vmem:[%s14521_s1 + $0x14b8] sm:$0xff]  ;;  %v7594_v25 = vpack.c.bf16 %v5731_v19, %v5723_v45  ;;  %v5809_v45 = vld [vmem:[%s14521_s1 + $0x16e0] sm:$0xff]  ;;  %v5854_v8 = vld [vmem:[%s14521_s1 + $0x1808] sm:$0xff] }
 0x159   : > { %7577 = vmatprep.subr.bf16.mxu1 %v7576_v41  ;;  %v5748_v30 = vld [vmem:[%s14521_s1 + $0x14f8] sm:$0xff]  ;;  %v5737_v41 = vld [vmem:[%s14521_s1 + $0x14a0] sm:$0xff]  ;;  %v5870_v60 = vld [vmem:[%s14521_s1 + $0x1888] sm:$0xff] }
 0x15a   : > { %2144 = vmatmul.mubr.f32.vlgmr.msra.gmra.mrb[0].mxu0 %v11042_v48  ;;  %v7596_v28 = vpack.c.bf16 %v5748_v30, %v5740_v6  ;;  %v5826_v6 = vld [vmem:[%s14521_s1 + $0x1768] sm:$0xff]  ;;  %v5820_v30 = vld [vmem:[%s14521_s1 + $0x1738] sm:$0xff] }
 0x15b   : > { %2221 = vmatmul.mubr.f32.vlgmr.msra.gmra.mrb[0].mxu1 %v11042_v48  ;;  %7531 = vmatpush1.bf16.msra.mxu0 %v7530_v35  ;;  %v5756_v35 = vld [vmem:[%s14521_s1 + $0x1538] sm:$0xff] }
 0x15c   : > { %7579 = vmatpush1.bf16.msra.mxu1 %v7578_v37  ;;  %7533 = vmatprep.subr.bf16.mxu0 %v7532_v14  ;;  %v7550_v37 = vpack.c.bf16 %v5745_v16, %v5737_v41  ;;  %v7598_v14 = vpack.c.bf16 %v5747_v29, %v5739_v27  ;;  %v7600_v43 = vpack.c.bf16 %v5764_v42, %v5756_v35  ;;  %v5817_v16 = vld [vmem:[%s14521_s1 + $0x1720] sm:$0xff]  ;;  %v5842_v35 = vld [vmem:[%s14521_s1 + $0x17e8] sm:$0xff]  ;;  %v5836_v42 = vld [vmem:[%s14521_s1 + $0x17b8] sm:$0xff] }
 0x15d   : > { %7581 = vmatprep.subr.bf16.mxu1 %v7580_v40  ;;  %5846 = vmatprep.mubr.msk.f32.mxu0 %vm466_vm0, %v11076_v51  ;;  %v5755_v40 = vld [vmem:[%s14521_s1 + $0x1530] sm:$0xff]  ;;  %v7568_v41 = vpack.c.bf16 %v5826_v6, %v5818_v23  ;;  %v5825_v27 = vld [vmem:[%s14521_s1 + $0x1760] sm:$0xff] }
 0x15e   : > { %5848 = vmatprep.mubr.msk.f32.mxu1 %vm466_vm0, %v11076_v51  ;;  %2150 = vmatmul.mubr.f32.gmra.mrb[2].mxu0 %v11080_v52  ;;  %v5885_v23 = vld [vmem:[%s14521_s1 + $0x1900] sm:$0xff] }
 0x15f   : > { %7535 = vmatpush1.bf16.msra.mxu0 %v7534_v10  ;;  %2227 = vmatmul.mubr.f32.gmra.mrb[2].mxu1 %v11080_v52  ;;  %v5780_v10 = vld [vmem:[%s14521_s1 + $0x15f8] sm:$0xff]  ;;  %v5893_v6 = vld [vmem:[%s14521_s1 + $0x1940] sm:$0xff] }
 0x160   : > { %7583 = vmatpush1.bf16.msra.mxu1 %v7582_v53  ;;  %7537 = vmatprep.subr.bf16.mxu0 %v7536_v54  ;;  %v7554_v53 = vpack.c.bf16 %v5761_v39, %v5753_v18  ;;  %v7602_v54 = vpack.c.bf16 %v5763_v46, %v5755_v40  ;;  %v7604_v57 = vpack.c.bf16 %v5780_v10, %v5772_v50  ;;  %v5833_v39 = vld [vmem:[%s14521_s1 + $0x17a0] sm:$0xff]  ;;  %v5862_v50 = vld [vmem:[%s14521_s1 + $0x1848] sm:$0xff]  ;;  %v5856_v10 = vld [vmem:[%s14521_s1 + $0x1818] sm:$0xff] }
 0x161   : > { %7585 = vmatprep.subr.bf16.mxu1 %v7584_v56  ;;  %5849 = vmatprep.mubr.msk.f32.mxu0 %vm466_vm0, %v10788_v44  ;;  %v5771_v56 = vld [vmem:[%s14521_s1 + $0x15b0] sm:$0xff]  ;;  %v7572_v18 = vpack.c.bf16 %v5842_v35, %v5834_v34  ;;  %v5841_v40 = vld [vmem:[%s14521_s1 + $0x17e0] sm:$0xff] }
 0x162   : > { %5851 = vmatprep.mubr.msk.f32.mxu1 %vm466_vm0, %v10788_v44  ;;  %v7592_v44 = vpack.c.bf16 %v5732_v12, %v5724_v11  ;;  %v5810_v11 = vld [vmem:[%s14521_s1 + $0x16e8] sm:$0xff]  ;;  %v5804_v12 = vld [vmem:[%s14521_s1 + $0x16b8] sm:$0xff]  ;;  %v5901_v34 = vld [vmem:[%s14521_s1 + $0x1980] sm:$0xff] }
 0x163   : > { %7539 = vmatpush1.bf16.msra.mxu0 %v7538_v62  ;;  %v5796_v62 = vld [vmem:[%s14521_s1 + $0x1678] sm:$0xff]  ;;  %v7564_v21 = vpack.c.bf16 %v5810_v11, %v5802_v20  ;;  %v5879_v20 = vld [vmem:[%s14521_s1 + $0x18d0] sm:$0xff]  ;;  %v5886_v11 = vld [vmem:[%s14521_s1 + $0x1908] sm:$0xff] }
 0x164   : > { %7587 = vmatpush1.bf16.msra.mxu1 %v7586_v63  ;;  %7541 = vmatprep.subr.bf16.mxu0 %v7540_v0  ;;  %v7558_v63 = vpack.c.bf16 %v5777_v17, %v5769_v9  ;;  %v7606_v0 = vpack.c.bf16 %v5779_v58, %v5771_v56  ;;  %v7608_v5 = vpack.c.bf16 %v5796_v62, %v5788_v61  ;;  %v5853_v17 = vld [vmem:[%s14521_s1 + $0x1800] sm:$0xff]  ;;  %v5878_v61 = vld [vmem:[%s14521_s1 + $0x18c8] sm:$0xff]  ;;  %v5872_v62 = vld [vmem:[%s14521_s1 + $0x1898] sm:$0xff] }
 0x165   : > { %7589 = vmatprep.subr.bf16.mxu1 %v7588_v4  ;;  %v5787_v4 = vld [vmem:[%s14521_s1 + $0x1630] sm:$0xff]  ;;  %v7624_v9 = vpack.c.bf16 %v5862_v50, %v5854_v8  ;;  %v5861_v56 = vld [vmem:[%s14521_s1 + $0x1840] sm:$0xff] }
 0x166   : > { %v5903_v35 = vld [vmem:[%s14521_s1 + $0x1990] sm:$0xff] }
 0x167   : > { %7543 = vmatpush1.bf16.msra.mxu0 %v7542_v13  ;;  %v5812_v13 = vld [vmem:[%s14521_s1 + $0x16f8] sm:$0xff]  ;;  %v5919_v8 = vld [vmem:[%s14521_s1 + $0x1a10] sm:$0xff] }
 0x168   : > { %7591 = vmatpush1.bf16.msra.mxu1 %v7590_v47  ;;  %7545 = vmatprep.subr.bf16.mxu0 %v7544_v26  ;;  %v7562_v47 = vpack.c.bf16 %v5793_v3, %v5785_v2  ;;  %v7610_v26 = vpack.c.bf16 %v5795_v7, %v5787_v4  ;;  %v7612_v19 = vpack.c.bf16 %v5812_v13, %v5804_v12  ;;  %v5869_v3 = vld [vmem:[%s14521_s1 + $0x1880] sm:$0xff]  ;;  %v5894_v12 = vld [vmem:[%s14521_s1 + $0x1948] sm:$0xff]  ;;  %v5888_v13 = vld [vmem:[%s14521_s1 + $0x1918] sm:$0xff] }
 0x169   : > { %7593 = vmatprep.subr.bf16.mxu1 %v7592_v44  ;;  %v5803_v44 = vld [vmem:[%s14521_s1 + $0x16b0] sm:$0xff]  ;;  %v7628_v2 = vpack.c.bf16 %v5878_v61, %v5870_v60  ;;  %v5877_v4 = vld [vmem:[%s14521_s1 + $0x18c0] sm:$0xff] }
 0x16a   : > { %v5935_v60 = vld [vmem:[%s14521_s1 + $0x1a90] sm:$0xff] }
 0x16b   : > { %7547 = vmatpush1.bf16.msra.mxu0 %v7546_v24  ;;  %v5828_v24 = vld [vmem:[%s14521_s1 + $0x1778] sm:$0xff] }
 0x16c   : > { %7595 = vmatpush1.bf16.msra.mxu1 %v7594_v25  ;;  %7549 = vmatprep.subr.bf16.mxu0 %v7548_v15  ;;  %v7566_v25 = vpack.c.bf16 %v5809_v45, %v5801_v31  ;;  %v7614_v15 = vpack.c.bf16 %v5811_v22, %v5803_v44  ;;  %v7616_v29 = vpack.c.bf16 %v5828_v24, %v5820_v30  ;;  %v11386_v31 = vld [vmem:[%s9037_s4 + $0x18] sm:$0xff]  ;;  %v5887_v30 = vld [vmem:[%s14521_s1 + $0x1910] sm:$0xff] }
 0x16d   : > { %7597 = vmatprep.subr.bf16.mxu1 %v7596_v28  ;;  %v5819_v28 = vld [vmem:[%s14521_s1 + $0x1730] sm:$0xff]  ;;  %v2601_v45 = vrot.slane %v11386_v31, 4  ;;  %v7630_v44 = vpack.c.bf16 %v5877_v4, %v5869_v3  ;;  %v7632_v22 = vpack.c.bf16 %v5894_v12, %v5886_v11 }
 0x16e   : > { %v5895_v24 = vld [vmem:[%s14521_s1 + $0x1950] sm:$0xff] }
 0x16f   : > { %7551 = vmatpush1.bf16.msra.mxu0 %v7550_v37  ;;  %v5844_v37 = vld [vmem:[%s14521_s1 + $0x17f8] sm:$0xff]  ;;  %v5951_v11 = vld [vmem:[%s14521_s1 + $0x1b10] sm:$0xff] }
 0x170   : > { %7599 = vmatpush1.bf16.msra.mxu1 %v7598_v14  ;;  %7553 = vmatprep.subr.bf16.mxu0 %v7552_v38  ;;  %v7570_v14 = vpack.c.bf16 %v5825_v27, %v5817_v16  ;;  %v7618_v38 = vpack.c.bf16 %v5827_v32, %v5819_v28  ;;  %v7620_v46 = vpack.c.bf16 %v5844_v37, %v5836_v42  ;;  %v5912_v16 = vld [vmem:[%s14521_s1 + $0x19d8] sm:$0xff]  ;;  %v5918_v37 = vld [vmem:[%s14521_s1 + $0x1a08] sm:$0xff] }
 0x171   : > { %7601 = vmatprep.subr.bf16.mxu1 %v7600_v43  ;;  %v5835_v43 = vld [vmem:[%s14521_s1 + $0x17b0] sm:$0xff]  ;;  %v7634_v28 = vpack.c.bf16 %v5893_v6, %v5885_v23 }
 0x173   : > { %7555 = vmatpush1.bf16.msra.mxu0 %v7554_v53  ;;  %v5864_v53 = vld [vmem:[%s14521_s1 + $0x1858] sm:$0xff] }
 0x174   : > { %7603 = vmatpush1.bf16.msra.mxu1 %v7602_v54  ;;  %7557 = vmatprep.subr.bf16.mxu0 %v7556_v55  ;;  %v7574_v54 = vpack.c.bf16 %v5841_v40, %v5833_v39  ;;  %v7622_v55 = vpack.c.bf16 %v5843_v49, %v5835_v43  ;;  %v7672_v58 = vpack.c.bf16 %v5864_v53, %v5856_v10  ;;  %v5925_v49 = vld [vmem:[%s14521_s1 + $0x1a40] sm:$0xff]  ;;  %v5927_v10 = vld [vmem:[%s14521_s1 + $0x1a50] sm:$0xff]  ;;  %v5934_v53 = vld [vmem:[%s14521_s1 + $0x1a88] sm:$0xff] }
 0x175   : > { %7605 = vmatprep.subr.bf16.mxu1 %v7604_v57  ;;  %v5855_v57 = vld [vmem:[%s14521_s1 + $0x1810] sm:$0xff] }
 0x177   : > { %7559 = vmatpush1.bf16.msra.mxu0 %v7558_v63  ;;  %v5880_v63 = vld [vmem:[%s14521_s1 + $0x18d8] sm:$0xff] }
 0x178   : > { %7607 = vmatpush1.bf16.msra.mxu1 %v7606_v0  ;;  %7561 = vmatprep.subr.bf16.mxu0 %v7560_v1  ;;  %v7626_v0 = vpack.c.bf16 %v5861_v56, %v5853_v17  ;;  %v7674_v1 = vpack.c.bf16 %v5863_v59, %v5855_v57  ;;  %v7676_v7 = vpack.c.bf16 %v5880_v63, %v5872_v62  ;;  %v5941_v59 = vld [vmem:[%s14521_s1 + $0x1ac0] sm:$0xff]  ;;  %v5943_v62 = vld [vmem:[%s14521_s1 + $0x1ad0] sm:$0xff]  ;;  %v5950_v63 = vld [vmem:[%s14521_s1 + $0x1b08] sm:$0xff] }
 0x179   : > { %7609 = vmatprep.subr.bf16.mxu1 %v7608_v5  ;;  %v5871_v5 = vld [vmem:[%s14521_s1 + $0x1890] sm:$0xff]  ;;  %v7690_v56 = vpack.c.bf16 %v5927_v10, %v5919_v8  ;;  %v7694_v4 = vpack.c.bf16 %v5943_v62, %v5935_v60  ;;  %v5997_v8 = vld [vmem:[%s14521_s1 + $0x1c80] sm:$0xff] }
 0x17a   : > { %v5999_v10 = vld [vmem:[%s14521_s1 + $0x1c90] sm:$0xff]  ;;  %v6013_v60 = vld [vmem:[%s14521_s1 + $0x1d00] sm:$0xff] }
 0x17b   : > { %7563 = vmatpush1.bf16.msra.mxu0 %v7562_v47  ;;  %v5896_v47 = vld [vmem:[%s14521_s1 + $0x1958] sm:$0xff]  ;;  %v6015_v62 = vld [vmem:[%s14521_s1 + $0x1d10] sm:$0xff] }
 0x17c   : > { %7611 = vmatpush1.bf16.msra.mxu1 %v7610_v26  ;;  %7565 = vmatprep.subr.bf16.mxu0 %v7564_v21  ;;  %v11382_v26 = vld [vmem:[%s9037_s4 + $0x8] sm:$0xff] }
 0x17d   : > { %7613 = vmatprep.subr.bf16.mxu1 %v7612_v19  ;;  %v2600_v21 = vrot.slane %v11382_v26, 4  ;;  %v7678_v19 = vpack.c.bf16 %v5879_v20, %v5871_v5  ;;  %v5957_v20 = vld [vmem:[%s14521_s1 + $0x1b40] sm:$0xff] }
 0x17f   : > { %7567 = vmatpush1.bf16.msra.mxu0 %v7566_v25  ;;  %v5902_v25 = vld [vmem:[%s14521_s1 + $0x1988] sm:$0xff]  ;;  %v11422_v27 = vsel %vm2596_vm4, %v2600_v21, %v2601_v45 }
 0x180   : > { %7615 = vmatpush1.bf16.msra.mxu1 %v7614_v15  ;;  %7569 = vmatprep.subr.bf16.mxu0 %v7568_v41  ;;  %v5910_v15 = vld [vmem:[%s14521_s1 + $0x19c8] sm:$0xff]  ;;  %v5904_v41 = vld [vmem:[%s14521_s1 + $0x1998] sm:$0xff] }
 0x181   : > { %7617 = vmatprep.subr.bf16.mxu1 %v7616_v29  ;;  %v7682_v29 = vpack.c.bf16 %v5895_v24, %v5887_v30  ;;  %v7636_v32 = vpack.c.bf16 %v5910_v15, %v5902_v25  ;;  %v7684_v42 = vpack.c.bf16 %v5912_v16, %v5904_v41  ;;  %v5974_v21 = vld [vmem:[%s14521_s1 + $0x1bc8] sm:$0xff]  ;;  %v5965_v30 = vld [vmem:[%s14521_s1 + $0x1b80] sm:$0xff]  ;;  %v5967_v24 = vld [vmem:[%s14521_s1 + $0x1b90] sm:$0xff] }
 0x182   : > { %v5975_v15 = vld [vmem:[%s14521_s1 + $0x1bd0] sm:$0xff]  ;;  %v5982_v41 = vld [vmem:[%s14521_s1 + $0x1c08] sm:$0xff] }
 0x183   : > { %7571 = vmatpush1.bf16.msra.mxu0 %v7570_v14  ;;  %v5926_v14 = vld [vmem:[%s14521_s1 + $0x1a48] sm:$0xff] }
 0x184   : > { %7619 = vmatpush1.bf16.msra.mxu1 %v7618_v38  ;;  %7573 = vmatprep.subr.bf16.mxu0 %v7572_v18  ;;  %v5920_v38 = vld [vmem:[%s14521_s1 + $0x1a18] sm:$0xff]  ;;  %v7640_v43 = vpack.c.bf16 %v5926_v14, %v5918_v37  ;;  %v5990_v16 = vld [vmem:[%s14521_s1 + $0x1c48] sm:$0xff]  ;;  %v5991_v14 = vld [vmem:[%s14521_s1 + $0x1c50] sm:$0xff] }
 0x185   : > { %7621 = vmatprep.subr.bf16.mxu1 %v7620_v46  ;;  %v5928_v18 = vld [vmem:[%s14521_s1 + $0x1a58] sm:$0xff]  ;;  %v5917_v46 = vld [vmem:[%s14521_s1 + $0x1a00] sm:$0xff] }
 0x186   : > { %v7688_v50 = vpack.c.bf16 %v5928_v18, %v5920_v38  ;;  %v7642_v17 = vpack.c.bf16 %v5925_v49, %v5917_v46  ;;  %v5998_v38 = vld [vmem:[%s14521_s1 + $0x1c88] sm:$0xff] }
 0x187   : > { %7575 = vmatpush1.bf16.msra.mxu0 %v7574_v54  ;;  %v5942_v54 = vld [vmem:[%s14521_s1 + $0x1ac8] sm:$0xff] }
 0x188   : > { %7623 = vmatpush1.bf16.msra.mxu1 %v7622_v55  ;;  %7625 = vmatprep.subr.bf16.mxu0 %v7624_v9  ;;  %v5936_v55 = vld [vmem:[%s14521_s1 + $0x1a98] sm:$0xff]  ;;  %v7644_v57 = vpack.c.bf16 %v5942_v54, %v5934_v53  ;;  %v6006_v18 = vld [vmem:[%s14521_s1 + $0x1cc8] sm:$0xff]  ;;  %v6007_v54 = vld [vmem:[%s14521_s1 + $0x1cd0] sm:$0xff] }
 0x189   : > { %7673 = vmatprep.subr.bf16.mxu1 %v7672_v58  ;;  %v5944_v9 = vld [vmem:[%s14521_s1 + $0x1ad8] sm:$0xff]  ;;  %v5933_v58 = vld [vmem:[%s14521_s1 + $0x1a80] sm:$0xff]  ;;  %v7660_v49 = vpack.c.bf16 %v6006_v18, %v5998_v38  ;;  %v2603_v18 = vrot.slane %v11045_v36, 4  ;;  %v5883_v36 = vld [vmem:[%s14521_s1 + $0x18f0] sm:$0xff] }
 0x18a   : > { %2298 = vmatmul.mubr.f32.vlgmr.msra.gmra.mrb[4].mxu0 %v11042_v48  ;;  %v7692_v61 = vpack.c.bf16 %v5944_v9, %v5936_v55  ;;  %v7646_v3 = vpack.c.bf16 %v5941_v59, %v5933_v58  ;;  %v6014_v55 = vld [vmem:[%s14521_s1 + $0x1d08] sm:$0xff]  ;;  %v7710_v58 = vpack.c.bf16 %v6007_v54, %v5999_v10  ;;  %v5892_v10 = vld [vmem:[%s14521_s1 + $0x1938] sm:$0xff] }
 0x18b   : > { %2375 = vmatmul.mubr.f32.vlgmr.msra.gmra.mrb[4].mxu1 %v11042_v48  ;;  %7627 = vmatpush1.bf16.msra.mxu0 %v7626_v0  ;;  %v7680_v48 = vpack.c.bf16 %v5896_v47, %v5888_v13  ;;  %v5958_v0 = vld [vmem:[%s14521_s1 + $0x1b48] sm:$0xff]  ;;  %v5959_v13 = vld [vmem:[%s14521_s1 + $0x1b50] sm:$0xff] }
 0x18c   : > { %7675 = vmatpush1.bf16.msra.mxu1 %v7674_v1  ;;  %7629 = vmatprep.subr.bf16.mxu0 %v7628_v2  ;;  %v5952_v1 = vld [vmem:[%s14521_s1 + $0x1b18] sm:$0xff]  ;;  %v7648_v5 = vpack.c.bf16 %v5958_v0, %v5950_v63  ;;  %v5966_v47 = vld [vmem:[%s14521_s1 + $0x1b88] sm:$0xff]  ;;  %v7698_v23 = vpack.c.bf16 %v5959_v13, %v5951_v11  ;;  %v6023_v0 = vld [vmem:[%s14521_s1 + $0x1d50] sm:$0xff] }
 0x18d   : > { %7677 = vmatprep.subr.bf16.mxu1 %v7676_v7  ;;  %5850 = vmatprep.mubr.msk.f32.mxu0 %vm466_vm0, %v11076_v51  ;;  %v5960_v2 = vld [vmem:[%s14521_s1 + $0x1b58] sm:$0xff]  ;;  %v5949_v7 = vld [vmem:[%s14521_s1 + $0x1b00] sm:$0xff]  ;;  %v7652_v6 = vpack.c.bf16 %v5974_v21, %v5966_v47  ;;  %v6022_v9 = vld [vmem:[%s14521_s1 + $0x1d48] sm:$0xff] }
 0x18e   : > { %5852 = vmatprep.mubr.msk.f32.mxu1 %vm466_vm0, %v11076_v51  ;;  %2304 = vmatmul.mubr.f32.gmra.mrb[6].mxu0 %v11080_v52  ;;  %v5909_v51 = vld [vmem:[%s14521_s1 + $0x19c0] sm:$0xff]  ;;  %v7696_v12 = vpack.c.bf16 %v5960_v2, %v5952_v1  ;;  %v7664_v59 = vpack.c.bf16 %v6022_v9, %v6014_v55  ;;  %v6030_v1 = vld [vmem:[%s14521_s1 + $0x1d88] sm:$0xff]  ;;  %v6031_v13 = vld [vmem:[%s14521_s1 + $0x1d90] sm:$0xff] }
 0x18f   : > { %7631 = vmatpush1.bf16.msra.mxu0 %v7630_v44  ;;  %2381 = vmatmul.mubr.f32.gmra.mrb[6].mxu1 %v11080_v52  ;;  %v5911_v52 = vld [vmem:[%s14521_s1 + $0x19d0] sm:$0xff]  ;;  %v7638_v39 = vpack.c.bf16 %v5909_v51, %v5901_v34  ;;  %v5968_v44 = vld [vmem:[%s14521_s1 + $0x1b98] sm:$0xff]  ;;  %v7702_v34 = vpack.c.bf16 %v5975_v15, %v5967_v24  ;;  %v7656_v51 = vpack.c.bf16 %v5990_v16, %v5982_v41  ;;  %v6038_v2 = vld [vmem:[%s14521_s1 + $0x1dc8] sm:$0xff] }
 0x190   : > { %7679 = vmatpush1.bf16.msra.mxu1 %v7678_v19  ;;  %7633 = vmatprep.subr.bf16.mxu0 %v7632_v22  ;;  %v7686_v40 = vpack.c.bf16 %v5911_v52, %v5903_v35  ;;  %v5976_v19 = vld [vmem:[%s14521_s1 + $0x1bd8] sm:$0xff]  ;;  %v7650_v22 = vpack.c.bf16 %v5957_v20, %v5949_v7  ;;  %v5981_v35 = vld [vmem:[%s14521_s1 + $0x1c00] sm:$0xff]  ;;  %v5983_v52 = vld [vmem:[%s14521_s1 + $0x1c10] sm:$0xff]  ;;  %v7714_v7 = vpack.c.bf16 %v6023_v0, %v6015_v62 }
 0x191   : > { %7681 = vmatprep.subr.bf16.mxu1 %v7680_v48  ;;  %6045 = vmatprep.mubr.msk.f32.mxu0 %vm466_vm0, %v11422_v27  ;;  %v5973_v48 = vld [vmem:[%s14521_s1 + $0x1bc0] sm:$0xff]  ;;  %v7700_v25 = vpack.c.bf16 %v5976_v19, %v5968_v44  ;;  %v7706_v46 = vpack.c.bf16 %v5991_v14, %v5983_v52  ;;  %v7668_v20 = vpack.c.bf16 %v6038_v2, %v6030_v1  ;;  %v6039_v21 = vld [vmem:[%s14521_s1 + $0x1dd0] sm:$0xff]  ;;  %v5858_v44 = vld [vmem:[%s14521_s1 + $0x1828] sm:$0xff] }
 0x192   : > { %6047 = vmatprep.mubr.msk.f32.mxu1 %vm466_vm0, %v11422_v27  ;;  %v6029_v11 = vld [vmem:[%s14521_s1 + $0x1d80] sm:$0xff]  ;;  %v5866_v19 = vld [vmem:[%s14521_s1 + $0x1868] sm:$0xff]  ;;  %v11650_v24 = vld [vmem:[%s9037_s4 + $0x10] sm:$0xff]  ;;  %v7718_v15 = vpack.c.bf16 %v6039_v21, %v6031_v13 }
 0x193   : > { %7635 = vmatpush1.bf16.msra.mxu0 %v7634_v28  ;;  %v5984_v28 = vld [vmem:[%s14521_s1 + $0x1c18] sm:$0xff]  ;;  %v7720_v41 = vpack.c.bf16 %v5866_v19, %v5858_v44  ;;  %v5857_v16 = vld [vmem:[%s14521_s1 + $0x1820] sm:$0xff]  ;;  %v5914_v62 = vld [vmem:[%s14521_s1 + $0x19e8] sm:$0xff] }
 0x194   : > { %7683 = vmatpush1.bf16.msra.mxu1 %v7682_v29  ;;  %7637 = vmatprep.subr.bf16.mxu0 %v7636_v32  ;;  %v5992_v29 = vld [vmem:[%s14521_s1 + $0x1c58] sm:$0xff]  ;;  %v7654_v32 = vpack.c.bf16 %v5973_v48, %v5965_v30  ;;  %v11646_v30 = vld [vmem:[%s9037_s4] sm:$0xff]  ;;  %v5930_v13 = vld [vmem:[%s14521_s1 + $0x1a68] sm:$0xff] }
 0x195   : > { %7685 = vmatprep.subr.bf16.mxu1 %v7684_v42  ;;  %v5989_v42 = vld [vmem:[%s14521_s1 + $0x1c40] sm:$0xff]  ;;  %v7704_v37 = vpack.c.bf16 %v5992_v29, %v5984_v28  ;;  %v2597_v48 = vrot.slane %v11646_v30, 4  ;;  %v5859_v29 = vld [vmem:[%s14521_s1 + $0x1830] sm:$0xff]  ;;  %v5884_v52 = vld [vmem:[%s14521_s1 + $0x18f8] sm:$0xff] }
 0x196   : > { %v5865_v28 = vld [vmem:[%s14521_s1 + $0x1860] sm:$0xff]  ;;  %v5916_v0 = vld [vmem:[%s14521_s1 + $0x19f8] sm:$0xff] }
 0x197   : > { %7639 = vmatpush1.bf16.msra.mxu0 %v7638_v39  ;;  %v6000_v39 = vld [vmem:[%s14521_s1 + $0x1c98] sm:$0xff]  ;;  %v7722_v38 = vpack.c.bf16 %v5865_v28, %v5857_v16 }
 0x198   : > { %7687 = vmatpush1.bf16.msra.mxu1 %v7686_v40  ;;  %7641 = vmatprep.subr.bf16.mxu0 %v7640_v43  ;;  %v6008_v40 = vld [vmem:[%s14521_s1 + $0x1cd8] sm:$0xff]  ;;  %v7658_v43 = vpack.c.bf16 %v5989_v42, %v5981_v35  ;;  %v5882_v35 = vld [vmem:[%s14521_s1 + $0x18e8] sm:$0xff] }
 0x199   : > { %7689 = vmatprep.subr.bf16.mxu1 %v7688_v50  ;;  %v6005_v50 = vld [vmem:[%s14521_s1 + $0x1cc0] sm:$0xff]  ;;  %v7708_v53 = vpack.c.bf16 %v6008_v40, %v6000_v39  ;;  %v5876_v42 = vld [vmem:[%s14521_s1 + $0x18b8] sm:$0xff] }
 0x19a   : > { %v5932_v21 = vld [vmem:[%s14521_s1 + $0x1a78] sm:$0xff] }
 0x19b   : > { %7643 = vmatpush1.bf16.msra.mxu0 %v7642_v17  ;;  %v6016_v17 = vld [vmem:[%s14521_s1 + $0x1d18] sm:$0xff] }
 0x19c   : > { %7691 = vmatpush1.bf16.msra.mxu1 %v7690_v56  ;;  %7645 = vmatprep.subr.bf16.mxu0 %v7644_v57  ;;  %v6024_v56 = vld [vmem:[%s14521_s1 + $0x1d58] sm:$0xff]  ;;  %v7662_v57 = vpack.c.bf16 %v6005_v50, %v5997_v8  ;;  %v5890_v8 = vld [vmem:[%s14521_s1 + $0x1928] sm:$0xff] }
 0x19d   : > { %7693 = vmatprep.subr.bf16.mxu1 %v7692_v61  ;;  %v6021_v61 = vld [vmem:[%s14521_s1 + $0x1d40] sm:$0xff]  ;;  %v7712_v63 = vpack.c.bf16 %v6024_v56, %v6016_v17  ;;  %v5898_v50 = vld [vmem:[%s14521_s1 + $0x1968] sm:$0xff]  ;;  %v5940_v16 = vld [vmem:[%s14521_s1 + $0x1ab8] sm:$0xff] }
 0x19e   : > { %v7728_v56 = vpack.c.bf16 %v5898_v50, %v5890_v8  ;;  %v5948_v28 = vld [vmem:[%s14521_s1 + $0x1af8] sm:$0xff]  ;;  %v5955_v8 = vld [vmem:[%s14521_s1 + $0x1b30] sm:$0xff] }
 0x19f   : > { %7647 = vmatpush1.bf16.msra.mxu0 %v7646_v3  ;;  %v6032_v3 = vld [vmem:[%s14521_s1 + $0x1d98] sm:$0xff] }
 0x1a0   : > { %7695 = vmatpush1.bf16.msra.mxu1 %v7694_v4  ;;  %7649 = vmatprep.subr.bf16.mxu0 %v7648_v5  ;;  %v6040_v4 = vld [vmem:[%s14521_s1 + $0x1dd8] sm:$0xff]  ;;  %v7666_v5 = vpack.c.bf16 %v6021_v61, %v6013_v60  ;;  %v5899_v60 = vld [vmem:[%s14521_s1 + $0x1970] sm:$0xff]  ;;  %v5906_v61 = vld [vmem:[%s14521_s1 + $0x19a8] sm:$0xff] }
 0x1a1   : > { %7697 = vmatprep.subr.bf16.mxu1 %v7696_v12  ;;  %v6037_v12 = vld [vmem:[%s14521_s1 + $0x1dc0] sm:$0xff]  ;;  %v7716_v47 = vpack.c.bf16 %v6040_v4, %v6032_v3  ;;  %v7732_v3 = vpack.c.bf16 %v5914_v62, %v5906_v61  ;;  %v5971_v61 = vld [vmem:[%s14521_s1 + $0x1bb0] sm:$0xff] }
 0x1a2   : > { %v5905_v4 = vld [vmem:[%s14521_s1 + $0x19a0] sm:$0xff] }
 0x1a3   : > { %7651 = vmatpush1.bf16.msra.mxu0 %v7650_v22  ;;  %v5860_v22 = vld [vmem:[%s14521_s1 + $0x1838] sm:$0xff] }
 0x1a4   : > { %7699 = vmatpush1.bf16.msra.mxu1 %v7698_v23  ;;  %7653 = vmatprep.subr.bf16.mxu0 %v7652_v6  ;;  %v5868_v23 = vld [vmem:[%s14521_s1 + $0x1878] sm:$0xff]  ;;  %v7670_v6 = vpack.c.bf16 %v6037_v12, %v6029_v11  ;;  %v5915_v11 = vld [vmem:[%s14521_s1 + $0x19f0] sm:$0xff]  ;;  %v5922_v12 = vld [vmem:[%s14521_s1 + $0x1a28] sm:$0xff] }
 0x1a5   : > { %7701 = vmatprep.subr.bf16.mxu1 %v7700_v25  ;;  %v2598_v25 = vrot.slane %v11650_v24, 4 }
 0x1a7   : > { %7655 = vmatpush1.bf16.msra.mxu0 %v7654_v32  ;;  %v7768_v32 = vpack.c.bf16 %v5868_v23, %v5860_v22  ;;  %v11679_v14 = vsel %vm2596_vm4, %v2597_v48, %v2598_v25  ;;  %v11714_v9 = vsel %vm2596_vm4, %v2598_v25, %v2603_v18  ;;  %v7736_v22 = vpack.c.bf16 %v5930_v13, %v5922_v12  ;;  %v5921_v23 = vld [vmem:[%s14521_s1 + $0x1a20] sm:$0xff]  ;;  %v5923_v48 = vld [vmem:[%s14521_s1 + $0x1a30] sm:$0xff]  ;;  %v5962_v18 = vld [vmem:[%s14521_s1 + $0x1b68] sm:$0xff] }
 0x1a8   : > { %7703 = vmatpush1.bf16.msra.mxu1 %v7702_v34  ;;  %7657 = vmatprep.subr.bf16.mxu0 %v7656_v51  ;;  %v5867_v34 = vld [vmem:[%s14521_s1 + $0x1870] sm:$0xff]  ;;  %v5874_v51 = vld [vmem:[%s14521_s1 + $0x18a8] sm:$0xff] }
 0x1a9   : > { %7705 = vmatprep.subr.bf16.mxu1 %v7704_v37  ;;  %v2605_v37 = vrot.slane %v11038_v33, 4  ;;  %v7770_v39 = vpack.c.bf16 %v5867_v34, %v5859_v29  ;;  %v7724_v40 = vpack.c.bf16 %v5882_v35, %v5874_v51  ;;  %v5875_v33 = vld [vmem:[%s14521_s1 + $0x18b0] sm:$0xff]  ;;  %v5937_v51 = vld [vmem:[%s14521_s1 + $0x1aa0] sm:$0xff] }
 0x1aa   : > { %v7774_v17 = vpack.c.bf16 %v5883_v36, %v5875_v33  ;;  %v5931_v25 = vld [vmem:[%s14521_s1 + $0x1a70] sm:$0xff]  ;;  %v5945_v35 = vld [vmem:[%s14521_s1 + $0x1ae0] sm:$0xff] }
 0x1ab   : > { %7659 = vmatpush1.bf16.msra.mxu0 %v7658_v43  ;;  %v5873_v43 = vld [vmem:[%s14521_s1 + $0x18a0] sm:$0xff]  ;;  %v11710_v54 = vsel %vm2596_vm4, %v2601_v45, %v2605_v37  ;;  %v5947_v37 = vld [vmem:[%s14521_s1 + $0x1af0] sm:$0xff] }
 0x1ac   : > { %7707 = vmatpush1.bf16.msra.mxu1 %v7706_v46  ;;  %7661 = vmatprep.subr.bf16.mxu0 %v7660_v49  ;;  %v5881_v46 = vld [vmem:[%s14521_s1 + $0x18e0] sm:$0xff]  ;;  %v7772_v49 = vpack.c.bf16 %v5884_v52, %v5876_v42  ;;  %v5939_v42 = vld [vmem:[%s14521_s1 + $0x1ab0] sm:$0xff]  ;;  %v7788_v52 = vpack.c.bf16 %v5948_v28, %v5940_v16  ;;  %v6018_v28 = vld [vmem:[%s14521_s1 + $0x1d28] sm:$0xff] }
 0x1ad   : > { %7709 = vmatprep.subr.bf16.mxu1 %v7708_v53  ;;  %v5900_v53 = vld [vmem:[%s14521_s1 + $0x1978] sm:$0xff]  ;;  %v7726_v55 = vpack.c.bf16 %v5881_v46, %v5873_v43  ;;  %v5897_v45 = vld [vmem:[%s14521_s1 + $0x1960] sm:$0xff]  ;;  %v7742_v43 = vpack.c.bf16 %v5945_v35, %v5937_v51  ;;  %v7790_v46 = vpack.c.bf16 %v5947_v37, %v5939_v42  ;;  %v5987_v12 = vld [vmem:[%s14521_s1 + $0x1c30] sm:$0xff] }
 0x1ae   : > { %v5961_v36 = vld [vmem:[%s14521_s1 + $0x1b60] sm:$0xff]  ;;  %v6011_v16 = vld [vmem:[%s14521_s1 + $0x1cf0] sm:$0xff] }
 0x1af   : > { %7663 = vmatpush1.bf16.msra.mxu0 %v7662_v57  ;;  %v5889_v57 = vld [vmem:[%s14521_s1 + $0x1920] sm:$0xff] }
 0x1b0   : > { %7711 = vmatpush1.bf16.msra.mxu1 %v7710_v58  ;;  %7665 = vmatprep.subr.bf16.mxu0 %v7664_v59  ;;  %v5891_v58 = vld [vmem:[%s14521_s1 + $0x1930] sm:$0xff]  ;;  %v7776_v59 = vpack.c.bf16 %v5900_v53, %v5892_v10  ;;  %v7730_v1 = vpack.c.bf16 %v5897_v45, %v5889_v57  ;;  %v5970_v53 = vld [vmem:[%s14521_s1 + $0x1ba8] sm:$0xff]  ;;  %v6025_v37 = vld [vmem:[%s14521_s1 + $0x1d60] sm:$0xff] }
 0x1b1   : > { %7713 = vmatprep.subr.bf16.mxu1 %v7712_v63  ;;  %v5908_v63 = vld [vmem:[%s14521_s1 + $0x19b8] sm:$0xff]  ;;  %v7778_v2 = vpack.c.bf16 %v5899_v60, %v5891_v58  ;;  %v5963_v10 = vld [vmem:[%s14521_s1 + $0x1b70] sm:$0xff]  ;;  %v5977_v60 = vld [vmem:[%s14521_s1 + $0x1be0] sm:$0xff] }
 0x1b2   : > { %v7794_v45 = vpack.c.bf16 %v5963_v10, %v5955_v8  ;;  %v6041_v10 = vld [vmem:[%s14521_s1 + $0x1de0] sm:$0xff] }
 0x1b3   : > { %7667 = vmatpush1.bf16.msra.mxu0 %v7666_v5  ;;  %v5913_v5 = vld [vmem:[%s14521_s1 + $0x19e0] sm:$0xff] }
 0x1b4   : > { %7715 = vmatpush1.bf16.msra.mxu1 %v7714_v7  ;;  %7669 = vmatprep.subr.bf16.mxu0 %v7668_v20  ;;  %v5907_v7 = vld [vmem:[%s14521_s1 + $0x19b0] sm:$0xff]  ;;  %v7780_v20 = vpack.c.bf16 %v5916_v0, %v5908_v63  ;;  %v7734_v44 = vpack.c.bf16 %v5913_v5, %v5905_v4  ;;  %v5986_v0 = vld [vmem:[%s14521_s1 + $0x1c28] sm:$0xff] }
 0x1b5   : > { %7717 = vmatprep.subr.bf16.mxu1 %v7716_v47  ;;  %v5924_v47 = vld [vmem:[%s14521_s1 + $0x1a38] sm:$0xff]  ;;  %v7782_v19 = vpack.c.bf16 %v5915_v11, %v5907_v7  ;;  %v5979_v63 = vld [vmem:[%s14521_s1 + $0x1bf0] sm:$0xff]  ;;  %v5993_v11 = vld [vmem:[%s14521_s1 + $0x1c60] sm:$0xff] }
 0x1b6   : > { %v7798_v5 = vpack.c.bf16 %v5979_v63, %v5971_v61  ;;  %v6061_v63 = vld [vmem:[%s14521_s1 + $0x1e40] sm:$0xff] }
 0x1b7   : > { %7671 = vmatpush1.bf16.msra.mxu0 %v7670_v6  ;;  %v5929_v6 = vld [vmem:[%s14521_s1 + $0x1a60] sm:$0xff] }
 0x1b8   : > { %7719 = vmatpush1.bf16.msra.mxu1 %v7718_v15  ;;  %7721 = vmatprep.subr.bf16.mxu0 %v7720_v41  ;;  %v5938_v15 = vld [vmem:[%s14521_s1 + $0x1aa8] sm:$0xff]  ;;  %v7738_v29 = vpack.c.bf16 %v5929_v6, %v5921_v23 }
 0x1b9   : > { %7769 = vmatprep.subr.bf16.mxu1 %v7768_v32  ;;  %v5946_v41 = vld [vmem:[%s14521_s1 + $0x1ae8] sm:$0xff]  ;;  %v7786_v32 = vpack.c.bf16 %v5931_v25, %v5923_v48  ;;  %v6009_v25 = vld [vmem:[%s14521_s1 + $0x1ce0] sm:$0xff] }
 0x1ba   : > { %2678 = vmatmul.mubr.f32.vlgmr.msra.gmra.mrb[0].mxu0 %v11679_v14  ;;  %v7740_v34 = vpack.c.bf16 %v5946_v41, %v5938_v15  ;;  %v6003_v15 = vld [vmem:[%s14521_s1 + $0x1cb0] sm:$0xff] }
 0x1bb   : > { %2755 = vmatmul.mubr.f32.vlgmr.msra.gmra.mrb[0].mxu1 %v11679_v14  ;;  %7723 = vmatpush1.bf16.msra.mxu0 %v7722_v38  ;;  %v5954_v38 = vld [vmem:[%s14521_s1 + $0x1b28] sm:$0xff]  ;;  %v7806_v35 = vpack.c.bf16 %v6011_v16, %v6003_v15 }
 0x1bc   : > { %7771 = vmatpush1.bf16.msra.mxu1 %v7770_v39  ;;  %7725 = vmatprep.subr.bf16.mxu0 %v7724_v40  ;;  %v5956_v39 = vld [vmem:[%s14521_s1 + $0x1b38] sm:$0xff]  ;;  %v7744_v33 = vpack.c.bf16 %v5962_v18, %v5954_v38  ;;  %v6019_v38 = vld [vmem:[%s14521_s1 + $0x1d30] sm:$0xff] }
 0x1bd   : > { %7773 = vmatprep.subr.bf16.mxu1 %v7772_v49  ;;  %6046 = vmatprep.mubr.msk.f32.mxu0 %vm466_vm0, %v11710_v54  ;;  %v5964_v40 = vld [vmem:[%s14521_s1 + $0x1b78] sm:$0xff]  ;;  %v5953_v49 = vld [vmem:[%s14521_s1 + $0x1b20] sm:$0xff] }
 0x1be   : > { %6048 = vmatprep.mubr.msk.f32.mxu1 %vm466_vm0, %v11710_v54  ;;  %2684 = vmatmul.mubr.f32.gmra.mrb[2].mxu0 %v11714_v9  ;;  %v7792_v50 = vpack.c.bf16 %v5964_v40, %v5956_v39  ;;  %v7746_v57 = vpack.c.bf16 %v5961_v36, %v5953_v49  ;;  %v6027_v39 = vld [vmem:[%s14521_s1 + $0x1d70] sm:$0xff]  ;;  %v6034_v40 = vld [vmem:[%s14521_s1 + $0x1da8] sm:$0xff] }
 0x1bf   : > { %7727 = vmatpush1.bf16.msra.mxu0 %v7726_v55  ;;  %2761 = vmatmul.mubr.f32.gmra.mrb[2].mxu1 %v11714_v9  ;;  %v5978_v55 = vld [vmem:[%s14521_s1 + $0x1be8] sm:$0xff]  ;;  %v7810_v36 = vpack.c.bf16 %v6027_v39, %v6019_v38  ;;  %v6101_v39 = vld [vmem:[%s14521_s1 + $0x1f80] sm:$0xff] }
 0x1c0   : > { %7775 = vmatpush1.bf16.msra.mxu1 %v7774_v17  ;;  %7729 = vmatprep.subr.bf16.mxu0 %v7728_v56  ;;  %v5972_v17 = vld [vmem:[%s14521_s1 + $0x1bb8] sm:$0xff]  ;;  %v7748_v58 = vpack.c.bf16 %v5978_v55, %v5970_v53  ;;  %v6035_v53 = vld [vmem:[%s14521_s1 + $0x1db0] sm:$0xff] }
 0x1c1   : > { %7777 = vmatprep.subr.bf16.mxu1 %v7776_v59  ;;  %6049 = vmatprep.mubr.msk.f32.mxu0 %vm466_vm0, %v11422_v27  ;;  %v5980_v56 = vld [vmem:[%s14521_s1 + $0x1bf8] sm:$0xff]  ;;  %v5969_v59 = vld [vmem:[%s14521_s1 + $0x1ba0] sm:$0xff] }
 0x1c2   : > { %6051 = vmatprep.mubr.msk.f32.mxu1 %vm466_vm0, %v11422_v27  ;;  %v7784_v27 = vpack.c.bf16 %v5932_v21, %v5924_v47  ;;  %v7796_v62 = vpack.c.bf16 %v5980_v56, %v5972_v17  ;;  %v7750_v4 = vpack.c.bf16 %v5977_v60, %v5969_v59  ;;  %v5995_v47 = vld [vmem:[%s14521_s1 + $0x1c70] sm:$0xff]  ;;  %v6002_v21 = vld [vmem:[%s14521_s1 + $0x1ca8] sm:$0xff] }
 0x1c3   : > { %7731 = vmatpush1.bf16.msra.mxu0 %v7730_v1  ;;  %v5994_v1 = vld [vmem:[%s14521_s1 + $0x1c68] sm:$0xff]  ;;  %v7802_v6 = vpack.c.bf16 %v5995_v47, %v5987_v12  ;;  %v6043_v17 = vld [vmem:[%s14521_s1 + $0x1df0] sm:$0xff]  ;;  %v6077_v47 = vld [vmem:[%s14521_s1 + $0x1ec0] sm:$0xff] }
 0x1c4   : > { %7779 = vmatpush1.bf16.msra.mxu1 %v7778_v2  ;;  %7733 = vmatprep.subr.bf16.mxu0 %v7732_v3  ;;  %v5988_v2 = vld [vmem:[%s14521_s1 + $0x1c38] sm:$0xff]  ;;  %v7752_v7 = vpack.c.bf16 %v5994_v1, %v5986_v0  ;;  %v6054_v56 = vld [vmem:[%s14521_s1 + $0x1e08] sm:$0xff]  ;;  %v7814_v60 = vpack.c.bf16 %v6043_v17, %v6035_v53  ;;  %v6055_v0 = vld [vmem:[%s14521_s1 + $0x1e10] sm:$0xff] }
 0x1c5   : > { %7781 = vmatprep.subr.bf16.mxu1 %v7780_v20  ;;  %v5996_v3 = vld [vmem:[%s14521_s1 + $0x1c78] sm:$0xff]  ;;  %v5985_v20 = vld [vmem:[%s14521_s1 + $0x1c20] sm:$0xff]  ;;  %v6119_v17 = vld [vmem:[%s14521_s1 + $0x2010] sm:$0xff] }
 0x1c6   : > { %v7800_v13 = vpack.c.bf16 %v5996_v3, %v5988_v2  ;;  %v7754_v23 = vpack.c.bf16 %v5993_v11, %v5985_v20  ;;  %v6063_v2 = vld [vmem:[%s14521_s1 + $0x1e50] sm:$0xff]  ;;  %v6070_v3 = vld [vmem:[%s14521_s1 + $0x1e88] sm:$0xff]  ;;  %v6117_v53 = vld [vmem:[%s14521_s1 + $0x2000] sm:$0xff] }
 0x1c7   : > { %7735 = vmatpush1.bf16.msra.mxu0 %v7734_v44  ;;  %v6010_v44 = vld [vmem:[%s14521_s1 + $0x1ce8] sm:$0xff]  ;;  %v7866_v11 = vpack.c.bf16 %v6063_v2, %v6055_v0  ;;  %v6133_v0 = vld [vmem:[%s14521_s1 + $0x2080] sm:$0xff]  ;;  %v6135_v2 = vld [vmem:[%s14521_s1 + $0x2090] sm:$0xff] }
 0x1c8   : > { %7783 = vmatpush1.bf16.msra.mxu1 %v7782_v19  ;;  %7737 = vmatprep.subr.bf16.mxu0 %v7736_v22  ;;  %v6004_v19 = vld [vmem:[%s14521_s1 + $0x1cb8] sm:$0xff]  ;;  %v7756_v48 = vpack.c.bf16 %v6010_v44, %v6002_v21  ;;  %v6071_v21 = vld [vmem:[%s14521_s1 + $0x1e90] sm:$0xff] }
 0x1c9   : > { %7785 = vmatprep.subr.bf16.mxu1 %v7784_v27  ;;  %v6012_v22 = vld [vmem:[%s14521_s1 + $0x1cf8] sm:$0xff]  ;;  %v6001_v27 = vld [vmem:[%s14521_s1 + $0x1ca0] sm:$0xff] }
 0x1ca   : > { %v7804_v41 = vpack.c.bf16 %v6012_v22, %v6004_v19  ;;  %v7758_v51 = vpack.c.bf16 %v6009_v25, %v6001_v27  ;;  %v6079_v19 = vld [vmem:[%s14521_s1 + $0x1ed0] sm:$0xff]  ;;  %v6086_v22 = vld [vmem:[%s14521_s1 + $0x1f08] sm:$0xff]  ;;  %v3134_v27 = vrot.slane %v11382_v26, 5  ;;  %v3135_v25 = vrot.slane %v11386_v31, 5  ;;  %v6097_v31 = vld [vmem:[%s14521_s1 + $0x1f60] sm:$0xff] }
 0x1cb   : > { %7739 = vmatpush1.bf16.msra.mxu0 %v7738_v29  ;;  %v6026_v29 = vld [vmem:[%s14521_s1 + $0x1d68] sm:$0xff]  ;;  %v6087_v26 = vld [vmem:[%s14521_s1 + $0x1f10] sm:$0xff] }
 0x1cc   : > { %7787 = vmatpush1.bf16.msra.mxu1 %v7786_v32  ;;  %7741 = vmatprep.subr.bf16.mxu0 %v7740_v34  ;;  %v6020_v32 = vld [vmem:[%s14521_s1 + $0x1d38] sm:$0xff]  ;;  %v7760_v42 = vpack.c.bf16 %v6026_v29, %v6018_v28  ;;  %v6085_v28 = vld [vmem:[%s14521_s1 + $0x1f00] sm:$0xff] }
 0x1cd   : > { %7789 = vmatprep.subr.bf16.mxu1 %v7788_v52  ;;  %v6028_v34 = vld [vmem:[%s14521_s1 + $0x1d78] sm:$0xff]  ;;  %v6017_v52 = vld [vmem:[%s14521_s1 + $0x1d20] sm:$0xff] }
 0x1ce   : > { %v7808_v18 = vpack.c.bf16 %v6028_v34, %v6020_v32  ;;  %v7762_v49 = vpack.c.bf16 %v6025_v37, %v6017_v52  ;;  %v6093_v29 = vld [vmem:[%s14521_s1 + $0x1f40] sm:$0xff]  ;;  %v6095_v32 = vld [vmem:[%s14521_s1 + $0x1f50] sm:$0xff]  ;;  %v6102_v34 = vld [vmem:[%s14521_s1 + $0x1f88] sm:$0xff]  ;;  %v12050_v52 = vsel %vm3130_vm5, %v3134_v27, %v3135_v25 }
 0x1cf   : > { %7743 = vmatpush1.bf16.msra.mxu0 %v7742_v43  ;;  %v6042_v43 = vld [vmem:[%s14521_s1 + $0x1de8] sm:$0xff]  ;;  %v7826_v37 = vpack.c.bf16 %v6093_v29, %v6085_v28  ;;  %v7874_v38 = vpack.c.bf16 %v6095_v32, %v6087_v26  ;;  %v6168_v27 = vld [vmem:[%s14521_s1 + $0x2198] sm:$0xff]  ;;  %v6165_v29 = vld [vmem:[%s14521_s1 + $0x2180] sm:$0xff] }
 0x1d0   : > { %7791 = vmatpush1.bf16.msra.mxu1 %v7790_v46  ;;  %7745 = vmatprep.subr.bf16.mxu0 %v7744_v33  ;;  %v6036_v46 = vld [vmem:[%s14521_s1 + $0x1db8] sm:$0xff]  ;;  %v7764_v8 = vpack.c.bf16 %v6042_v43, %v6034_v40  ;;  %v6103_v40 = vld [vmem:[%s14521_s1 + $0x1f90] sm:$0xff]  ;;  %v6173_v26 = vld [vmem:[%s14521_s1 + $0x21c0] sm:$0xff] }
 0x1d1   : > { %7793 = vmatprep.subr.bf16.mxu1 %v7792_v50  ;;  %v6044_v33 = vld [vmem:[%s14521_s1 + $0x1df8] sm:$0xff]  ;;  %v6033_v50 = vld [vmem:[%s14521_s1 + $0x1da0] sm:$0xff] }
 0x1d2   : > { %v7812_v55 = vpack.c.bf16 %v6044_v33, %v6036_v46  ;;  %v7766_v59 = vpack.c.bf16 %v6041_v10, %v6033_v50  ;;  %v6118_v46 = vld [vmem:[%s14521_s1 + $0x2008] sm:$0xff] }
 0x1d3   : > { %7747 = vmatpush1.bf16.msra.mxu0 %v7746_v57  ;;  %v6062_v57 = vld [vmem:[%s14521_s1 + $0x1e48] sm:$0xff] }
 0x1d4   : > { %7795 = vmatpush1.bf16.msra.mxu1 %v7794_v45  ;;  %7749 = vmatprep.subr.bf16.mxu0 %v7748_v58  ;;  %v6056_v45 = vld [vmem:[%s14521_s1 + $0x1e18] sm:$0xff]  ;;  %v7816_v61 = vpack.c.bf16 %v6062_v57, %v6054_v56  ;;  %v6126_v33 = vld [vmem:[%s14521_s1 + $0x2048] sm:$0xff]  ;;  %v6127_v57 = vld [vmem:[%s14521_s1 + $0x2050] sm:$0xff] }
 0x1d5   : > { %7797 = vmatprep.subr.bf16.mxu1 %v7796_v62  ;;  %v6064_v58 = vld [vmem:[%s14521_s1 + $0x1e58] sm:$0xff]  ;;  %v6053_v62 = vld [vmem:[%s14521_s1 + $0x1e00] sm:$0xff]  ;;  %v7832_v10 = vpack.c.bf16 %v6126_v33, %v6118_v46  ;;  %v6191_v46 = vld [vmem:[%s14521_s1 + $0x2250] sm:$0xff] }
 0x1d6   : > { %v7864_v1 = vpack.c.bf16 %v6064_v58, %v6056_v45  ;;  %v7818_v20 = vpack.c.bf16 %v6061_v63, %v6053_v62  ;;  %v6134_v45 = vld [vmem:[%s14521_s1 + $0x2088] sm:$0xff]  ;;  %v7882_v62 = vpack.c.bf16 %v6127_v57, %v6119_v17  ;;  %v6205_v17 = vld [vmem:[%s14521_s1 + $0x22c0] sm:$0xff] }
 0x1d7   : > { %7751 = vmatpush1.bf16.msra.mxu0 %v7750_v4  ;;  %v6078_v4 = vld [vmem:[%s14521_s1 + $0x1ec8] sm:$0xff] }
 0x1d8   : > { %7799 = vmatpush1.bf16.msra.mxu1 %v7798_v5  ;;  %7753 = vmatprep.subr.bf16.mxu0 %v7752_v7  ;;  %v6072_v5 = vld [vmem:[%s14521_s1 + $0x1e98] sm:$0xff]  ;;  %v7820_v12 = vpack.c.bf16 %v6078_v4, %v6070_v3  ;;  %v6142_v58 = vld [vmem:[%s14521_s1 + $0x20c8] sm:$0xff]  ;;  %v6143_v4 = vld [vmem:[%s14521_s1 + $0x20d0] sm:$0xff] }
 0x1d9   : > { %7801 = vmatprep.subr.bf16.mxu1 %v7800_v13  ;;  %v6080_v7 = vld [vmem:[%s14521_s1 + $0x1ed8] sm:$0xff]  ;;  %v6069_v13 = vld [vmem:[%s14521_s1 + $0x1e80] sm:$0xff]  ;;  %v7836_v63 = vpack.c.bf16 %v6142_v58, %v6134_v45  ;;  %v6198_v33 = vld [vmem:[%s14521_s1 + $0x2288] sm:$0xff] }
 0x1da   : > { %v7868_v44 = vpack.c.bf16 %v6080_v7, %v6072_v5  ;;  %v7822_v15 = vpack.c.bf16 %v6077_v47, %v6069_v13  ;;  %v6150_v5 = vld [vmem:[%s14521_s1 + $0x2108] sm:$0xff]  ;;  %v7886_v13 = vpack.c.bf16 %v6143_v4, %v6135_v2  ;;  %v6207_v45 = vld [vmem:[%s14521_s1 + $0x22d0] sm:$0xff]  ;;  %v6221_v2 = vld [vmem:[%s14521_s1 + $0x2340] sm:$0xff] }
 0x1db   : > { %7755 = vmatpush1.bf16.msra.mxu0 %v7754_v23  ;;  %v6094_v23 = vld [vmem:[%s14521_s1 + $0x1f48] sm:$0xff] }
 0x1dc   : > { %7803 = vmatpush1.bf16.msra.mxu1 %v7802_v6  ;;  %7757 = vmatprep.subr.bf16.mxu0 %v7756_v48  ;;  %v6088_v6 = vld [vmem:[%s14521_s1 + $0x1f18] sm:$0xff]  ;;  %v7824_v16 = vpack.c.bf16 %v6094_v23, %v6086_v22  ;;  %v6158_v7 = vld [vmem:[%s14521_s1 + $0x2148] sm:$0xff]  ;;  %v6159_v23 = vld [vmem:[%s14521_s1 + $0x2150] sm:$0xff] }
 0x1dd   : > { %7805 = vmatprep.subr.bf16.mxu1 %v7804_v41  ;;  %v6096_v48 = vld [vmem:[%s14521_s1 + $0x1f58] sm:$0xff]  ;;  %v7870_v41 = vpack.c.bf16 %v6079_v19, %v6071_v21  ;;  %v7840_v47 = vpack.c.bf16 %v6158_v7, %v6150_v5  ;;  %v6149_v21 = vld [vmem:[%s14521_s1 + $0x2100] sm:$0xff]  ;;  %v6151_v19 = vld [vmem:[%s14521_s1 + $0x2110] sm:$0xff] }
 0x1de   : > { %v6214_v58 = vld [vmem:[%s14521_s1 + $0x2308] sm:$0xff]  ;;  %v6223_v5 = vld [vmem:[%s14521_s1 + $0x2350] sm:$0xff] }
 0x1df   : > { %7759 = vmatpush1.bf16.msra.mxu0 %v7758_v51  ;;  %v6110_v51 = vld [vmem:[%s14521_s1 + $0x1fc8] sm:$0xff] }
 0x1e0   : > { %7807 = vmatpush1.bf16.msra.mxu1 %v7806_v35  ;;  %7761 = vmatprep.subr.bf16.mxu0 %v7760_v42  ;;  %v6104_v35 = vld [vmem:[%s14521_s1 + $0x1f98] sm:$0xff]  ;;  %v6230_v7 = vld [vmem:[%s14521_s1 + $0x2388] sm:$0xff] }
 0x1e1   : > { %7809 = vmatprep.subr.bf16.mxu1 %v7808_v18  ;;  %v6112_v42 = vld [vmem:[%s14521_s1 + $0x1fd8] sm:$0xff]  ;;  %v7828_v18 = vpack.c.bf16 %v6110_v51, %v6102_v34  ;;  %v6175_v34 = vld [vmem:[%s14521_s1 + $0x21d0] sm:$0xff]  ;;  %v6182_v51 = vld [vmem:[%s14521_s1 + $0x2208] sm:$0xff] }
 0x1e2   : > { %v7876_v43 = vpack.c.bf16 %v6112_v42, %v6104_v35  ;;  %v6190_v35 = vld [vmem:[%s14521_s1 + $0x2248] sm:$0xff]  ;;  %v6184_v42 = vld [vmem:[%s14521_s1 + $0x2218] sm:$0xff] }
 0x1e3   : > { %7763 = vmatpush1.bf16.msra.mxu0 %v7762_v49  ;;  %v6120_v49 = vld [vmem:[%s14521_s1 + $0x2018] sm:$0xff] }
 0x1e4   : > { %7811 = vmatpush1.bf16.msra.mxu1 %v7810_v36  ;;  %7765 = vmatprep.subr.bf16.mxu0 %v7764_v8  ;;  %v6128_v36 = vld [vmem:[%s14521_s1 + $0x2058] sm:$0xff] }
 0x1e5   : > { %7813 = vmatprep.subr.bf16.mxu1 %v7812_v55  ;;  %v6125_v55 = vld [vmem:[%s14521_s1 + $0x2040] sm:$0xff]  ;;  %v7880_v56 = vpack.c.bf16 %v6128_v36, %v6120_v49  ;;  %v6206_v49 = vld [vmem:[%s14521_s1 + $0x22c8] sm:$0xff]  ;;  %v6200_v36 = vld [vmem:[%s14521_s1 + $0x2298] sm:$0xff] }
 0x1e7   : > { %7767 = vmatpush1.bf16.msra.mxu0 %v7766_v59  ;;  %v6136_v59 = vld [vmem:[%s14521_s1 + $0x2098] sm:$0xff] }
 0x1e8   : > { %7815 = vmatpush1.bf16.msra.mxu1 %v7814_v60  ;;  %7817 = vmatprep.subr.bf16.mxu0 %v7816_v61  ;;  %v6144_v60 = vld [vmem:[%s14521_s1 + $0x20d8] sm:$0xff]  ;;  %v7834_v61 = vpack.c.bf16 %v6125_v55, %v6117_v53  ;;  %v7852_v53 = vpack.c.bf16 %v6206_v49, %v6198_v33  ;;  %v6197_v55 = vld [vmem:[%s14521_s1 + $0x2280] sm:$0xff] }
 0x1e9   : > { %7865 = vmatprep.subr.bf16.mxu1 %v7864_v1  ;;  %v6141_v1 = vld [vmem:[%s14521_s1 + $0x20c0] sm:$0xff]  ;;  %v7884_v3 = vpack.c.bf16 %v6144_v60, %v6136_v59  ;;  %v6222_v59 = vld [vmem:[%s14521_s1 + $0x2348] sm:$0xff]  ;;  %v6216_v60 = vld [vmem:[%s14521_s1 + $0x2318] sm:$0xff] }
 0x1ea   : > { %2832 = vmatmul.mubr.f32.vlgmr.msra.gmra.mrb[4].mxu0 %v11679_v14  ;;  %v6073_v49 = vld [vmem:[%s14521_s1 + $0x1ea0] sm:$0xff] }
 0x1eb   : > { %2909 = vmatmul.mubr.f32.vlgmr.msra.gmra.mrb[4].mxu1 %v11679_v14  ;;  %7819 = vmatpush1.bf16.msra.mxu0 %v7818_v20  ;;  %v7872_v14 = vpack.c.bf16 %v6096_v48, %v6088_v6  ;;  %v6152_v20 = vld [vmem:[%s14521_s1 + $0x2118] sm:$0xff]  ;;  %v6166_v6 = vld [vmem:[%s14521_s1 + $0x2188] sm:$0xff] }
 0x1ec   : > { %7867 = vmatpush1.bf16.msra.mxu1 %v7866_v11  ;;  %7821 = vmatprep.subr.bf16.mxu0 %v7820_v12  ;;  %v6160_v11 = vld [vmem:[%s14521_s1 + $0x2158] sm:$0xff]  ;;  %v7838_v12 = vpack.c.bf16 %v6141_v1, %v6133_v0  ;;  %v6174_v48 = vld [vmem:[%s14521_s1 + $0x21c8] sm:$0xff]  ;;  %v7856_v0 = vpack.c.bf16 %v6222_v59, %v6214_v58  ;;  %v6213_v1 = vld [vmem:[%s14521_s1 + $0x2300] sm:$0xff] }
 0x1ed   : > { %7869 = vmatprep.subr.bf16.mxu1 %v7868_v44  ;;  %6050 = vmatprep.mubr.msk.f32.mxu0 %vm466_vm0, %v11710_v54  ;;  %v6157_v44 = vld [vmem:[%s14521_s1 + $0x2140] sm:$0xff]  ;;  %v7888_v22 = vpack.c.bf16 %v6160_v11, %v6152_v20  ;;  %v7844_v28 = vpack.c.bf16 %v6174_v48, %v6166_v6  ;;  %v6238_v20 = vld [vmem:[%s14521_s1 + $0x23c8] sm:$0xff]  ;;  %v6232_v11 = vld [vmem:[%s14521_s1 + $0x2398] sm:$0xff] }
 0x1ee   : > { %6052 = vmatprep.mubr.msk.f32.mxu1 %vm466_vm0, %v11710_v54  ;;  %2838 = vmatmul.mubr.f32.gmra.mrb[6].mxu0 %v11714_v9  ;;  %v6109_v54 = vld [vmem:[%s14521_s1 + $0x1fc0] sm:$0xff]  ;;  %v6239_v6 = vld [vmem:[%s14521_s1 + $0x23d0] sm:$0xff]  ;;  %v6058_v48 = vld [vmem:[%s14521_s1 + $0x1e28] sm:$0xff] }
 0x1ef   : > { %7823 = vmatpush1.bf16.msra.mxu0 %v7822_v15  ;;  %2915 = vmatmul.mubr.f32.gmra.mrb[6].mxu1 %v11714_v9  ;;  %v6111_v9 = vld [vmem:[%s14521_s1 + $0x1fd0] sm:$0xff]  ;;  %v7830_v8 = vpack.c.bf16 %v6109_v54, %v6101_v39  ;;  %v6176_v15 = vld [vmem:[%s14521_s1 + $0x21d8] sm:$0xff]  ;;  %v7848_v39 = vpack.c.bf16 %v6190_v35, %v6182_v51  ;;  %v6181_v54 = vld [vmem:[%s14521_s1 + $0x2200] sm:$0xff] }
 0x1f0   : > { %7871 = vmatpush1.bf16.msra.mxu1 %v7870_v41  ;;  %7825 = vmatprep.subr.bf16.mxu0 %v7824_v16  ;;  %v7878_v50 = vpack.c.bf16 %v6111_v9, %v6103_v40  ;;  %v7842_v41 = vpack.c.bf16 %v6157_v44, %v6149_v21  ;;  %v7890_v16 = vpack.c.bf16 %v6159_v23, %v6151_v19  ;;  %v6189_v40 = vld [vmem:[%s14521_s1 + $0x2240] sm:$0xff]  ;;  %v6074_v35 = vld [vmem:[%s14521_s1 + $0x1ea8] sm:$0xff] }
 0x1f1   : > { %7873 = vmatprep.subr.bf16.mxu1 %v7872_v14  ;;  %6245 = vmatprep.mubr.msk.f32.mxu0 %vm466_vm0, %v12050_v52  ;;  %v6167_v14 = vld [vmem:[%s14521_s1 + $0x2190] sm:$0xff]  ;;  %v7892_v32 = vpack.c.bf16 %v6176_v15, %v6168_v27  ;;  %v7860_v21 = vpack.c.bf16 %v6238_v20, %v6230_v7  ;;  %v6229_v44 = vld [vmem:[%s14521_s1 + $0x2380] sm:$0xff]  ;;  %v6066_v27 = vld [vmem:[%s14521_s1 + $0x1e68] sm:$0xff] }
 0x1f2   : > { %6247 = vmatprep.mubr.msk.f32.mxu1 %vm466_vm0, %v12050_v52  ;;  %v6237_v19 = vld [vmem:[%s14521_s1 + $0x23c0] sm:$0xff]  ;;  %v6060_v15 = vld [vmem:[%s14521_s1 + $0x1e38] sm:$0xff] }
 0x1f3   : > { %7827 = vmatpush1.bf16.msra.mxu0 %v7826_v37  ;;  %v6192_v37 = vld [vmem:[%s14521_s1 + $0x2258] sm:$0xff]  ;;  %v6105_v20 = vld [vmem:[%s14521_s1 + $0x1fa0] sm:$0xff] }
 0x1f4   : > { %7875 = vmatpush1.bf16.msra.mxu1 %v7874_v38  ;;  %7829 = vmatprep.subr.bf16.mxu0 %v7828_v18  ;;  %v7846_v38 = vpack.c.bf16 %v6173_v26, %v6165_v29  ;;  %v7894_v18 = vpack.c.bf16 %v6175_v34, %v6167_v14  ;;  %v7896_v9 = vpack.c.bf16 %v6192_v37, %v6184_v42  ;;  %v3132_v29 = vrot.slane %v11650_v24, 5  ;;  %v6065_v34 = vld [vmem:[%s14521_s1 + $0x1e60] sm:$0xff]  ;;  %v6067_v24 = vld [vmem:[%s14521_s1 + $0x1e70] sm:$0xff]  ;;  %v6082_v42 = vld [vmem:[%s14521_s1 + $0x1ee8] sm:$0xff] }
 0x1f5   : > { %7877 = vmatprep.subr.bf16.mxu1 %v7876_v43  ;;  %v6183_v43 = vld [vmem:[%s14521_s1 + $0x2210] sm:$0xff]  ;;  %v7912_v14 = vpack.c.bf16 %v6066_v27, %v6058_v48  ;;  %v6076_v37 = vld [vmem:[%s14521_s1 + $0x1eb8] sm:$0xff]  ;;  %v7916_v33 = vpack.c.bf16 %v6082_v42, %v6074_v35  ;;  %v6121_v27 = vld [vmem:[%s14521_s1 + $0x2020] sm:$0xff] }
 0x1f6   : > { %v6139_v35 = vld [vmem:[%s14521_s1 + $0x20b0] sm:$0xff] }
 0x1f7   : > { %7831 = vmatpush1.bf16.msra.mxu0 %v7830_v8  ;;  %v6208_v8 = vld [vmem:[%s14521_s1 + $0x22d8] sm:$0xff] }
 0x1f8   : > { %7879 = vmatpush1.bf16.msra.mxu1 %v7878_v50  ;;  %7833 = vmatprep.subr.bf16.mxu0 %v7832_v10  ;;  %v7850_v50 = vpack.c.bf16 %v6189_v40, %v6181_v54  ;;  %v7898_v10 = vpack.c.bf16 %v6191_v46, %v6183_v43  ;;  %v7900_v57 = vpack.c.bf16 %v6208_v8, %v6200_v36  ;;  %v12307_v43 = vld [vmem:[%s9037_s4 + $0x20] sm:$0xff]  ;;  %v6075_v8 = vld [vmem:[%s14521_s1 + $0x1eb0] sm:$0xff] }
 0x1f9   : > { %7881 = vmatprep.subr.bf16.mxu1 %v7880_v56  ;;  %v6199_v56 = vld [vmem:[%s14521_s1 + $0x2290] sm:$0xff]  ;;  %v6081_v36 = vld [vmem:[%s14521_s1 + $0x1ee0] sm:$0xff] }
 0x1fb   : > { %7835 = vmatpush1.bf16.msra.mxu0 %v7834_v61  ;;  %v6224_v61 = vld [vmem:[%s14521_s1 + $0x2358] sm:$0xff] }
 0x1fc   : > { %7883 = vmatpush1.bf16.msra.mxu1 %v7882_v62  ;;  %7837 = vmatprep.subr.bf16.mxu0 %v7836_v63  ;;  %v7854_v62 = vpack.c.bf16 %v6205_v17, %v6197_v55  ;;  %v7902_v63 = vpack.c.bf16 %v6207_v45, %v6199_v56  ;;  %v7904_v4 = vpack.c.bf16 %v6224_v61, %v6216_v60  ;;  %v6098_v55 = vld [vmem:[%s14521_s1 + $0x1f68] sm:$0xff]  ;;  %v6092_v17 = vld [vmem:[%s14521_s1 + $0x1f38] sm:$0xff]  ;;  %v6089_v61 = vld [vmem:[%s14521_s1 + $0x1f20] sm:$0xff] }
 0x1fd   : > { %7885 = vmatprep.subr.bf16.mxu1 %v7884_v3  ;;  %v6215_v3 = vld [vmem:[%s14521_s1 + $0x2310] sm:$0xff]  ;;  %v6100_v56 = vld [vmem:[%s14521_s1 + $0x1f78] sm:$0xff]  ;;  %v7918_v45 = vpack.c.bf16 %v6081_v36, %v6073_v49  ;;  %v6153_v36 = vld [vmem:[%s14521_s1 + $0x2120] sm:$0xff] }
 0x1ff   : > { %7839 = vmatpush1.bf16.msra.mxu0 %v7838_v12  ;;  %v6240_v12 = vld [vmem:[%s14521_s1 + $0x23d8] sm:$0xff] }
 0x200   : > { %7887 = vmatpush1.bf16.msra.mxu1 %v7886_v13  ;;  %7841 = vmatprep.subr.bf16.mxu0 %v7840_v47  ;;  %v7858_v13 = vpack.c.bf16 %v6221_v2, %v6213_v1  ;;  %v7906_v47 = vpack.c.bf16 %v6223_v5, %v6215_v3  ;;  %v7908_v23 = vpack.c.bf16 %v6240_v12, %v6232_v11  ;;  %v6114_v1 = vld [vmem:[%s14521_s1 + $0x1fe8] sm:$0xff]  ;;  %v6108_v2 = vld [vmem:[%s14521_s1 + $0x1fb8] sm:$0xff]  ;;  %v6113_v11 = vld [vmem:[%s14521_s1 + $0x1fe0] sm:$0xff] }
 0x201   : > { %7889 = vmatprep.subr.bf16.mxu1 %v7888_v22  ;;  %v6231_v22 = vld [vmem:[%s14521_s1 + $0x2390] sm:$0xff]  ;;  %v6116_v3 = vld [vmem:[%s14521_s1 + $0x1ff8] sm:$0xff] }
 0x202   : > { %v7910_v26 = vpack.c.bf16 %v6239_v6, %v6231_v22  ;;  %v6107_v12 = vld [vmem:[%s14521_s1 + $0x1fb0] sm:$0xff]  ;;  %v6132_v22 = vld [vmem:[%s14521_s1 + $0x2078] sm:$0xff] }
 0x203   : > { %7843 = vmatpush1.bf16.msra.mxu0 %v7842_v41  ;;  %v6068_v41 = vld [vmem:[%s14521_s1 + $0x1e78] sm:$0xff] }
 0x204   : > { %7891 = vmatpush1.bf16.msra.mxu1 %v7890_v16  ;;  %7845 = vmatprep.subr.bf16.mxu0 %v7844_v28  ;;  %v7862_v16 = vpack.c.bf16 %v6237_v19, %v6229_v44  ;;  %v3131_v28 = vrot.slane %v11646_v30, 5  ;;  %v6059_v30 = vld [vmem:[%s14521_s1 + $0x1e30] sm:$0xff]  ;;  %v7960_v51 = vpack.c.bf16 %v6068_v41, %v6060_v15  ;;  %v6130_v44 = vld [vmem:[%s14521_s1 + $0x2068] sm:$0xff]  ;;  %v6124_v19 = vld [vmem:[%s14521_s1 + $0x2038] sm:$0xff] }
 0x205   : > { %7893 = vmatprep.subr.bf16.mxu1 %v7892_v32  ;;  %v6057_v32 = vld [vmem:[%s14521_s1 + $0x1e20] sm:$0xff]  ;;  %v7962_v46 = vpack.c.bf16 %v6067_v24, %v6059_v30  ;;  %v6123_v41 = vld [vmem:[%s14521_s1 + $0x2030] sm:$0xff] }
 0x206   : > { %v12304_v54 = vsel %vm3130_vm5, %v3131_v28, %v3132_v29  ;;  %v7914_v40 = vpack.c.bf16 %v6065_v34, %v6057_v32  ;;  %v6129_v15 = vld [vmem:[%s14521_s1 + $0x2060] sm:$0xff]  ;;  %v6138_v28 = vld [vmem:[%s14521_s1 + $0x20a8] sm:$0xff] }
 0x207   : > { %7847 = vmatpush1.bf16.msra.mxu0 %v7846_v38  ;;  %v6084_v38 = vld [vmem:[%s14521_s1 + $0x1ef8] sm:$0xff]  ;;  %v7930_v32 = vpack.c.bf16 %v6129_v15, %v6121_v27  ;;  %v6145_v24 = vld [vmem:[%s14521_s1 + $0x20e0] sm:$0xff] }
 0x208   : > { %7895 = vmatpush1.bf16.msra.mxu1 %v7894_v18  ;;  %7849 = vmatprep.subr.bf16.mxu0 %v7848_v39  ;;  %v12300_v18 = vld [vmem:[%s9037_s4 + $0x28] sm:$0xff]  ;;  %v6201_v15 = vld [vmem:[%s14521_s1 + $0x22a0] sm:$0xff] }
 0x209   : > { %7897 = vmatprep.subr.bf16.mxu1 %v7896_v9  ;;  %v3139_v39 = vrot.slane %v12300_v18, 5  ;;  %v3137_v9 = vrot.slane %v12307_v43, 5 }
 0x20b   : > { %7851 = vmatpush1.bf16.msra.mxu0 %v7850_v50  ;;  %v7964_v50 = vpack.c.bf16 %v6084_v38, %v6076_v37  ;;  %v12342_v58 = vsel %vm3130_vm5, %v3132_v29, %v3137_v9  ;;  %v6146_v29 = vld [vmem:[%s14521_s1 + $0x20e8] sm:$0xff]  ;;  %v6147_v37 = vld [vmem:[%s14521_s1 + $0x20f0] sm:$0xff]  ;;  %v6164_v9 = vld [vmem:[%s14521_s1 + $0x2178] sm:$0xff] }
 0x20c   : > { %7899 = vmatpush1.bf16.msra.mxu1 %v7898_v10  ;;  %7853 = vmatprep.subr.bf16.mxu0 %v7852_v53  ;;  %v6083_v10 = vld [vmem:[%s14521_s1 + $0x1ef0] sm:$0xff]  ;;  %v6090_v53 = vld [vmem:[%s14521_s1 + $0x1f28] sm:$0xff]  ;;  %v7932_v30 = vpack.c.bf16 %v6146_v29, %v6138_v28 }
 0x20d   : > { %7901 = vmatprep.subr.bf16.mxu1 %v7900_v57  ;;  %v12338_v57 = vsel %vm3130_vm5, %v3135_v25, %v3139_v39  ;;  %v7966_v59 = vpack.c.bf16 %v6083_v10, %v6075_v8  ;;  %v7920_v60 = vpack.c.bf16 %v6098_v55, %v6090_v53  ;;  %v6091_v25 = vld [vmem:[%s14521_s1 + $0x1f30] sm:$0xff]  ;;  %v6154_v38 = vld [vmem:[%s14521_s1 + $0x2128] sm:$0xff]  ;;  %v6161_v8 = vld [vmem:[%s14521_s1 + $0x2160] sm:$0xff] }
 0x20e   : > { %v6162_v39 = vld [vmem:[%s14521_s1 + $0x2168] sm:$0xff]  ;;  %v6163_v53 = vld [vmem:[%s14521_s1 + $0x2170] sm:$0xff] }
 0x20f   : > { %7855 = vmatpush1.bf16.msra.mxu0 %v7854_v62  ;;  %v7968_v62 = vpack.c.bf16 %v6100_v56, %v6092_v17  ;;  %v7936_v49 = vpack.c.bf16 %v6162_v39, %v6154_v38  ;;  %v6170_v55 = vld [vmem:[%s14521_s1 + $0x21a8] sm:$0xff]  ;;  %v6172_v56 = vld [vmem:[%s14521_s1 + $0x21b8] sm:$0xff]  ;;  %v6211_v28 = vld [vmem:[%s14521_s1 + $0x22f0] sm:$0xff] }
 0x210   : > { %7903 = vmatpush1.bf16.msra.mxu1 %v7902_v63  ;;  %7857 = vmatprep.subr.bf16.mxu0 %v7856_v0  ;;  %v6099_v63 = vld [vmem:[%s14521_s1 + $0x1f70] sm:$0xff]  ;;  %v6106_v0 = vld [vmem:[%s14521_s1 + $0x1fa8] sm:$0xff] }
 0x211   : > { %7905 = vmatprep.subr.bf16.mxu1 %v7904_v4  ;;  %v7922_v4 = vpack.c.bf16 %v6097_v31, %v6089_v61  ;;  %v7970_v5 = vpack.c.bf16 %v6099_v63, %v6091_v25  ;;  %v7924_v7 = vpack.c.bf16 %v6114_v1, %v6106_v0  ;;  %v6178_v17 = vld [vmem:[%s14521_s1 + $0x21e8] sm:$0xff]  ;;  %v6169_v31 = vld [vmem:[%s14521_s1 + $0x21a0] sm:$0xff]  ;;  %v6179_v0 = vld [vmem:[%s14521_s1 + $0x21f0] sm:$0xff] }
 0x212   : > { %v7940_v61 = vpack.c.bf16 %v6178_v17, %v6170_v55  ;;  %v6177_v25 = vld [vmem:[%s14521_s1 + $0x21e0] sm:$0xff]  ;;  %v6186_v1 = vld [vmem:[%s14521_s1 + $0x2228] sm:$0xff]  ;;  %v6227_v38 = vld [vmem:[%s14521_s1 + $0x2370] sm:$0xff] }
 0x213   : > { %7859 = vmatpush1.bf16.msra.mxu0 %v7858_v13  ;;  %v7972_v13 = vpack.c.bf16 %v6116_v3, %v6108_v2  ;;  %v6194_v2 = vld [vmem:[%s14521_s1 + $0x2268] sm:$0xff]  ;;  %v6188_v3 = vld [vmem:[%s14521_s1 + $0x2238] sm:$0xff]  ;;  %v6243_v55 = vld [vmem:[%s14521_s1 + $0x23f0] sm:$0xff] }
 0x214   : > { %7907 = vmatpush1.bf16.msra.mxu1 %v7906_v47  ;;  %7861 = vmatprep.subr.bf16.mxu0 %v7860_v21  ;;  %v6115_v47 = vld [vmem:[%s14521_s1 + $0x1ff0] sm:$0xff]  ;;  %v6122_v21 = vld [vmem:[%s14521_s1 + $0x2028] sm:$0xff] }
 0x215   : > { %7909 = vmatprep.subr.bf16.mxu1 %v7908_v23  ;;  %v7926_v23 = vpack.c.bf16 %v6113_v11, %v6105_v20  ;;  %v7974_v6 = vpack.c.bf16 %v6115_v47, %v6107_v12  ;;  %v7928_v48 = vpack.c.bf16 %v6130_v44, %v6122_v21  ;;  %v7944_v20 = vpack.c.bf16 %v6194_v2, %v6186_v1  ;;  %v6185_v11 = vld [vmem:[%s14521_s1 + $0x2220] sm:$0xff]  ;;  %v6195_v21 = vld [vmem:[%s14521_s1 + $0x2270] sm:$0xff]  ;;  %v6202_v44 = vld [vmem:[%s14521_s1 + $0x22a8] sm:$0xff] }
 0x216   : > { %v6193_v12 = vld [vmem:[%s14521_s1 + $0x2260] sm:$0xff]  ;;  %v6218_v29 = vld [vmem:[%s14521_s1 + $0x2328] sm:$0xff]  ;;  %v6263_v1 = vld [vmem:[%s14521_s1 + $0x2450] sm:$0xff] }
 0x217   : > { %7863 = vmatpush1.bf16.msra.mxu0 %v7862_v16  ;;  %v6131_v16 = vld [vmem:[%s14521_s1 + $0x2070] sm:$0xff]  ;;  %v6234_v39 = vld [vmem:[%s14521_s1 + $0x23a8] sm:$0xff] }
 0x218   : > { %7911 = vmatpush1.bf16.msra.mxu1 %v7910_v26  ;;  %7913 = vmatprep.subr.bf16.mxu0 %v7912_v14  ;;  %v6140_v26 = vld [vmem:[%s14521_s1 + $0x20b8] sm:$0xff]  ;;  %v7978_v34 = vpack.c.bf16 %v6131_v16, %v6123_v41  ;;  %v6209_v41 = vld [vmem:[%s14521_s1 + $0x22e0] sm:$0xff]  ;;  %v6254_v17 = vld [vmem:[%s14521_s1 + $0x2408] sm:$0xff] }
 0x219   : > { %7961 = vmatprep.subr.bf16.mxu1 %v7960_v51  ;;  %v6148_v14 = vld [vmem:[%s14521_s1 + $0x20f8] sm:$0xff]  ;;  %v6137_v51 = vld [vmem:[%s14521_s1 + $0x20a0] sm:$0xff]  ;;  %v6270_v2 = vld [vmem:[%s14521_s1 + $0x2488] sm:$0xff] }
 0x21a   : > { %3212 = vmatmul.mubr.f32.vlgmr.msra.gmra.mrb[0].mxu0 %v12304_v54  ;;  %v7980_v42 = vpack.c.bf16 %v6148_v14, %v6140_v26  ;;  %v6226_v26 = vld [vmem:[%s14521_s1 + $0x2368] sm:$0xff]  ;;  %v6220_v14 = vld [vmem:[%s14521_s1 + $0x2338] sm:$0xff] }
 0x21b   : > { %3289 = vmatmul.mubr.f32.vlgmr.msra.gmra.mrb[0].mxu1 %v12304_v54  ;;  %7915 = vmatpush1.bf16.msra.mxu0 %v7914_v40  ;;  %v6156_v40 = vld [vmem:[%s14521_s1 + $0x2138] sm:$0xff] }
 0x21c   : > { %7963 = vmatpush1.bf16.msra.mxu1 %v7962_v46  ;;  %7917 = vmatprep.subr.bf16.mxu0 %v7916_v33  ;;  %v7934_v46 = vpack.c.bf16 %v6145_v24, %v6137_v51  ;;  %v7982_v33 = vpack.c.bf16 %v6147_v37, %v6139_v35  ;;  %v7984_v10 = vpack.c.bf16 %v6164_v9, %v6156_v40  ;;  %v6217_v24 = vld [vmem:[%s14521_s1 + $0x2320] sm:$0xff]  ;;  %v6242_v40 = vld [vmem:[%s14521_s1 + $0x23e8] sm:$0xff]  ;;  %v6236_v9 = vld [vmem:[%s14521_s1 + $0x23b8] sm:$0xff] }
 0x21d   : > { %7965 = vmatprep.subr.bf16.mxu1 %v7964_v50  ;;  %6246 = vmatprep.mubr.msk.f32.mxu0 %vm466_vm0, %v12338_v57  ;;  %v6155_v50 = vld [vmem:[%s14521_s1 + $0x2130] sm:$0xff]  ;;  %v7952_v51 = vpack.c.bf16 %v6226_v26, %v6218_v29  ;;  %v6225_v35 = vld [vmem:[%s14521_s1 + $0x2360] sm:$0xff] }
 0x21e   : > { %6248 = vmatprep.mubr.msk.f32.mxu1 %vm466_vm0, %v12338_v57  ;;  %3218 = vmatmul.mubr.f32.gmra.mrb[2].mxu0 %v12342_v58  ;;  %v6285_v29 = vld [vmem:[%s14521_s1 + $0x2500] sm:$0xff] }
 0x21f   : > { %7919 = vmatpush1.bf16.msra.mxu0 %v7918_v45  ;;  %3295 = vmatmul.mubr.f32.gmra.mrb[2].mxu1 %v12342_v58  ;;  %v6180_v45 = vld [vmem:[%s14521_s1 + $0x21f8] sm:$0xff]  ;;  %v6293_v26 = vld [vmem:[%s14521_s1 + $0x2540] sm:$0xff] }
 0x220   : > { %7967 = vmatpush1.bf16.msra.mxu1 %v7966_v59  ;;  %7921 = vmatprep.subr.bf16.mxu0 %v7920_v60  ;;  %v7938_v59 = vpack.c.bf16 %v6161_v8, %v6153_v36  ;;  %v7986_v60 = vpack.c.bf16 %v6163_v53, %v6155_v50  ;;  %v7988_v63 = vpack.c.bf16 %v6180_v45, %v6172_v56  ;;  %v6233_v8 = vld [vmem:[%s14521_s1 + $0x23a0] sm:$0xff]  ;;  %v6262_v56 = vld [vmem:[%s14521_s1 + $0x2448] sm:$0xff]  ;;  %v6256_v45 = vld [vmem:[%s14521_s1 + $0x2418] sm:$0xff] }
 0x221   : > { %7969 = vmatprep.subr.bf16.mxu1 %v7968_v62  ;;  %6249 = vmatprep.mubr.msk.f32.mxu0 %vm466_vm0, %v12050_v52  ;;  %v6171_v62 = vld [vmem:[%s14521_s1 + $0x21b0] sm:$0xff]  ;;  %v7956_v36 = vpack.c.bf16 %v6242_v40, %v6234_v39  ;;  %v6241_v50 = vld [vmem:[%s14521_s1 + $0x23e0] sm:$0xff] }
 0x222   : > { %6251 = vmatprep.mubr.msk.f32.mxu1 %vm466_vm0, %v12050_v52  ;;  %v7976_v52 = vpack.c.bf16 %v6132_v22, %v6124_v19  ;;  %v6210_v19 = vld [vmem:[%s14521_s1 + $0x22e8] sm:$0xff]  ;;  %v6204_v22 = vld [vmem:[%s14521_s1 + $0x22b8] sm:$0xff]  ;;  %v6301_v39 = vld [vmem:[%s14521_s1 + $0x2580] sm:$0xff] }
 0x223   : > { %7923 = vmatpush1.bf16.msra.mxu0 %v7922_v4  ;;  %v6196_v4 = vld [vmem:[%s14521_s1 + $0x2278] sm:$0xff]  ;;  %v7948_v27 = vpack.c.bf16 %v6210_v19, %v6202_v44  ;;  %v6279_v44 = vld [vmem:[%s14521_s1 + $0x24d0] sm:$0xff]  ;;  %v6286_v19 = vld [vmem:[%s14521_s1 + $0x2508] sm:$0xff] }
 0x224   : > { %7971 = vmatpush1.bf16.msra.mxu1 %v7970_v5  ;;  %7925 = vmatprep.subr.bf16.mxu0 %v7924_v7  ;;  %v7942_v5 = vpack.c.bf16 %v6177_v25, %v6169_v31  ;;  %v7990_v7 = vpack.c.bf16 %v6179_v0, %v6171_v62  ;;  %v7992_v47 = vpack.c.bf16 %v6196_v4, %v6188_v3  ;;  %v6253_v25 = vld [vmem:[%s14521_s1 + $0x2400] sm:$0xff]  ;;  %v6278_v3 = vld [vmem:[%s14521_s1 + $0x24c8] sm:$0xff]  ;;  %v6272_v4 = vld [vmem:[%s14521_s1 + $0x2498] sm:$0xff] }
 0x225   : > { %7973 = vmatprep.subr.bf16.mxu1 %v7972_v13  ;;  %v6187_v13 = vld [vmem:[%s14521_s1 + $0x2230] sm:$0xff]  ;;  %v8008_v31 = vpack.c.bf16 %v6262_v56, %v6254_v17  ;;  %v6261_v62 = vld [vmem:[%s14521_s1 + $0x2440] sm:$0xff] }
 0x226   : > { %v6303_v40 = vld [vmem:[%s14521_s1 + $0x2590] sm:$0xff] }
 0x227   : > { %7927 = vmatpush1.bf16.msra.mxu0 %v7926_v23  ;;  %v6212_v23 = vld [vmem:[%s14521_s1 + $0x22f8] sm:$0xff]  ;;  %v6319_v17 = vld [vmem:[%s14521_s1 + $0x2610] sm:$0xff] }
 0x228   : > { %7975 = vmatpush1.bf16.msra.mxu1 %v7974_v6  ;;  %7929 = vmatprep.subr.bf16.mxu0 %v7928_v48  ;;  %v7946_v6 = vpack.c.bf16 %v6193_v12, %v6185_v11  ;;  %v7994_v48 = vpack.c.bf16 %v6195_v21, %v6187_v13  ;;  %v7996_v16 = vpack.c.bf16 %v6212_v23, %v6204_v22  ;;  %v6269_v12 = vld [vmem:[%s14521_s1 + $0x2480] sm:$0xff]  ;;  %v6294_v22 = vld [vmem:[%s14521_s1 + $0x2548] sm:$0xff]  ;;  %v6288_v23 = vld [vmem:[%s14521_s1 + $0x2518] sm:$0xff] }
 0x229   : > { %7977 = vmatprep.subr.bf16.mxu1 %v7976_v52  ;;  %v6203_v52 = vld [vmem:[%s14521_s1 + $0x22b0] sm:$0xff]  ;;  %v8012_v11 = vpack.c.bf16 %v6278_v3, %v6270_v2  ;;  %v6277_v13 = vld [vmem:[%s14521_s1 + $0x24c0] sm:$0xff] }
 0x22a   : > { %v6335_v2 = vld [vmem:[%s14521_s1 + $0x2690] sm:$0xff] }
 0x22b   : > { %7931 = vmatpush1.bf16.msra.mxu0 %v7930_v32  ;;  %v6228_v32 = vld [vmem:[%s14521_s1 + $0x2378] sm:$0xff] }
 0x22c   : > { %7979 = vmatpush1.bf16.msra.mxu1 %v7978_v34  ;;  %7933 = vmatprep.subr.bf16.mxu0 %v7932_v30  ;;  %v7950_v34 = vpack.c.bf16 %v6209_v41, %v6201_v15  ;;  %v7998_v30 = vpack.c.bf16 %v6211_v28, %v6203_v52  ;;  %v8000_v37 = vpack.c.bf16 %v6228_v32, %v6220_v14  ;;  %v12648_v15 = vld [vmem:[%s9037_s4 + $0x18] sm:$0xff]  ;;  %v6287_v14 = vld [vmem:[%s14521_s1 + $0x2510] sm:$0xff] }
 0x22d   : > { %7981 = vmatprep.subr.bf16.mxu1 %v7980_v42  ;;  %v6219_v42 = vld [vmem:[%s14521_s1 + $0x2330] sm:$0xff]  ;;  %v3669_v41 = vrot.slane %v12648_v15, 6  ;;  %v8014_v52 = vpack.c.bf16 %v6277_v13, %v6269_v12  ;;  %v8016_v28 = vpack.c.bf16 %v6294_v22, %v6286_v19 }
 0x22e   : > { %v6295_v32 = vld [vmem:[%s14521_s1 + $0x2550] sm:$0xff] }
 0x22f   : > { %7935 = vmatpush1.bf16.msra.mxu0 %v7934_v46  ;;  %v6244_v46 = vld [vmem:[%s14521_s1 + $0x23f8] sm:$0xff]  ;;  %v6351_v19 = vld [vmem:[%s14521_s1 + $0x2710] sm:$0xff] }
 0x230   : > { %7983 = vmatpush1.bf16.msra.mxu1 %v7982_v33  ;;  %7937 = vmatprep.subr.bf16.mxu0 %v7936_v49  ;;  %v7954_v33 = vpack.c.bf16 %v6225_v35, %v6217_v24  ;;  %v8002_v49 = vpack.c.bf16 %v6227_v38, %v6219_v42  ;;  %v8004_v53 = vpack.c.bf16 %v6244_v46, %v6236_v9  ;;  %v6312_v24 = vld [vmem:[%s14521_s1 + $0x25d8] sm:$0xff]  ;;  %v6318_v46 = vld [vmem:[%s14521_s1 + $0x2608] sm:$0xff] }
 0x231   : > { %7985 = vmatprep.subr.bf16.mxu1 %v7984_v10  ;;  %v6235_v10 = vld [vmem:[%s14521_s1 + $0x23b0] sm:$0xff]  ;;  %v8018_v42 = vpack.c.bf16 %v6293_v26, %v6285_v29 }
 0x233   : > { %7939 = vmatpush1.bf16.msra.mxu0 %v7938_v59  ;;  %v6264_v59 = vld [vmem:[%s14521_s1 + $0x2458] sm:$0xff] }
 0x234   : > { %7987 = vmatpush1.bf16.msra.mxu1 %v7986_v60  ;;  %7941 = vmatprep.subr.bf16.mxu0 %v7940_v61  ;;  %v7958_v60 = vpack.c.bf16 %v6241_v50, %v6233_v8  ;;  %v8006_v61 = vpack.c.bf16 %v6243_v55, %v6235_v10  ;;  %v8056_v0 = vpack.c.bf16 %v6264_v59, %v6256_v45  ;;  %v6325_v55 = vld [vmem:[%s14521_s1 + $0x2640] sm:$0xff]  ;;  %v6327_v45 = vld [vmem:[%s14521_s1 + $0x2650] sm:$0xff]  ;;  %v6334_v59 = vld [vmem:[%s14521_s1 + $0x2688] sm:$0xff] }
 0x235   : > { %7989 = vmatprep.subr.bf16.mxu1 %v7988_v63  ;;  %v6255_v63 = vld [vmem:[%s14521_s1 + $0x2410] sm:$0xff] }
 0x237   : > { %7943 = vmatpush1.bf16.msra.mxu0 %v7942_v5  ;;  %v6280_v5 = vld [vmem:[%s14521_s1 + $0x24d8] sm:$0xff] }
 0x238   : > { %7991 = vmatpush1.bf16.msra.mxu1 %v7990_v7  ;;  %7945 = vmatprep.subr.bf16.mxu0 %v7944_v20  ;;  %v8010_v7 = vpack.c.bf16 %v6261_v62, %v6253_v25  ;;  %v8058_v20 = vpack.c.bf16 %v6263_v1, %v6255_v63  ;;  %v8060_v21 = vpack.c.bf16 %v6280_v5, %v6272_v4  ;;  %v6341_v1 = vld [vmem:[%s14521_s1 + $0x26c0] sm:$0xff]  ;;  %v6343_v4 = vld [vmem:[%s14521_s1 + $0x26d0] sm:$0xff]  ;;  %v6350_v5 = vld [vmem:[%s14521_s1 + $0x2708] sm:$0xff] }
 0x239   : > { %7993 = vmatprep.subr.bf16.mxu1 %v7992_v47  ;;  %v6271_v47 = vld [vmem:[%s14521_s1 + $0x2490] sm:$0xff]  ;;  %v8074_v62 = vpack.c.bf16 %v6327_v45, %v6319_v17  ;;  %v8078_v13 = vpack.c.bf16 %v6343_v4, %v6335_v2  ;;  %v6397_v17 = vld [vmem:[%s14521_s1 + $0x2880] sm:$0xff] }
 0x23a   : > { %v6399_v45 = vld [vmem:[%s14521_s1 + $0x2890] sm:$0xff]  ;;  %v6413_v2 = vld [vmem:[%s14521_s1 + $0x2900] sm:$0xff] }
 0x23b   : > { %7947 = vmatpush1.bf16.msra.mxu0 %v7946_v6  ;;  %v6296_v6 = vld [vmem:[%s14521_s1 + $0x2558] sm:$0xff]  ;;  %v6415_v4 = vld [vmem:[%s14521_s1 + $0x2910] sm:$0xff] }
 0x23c   : > { %7995 = vmatpush1.bf16.msra.mxu1 %v7994_v48  ;;  %7949 = vmatprep.subr.bf16.mxu0 %v7948_v27  ;;  %v12644_v48 = vld [vmem:[%s9037_s4 + $0x8] sm:$0xff] }
 0x23d   : > { %7997 = vmatprep.subr.bf16.mxu1 %v7996_v16  ;;  %v3668_v27 = vrot.slane %v12644_v48, 6  ;;  %v8062_v16 = vpack.c.bf16 %v6279_v44, %v6271_v47  ;;  %v6357_v44 = vld [vmem:[%s14521_s1 + $0x2740] sm:$0xff] }
 0x23f   : > { %7951 = vmatpush1.bf16.msra.mxu0 %v7950_v34  ;;  %v6302_v34 = vld [vmem:[%s14521_s1 + $0x2588] sm:$0xff]  ;;  %v12684_v35 = vsel %vm3664_vm6, %v3668_v27, %v3669_v41 }
 0x240   : > { %7999 = vmatpush1.bf16.msra.mxu1 %v7998_v30  ;;  %7953 = vmatprep.subr.bf16.mxu0 %v7952_v51  ;;  %v6310_v30 = vld [vmem:[%s14521_s1 + $0x25c8] sm:$0xff]  ;;  %v6304_v51 = vld [vmem:[%s14521_s1 + $0x2598] sm:$0xff] }
 0x241   : > { %8001 = vmatprep.subr.bf16.mxu1 %v8000_v37  ;;  %v8066_v37 = vpack.c.bf16 %v6295_v32, %v6287_v14  ;;  %v8020_v38 = vpack.c.bf16 %v6310_v30, %v6302_v34  ;;  %v8068_v9 = vpack.c.bf16 %v6312_v24, %v6304_v51  ;;  %v6374_v27 = vld [vmem:[%s14521_s1 + $0x27c8] sm:$0xff]  ;;  %v6365_v14 = vld [vmem:[%s14521_s1 + $0x2780] sm:$0xff]  ;;  %v6367_v32 = vld [vmem:[%s14521_s1 + $0x2790] sm:$0xff] }
 0x242   : > { %v6375_v30 = vld [vmem:[%s14521_s1 + $0x27d0] sm:$0xff]  ;;  %v6382_v51 = vld [vmem:[%s14521_s1 + $0x2808] sm:$0xff] }
 0x243   : > { %7955 = vmatpush1.bf16.msra.mxu0 %v7954_v33  ;;  %v6326_v33 = vld [vmem:[%s14521_s1 + $0x2648] sm:$0xff] }
 0x244   : > { %8003 = vmatpush1.bf16.msra.mxu1 %v8002_v49  ;;  %7957 = vmatprep.subr.bf16.mxu0 %v7956_v36  ;;  %v6320_v49 = vld [vmem:[%s14521_s1 + $0x2618] sm:$0xff]  ;;  %v8024_v10 = vpack.c.bf16 %v6326_v33, %v6318_v46  ;;  %v6390_v24 = vld [vmem:[%s14521_s1 + $0x2848] sm:$0xff]  ;;  %v6391_v33 = vld [vmem:[%s14521_s1 + $0x2850] sm:$0xff] }
 0x245   : > { %8005 = vmatprep.subr.bf16.mxu1 %v8004_v53  ;;  %v6328_v36 = vld [vmem:[%s14521_s1 + $0x2658] sm:$0xff]  ;;  %v6317_v53 = vld [vmem:[%s14521_s1 + $0x2600] sm:$0xff] }
 0x246   : > { %v8072_v56 = vpack.c.bf16 %v6328_v36, %v6320_v49  ;;  %v8026_v25 = vpack.c.bf16 %v6325_v55, %v6317_v53  ;;  %v6398_v49 = vld [vmem:[%s14521_s1 + $0x2888] sm:$0xff] }
 0x247   : > { %7959 = vmatpush1.bf16.msra.mxu0 %v7958_v60  ;;  %v6342_v60 = vld [vmem:[%s14521_s1 + $0x26c8] sm:$0xff] }
 0x248   : > { %8007 = vmatpush1.bf16.msra.mxu1 %v8006_v61  ;;  %8009 = vmatprep.subr.bf16.mxu0 %v8008_v31  ;;  %v6336_v61 = vld [vmem:[%s14521_s1 + $0x2698] sm:$0xff]  ;;  %v8028_v63 = vpack.c.bf16 %v6342_v60, %v6334_v59  ;;  %v6406_v36 = vld [vmem:[%s14521_s1 + $0x28c8] sm:$0xff]  ;;  %v6407_v60 = vld [vmem:[%s14521_s1 + $0x28d0] sm:$0xff] }
 0x249   : > { %8057 = vmatprep.subr.bf16.mxu1 %v8056_v0  ;;  %v6344_v31 = vld [vmem:[%s14521_s1 + $0x26d8] sm:$0xff]  ;;  %v6333_v0 = vld [vmem:[%s14521_s1 + $0x2680] sm:$0xff]  ;;  %v8044_v55 = vpack.c.bf16 %v6406_v36, %v6398_v49  ;;  %v3671_v36 = vrot.slane %v12307_v43, 6  ;;  %v6283_v43 = vld [vmem:[%s14521_s1 + $0x24f0] sm:$0xff] }
 0x24a   : > { %3366 = vmatmul.mubr.f32.vlgmr.msra.gmra.mrb[4].mxu0 %v12304_v54  ;;  %v8076_v3 = vpack.c.bf16 %v6344_v31, %v6336_v61  ;;  %v8030_v12 = vpack.c.bf16 %v6341_v1, %v6333_v0  ;;  %v6414_v61 = vld [vmem:[%s14521_s1 + $0x2908] sm:$0xff]  ;;  %v8094_v0 = vpack.c.bf16 %v6407_v60, %v6399_v45  ;;  %v6292_v45 = vld [vmem:[%s14521_s1 + $0x2538] sm:$0xff] }
 0x24b   : > { %3443 = vmatmul.mubr.f32.vlgmr.msra.gmra.mrb[4].mxu1 %v12304_v54  ;;  %8011 = vmatpush1.bf16.msra.mxu0 %v8010_v7  ;;  %v8064_v54 = vpack.c.bf16 %v6296_v6, %v6288_v23  ;;  %v6358_v7 = vld [vmem:[%s14521_s1 + $0x2748] sm:$0xff]  ;;  %v6359_v23 = vld [vmem:[%s14521_s1 + $0x2750] sm:$0xff] }
 0x24c   : > { %8059 = vmatpush1.bf16.msra.mxu1 %v8058_v20  ;;  %8013 = vmatprep.subr.bf16.mxu0 %v8012_v11  ;;  %v6352_v20 = vld [vmem:[%s14521_s1 + $0x2718] sm:$0xff]  ;;  %v8032_v47 = vpack.c.bf16 %v6358_v7, %v6350_v5  ;;  %v6366_v6 = vld [vmem:[%s14521_s1 + $0x2788] sm:$0xff]  ;;  %v8082_v29 = vpack.c.bf16 %v6359_v23, %v6351_v19  ;;  %v6423_v7 = vld [vmem:[%s14521_s1 + $0x2950] sm:$0xff] }
 0x24d   : > { %8061 = vmatprep.subr.bf16.mxu1 %v8060_v21  ;;  %6250 = vmatprep.mubr.msk.f32.mxu0 %vm466_vm0, %v12338_v57  ;;  %v6360_v11 = vld [vmem:[%s14521_s1 + $0x2758] sm:$0xff]  ;;  %v6349_v21 = vld [vmem:[%s14521_s1 + $0x2700] sm:$0xff]  ;;  %v8036_v26 = vpack.c.bf16 %v6374_v27, %v6366_v6  ;;  %v6422_v31 = vld [vmem:[%s14521_s1 + $0x2948] sm:$0xff] }
 0x24e   : > { %6252 = vmatprep.mubr.msk.f32.mxu1 %vm466_vm0, %v12338_v57  ;;  %3372 = vmatmul.mubr.f32.gmra.mrb[6].mxu0 %v12342_v58  ;;  %v6309_v57 = vld [vmem:[%s14521_s1 + $0x25c0] sm:$0xff]  ;;  %v8080_v22 = vpack.c.bf16 %v6360_v11, %v6352_v20  ;;  %v8048_v1 = vpack.c.bf16 %v6422_v31, %v6414_v61  ;;  %v6430_v20 = vld [vmem:[%s14521_s1 + $0x2988] sm:$0xff]  ;;  %v6431_v23 = vld [vmem:[%s14521_s1 + $0x2990] sm:$0xff] }
 0x24f   : > { %8015 = vmatpush1.bf16.msra.mxu0 %v8014_v52  ;;  %3449 = vmatmul.mubr.f32.gmra.mrb[6].mxu1 %v12342_v58  ;;  %v6311_v58 = vld [vmem:[%s14521_s1 + $0x25d0] sm:$0xff]  ;;  %v8022_v8 = vpack.c.bf16 %v6309_v57, %v6301_v39  ;;  %v6368_v52 = vld [vmem:[%s14521_s1 + $0x2798] sm:$0xff]  ;;  %v8086_v39 = vpack.c.bf16 %v6375_v30, %v6367_v32  ;;  %v8040_v57 = vpack.c.bf16 %v6390_v24, %v6382_v51  ;;  %v6438_v11 = vld [vmem:[%s14521_s1 + $0x29c8] sm:$0xff] }
 0x250   : > { %8063 = vmatpush1.bf16.msra.mxu1 %v8062_v16  ;;  %8017 = vmatprep.subr.bf16.mxu0 %v8016_v28  ;;  %v8070_v50 = vpack.c.bf16 %v6311_v58, %v6303_v40  ;;  %v6376_v16 = vld [vmem:[%s14521_s1 + $0x27d8] sm:$0xff]  ;;  %v8034_v28 = vpack.c.bf16 %v6357_v44, %v6349_v21  ;;  %v6381_v40 = vld [vmem:[%s14521_s1 + $0x2800] sm:$0xff]  ;;  %v6383_v58 = vld [vmem:[%s14521_s1 + $0x2810] sm:$0xff]  ;;  %v8098_v21 = vpack.c.bf16 %v6423_v7, %v6415_v4 }
 0x251   : > { %8065 = vmatprep.subr.bf16.mxu1 %v8064_v54  ;;  %6445 = vmatprep.mubr.msk.f32.mxu0 %vm466_vm0, %v12684_v35  ;;  %v6373_v54 = vld [vmem:[%s14521_s1 + $0x27c0] sm:$0xff]  ;;  %v8084_v34 = vpack.c.bf16 %v6376_v16, %v6368_v52  ;;  %v8090_v53 = vpack.c.bf16 %v6391_v33, %v6383_v58  ;;  %v8052_v44 = vpack.c.bf16 %v6438_v11, %v6430_v20  ;;  %v6439_v27 = vld [vmem:[%s14521_s1 + $0x29d0] sm:$0xff]  ;;  %v6258_v52 = vld [vmem:[%s14521_s1 + $0x2428] sm:$0xff] }
 0x252   : > { %6447 = vmatprep.mubr.msk.f32.mxu1 %vm466_vm0, %v12684_v35  ;;  %v6429_v19 = vld [vmem:[%s14521_s1 + $0x2980] sm:$0xff]  ;;  %v6266_v16 = vld [vmem:[%s14521_s1 + $0x2468] sm:$0xff]  ;;  %v12912_v32 = vld [vmem:[%s9037_s4 + $0x10] sm:$0xff]  ;;  %v8102_v30 = vpack.c.bf16 %v6439_v27, %v6431_v23 }
 0x253   : > { %8019 = vmatpush1.bf16.msra.mxu0 %v8018_v42  ;;  %v6384_v42 = vld [vmem:[%s14521_s1 + $0x2818] sm:$0xff]  ;;  %v8104_v51 = vpack.c.bf16 %v6266_v16, %v6258_v52  ;;  %v6257_v24 = vld [vmem:[%s14521_s1 + $0x2420] sm:$0xff]  ;;  %v6314_v4 = vld [vmem:[%s14521_s1 + $0x25e8] sm:$0xff] }
 0x254   : > { %8067 = vmatpush1.bf16.msra.mxu1 %v8066_v37  ;;  %8021 = vmatprep.subr.bf16.mxu0 %v8020_v38  ;;  %v6392_v37 = vld [vmem:[%s14521_s1 + $0x2858] sm:$0xff]  ;;  %v8038_v38 = vpack.c.bf16 %v6373_v54, %v6365_v14  ;;  %v12908_v14 = vld [vmem:[%s9037_s4] sm:$0xff]  ;;  %v6330_v23 = vld [vmem:[%s14521_s1 + $0x2668] sm:$0xff] }
 0x255   : > { %8069 = vmatprep.subr.bf16.mxu1 %v8068_v9  ;;  %v6389_v9 = vld [vmem:[%s14521_s1 + $0x2840] sm:$0xff]  ;;  %v8088_v46 = vpack.c.bf16 %v6392_v37, %v6384_v42  ;;  %v3665_v54 = vrot.slane %v12908_v14, 6  ;;  %v6259_v37 = vld [vmem:[%s14521_s1 + $0x2430] sm:$0xff]  ;;  %v6284_v58 = vld [vmem:[%s14521_s1 + $0x24f8] sm:$0xff] }
 0x256   : > { %v6265_v42 = vld [vmem:[%s14521_s1 + $0x2460] sm:$0xff]  ;;  %v6316_v7 = vld [vmem:[%s14521_s1 + $0x25f8] sm:$0xff] }
 0x257   : > { %8023 = vmatpush1.bf16.msra.mxu0 %v8022_v8  ;;  %v6400_v8 = vld [vmem:[%s14521_s1 + $0x2898] sm:$0xff]  ;;  %v8106_v49 = vpack.c.bf16 %v6265_v42, %v6257_v24 }
 0x258   : > { %8071 = vmatpush1.bf16.msra.mxu1 %v8070_v50  ;;  %8025 = vmatprep.subr.bf16.mxu0 %v8024_v10  ;;  %v6408_v50 = vld [vmem:[%s14521_s1 + $0x28d8] sm:$0xff]  ;;  %v8042_v10 = vpack.c.bf16 %v6389_v9, %v6381_v40  ;;  %v6282_v40 = vld [vmem:[%s14521_s1 + $0x24e8] sm:$0xff] }
 0x259   : > { %8073 = vmatprep.subr.bf16.mxu1 %v8072_v56  ;;  %v6405_v56 = vld [vmem:[%s14521_s1 + $0x28c0] sm:$0xff]  ;;  %v8092_v59 = vpack.c.bf16 %v6408_v50, %v6400_v8  ;;  %v6276_v9 = vld [vmem:[%s14521_s1 + $0x24b8] sm:$0xff] }
 0x25a   : > { %v6332_v27 = vld [vmem:[%s14521_s1 + $0x2678] sm:$0xff] }
 0x25b   : > { %8027 = vmatpush1.bf16.msra.mxu0 %v8026_v25  ;;  %v6416_v25 = vld [vmem:[%s14521_s1 + $0x2918] sm:$0xff] }
 0x25c   : > { %8075 = vmatpush1.bf16.msra.mxu1 %v8074_v62  ;;  %8029 = vmatprep.subr.bf16.mxu0 %v8028_v63  ;;  %v6424_v62 = vld [vmem:[%s14521_s1 + $0x2958] sm:$0xff]  ;;  %v8046_v63 = vpack.c.bf16 %v6405_v56, %v6397_v17  ;;  %v6290_v17 = vld [vmem:[%s14521_s1 + $0x2528] sm:$0xff] }
 0x25d   : > { %8077 = vmatprep.subr.bf16.mxu1 %v8076_v3  ;;  %v6421_v3 = vld [vmem:[%s14521_s1 + $0x2940] sm:$0xff]  ;;  %v8096_v5 = vpack.c.bf16 %v6424_v62, %v6416_v25  ;;  %v6298_v56 = vld [vmem:[%s14521_s1 + $0x2568] sm:$0xff]  ;;  %v6340_v24 = vld [vmem:[%s14521_s1 + $0x26b8] sm:$0xff] }
 0x25e   : > { %v8112_v62 = vpack.c.bf16 %v6298_v56, %v6290_v17  ;;  %v6348_v42 = vld [vmem:[%s14521_s1 + $0x26f8] sm:$0xff]  ;;  %v6355_v17 = vld [vmem:[%s14521_s1 + $0x2730] sm:$0xff] }
 0x25f   : > { %8031 = vmatpush1.bf16.msra.mxu0 %v8030_v12  ;;  %v6432_v12 = vld [vmem:[%s14521_s1 + $0x2998] sm:$0xff] }
 0x260   : > { %8079 = vmatpush1.bf16.msra.mxu1 %v8078_v13  ;;  %8033 = vmatprep.subr.bf16.mxu0 %v8032_v47  ;;  %v6440_v13 = vld [vmem:[%s14521_s1 + $0x29d8] sm:$0xff]  ;;  %v8050_v47 = vpack.c.bf16 %v6421_v3, %v6413_v2  ;;  %v6299_v2 = vld [vmem:[%s14521_s1 + $0x2570] sm:$0xff]  ;;  %v6306_v3 = vld [vmem:[%s14521_s1 + $0x25a8] sm:$0xff] }
 0x261   : > { %8081 = vmatprep.subr.bf16.mxu1 %v8080_v22  ;;  %v6437_v22 = vld [vmem:[%s14521_s1 + $0x29c0] sm:$0xff]  ;;  %v8100_v6 = vpack.c.bf16 %v6440_v13, %v6432_v12  ;;  %v8116_v12 = vpack.c.bf16 %v6314_v4, %v6306_v3  ;;  %v6371_v3 = vld [vmem:[%s14521_s1 + $0x27b0] sm:$0xff] }
 0x262   : > { %v6305_v13 = vld [vmem:[%s14521_s1 + $0x25a0] sm:$0xff] }
 0x263   : > { %8035 = vmatpush1.bf16.msra.mxu0 %v8034_v28  ;;  %v6260_v28 = vld [vmem:[%s14521_s1 + $0x2438] sm:$0xff] }
 0x264   : > { %8083 = vmatpush1.bf16.msra.mxu1 %v8082_v29  ;;  %8037 = vmatprep.subr.bf16.mxu0 %v8036_v26  ;;  %v6268_v29 = vld [vmem:[%s14521_s1 + $0x2478] sm:$0xff]  ;;  %v8054_v26 = vpack.c.bf16 %v6437_v22, %v6429_v19  ;;  %v6315_v19 = vld [vmem:[%s14521_s1 + $0x25f0] sm:$0xff]  ;;  %v6322_v22 = vld [vmem:[%s14521_s1 + $0x2628] sm:$0xff] }
 0x265   : > { %8085 = vmatprep.subr.bf16.mxu1 %v8084_v34  ;;  %v3666_v34 = vrot.slane %v12912_v32, 6 }
 0x267   : > { %8039 = vmatpush1.bf16.msra.mxu0 %v8038_v38  ;;  %v8152_v38 = vpack.c.bf16 %v6268_v29, %v6260_v28  ;;  %v12941_v33 = vsel %vm3664_vm6, %v3665_v54, %v3666_v34  ;;  %v12976_v31 = vsel %vm3664_vm6, %v3666_v34, %v3671_v36  ;;  %v8120_v28 = vpack.c.bf16 %v6330_v23, %v6322_v22  ;;  %v6321_v29 = vld [vmem:[%s14521_s1 + $0x2620] sm:$0xff]  ;;  %v6323_v54 = vld [vmem:[%s14521_s1 + $0x2630] sm:$0xff]  ;;  %v6362_v36 = vld [vmem:[%s14521_s1 + $0x2768] sm:$0xff] }
 0x268   : > { %8087 = vmatpush1.bf16.msra.mxu1 %v8086_v39  ;;  %8041 = vmatprep.subr.bf16.mxu0 %v8040_v57  ;;  %v6267_v39 = vld [vmem:[%s14521_s1 + $0x2470] sm:$0xff]  ;;  %v6274_v57 = vld [vmem:[%s14521_s1 + $0x24a8] sm:$0xff] }
 0x269   : > { %8089 = vmatprep.subr.bf16.mxu1 %v8088_v46  ;;  %v3673_v46 = vrot.slane %v12300_v18, 6  ;;  %v8154_v8 = vpack.c.bf16 %v6267_v39, %v6259_v37  ;;  %v8108_v50 = vpack.c.bf16 %v6282_v40, %v6274_v57  ;;  %v6275_v18 = vld [vmem:[%s14521_s1 + $0x24b0] sm:$0xff]  ;;  %v6337_v57 = vld [vmem:[%s14521_s1 + $0x26a0] sm:$0xff] }
 0x26a   : > { %v8158_v25 = vpack.c.bf16 %v6283_v43, %v6275_v18  ;;  %v6331_v34 = vld [vmem:[%s14521_s1 + $0x2670] sm:$0xff]  ;;  %v6345_v40 = vld [vmem:[%s14521_s1 + $0x26e0] sm:$0xff] }
 0x26b   : > { %8043 = vmatpush1.bf16.msra.mxu0 %v8042_v10  ;;  %v6273_v10 = vld [vmem:[%s14521_s1 + $0x24a0] sm:$0xff]  ;;  %v12972_v60 = vsel %vm3664_vm6, %v3669_v41, %v3673_v46  ;;  %v6347_v46 = vld [vmem:[%s14521_s1 + $0x26f0] sm:$0xff] }
 0x26c   : > { %8091 = vmatpush1.bf16.msra.mxu1 %v8090_v53  ;;  %8045 = vmatprep.subr.bf16.mxu0 %v8044_v55  ;;  %v6281_v53 = vld [vmem:[%s14521_s1 + $0x24e0] sm:$0xff]  ;;  %v8156_v55 = vpack.c.bf16 %v6284_v58, %v6276_v9  ;;  %v6339_v9 = vld [vmem:[%s14521_s1 + $0x26b0] sm:$0xff]  ;;  %v8172_v58 = vpack.c.bf16 %v6348_v42, %v6340_v24  ;;  %v6418_v42 = vld [vmem:[%s14521_s1 + $0x2928] sm:$0xff] }
 0x26d   : > { %8093 = vmatprep.subr.bf16.mxu1 %v8092_v59  ;;  %v6300_v59 = vld [vmem:[%s14521_s1 + $0x2578] sm:$0xff]  ;;  %v8110_v61 = vpack.c.bf16 %v6281_v53, %v6273_v10  ;;  %v6297_v41 = vld [vmem:[%s14521_s1 + $0x2560] sm:$0xff]  ;;  %v8126_v10 = vpack.c.bf16 %v6345_v40, %v6337_v57  ;;  %v8174_v53 = vpack.c.bf16 %v6347_v46, %v6339_v9  ;;  %v6387_v22 = vld [vmem:[%s14521_s1 + $0x2830] sm:$0xff] }
 0x26e   : > { %v6361_v43 = vld [vmem:[%s14521_s1 + $0x2760] sm:$0xff]  ;;  %v6411_v24 = vld [vmem:[%s14521_s1 + $0x28f0] sm:$0xff] }
 0x26f   : > { %8047 = vmatpush1.bf16.msra.mxu0 %v8046_v63  ;;  %v6289_v63 = vld [vmem:[%s14521_s1 + $0x2520] sm:$0xff] }
 0x270   : > { %8095 = vmatpush1.bf16.msra.mxu1 %v8094_v0  ;;  %8049 = vmatprep.subr.bf16.mxu0 %v8048_v1  ;;  %v6291_v0 = vld [vmem:[%s14521_s1 + $0x2530] sm:$0xff]  ;;  %v8160_v1 = vpack.c.bf16 %v6300_v59, %v6292_v45  ;;  %v8114_v20 = vpack.c.bf16 %v6297_v41, %v6289_v63  ;;  %v6370_v59 = vld [vmem:[%s14521_s1 + $0x27a8] sm:$0xff]  ;;  %v6425_v46 = vld [vmem:[%s14521_s1 + $0x2960] sm:$0xff] }
 0x271   : > { %8097 = vmatprep.subr.bf16.mxu1 %v8096_v5  ;;  %v6308_v5 = vld [vmem:[%s14521_s1 + $0x25b8] sm:$0xff]  ;;  %v8162_v11 = vpack.c.bf16 %v6299_v2, %v6291_v0  ;;  %v6363_v45 = vld [vmem:[%s14521_s1 + $0x2770] sm:$0xff]  ;;  %v6377_v2 = vld [vmem:[%s14521_s1 + $0x27e0] sm:$0xff] }
 0x272   : > { %v8178_v41 = vpack.c.bf16 %v6363_v45, %v6355_v17  ;;  %v6441_v45 = vld [vmem:[%s14521_s1 + $0x29e0] sm:$0xff] }
 0x273   : > { %8051 = vmatpush1.bf16.msra.mxu0 %v8050_v47  ;;  %v6313_v47 = vld [vmem:[%s14521_s1 + $0x25e0] sm:$0xff] }
 0x274   : > { %8099 = vmatpush1.bf16.msra.mxu1 %v8098_v21  ;;  %8053 = vmatprep.subr.bf16.mxu0 %v8052_v44  ;;  %v6307_v21 = vld [vmem:[%s14521_s1 + $0x25b0] sm:$0xff]  ;;  %v8164_v44 = vpack.c.bf16 %v6316_v7, %v6308_v5  ;;  %v8118_v52 = vpack.c.bf16 %v6313_v47, %v6305_v13  ;;  %v6386_v7 = vld [vmem:[%s14521_s1 + $0x2828] sm:$0xff] }
 0x275   : > { %8101 = vmatprep.subr.bf16.mxu1 %v8100_v6  ;;  %v6324_v6 = vld [vmem:[%s14521_s1 + $0x2638] sm:$0xff]  ;;  %v8166_v16 = vpack.c.bf16 %v6315_v19, %v6307_v21  ;;  %v6379_v5 = vld [vmem:[%s14521_s1 + $0x27f0] sm:$0xff]  ;;  %v6393_v19 = vld [vmem:[%s14521_s1 + $0x2860] sm:$0xff] }
 0x276   : > { %v8182_v47 = vpack.c.bf16 %v6379_v5, %v6371_v3  ;;  %v6461_v5 = vld [vmem:[%s14521_s1 + $0x2a40] sm:$0xff] }
 0x277   : > { %8055 = vmatpush1.bf16.msra.mxu0 %v8054_v26  ;;  %v6329_v26 = vld [vmem:[%s14521_s1 + $0x2660] sm:$0xff] }
 0x278   : > { %8103 = vmatpush1.bf16.msra.mxu1 %v8102_v30  ;;  %8105 = vmatprep.subr.bf16.mxu0 %v8104_v51  ;;  %v6338_v30 = vld [vmem:[%s14521_s1 + $0x26a8] sm:$0xff]  ;;  %v8122_v37 = vpack.c.bf16 %v6329_v26, %v6321_v29 }
 0x279   : > { %8153 = vmatprep.subr.bf16.mxu1 %v8152_v38  ;;  %v6346_v51 = vld [vmem:[%s14521_s1 + $0x26e8] sm:$0xff]  ;;  %v8170_v38 = vpack.c.bf16 %v6331_v34, %v6323_v54  ;;  %v6409_v34 = vld [vmem:[%s14521_s1 + $0x28e0] sm:$0xff] }
 0x27a   : > { %3746 = vmatmul.mubr.f32.vlgmr.msra.gmra.mrb[0].mxu0 %v12941_v33  ;;  %v8124_v39 = vpack.c.bf16 %v6346_v51, %v6338_v30  ;;  %v6403_v30 = vld [vmem:[%s14521_s1 + $0x28b0] sm:$0xff] }
 0x27b   : > { %3823 = vmatmul.mubr.f32.vlgmr.msra.gmra.mrb[0].mxu1 %v12941_v33  ;;  %8107 = vmatpush1.bf16.msra.mxu0 %v8106_v49  ;;  %v6354_v49 = vld [vmem:[%s14521_s1 + $0x2728] sm:$0xff]  ;;  %v8190_v40 = vpack.c.bf16 %v6411_v24, %v6403_v30 }
 0x27c   : > { %8155 = vmatpush1.bf16.msra.mxu1 %v8154_v8  ;;  %8109 = vmatprep.subr.bf16.mxu0 %v8108_v50  ;;  %v6356_v8 = vld [vmem:[%s14521_s1 + $0x2738] sm:$0xff]  ;;  %v8128_v18 = vpack.c.bf16 %v6362_v36, %v6354_v49  ;;  %v6419_v49 = vld [vmem:[%s14521_s1 + $0x2930] sm:$0xff] }
 0x27d   : > { %8157 = vmatprep.subr.bf16.mxu1 %v8156_v55  ;;  %6446 = vmatprep.mubr.msk.f32.mxu0 %vm466_vm0, %v12972_v60  ;;  %v6364_v50 = vld [vmem:[%s14521_s1 + $0x2778] sm:$0xff]  ;;  %v6353_v55 = vld [vmem:[%s14521_s1 + $0x2720] sm:$0xff] }
 0x27e   : > { %6448 = vmatprep.mubr.msk.f32.mxu1 %vm466_vm0, %v12972_v60  ;;  %3752 = vmatmul.mubr.f32.gmra.mrb[2].mxu0 %v12976_v31  ;;  %v8176_v56 = vpack.c.bf16 %v6364_v50, %v6356_v8  ;;  %v8130_v63 = vpack.c.bf16 %v6361_v43, %v6353_v55  ;;  %v6427_v8 = vld [vmem:[%s14521_s1 + $0x2970] sm:$0xff]  ;;  %v6434_v50 = vld [vmem:[%s14521_s1 + $0x29a8] sm:$0xff] }
 0x27f   : > { %8111 = vmatpush1.bf16.msra.mxu0 %v8110_v61  ;;  %3829 = vmatmul.mubr.f32.gmra.mrb[2].mxu1 %v12976_v31  ;;  %v6378_v61 = vld [vmem:[%s14521_s1 + $0x27e8] sm:$0xff]  ;;  %v8194_v43 = vpack.c.bf16 %v6427_v8, %v6419_v49  ;;  %v6501_v8 = vld [vmem:[%s14521_s1 + $0x2b80] sm:$0xff] }
 0x280   : > { %8159 = vmatpush1.bf16.msra.mxu1 %v8158_v25  ;;  %8113 = vmatprep.subr.bf16.mxu0 %v8112_v62  ;;  %v6372_v25 = vld [vmem:[%s14521_s1 + $0x27b8] sm:$0xff]  ;;  %v8132_v0 = vpack.c.bf16 %v6378_v61, %v6370_v59  ;;  %v6435_v59 = vld [vmem:[%s14521_s1 + $0x29b0] sm:$0xff] }
 0x281   : > { %8161 = vmatprep.subr.bf16.mxu1 %v8160_v1  ;;  %6449 = vmatprep.mubr.msk.f32.mxu0 %vm466_vm0, %v12684_v35  ;;  %v6380_v62 = vld [vmem:[%s14521_s1 + $0x27f8] sm:$0xff]  ;;  %v6369_v1 = vld [vmem:[%s14521_s1 + $0x27a0] sm:$0xff] }
 0x282   : > { %6451 = vmatprep.mubr.msk.f32.mxu1 %vm466_vm0, %v12684_v35  ;;  %v8168_v35 = vpack.c.bf16 %v6332_v27, %v6324_v6  ;;  %v8180_v4 = vpack.c.bf16 %v6380_v62, %v6372_v25  ;;  %v8134_v13 = vpack.c.bf16 %v6377_v2, %v6369_v1  ;;  %v6395_v6 = vld [vmem:[%s14521_s1 + $0x2870] sm:$0xff]  ;;  %v6402_v27 = vld [vmem:[%s14521_s1 + $0x28a8] sm:$0xff] }
 0x283   : > { %8115 = vmatpush1.bf16.msra.mxu0 %v8114_v20  ;;  %v6394_v20 = vld [vmem:[%s14521_s1 + $0x2868] sm:$0xff]  ;;  %v8186_v26 = vpack.c.bf16 %v6395_v6, %v6387_v22  ;;  %v6443_v25 = vld [vmem:[%s14521_s1 + $0x29f0] sm:$0xff]  ;;  %v6477_v6 = vld [vmem:[%s14521_s1 + $0x2ac0] sm:$0xff] }
 0x284   : > { %8163 = vmatpush1.bf16.msra.mxu1 %v8162_v11  ;;  %8117 = vmatprep.subr.bf16.mxu0 %v8116_v12  ;;  %v6388_v11 = vld [vmem:[%s14521_s1 + $0x2838] sm:$0xff]  ;;  %v8136_v21 = vpack.c.bf16 %v6394_v20, %v6386_v7  ;;  %v6454_v62 = vld [vmem:[%s14521_s1 + $0x2a08] sm:$0xff]  ;;  %v8198_v2 = vpack.c.bf16 %v6443_v25, %v6435_v59  ;;  %v6455_v7 = vld [vmem:[%s14521_s1 + $0x2a10] sm:$0xff] }
 0x285   : > { %8165 = vmatprep.subr.bf16.mxu1 %v8164_v44  ;;  %v6396_v12 = vld [vmem:[%s14521_s1 + $0x2878] sm:$0xff]  ;;  %v6385_v44 = vld [vmem:[%s14521_s1 + $0x2820] sm:$0xff]  ;;  %v6519_v25 = vld [vmem:[%s14521_s1 + $0x2c10] sm:$0xff] }
 0x286   : > { %v8184_v23 = vpack.c.bf16 %v6396_v12, %v6388_v11  ;;  %v8138_v29 = vpack.c.bf16 %v6393_v19, %v6385_v44  ;;  %v6463_v11 = vld [vmem:[%s14521_s1 + $0x2a50] sm:$0xff]  ;;  %v6470_v12 = vld [vmem:[%s14521_s1 + $0x2a88] sm:$0xff]  ;;  %v6517_v59 = vld [vmem:[%s14521_s1 + $0x2c00] sm:$0xff] }
 0x287   : > { %8119 = vmatpush1.bf16.msra.mxu0 %v8118_v52  ;;  %v6410_v52 = vld [vmem:[%s14521_s1 + $0x28e8] sm:$0xff]  ;;  %v8250_v19 = vpack.c.bf16 %v6463_v11, %v6455_v7  ;;  %v6533_v7 = vld [vmem:[%s14521_s1 + $0x2c80] sm:$0xff]  ;;  %v6535_v11 = vld [vmem:[%s14521_s1 + $0x2c90] sm:$0xff] }
 0x288   : > { %8167 = vmatpush1.bf16.msra.mxu1 %v8166_v16  ;;  %8121 = vmatprep.subr.bf16.mxu0 %v8120_v28  ;;  %v6404_v16 = vld [vmem:[%s14521_s1 + $0x28b8] sm:$0xff]  ;;  %v8140_v54 = vpack.c.bf16 %v6410_v52, %v6402_v27  ;;  %v6471_v27 = vld [vmem:[%s14521_s1 + $0x2a90] sm:$0xff] }
 0x289   : > { %8169 = vmatprep.subr.bf16.mxu1 %v8168_v35  ;;  %v6412_v28 = vld [vmem:[%s14521_s1 + $0x28f8] sm:$0xff]  ;;  %v6401_v35 = vld [vmem:[%s14521_s1 + $0x28a0] sm:$0xff] }
 0x28a   : > { %v8188_v51 = vpack.c.bf16 %v6412_v28, %v6404_v16  ;;  %v8142_v57 = vpack.c.bf16 %v6409_v34, %v6401_v35  ;;  %v6479_v16 = vld [vmem:[%s14521_s1 + $0x2ad0] sm:$0xff]  ;;  %v6486_v28 = vld [vmem:[%s14521_s1 + $0x2b08] sm:$0xff]  ;;  %v4202_v35 = vrot.slane %v12644_v48, 7  ;;  %v4203_v34 = vrot.slane %v12648_v15, 7  ;;  %v6497_v15 = vld [vmem:[%s14521_s1 + $0x2b60] sm:$0xff] }
 0x28b   : > { %8123 = vmatpush1.bf16.msra.mxu0 %v8122_v37  ;;  %v6426_v37 = vld [vmem:[%s14521_s1 + $0x2968] sm:$0xff]  ;;  %v6487_v48 = vld [vmem:[%s14521_s1 + $0x2b10] sm:$0xff] }
 0x28c   : > { %8171 = vmatpush1.bf16.msra.mxu1 %v8170_v38  ;;  %8125 = vmatprep.subr.bf16.mxu0 %v8124_v39  ;;  %v6420_v38 = vld [vmem:[%s14521_s1 + $0x2938] sm:$0xff]  ;;  %v8144_v9 = vpack.c.bf16 %v6426_v37, %v6418_v42  ;;  %v6485_v42 = vld [vmem:[%s14521_s1 + $0x2b00] sm:$0xff] }
 0x28d   : > { %8173 = vmatprep.subr.bf16.mxu1 %v8172_v58  ;;  %v6428_v39 = vld [vmem:[%s14521_s1 + $0x2978] sm:$0xff]  ;;  %v6417_v58 = vld [vmem:[%s14521_s1 + $0x2920] sm:$0xff] }
 0x28e   : > { %v8192_v36 = vpack.c.bf16 %v6428_v39, %v6420_v38  ;;  %v8146_v55 = vpack.c.bf16 %v6425_v46, %v6417_v58  ;;  %v6493_v37 = vld [vmem:[%s14521_s1 + $0x2b40] sm:$0xff]  ;;  %v6495_v38 = vld [vmem:[%s14521_s1 + $0x2b50] sm:$0xff]  ;;  %v6502_v39 = vld [vmem:[%s14521_s1 + $0x2b88] sm:$0xff]  ;;  %v13312_v58 = vsel %vm4198_vm7, %v4202_v35, %v4203_v34 }
 0x28f   : > { %8127 = vmatpush1.bf16.msra.mxu0 %v8126_v10  ;;  %v6442_v10 = vld [vmem:[%s14521_s1 + $0x29e8] sm:$0xff]  ;;  %v8210_v46 = vpack.c.bf16 %v6493_v37, %v6485_v42  ;;  %v8258_v49 = vpack.c.bf16 %v6495_v38, %v6487_v48  ;;  %v6568_v35 = vld [vmem:[%s14521_s1 + $0x2d98] sm:$0xff]  ;;  %v6565_v37 = vld [vmem:[%s14521_s1 + $0x2d80] sm:$0xff] }
 0x290   : > { %8175 = vmatpush1.bf16.msra.mxu1 %v8174_v53  ;;  %8129 = vmatprep.subr.bf16.mxu0 %v8128_v18  ;;  %v6436_v53 = vld [vmem:[%s14521_s1 + $0x29b8] sm:$0xff]  ;;  %v8148_v17 = vpack.c.bf16 %v6442_v10, %v6434_v50  ;;  %v6503_v50 = vld [vmem:[%s14521_s1 + $0x2b90] sm:$0xff]  ;;  %v6573_v48 = vld [vmem:[%s14521_s1 + $0x2dc0] sm:$0xff] }
 0x291   : > { %8177 = vmatprep.subr.bf16.mxu1 %v8176_v56  ;;  %v6444_v18 = vld [vmem:[%s14521_s1 + $0x29f8] sm:$0xff]  ;;  %v6433_v56 = vld [vmem:[%s14521_s1 + $0x29a0] sm:$0xff] }
 0x292   : > { %v8196_v61 = vpack.c.bf16 %v6444_v18, %v6436_v53  ;;  %v8150_v1 = vpack.c.bf16 %v6441_v45, %v6433_v56  ;;  %v6518_v53 = vld [vmem:[%s14521_s1 + $0x2c08] sm:$0xff] }
 0x293   : > { %8131 = vmatpush1.bf16.msra.mxu0 %v8130_v63  ;;  %v6462_v63 = vld [vmem:[%s14521_s1 + $0x2a48] sm:$0xff] }
 0x294   : > { %8179 = vmatpush1.bf16.msra.mxu1 %v8178_v41  ;;  %8133 = vmatprep.subr.bf16.mxu0 %v8132_v0  ;;  %v6456_v41 = vld [vmem:[%s14521_s1 + $0x2a18] sm:$0xff]  ;;  %v8200_v3 = vpack.c.bf16 %v6462_v63, %v6454_v62  ;;  %v6526_v18 = vld [vmem:[%s14521_s1 + $0x2c48] sm:$0xff]  ;;  %v6527_v63 = vld [vmem:[%s14521_s1 + $0x2c50] sm:$0xff] }
 0x295   : > { %8181 = vmatprep.subr.bf16.mxu1 %v8180_v4  ;;  %v6464_v0 = vld [vmem:[%s14521_s1 + $0x2a58] sm:$0xff]  ;;  %v6453_v4 = vld [vmem:[%s14521_s1 + $0x2a00] sm:$0xff]  ;;  %v8216_v45 = vpack.c.bf16 %v6526_v18, %v6518_v53  ;;  %v6591_v53 = vld [vmem:[%s14521_s1 + $0x2e50] sm:$0xff] }
 0x296   : > { %v8248_v20 = vpack.c.bf16 %v6464_v0, %v6456_v41  ;;  %v8202_v44 = vpack.c.bf16 %v6461_v5, %v6453_v4  ;;  %v6534_v41 = vld [vmem:[%s14521_s1 + $0x2c88] sm:$0xff]  ;;  %v8266_v4 = vpack.c.bf16 %v6527_v63, %v6519_v25  ;;  %v6605_v25 = vld [vmem:[%s14521_s1 + $0x2ec0] sm:$0xff] }
 0x297   : > { %8135 = vmatpush1.bf16.msra.mxu0 %v8134_v13  ;;  %v6478_v13 = vld [vmem:[%s14521_s1 + $0x2ac8] sm:$0xff] }
 0x298   : > { %8183 = vmatpush1.bf16.msra.mxu1 %v8182_v47  ;;  %8137 = vmatprep.subr.bf16.mxu0 %v8136_v21  ;;  %v6472_v47 = vld [vmem:[%s14521_s1 + $0x2a98] sm:$0xff]  ;;  %v8204_v22 = vpack.c.bf16 %v6478_v13, %v6470_v12  ;;  %v6542_v0 = vld [vmem:[%s14521_s1 + $0x2cc8] sm:$0xff]  ;;  %v6543_v13 = vld [vmem:[%s14521_s1 + $0x2cd0] sm:$0xff] }
 0x299   : > { %8185 = vmatprep.subr.bf16.mxu1 %v8184_v23  ;;  %v6480_v21 = vld [vmem:[%s14521_s1 + $0x2ad8] sm:$0xff]  ;;  %v6469_v23 = vld [vmem:[%s14521_s1 + $0x2a80] sm:$0xff]  ;;  %v8220_v5 = vpack.c.bf16 %v6542_v0, %v6534_v41  ;;  %v6598_v18 = vld [vmem:[%s14521_s1 + $0x2e88] sm:$0xff] }
 0x29a   : > { %v8252_v52 = vpack.c.bf16 %v6480_v21, %v6472_v47  ;;  %v8206_v30 = vpack.c.bf16 %v6477_v6, %v6469_v23  ;;  %v6550_v47 = vld [vmem:[%s14521_s1 + $0x2d08] sm:$0xff]  ;;  %v8270_v23 = vpack.c.bf16 %v6543_v13, %v6535_v11  ;;  %v6607_v41 = vld [vmem:[%s14521_s1 + $0x2ed0] sm:$0xff]  ;;  %v6621_v11 = vld [vmem:[%s14521_s1 + $0x2f40] sm:$0xff] }
 0x29b   : > { %8139 = vmatpush1.bf16.msra.mxu0 %v8138_v29  ;;  %v6494_v29 = vld [vmem:[%s14521_s1 + $0x2b48] sm:$0xff] }
 0x29c   : > { %8187 = vmatpush1.bf16.msra.mxu1 %v8186_v26  ;;  %8141 = vmatprep.subr.bf16.mxu0 %v8140_v54  ;;  %v6488_v26 = vld [vmem:[%s14521_s1 + $0x2b18] sm:$0xff]  ;;  %v8208_v24 = vpack.c.bf16 %v6494_v29, %v6486_v28  ;;  %v6558_v21 = vld [vmem:[%s14521_s1 + $0x2d48] sm:$0xff]  ;;  %v6559_v29 = vld [vmem:[%s14521_s1 + $0x2d50] sm:$0xff] }
 0x29d   : > { %8189 = vmatprep.subr.bf16.mxu1 %v8188_v51  ;;  %v6496_v54 = vld [vmem:[%s14521_s1 + $0x2b58] sm:$0xff]  ;;  %v8254_v51 = vpack.c.bf16 %v6479_v16, %v6471_v27  ;;  %v8224_v6 = vpack.c.bf16 %v6558_v21, %v6550_v47  ;;  %v6549_v27 = vld [vmem:[%s14521_s1 + $0x2d00] sm:$0xff]  ;;  %v6551_v16 = vld [vmem:[%s14521_s1 + $0x2d10] sm:$0xff] }
 0x29e   : > { %v6614_v0 = vld [vmem:[%s14521_s1 + $0x2f08] sm:$0xff]  ;;  %v6623_v47 = vld [vmem:[%s14521_s1 + $0x2f50] sm:$0xff] }
 0x29f   : > { %8143 = vmatpush1.bf16.msra.mxu0 %v8142_v57  ;;  %v6510_v57 = vld [vmem:[%s14521_s1 + $0x2bc8] sm:$0xff] }
 0x2a0   : > { %8191 = vmatpush1.bf16.msra.mxu1 %v8190_v40  ;;  %8145 = vmatprep.subr.bf16.mxu0 %v8144_v9  ;;  %v6504_v40 = vld [vmem:[%s14521_s1 + $0x2b98] sm:$0xff]  ;;  %v6630_v21 = vld [vmem:[%s14521_s1 + $0x2f88] sm:$0xff] }
 0x2a1   : > { %8193 = vmatprep.subr.bf16.mxu1 %v8192_v36  ;;  %v6512_v9 = vld [vmem:[%s14521_s1 + $0x2bd8] sm:$0xff]  ;;  %v8212_v36 = vpack.c.bf16 %v6510_v57, %v6502_v39  ;;  %v6575_v39 = vld [vmem:[%s14521_s1 + $0x2dd0] sm:$0xff]  ;;  %v6582_v57 = vld [vmem:[%s14521_s1 + $0x2e08] sm:$0xff] }
 0x2a2   : > { %v8260_v10 = vpack.c.bf16 %v6512_v9, %v6504_v40  ;;  %v6590_v40 = vld [vmem:[%s14521_s1 + $0x2e48] sm:$0xff]  ;;  %v6584_v9 = vld [vmem:[%s14521_s1 + $0x2e18] sm:$0xff] }
 0x2a3   : > { %8147 = vmatpush1.bf16.msra.mxu0 %v8146_v55  ;;  %v6520_v55 = vld [vmem:[%s14521_s1 + $0x2c18] sm:$0xff] }
 0x2a4   : > { %8195 = vmatpush1.bf16.msra.mxu1 %v8194_v43  ;;  %8149 = vmatprep.subr.bf16.mxu0 %v8148_v17  ;;  %v6528_v43 = vld [vmem:[%s14521_s1 + $0x2c58] sm:$0xff] }
 0x2a5   : > { %8197 = vmatprep.subr.bf16.mxu1 %v8196_v61  ;;  %v6525_v61 = vld [vmem:[%s14521_s1 + $0x2c40] sm:$0xff]  ;;  %v8264_v62 = vpack.c.bf16 %v6528_v43, %v6520_v55  ;;  %v6606_v55 = vld [vmem:[%s14521_s1 + $0x2ec8] sm:$0xff]  ;;  %v6600_v43 = vld [vmem:[%s14521_s1 + $0x2e98] sm:$0xff] }
 0x2a7   : > { %8151 = vmatpush1.bf16.msra.mxu0 %v8150_v1  ;;  %v6536_v1 = vld [vmem:[%s14521_s1 + $0x2c98] sm:$0xff] }
 0x2a8   : > { %8199 = vmatpush1.bf16.msra.mxu1 %v8198_v2  ;;  %8201 = vmatprep.subr.bf16.mxu0 %v8200_v3  ;;  %v6544_v2 = vld [vmem:[%s14521_s1 + $0x2cd8] sm:$0xff]  ;;  %v8218_v3 = vpack.c.bf16 %v6525_v61, %v6517_v59  ;;  %v8236_v59 = vpack.c.bf16 %v6606_v55, %v6598_v18  ;;  %v6597_v61 = vld [vmem:[%s14521_s1 + $0x2e80] sm:$0xff] }
 0x2a9   : > { %8249 = vmatprep.subr.bf16.mxu1 %v8248_v20  ;;  %v6541_v20 = vld [vmem:[%s14521_s1 + $0x2cc0] sm:$0xff]  ;;  %v8268_v12 = vpack.c.bf16 %v6544_v2, %v6536_v1  ;;  %v6622_v1 = vld [vmem:[%s14521_s1 + $0x2f48] sm:$0xff]  ;;  %v6616_v2 = vld [vmem:[%s14521_s1 + $0x2f18] sm:$0xff] }
 0x2aa   : > { %3900 = vmatmul.mubr.f32.vlgmr.msra.gmra.mrb[4].mxu0 %v12941_v33  ;;  %v6473_v55 = vld [vmem:[%s14521_s1 + $0x2aa0] sm:$0xff] }
 0x2ab   : > { %3977 = vmatmul.mubr.f32.vlgmr.msra.gmra.mrb[4].mxu1 %v12941_v33  ;;  %8203 = vmatpush1.bf16.msra.mxu0 %v8202_v44  ;;  %v8256_v33 = vpack.c.bf16 %v6496_v54, %v6488_v26  ;;  %v6552_v44 = vld [vmem:[%s14521_s1 + $0x2d18] sm:$0xff]  ;;  %v6566_v26 = vld [vmem:[%s14521_s1 + $0x2d88] sm:$0xff] }
 0x2ac   : > { %8251 = vmatpush1.bf16.msra.mxu1 %v8250_v19  ;;  %8205 = vmatprep.subr.bf16.mxu0 %v8204_v22  ;;  %v6560_v19 = vld [vmem:[%s14521_s1 + $0x2d58] sm:$0xff]  ;;  %v8222_v22 = vpack.c.bf16 %v6541_v20, %v6533_v7  ;;  %v6574_v54 = vld [vmem:[%s14521_s1 + $0x2dc8] sm:$0xff]  ;;  %v8240_v7 = vpack.c.bf16 %v6622_v1, %v6614_v0  ;;  %v6613_v20 = vld [vmem:[%s14521_s1 + $0x2f00] sm:$0xff] }
 0x2ad   : > { %8253 = vmatprep.subr.bf16.mxu1 %v8252_v52  ;;  %6450 = vmatprep.mubr.msk.f32.mxu0 %vm466_vm0, %v12972_v60  ;;  %v6557_v52 = vld [vmem:[%s14521_s1 + $0x2d40] sm:$0xff]  ;;  %v8272_v28 = vpack.c.bf16 %v6560_v19, %v6552_v44  ;;  %v8228_v42 = vpack.c.bf16 %v6574_v54, %v6566_v26  ;;  %v6638_v44 = vld [vmem:[%s14521_s1 + $0x2fc8] sm:$0xff]  ;;  %v6632_v19 = vld [vmem:[%s14521_s1 + $0x2f98] sm:$0xff] }
 0x2ae   : > { %6452 = vmatprep.mubr.msk.f32.mxu1 %vm466_vm0, %v12972_v60  ;;  %3906 = vmatmul.mubr.f32.gmra.mrb[6].mxu0 %v12976_v31  ;;  %v6509_v60 = vld [vmem:[%s14521_s1 + $0x2bc0] sm:$0xff]  ;;  %v6639_v26 = vld [vmem:[%s14521_s1 + $0x2fd0] sm:$0xff]  ;;  %v6458_v54 = vld [vmem:[%s14521_s1 + $0x2a28] sm:$0xff] }
 0x2af   : > { %8207 = vmatpush1.bf16.msra.mxu0 %v8206_v30  ;;  %3983 = vmatmul.mubr.f32.gmra.mrb[6].mxu1 %v12976_v31  ;;  %v6511_v31 = vld [vmem:[%s14521_s1 + $0x2bd0] sm:$0xff]  ;;  %v8214_v17 = vpack.c.bf16 %v6509_v60, %v6501_v8  ;;  %v6576_v30 = vld [vmem:[%s14521_s1 + $0x2dd8] sm:$0xff]  ;;  %v8232_v8 = vpack.c.bf16 %v6590_v40, %v6582_v57  ;;  %v6581_v60 = vld [vmem:[%s14521_s1 + $0x2e00] sm:$0xff] }
 0x2b0   : > { %8255 = vmatpush1.bf16.msra.mxu1 %v8254_v51  ;;  %8209 = vmatprep.subr.bf16.mxu0 %v8208_v24  ;;  %v8262_v56 = vpack.c.bf16 %v6511_v31, %v6503_v50  ;;  %v8226_v51 = vpack.c.bf16 %v6557_v52, %v6549_v27  ;;  %v8274_v24 = vpack.c.bf16 %v6559_v29, %v6551_v16  ;;  %v6589_v50 = vld [vmem:[%s14521_s1 + $0x2e40] sm:$0xff]  ;;  %v6474_v40 = vld [vmem:[%s14521_s1 + $0x2aa8] sm:$0xff] }
 0x2b1   : > { %8257 = vmatprep.subr.bf16.mxu1 %v8256_v33  ;;  %6645 = vmatprep.mubr.msk.f32.mxu0 %vm466_vm0, %v13312_v58  ;;  %v6567_v33 = vld [vmem:[%s14521_s1 + $0x2d90] sm:$0xff]  ;;  %v8276_v38 = vpack.c.bf16 %v6576_v30, %v6568_v35  ;;  %v8244_v27 = vpack.c.bf16 %v6638_v44, %v6630_v21  ;;  %v6629_v52 = vld [vmem:[%s14521_s1 + $0x2f80] sm:$0xff]  ;;  %v6466_v35 = vld [vmem:[%s14521_s1 + $0x2a68] sm:$0xff] }
 0x2b2   : > { %6647 = vmatprep.mubr.msk.f32.mxu1 %vm466_vm0, %v13312_v58  ;;  %v6637_v16 = vld [vmem:[%s14521_s1 + $0x2fc0] sm:$0xff]  ;;  %v6460_v30 = vld [vmem:[%s14521_s1 + $0x2a38] sm:$0xff] }
 0x2b3   : > { %8211 = vmatpush1.bf16.msra.mxu0 %v8210_v46  ;;  %v6592_v46 = vld [vmem:[%s14521_s1 + $0x2e58] sm:$0xff]  ;;  %v6505_v44 = vld [vmem:[%s14521_s1 + $0x2ba0] sm:$0xff] }
 0x2b4   : > { %8259 = vmatpush1.bf16.msra.mxu1 %v8258_v49  ;;  %8213 = vmatprep.subr.bf16.mxu0 %v8212_v36  ;;  %v8230_v49 = vpack.c.bf16 %v6573_v48, %v6565_v37  ;;  %v8278_v36 = vpack.c.bf16 %v6575_v39, %v6567_v33  ;;  %v8280_v31 = vpack.c.bf16 %v6592_v46, %v6584_v9  ;;  %v4200_v37 = vrot.slane %v12912_v32, 7  ;;  %v6465_v39 = vld [vmem:[%s14521_s1 + $0x2a60] sm:$0xff]  ;;  %v6467_v32 = vld [vmem:[%s14521_s1 + $0x2a70] sm:$0xff]  ;;  %v6482_v9 = vld [vmem:[%s14521_s1 + $0x2ae8] sm:$0xff] }
 0x2b5   : > { %8261 = vmatprep.subr.bf16.mxu1 %v8260_v10  ;;  %v6583_v10 = vld [vmem:[%s14521_s1 + $0x2e10] sm:$0xff]  ;;  %v8296_v33 = vpack.c.bf16 %v6466_v35, %v6458_v54  ;;  %v6476_v46 = vld [vmem:[%s14521_s1 + $0x2ab8] sm:$0xff]  ;;  %v8300_v18 = vpack.c.bf16 %v6482_v9, %v6474_v40  ;;  %v6521_v35 = vld [vmem:[%s14521_s1 + $0x2c20] sm:$0xff] }
 0x2b6   : > { %v6539_v40 = vld [vmem:[%s14521_s1 + $0x2cb0] sm:$0xff] }
 0x2b7   : > { %8215 = vmatpush1.bf16.msra.mxu0 %v8214_v17  ;;  %v6608_v17 = vld [vmem:[%s14521_s1 + $0x2ed8] sm:$0xff] }
 0x2b8   : > { %8263 = vmatpush1.bf16.msra.mxu1 %v8262_v56  ;;  %8217 = vmatprep.subr.bf16.mxu0 %v8216_v45  ;;  %v8234_v56 = vpack.c.bf16 %v6589_v50, %v6581_v60  ;;  %v8282_v45 = vpack.c.bf16 %v6591_v53, %v6583_v10  ;;  %v8284_v63 = vpack.c.bf16 %v6608_v17, %v6600_v43  ;;  %v13569_v10 = vld [vmem:[%s9037_s4 + $0x20] sm:$0xff]  ;;  %v6475_v17 = vld [vmem:[%s14521_s1 + $0x2ab0] sm:$0xff] }
 0x2b9   : > { %8265 = vmatprep.subr.bf16.mxu1 %v8264_v62  ;;  %v6599_v62 = vld [vmem:[%s14521_s1 + $0x2e90] sm:$0xff]  ;;  %v6481_v43 = vld [vmem:[%s14521_s1 + $0x2ae0] sm:$0xff] }
 0x2bb   : > { %8219 = vmatpush1.bf16.msra.mxu0 %v8218_v3  ;;  %v6624_v3 = vld [vmem:[%s14521_s1 + $0x2f58] sm:$0xff] }
 0x2bc   : > { %8267 = vmatpush1.bf16.msra.mxu1 %v8266_v4  ;;  %8221 = vmatprep.subr.bf16.mxu0 %v8220_v5  ;;  %v8238_v4 = vpack.c.bf16 %v6605_v25, %v6597_v61  ;;  %v8286_v5 = vpack.c.bf16 %v6607_v41, %v6599_v62  ;;  %v8288_v13 = vpack.c.bf16 %v6624_v3, %v6616_v2  ;;  %v6498_v61 = vld [vmem:[%s14521_s1 + $0x2b68] sm:$0xff]  ;;  %v6492_v25 = vld [vmem:[%s14521_s1 + $0x2b38] sm:$0xff]  ;;  %v6489_v3 = vld [vmem:[%s14521_s1 + $0x2b20] sm:$0xff] }
 0x2bd   : > { %8269 = vmatprep.subr.bf16.mxu1 %v8268_v12  ;;  %v6615_v12 = vld [vmem:[%s14521_s1 + $0x2f10] sm:$0xff]  ;;  %v6500_v62 = vld [vmem:[%s14521_s1 + $0x2b78] sm:$0xff]  ;;  %v8302_v41 = vpack.c.bf16 %v6481_v43, %v6473_v55  ;;  %v6553_v43 = vld [vmem:[%s14521_s1 + $0x2d20] sm:$0xff] }
 0x2bf   : > { %8223 = vmatpush1.bf16.msra.mxu0 %v8222_v22  ;;  %v6640_v22 = vld [vmem:[%s14521_s1 + $0x2fd8] sm:$0xff] }
 0x2c0   : > { %8271 = vmatpush1.bf16.msra.mxu1 %v8270_v23  ;;  %8225 = vmatprep.subr.bf16.mxu0 %v8224_v6  ;;  %v8242_v23 = vpack.c.bf16 %v6621_v11, %v6613_v20  ;;  %v8290_v6 = vpack.c.bf16 %v6623_v47, %v6615_v12  ;;  %v8292_v29 = vpack.c.bf16 %v6640_v22, %v6632_v19  ;;  %v6514_v20 = vld [vmem:[%s14521_s1 + $0x2be8] sm:$0xff]  ;;  %v6508_v11 = vld [vmem:[%s14521_s1 + $0x2bb8] sm:$0xff]  ;;  %v6513_v19 = vld [vmem:[%s14521_s1 + $0x2be0] sm:$0xff] }
 0x2c1   : > { %8273 = vmatprep.subr.bf16.mxu1 %v8272_v28  ;;  %v6631_v28 = vld [vmem:[%s14521_s1 + $0x2f90] sm:$0xff]  ;;  %v6516_v12 = vld [vmem:[%s14521_s1 + $0x2bf8] sm:$0xff] }
 0x2c2   : > { %v8294_v48 = vpack.c.bf16 %v6639_v26, %v6631_v28  ;;  %v6507_v22 = vld [vmem:[%s14521_s1 + $0x2bb0] sm:$0xff]  ;;  %v6532_v28 = vld [vmem:[%s14521_s1 + $0x2c78] sm:$0xff] }
 0x2c3   : > { %8227 = vmatpush1.bf16.msra.mxu0 %v8226_v51  ;;  %v6468_v51 = vld [vmem:[%s14521_s1 + $0x2a78] sm:$0xff] }
 0x2c4   : > { %8275 = vmatpush1.bf16.msra.mxu1 %v8274_v24  ;;  %8229 = vmatprep.subr.bf16.mxu0 %v8228_v42  ;;  %v8246_v24 = vpack.c.bf16 %v6637_v16, %v6629_v52  ;;  %v4199_v42 = vrot.slane %v12908_v14, 7  ;;  %v6459_v14 = vld [vmem:[%s14521_s1 + $0x2a30] sm:$0xff]  ;;  %v8344_v57 = vpack.c.bf16 %v6468_v51, %v6460_v30  ;;  %v6530_v52 = vld [vmem:[%s14521_s1 + $0x2c68] sm:$0xff]  ;;  %v6524_v16 = vld [vmem:[%s14521_s1 + $0x2c38] sm:$0xff] }
 0x2c5   : > { %8277 = vmatprep.subr.bf16.mxu1 %v8276_v38  ;;  %v6457_v38 = vld [vmem:[%s14521_s1 + $0x2a20] sm:$0xff]  ;;  %v8346_v53 = vpack.c.bf16 %v6467_v32, %v6459_v14  ;;  %v6523_v51 = vld [vmem:[%s14521_s1 + $0x2c30] sm:$0xff] }
 0x2c6   : > { %v13566_v60 = vsel %vm4198_vm7, %v4199_v42, %v4200_v37  ;;  %v8298_v50 = vpack.c.bf16 %v6465_v39, %v6457_v38  ;;  %v6529_v30 = vld [vmem:[%s14521_s1 + $0x2c60] sm:$0xff]  ;;  %v6538_v42 = vld [vmem:[%s14521_s1 + $0x2ca8] sm:$0xff] }
 0x2c7   : > { %8231 = vmatpush1.bf16.msra.mxu0 %v8230_v49  ;;  %v6484_v49 = vld [vmem:[%s14521_s1 + $0x2af8] sm:$0xff]  ;;  %v8314_v38 = vpack.c.bf16 %v6529_v30, %v6521_v35  ;;  %v6545_v32 = vld [vmem:[%s14521_s1 + $0x2ce0] sm:$0xff] }
 0x2c8   : > { %8279 = vmatpush1.bf16.msra.mxu1 %v8278_v36  ;;  %8233 = vmatprep.subr.bf16.mxu0 %v8232_v8  ;;  %v13562_v36 = vld [vmem:[%s9037_s4 + $0x28] sm:$0xff]  ;;  %v6601_v30 = vld [vmem:[%s14521_s1 + $0x2ea0] sm:$0xff] }
 0x2c9   : > { %8281 = vmatprep.subr.bf16.mxu1 %v8280_v31  ;;  %v4207_v8 = vrot.slane %v13562_v36, 7  ;;  %v4205_v31 = vrot.slane %v13569_v10, 7 }
 0x2cb   : > { %8235 = vmatpush1.bf16.msra.mxu0 %v8234_v56  ;;  %v8348_v56 = vpack.c.bf16 %v6484_v49, %v6476_v46  ;;  %v13604_v0 = vsel %vm4198_vm7, %v4200_v37, %v4205_v31  ;;  %v6546_v37 = vld [vmem:[%s14521_s1 + $0x2ce8] sm:$0xff]  ;;  %v6547_v46 = vld [vmem:[%s14521_s1 + $0x2cf0] sm:$0xff]  ;;  %v6564_v31 = vld [vmem:[%s14521_s1 + $0x2d78] sm:$0xff] }
 0x2cc   : > { %8283 = vmatpush1.bf16.msra.mxu1 %v8282_v45  ;;  %8237 = vmatprep.subr.bf16.mxu0 %v8236_v59  ;;  %v6483_v45 = vld [vmem:[%s14521_s1 + $0x2af0] sm:$0xff]  ;;  %v6490_v59 = vld [vmem:[%s14521_s1 + $0x2b28] sm:$0xff]  ;;  %v8316_v14 = vpack.c.bf16 %v6546_v37, %v6538_v42 }
 0x2cd   : > { %8285 = vmatprep.subr.bf16.mxu1 %v8284_v63  ;;  %v13600_v63 = vsel %vm4198_vm7, %v4203_v34, %v4207_v8  ;;  %v8350_v1 = vpack.c.bf16 %v6483_v45, %v6475_v17  ;;  %v8304_v2 = vpack.c.bf16 %v6498_v61, %v6490_v59  ;;  %v6491_v34 = vld [vmem:[%s14521_s1 + $0x2b30] sm:$0xff]  ;;  %v6554_v49 = vld [vmem:[%s14521_s1 + $0x2d28] sm:$0xff]  ;;  %v6561_v17 = vld [vmem:[%s14521_s1 + $0x2d60] sm:$0xff] }
 0x2ce   : > { %v6562_v8 = vld [vmem:[%s14521_s1 + $0x2d68] sm:$0xff]  ;;  %v6563_v59 = vld [vmem:[%s14521_s1 + $0x2d70] sm:$0xff] }
 0x2cf   : > { %8239 = vmatpush1.bf16.msra.mxu0 %v8238_v4  ;;  %v8352_v4 = vpack.c.bf16 %v6500_v62, %v6492_v25  ;;  %v8320_v55 = vpack.c.bf16 %v6562_v8, %v6554_v49  ;;  %v6570_v61 = vld [vmem:[%s14521_s1 + $0x2da8] sm:$0xff]  ;;  %v6572_v62 = vld [vmem:[%s14521_s1 + $0x2db8] sm:$0xff]  ;;  %v6611_v42 = vld [vmem:[%s14521_s1 + $0x2ef0] sm:$0xff] }
 0x2d0   : > { %8287 = vmatpush1.bf16.msra.mxu1 %v8286_v5  ;;  %8241 = vmatprep.subr.bf16.mxu0 %v8240_v7  ;;  %v6499_v5 = vld [vmem:[%s14521_s1 + $0x2b70] sm:$0xff]  ;;  %v6506_v7 = vld [vmem:[%s14521_s1 + $0x2ba8] sm:$0xff] }
 0x2d1   : > { %8289 = vmatprep.subr.bf16.mxu1 %v8288_v13  ;;  %v8306_v13 = vpack.c.bf16 %v6497_v15, %v6489_v3  ;;  %v8354_v47 = vpack.c.bf16 %v6499_v5, %v6491_v34  ;;  %v8308_v21 = vpack.c.bf16 %v6514_v20, %v6506_v7  ;;  %v6578_v25 = vld [vmem:[%s14521_s1 + $0x2de8] sm:$0xff]  ;;  %v6569_v15 = vld [vmem:[%s14521_s1 + $0x2da0] sm:$0xff]  ;;  %v6579_v7 = vld [vmem:[%s14521_s1 + $0x2df0] sm:$0xff] }
 0x2d2   : > { %v8324_v3 = vpack.c.bf16 %v6578_v25, %v6570_v61  ;;  %v6577_v34 = vld [vmem:[%s14521_s1 + $0x2de0] sm:$0xff]  ;;  %v6586_v20 = vld [vmem:[%s14521_s1 + $0x2e28] sm:$0xff]  ;;  %v6627_v49 = vld [vmem:[%s14521_s1 + $0x2f70] sm:$0xff] }
 0x2d3   : > { %8243 = vmatpush1.bf16.msra.mxu0 %v8242_v23  ;;  %v8356_v23 = vpack.c.bf16 %v6516_v12, %v6508_v11  ;;  %v6594_v11 = vld [vmem:[%s14521_s1 + $0x2e68] sm:$0xff]  ;;  %v6588_v12 = vld [vmem:[%s14521_s1 + $0x2e38] sm:$0xff]  ;;  %v6643_v61 = vld [vmem:[%s14521_s1 + $0x2ff0] sm:$0xff] }
 0x2d4   : > { %8291 = vmatpush1.bf16.msra.mxu1 %v8290_v6  ;;  %8245 = vmatprep.subr.bf16.mxu0 %v8244_v27  ;;  %v6515_v6 = vld [vmem:[%s14521_s1 + $0x2bf0] sm:$0xff]  ;;  %v6522_v27 = vld [vmem:[%s14521_s1 + $0x2c28] sm:$0xff] }
 0x2d5   : > { %8293 = vmatprep.subr.bf16.mxu1 %v8292_v29  ;;  %v8310_v29 = vpack.c.bf16 %v6513_v19, %v6505_v44  ;;  %v8358_v26 = vpack.c.bf16 %v6515_v6, %v6507_v22  ;;  %v8312_v54 = vpack.c.bf16 %v6530_v52, %v6522_v27  ;;  %v8328_v44 = vpack.c.bf16 %v6594_v11, %v6586_v20  ;;  %v6585_v19 = vld [vmem:[%s14521_s1 + $0x2e20] sm:$0xff]  ;;  %v6595_v27 = vld [vmem:[%s14521_s1 + $0x2e70] sm:$0xff]  ;;  %v6602_v52 = vld [vmem:[%s14521_s1 + $0x2ea8] sm:$0xff] }
 0x2d6   : > { %v6593_v22 = vld [vmem:[%s14521_s1 + $0x2e60] sm:$0xff]  ;;  %v6618_v37 = vld [vmem:[%s14521_s1 + $0x2f28] sm:$0xff]  ;;  %v6663_v20 = vld [vmem:[%s14521_s1 + $0x3050] sm:$0xff] }
 0x2d7   : > { %8247 = vmatpush1.bf16.msra.mxu0 %v8246_v24  ;;  %v6531_v24 = vld [vmem:[%s14521_s1 + $0x2c70] sm:$0xff]  ;;  %v6634_v8 = vld [vmem:[%s14521_s1 + $0x2fa8] sm:$0xff] }
 0x2d8   : > { %8295 = vmatpush1.bf16.msra.mxu1 %v8294_v48  ;;  %8297 = vmatprep.subr.bf16.mxu0 %v8296_v33  ;;  %v6540_v48 = vld [vmem:[%s14521_s1 + $0x2cb8] sm:$0xff]  ;;  %v8362_v39 = vpack.c.bf16 %v6531_v24, %v6523_v51  ;;  %v6609_v51 = vld [vmem:[%s14521_s1 + $0x2ee0] sm:$0xff]  ;;  %v6654_v25 = vld [vmem:[%s14521_s1 + $0x3008] sm:$0xff] }
 0x2d9   : > { %8345 = vmatprep.subr.bf16.mxu1 %v8344_v57  ;;  %v6548_v33 = vld [vmem:[%s14521_s1 + $0x2cf8] sm:$0xff]  ;;  %v6537_v57 = vld [vmem:[%s14521_s1 + $0x2ca0] sm:$0xff]  ;;  %v6670_v11 = vld [vmem:[%s14521_s1 + $0x3088] sm:$0xff] }
 0x2da   : > { %4280 = vmatmul.mubr.f32.vlgmr.msra.gmra.mrb[0].mxu0 %v13566_v60  ;;  %v8364_v9 = vpack.c.bf16 %v6548_v33, %v6540_v48  ;;  %v6626_v48 = vld [vmem:[%s14521_s1 + $0x2f68] sm:$0xff]  ;;  %v6620_v33 = vld [vmem:[%s14521_s1 + $0x2f38] sm:$0xff] }
 0x2db   : > { %4357 = vmatmul.mubr.f32.vlgmr.msra.gmra.mrb[0].mxu1 %v13566_v60  ;;  %8299 = vmatpush1.bf16.msra.mxu0 %v8298_v50  ;;  %v6556_v50 = vld [vmem:[%s14521_s1 + $0x2d38] sm:$0xff] }
 0x2dc   : > { %8347 = vmatpush1.bf16.msra.mxu1 %v8346_v53  ;;  %8301 = vmatprep.subr.bf16.mxu0 %v8300_v18  ;;  %v8318_v53 = vpack.c.bf16 %v6545_v32, %v6537_v57  ;;  %v8366_v18 = vpack.c.bf16 %v6547_v46, %v6539_v40  ;;  %v8368_v45 = vpack.c.bf16 %v6564_v31, %v6556_v50  ;;  %v6617_v32 = vld [vmem:[%s14521_s1 + $0x2f20] sm:$0xff]  ;;  %v6642_v50 = vld [vmem:[%s14521_s1 + $0x2fe8] sm:$0xff]  ;;  %v6636_v31 = vld [vmem:[%s14521_s1 + $0x2fb8] sm:$0xff] }
 0x2dd   : > { %8349 = vmatprep.subr.bf16.mxu1 %v8348_v56  ;;  %6646 = vmatprep.mubr.msk.f32.mxu0 %vm466_vm0, %v13600_v63  ;;  %v6555_v56 = vld [vmem:[%s14521_s1 + $0x2d30] sm:$0xff]  ;;  %v8336_v57 = vpack.c.bf16 %v6626_v48, %v6618_v37  ;;  %v6625_v40 = vld [vmem:[%s14521_s1 + $0x2f60] sm:$0xff]  ;;  %v6702_v37 = vld [vmem:[%s14521_s1 + $0x3188] sm:$0xff] }
 0x2de   : > { %6648 = vmatprep.mubr.msk.f32.mxu1 %vm466_vm0, %v13600_v63  ;;  %4286 = vmatmul.mubr.f32.gmra.mrb[2].mxu0 %v13604_v0  ;;  %v6710_v48 = vld [vmem:[%s14521_s1 + $0x31c8] sm:$0xff] }
 0x2df   : > { %8303 = vmatpush1.bf16.msra.mxu0 %v8302_v41  ;;  %4363 = vmatmul.mubr.f32.gmra.mrb[2].mxu1 %v13604_v0  ;;  %v6580_v41 = vld [vmem:[%s14521_s1 + $0x2df8] sm:$0xff] }
 0x2e0   : > { %8351 = vmatpush1.bf16.msra.mxu1 %v8350_v1  ;;  %8305 = vmatprep.subr.bf16.mxu0 %v8304_v2  ;;  %v8322_v1 = vpack.c.bf16 %v6561_v17, %v6553_v43  ;;  %v8370_v2 = vpack.c.bf16 %v6563_v59, %v6555_v56  ;;  %v8372_v5 = vpack.c.bf16 %v6580_v41, %v6572_v62  ;;  %v6633_v17 = vld [vmem:[%s14521_s1 + $0x2fa0] sm:$0xff]  ;;  %v6662_v62 = vld [vmem:[%s14521_s1 + $0x3048] sm:$0xff]  ;;  %v6656_v41 = vld [vmem:[%s14521_s1 + $0x3018] sm:$0xff] }
 0x2e1   : > { %8353 = vmatprep.subr.bf16.mxu1 %v8352_v4  ;;  %6649 = vmatprep.mubr.msk.f32.mxu0 %vm466_vm0, %v13312_v58  ;;  %v6571_v4 = vld [vmem:[%s14521_s1 + $0x2db0] sm:$0xff]  ;;  %v8340_v43 = vpack.c.bf16 %v6642_v50, %v6634_v8  ;;  %v6641_v56 = vld [vmem:[%s14521_s1 + $0x2fe0] sm:$0xff]  ;;  %v13955_v8 = vld [vmem:[%s9037_s4 + $0x18] sm:$0xff] }
 0x2e2   : > { %6651 = vmatprep.mubr.msk.f32.mxu1 %vm466_vm0, %v13312_v58  ;;  %v8360_v58 = vpack.c.bf16 %v6532_v28, %v6524_v16  ;;  %v6610_v16 = vld [vmem:[%s14521_s1 + $0x2ee8] sm:$0xff]  ;;  %v6604_v28 = vld [vmem:[%s14521_s1 + $0x2eb8] sm:$0xff] }
 0x2e3   : > { %8307 = vmatpush1.bf16.msra.mxu0 %v8306_v13  ;;  %v6596_v13 = vld [vmem:[%s14521_s1 + $0x2e78] sm:$0xff]  ;;  %v8332_v35 = vpack.c.bf16 %v6610_v16, %v6602_v52  ;;  %v6679_v52 = vld [vmem:[%s14521_s1 + $0x30d0] sm:$0xff]  ;;  %v6686_v16 = vld [vmem:[%s14521_s1 + $0x3108] sm:$0xff] }
 0x2e4   : > { %8355 = vmatpush1.bf16.msra.mxu1 %v8354_v47  ;;  %8309 = vmatprep.subr.bf16.mxu0 %v8308_v21  ;;  %v8326_v47 = vpack.c.bf16 %v6577_v34, %v6569_v15  ;;  %v8374_v21 = vpack.c.bf16 %v6579_v7, %v6571_v4  ;;  %v8376_v6 = vpack.c.bf16 %v6596_v13, %v6588_v12  ;;  %v6653_v34 = vld [vmem:[%s14521_s1 + $0x3000] sm:$0xff]  ;;  %v6678_v12 = vld [vmem:[%s14521_s1 + $0x30c8] sm:$0xff]  ;;  %v6672_v13 = vld [vmem:[%s14521_s1 + $0x3098] sm:$0xff] }
 0x2e5   : > { %8357 = vmatprep.subr.bf16.mxu1 %v8356_v23  ;;  %v6587_v23 = vld [vmem:[%s14521_s1 + $0x2e30] sm:$0xff]  ;;  %v8392_v15 = vpack.c.bf16 %v6662_v62, %v6654_v25  ;;  %v6661_v4 = vld [vmem:[%s14521_s1 + $0x3040] sm:$0xff]  ;;  %v6720_v50 = vld [vmem:[%s14521_s1 + $0x3218] sm:$0xff] }
 0x2e6   : > { %v6742_v25 = vld [vmem:[%s14521_s1 + $0x32c8] sm:$0xff]  ;;  %v6736_v62 = vld [vmem:[%s14521_s1 + $0x3298] sm:$0xff] }
 0x2e7   : > { %8311 = vmatpush1.bf16.msra.mxu0 %v8310_v29  ;;  %v6612_v29 = vld [vmem:[%s14521_s1 + $0x2ef8] sm:$0xff] }
 0x2e8   : > { %8359 = vmatpush1.bf16.msra.mxu1 %v8358_v26  ;;  %8313 = vmatprep.subr.bf16.mxu0 %v8312_v54  ;;  %v8330_v26 = vpack.c.bf16 %v6593_v22, %v6585_v19  ;;  %v8378_v54 = vpack.c.bf16 %v6595_v27, %v6587_v23  ;;  %v8380_v24 = vpack.c.bf16 %v6612_v29, %v6604_v28  ;;  %v6669_v22 = vld [vmem:[%s14521_s1 + $0x3080] sm:$0xff]  ;;  %v6694_v28 = vld [vmem:[%s14521_s1 + $0x3148] sm:$0xff]  ;;  %v6688_v29 = vld [vmem:[%s14521_s1 + $0x3118] sm:$0xff] }
 0x2e9   : > { %8361 = vmatprep.subr.bf16.mxu1 %v8360_v58  ;;  %v6603_v58 = vld [vmem:[%s14521_s1 + $0x2eb0] sm:$0xff]  ;;  %v8396_v19 = vpack.c.bf16 %v6678_v12, %v6670_v11  ;;  %v6677_v23 = vld [vmem:[%s14521_s1 + $0x30c0] sm:$0xff]  ;;  %v6758_v11 = vld [vmem:[%s14521_s1 + $0x3348] sm:$0xff] }
 0x2ea   : > { %v6752_v12 = vld [vmem:[%s14521_s1 + $0x3318] sm:$0xff] }
 0x2eb   : > { %8315 = vmatpush1.bf16.msra.mxu0 %v8314_v38  ;;  %v6628_v38 = vld [vmem:[%s14521_s1 + $0x2f78] sm:$0xff] }
 0x2ec   : > { %8363 = vmatpush1.bf16.msra.mxu1 %v8362_v39  ;;  %8317 = vmatprep.subr.bf16.mxu0 %v8316_v14  ;;  %v8334_v39 = vpack.c.bf16 %v6609_v51, %v6601_v30  ;;  %v8382_v14 = vpack.c.bf16 %v6611_v42, %v6603_v58  ;;  %v8384_v46 = vpack.c.bf16 %v6628_v38, %v6620_v33  ;;  %v6685_v51 = vld [vmem:[%s14521_s1 + $0x3100] sm:$0xff]  ;;  %v6695_v42 = vld [vmem:[%s14521_s1 + $0x3150] sm:$0xff]  ;;  %v6704_v33 = vld [vmem:[%s14521_s1 + $0x3198] sm:$0xff] }
 0x2ed   : > { %8365 = vmatprep.subr.bf16.mxu1 %v8364_v9  ;;  %v6619_v9 = vld [vmem:[%s14521_s1 + $0x2f30] sm:$0xff]  ;;  %v8400_v30 = vpack.c.bf16 %v6694_v28, %v6686_v16  ;;  %v6693_v58 = vld [vmem:[%s14521_s1 + $0x3140] sm:$0xff]  ;;  %v6712_v38 = vld [vmem:[%s14521_s1 + $0x31d8] sm:$0xff] }
 0x2ee   : > { %v6774_v16 = vld [vmem:[%s14521_s1 + $0x33c8] sm:$0xff]  ;;  %v6768_v28 = vld [vmem:[%s14521_s1 + $0x3398] sm:$0xff] }
 0x2ef   : > { %8319 = vmatpush1.bf16.msra.mxu0 %v8318_v53  ;;  %v6644_v53 = vld [vmem:[%s14521_s1 + $0x2ff8] sm:$0xff] }
 0x2f0   : > { %8367 = vmatpush1.bf16.msra.mxu1 %v8366_v18  ;;  %8321 = vmatprep.subr.bf16.mxu0 %v8320_v55  ;;  %v8338_v18 = vpack.c.bf16 %v6625_v40, %v6617_v32  ;;  %v8386_v55 = vpack.c.bf16 %v6627_v49, %v6619_v9  ;;  %v8388_v59 = vpack.c.bf16 %v6644_v53, %v6636_v31  ;;  %v6701_v32 = vld [vmem:[%s14521_s1 + $0x3180] sm:$0xff]  ;;  %v6726_v49 = vld [vmem:[%s14521_s1 + $0x3248] sm:$0xff]  ;;  %v6728_v31 = vld [vmem:[%s14521_s1 + $0x3258] sm:$0xff] }
 0x2f1   : > { %8369 = vmatprep.subr.bf16.mxu1 %v8368_v45  ;;  %v6635_v45 = vld [vmem:[%s14521_s1 + $0x2fb0] sm:$0xff]  ;;  %v6709_v40 = vld [vmem:[%s14521_s1 + $0x31c0] sm:$0xff]  ;;  %v8452_v9 = vpack.c.bf16 %v6712_v38, %v6704_v33  ;;  %v6792_v33 = vld [vmem:[%s14521_s1 + $0x3458] sm:$0xff] }
 0x2f2   : > { %v8406_v53 = vpack.c.bf16 %v6709_v40, %v6701_v32  ;;  %v6789_v32 = vld [vmem:[%s14521_s1 + $0x3440] sm:$0xff]  ;;  %v6783_v40 = vld [vmem:[%s14521_s1 + $0x3410] sm:$0xff] }
 0x2f3   : > { %8323 = vmatpush1.bf16.msra.mxu0 %v8322_v1  ;;  %v6664_v1 = vld [vmem:[%s14521_s1 + $0x3058] sm:$0xff] }
 0x2f4   : > { %8371 = vmatpush1.bf16.msra.mxu1 %v8370_v2  ;;  %8325 = vmatprep.subr.bf16.mxu0 %v8324_v3  ;;  %v8342_v2 = vpack.c.bf16 %v6641_v56, %v6633_v17  ;;  %v8390_v3 = vpack.c.bf16 %v6643_v61, %v6635_v45  ;;  %v8440_v7 = vpack.c.bf16 %v6664_v1, %v6656_v41  ;;  %v6725_v17 = vld [vmem:[%s14521_s1 + $0x3240] sm:$0xff]  ;;  %v6719_v56 = vld [vmem:[%s14521_s1 + $0x3210] sm:$0xff]  ;;  %v6734_v61 = vld [vmem:[%s14521_s1 + $0x3288] sm:$0xff] }
 0x2f5   : > { %8373 = vmatprep.subr.bf16.mxu1 %v8372_v5  ;;  %v6655_v5 = vld [vmem:[%s14521_s1 + $0x3010] sm:$0xff]  ;;  %v8456_v45 = vpack.c.bf16 %v6728_v31, %v6720_v50  ;;  %v6744_v41 = vld [vmem:[%s14521_s1 + $0x32d8] sm:$0xff] }
 0x2f6   : > { %v6808_v50 = vld [vmem:[%s14521_s1 + $0x34d8] sm:$0xff] }
 0x2f7   : > { %8327 = vmatpush1.bf16.msra.mxu0 %v8326_v47  ;;  %v6680_v47 = vld [vmem:[%s14521_s1 + $0x30d8] sm:$0xff] }
 0x2f8   : > { %8375 = vmatpush1.bf16.msra.mxu1 %v8374_v21  ;;  %8329 = vmatprep.subr.bf16.mxu0 %v8328_v44  ;;  %v8394_v21 = vpack.c.bf16 %v6661_v4, %v6653_v34  ;;  %v8442_v44 = vpack.c.bf16 %v6663_v20, %v6655_v5  ;;  %v8444_v27 = vpack.c.bf16 %v6680_v47, %v6672_v13  ;;  %v6741_v34 = vld [vmem:[%s14521_s1 + $0x32c0] sm:$0xff]  ;;  %v6735_v4 = vld [vmem:[%s14521_s1 + $0x3290] sm:$0xff]  ;;  %v6750_v20 = vld [vmem:[%s14521_s1 + $0x3308] sm:$0xff] }
 0x2f9   : > { %8377 = vmatprep.subr.bf16.mxu1 %v8376_v6  ;;  %v6671_v6 = vld [vmem:[%s14521_s1 + $0x3090] sm:$0xff]  ;;  %v8460_v5 = vpack.c.bf16 %v6744_v41, %v6736_v62  ;;  %v6760_v13 = vld [vmem:[%s14521_s1 + $0x3358] sm:$0xff] }
 0x2fa   : > { %v6824_v62 = vld [vmem:[%s14521_s1 + $0x3558] sm:$0xff] }
 0x2fb   : > { %8331 = vmatpush1.bf16.msra.mxu0 %v8330_v26  ;;  %v6696_v26 = vld [vmem:[%s14521_s1 + $0x3158] sm:$0xff] }
 0x2fc   : > { %8379 = vmatpush1.bf16.msra.mxu1 %v8378_v54  ;;  %8333 = vmatprep.subr.bf16.mxu0 %v8332_v35  ;;  %v8398_v54 = vpack.c.bf16 %v6677_v23, %v6669_v22  ;;  %v8446_v35 = vpack.c.bf16 %v6679_v52, %v6671_v6  ;;  %v6757_v22 = vld [vmem:[%s14521_s1 + $0x3340] sm:$0xff]  ;;  %v6751_v23 = vld [vmem:[%s14521_s1 + $0x3310] sm:$0xff]  ;;  %v8464_v6 = vpack.c.bf16 %v6760_v13, %v6752_v12  ;;  %v6766_v52 = vld [vmem:[%s14521_s1 + $0x3388] sm:$0xff] }
 0x2fd   : > { %8381 = vmatprep.subr.bf16.mxu1 %v8380_v24  ;;  %v6687_v24 = vld [vmem:[%s14521_s1 + $0x3110] sm:$0xff]  ;;  %v6840_v12 = vld [vmem:[%s14521_s1 + $0x35d8] sm:$0xff] }
 0x2ff   : > { %8335 = vmatpush1.bf16.msra.mxu0 %v8334_v39  ;;  %v8402_v39 = vpack.c.bf16 %v6693_v58, %v6685_v51  ;;  %v6773_v51 = vld [vmem:[%s14521_s1 + $0x33c0] sm:$0xff]  ;;  %v6767_v58 = vld [vmem:[%s14521_s1 + $0x3390] sm:$0xff] }
 0x300   : > { %8383 = vmatpush1.bf16.msra.mxu1 %v8382_v14  ;;  %8337 = vmatprep.subr.bf16.mxu0 %v8336_v57  ;;  %v8450_v14 = vpack.c.bf16 %v6695_v42, %v6687_v24  ;;  %v8404_v57 = vpack.c.bf16 %v6710_v48, %v6702_v37  ;;  %v6782_v42 = vld [vmem:[%s14521_s1 + $0x3408] sm:$0xff]  ;;  %v6784_v48 = vld [vmem:[%s14521_s1 + $0x3418] sm:$0xff] }
 0x301   : > { %8385 = vmatprep.subr.bf16.mxu1 %v8384_v46  ;;  %v6718_v46 = vld [vmem:[%s14521_s1 + $0x3208] sm:$0xff] }
 0x302   : > { %v6790_v37 = vld [vmem:[%s14521_s1 + $0x3448] sm:$0xff] }
 0x303   : > { %8339 = vmatpush1.bf16.msra.mxu0 %v8338_v18 }
 0x304   : > { %8387 = vmatpush1.bf16.msra.mxu1 %v8386_v55  ;;  %8341 = vmatprep.subr.bf16.mxu0 %v8340_v43  ;;  %v8408_v55 = vpack.c.bf16 %v6726_v49, %v6718_v46  ;;  %v6717_v43 = vld [vmem:[%s14521_s1 + $0x3200] sm:$0xff]  ;;  %v6806_v46 = vld [vmem:[%s14521_s1 + $0x34c8] sm:$0xff]  ;;  %v6800_v49 = vld [vmem:[%s14521_s1 + $0x3498] sm:$0xff] }
 0x305   : > { %8389 = vmatprep.subr.bf16.mxu1 %v8388_v59  ;;  %v6727_v59 = vld [vmem:[%s14521_s1 + $0x3250] sm:$0xff]  ;;  %v8410_v1 = vpack.c.bf16 %v6725_v17, %v6717_v43  ;;  %v6805_v43 = vld [vmem:[%s14521_s1 + $0x34c0] sm:$0xff] }
 0x306   : > { %v6799_v17 = vld [vmem:[%s14521_s1 + $0x3490] sm:$0xff] }
 0x307   : > { %8343 = vmatpush1.bf16.msra.mxu0 %v8342_v2  ;;  %v8458_v2 = vpack.c.bf16 %v6727_v59, %v6719_v56  ;;  %v8476_v56 = vpack.c.bf16 %v6808_v50, %v6800_v49  ;;  %v6814_v59 = vld [vmem:[%s14521_s1 + $0x3508] sm:$0xff]  ;;  %v6692_v49 = vld [vmem:[%s14521_s1 + $0x3138] sm:$0xff] }
 0x308   : > { %8391 = vmatpush1.bf16.msra.mxu1 %v8390_v3  ;;  %8393 = vmatprep.subr.bf16.mxu0 %v8392_v15  ;;  %v8412_v3 = vpack.c.bf16 %v6742_v25, %v6734_v61  ;;  %v6733_v15 = vld [vmem:[%s14521_s1 + $0x3280] sm:$0xff]  ;;  %v6822_v61 = vld [vmem:[%s14521_s1 + $0x3548] sm:$0xff]  ;;  %v6816_v25 = vld [vmem:[%s14521_s1 + $0x3518] sm:$0xff] }
 0x309   : > { %8441 = vmatprep.subr.bf16.mxu1 %v8440_v7  ;;  %v6743_v7 = vld [vmem:[%s14521_s1 + $0x32d0] sm:$0xff]  ;;  %v8414_v47 = vpack.c.bf16 %v6741_v34, %v6733_v15  ;;  %v6821_v15 = vld [vmem:[%s14521_s1 + $0x3540] sm:$0xff]  ;;  %v6700_v50 = vld [vmem:[%s14521_s1 + $0x3178] sm:$0xff] }
 0x30a   : > { %4434 = vmatmul.mubr.f32.vlgmr.msra.gmra.mrb[4].mxu0 %v13566_v60  ;;  %v6815_v34 = vld [vmem:[%s14521_s1 + $0x3510] sm:$0xff] }
 0x30b   : > { %4511 = vmatmul.mubr.f32.vlgmr.msra.gmra.mrb[4].mxu1 %v13566_v60  ;;  %8395 = vmatpush1.bf16.msra.mxu0 %v8394_v21  ;;  %v8448_v60 = vpack.c.bf16 %v6696_v26, %v6688_v29  ;;  %v8462_v21 = vpack.c.bf16 %v6743_v7, %v6735_v4  ;;  %v6776_v29 = vld [vmem:[%s14521_s1 + $0x33d8] sm:$0xff]  ;;  %v8480_v4 = vpack.c.bf16 %v6824_v62, %v6816_v25  ;;  %v6830_v7 = vld [vmem:[%s14521_s1 + $0x3588] sm:$0xff] }
 0x30c   : > { %8443 = vmatpush1.bf16.msra.mxu1 %v8442_v44  ;;  %8397 = vmatprep.subr.bf16.mxu0 %v8396_v19  ;;  %v8416_v44 = vpack.c.bf16 %v6758_v11, %v6750_v20  ;;  %v6749_v19 = vld [vmem:[%s14521_s1 + $0x3300] sm:$0xff]  ;;  %v8468_v24 = vpack.c.bf16 %v6776_v29, %v6768_v28  ;;  %v6838_v20 = vld [vmem:[%s14521_s1 + $0x35c8] sm:$0xff]  ;;  %v6832_v11 = vld [vmem:[%s14521_s1 + $0x3598] sm:$0xff] }
 0x30d   : > { %8445 = vmatprep.subr.bf16.mxu1 %v8444_v27  ;;  %6650 = vmatprep.mubr.msk.f32.mxu0 %vm466_vm0, %v13600_v63  ;;  %v6759_v27 = vld [vmem:[%s14521_s1 + $0x3350] sm:$0xff]  ;;  %v8418_v26 = vpack.c.bf16 %v6757_v22, %v6749_v19  ;;  %v6837_v19 = vld [vmem:[%s14521_s1 + $0x35c0] sm:$0xff]  ;;  %v6668_v28 = vld [vmem:[%s14521_s1 + $0x3078] sm:$0xff] }
 0x30e   : > { %6652 = vmatprep.mubr.msk.f32.mxu1 %vm466_vm0, %v13600_v63  ;;  %4440 = vmatmul.mubr.f32.gmra.mrb[6].mxu0 %v13604_v0  ;;  %v6703_v63 = vld [vmem:[%s14521_s1 + $0x3190] sm:$0xff]  ;;  %v6716_v25 = vld [vmem:[%s14521_s1 + $0x31f8] sm:$0xff] }
 0x30f   : > { %8399 = vmatpush1.bf16.msra.mxu0 %v8398_v54  ;;  %4517 = vmatmul.mubr.f32.gmra.mrb[6].mxu1 %v13604_v0  ;;  %v6711_v0 = vld [vmem:[%s14521_s1 + $0x31d0] sm:$0xff]  ;;  %v8466_v54 = vpack.c.bf16 %v6759_v27, %v6751_v23  ;;  %v8484_v23 = vpack.c.bf16 %v6840_v12, %v6832_v11  ;;  %v6658_v27 = vld [vmem:[%s14521_s1 + $0x3028] sm:$0xff] }
 0x310   : > { %8447 = vmatpush1.bf16.msra.mxu1 %v8446_v35  ;;  %8401 = vmatprep.subr.bf16.mxu0 %v8400_v30  ;;  %v8454_v18 = vpack.c.bf16 %v6711_v0, %v6703_v63  ;;  %v8420_v35 = vpack.c.bf16 %v6774_v16, %v6766_v52  ;;  %v6765_v30 = vld [vmem:[%s14521_s1 + $0x3380] sm:$0xff]  ;;  %v8472_v63 = vpack.c.bf16 %v6792_v33, %v6784_v48  ;;  %v6798_v0 = vld [vmem:[%s14521_s1 + $0x3488] sm:$0xff]  ;;  %v6831_v22 = vld [vmem:[%s14521_s1 + $0x3590] sm:$0xff] }
 0x311   : > { %8449 = vmatprep.subr.bf16.mxu1 %v8448_v60  ;;  %6845 = vmatprep.mubr.msk.f32.mxu0 %vm466_vm0, %v13955_v8  ;;  %v6775_v60 = vld [vmem:[%s14521_s1 + $0x33d0] sm:$0xff]  ;;  %v8422_v38 = vpack.c.bf16 %v6773_v51, %v6765_v30  ;;  %v6666_v52 = vld [vmem:[%s14521_s1 + $0x3068] sm:$0xff]  ;;  %v6660_v16 = vld [vmem:[%s14521_s1 + $0x3038] sm:$0xff] }
 0x312   : > { %6847 = vmatprep.mubr.msk.f32.mxu1 %vm466_vm0, %v13955_v8  ;;  %v6665_v30 = vld [vmem:[%s14521_s1 + $0x3060] sm:$0xff]  ;;  %v8536_v51 = vpack.c.bf16 %v6668_v28, %v6660_v16  ;;  %v6676_v48 = vld [vmem:[%s14521_s1 + $0x30b8] sm:$0xff] }
 0x313   : > { %8403 = vmatpush1.bf16.msra.mxu0 %v8402_v39  ;;  %v8470_v39 = vpack.c.bf16 %v6775_v60, %v6767_v58  ;;  %v6659_v58 = vld [vmem:[%s14521_s1 + $0x3030] sm:$0xff]  ;;  %v6674_v60 = vld [vmem:[%s14521_s1 + $0x30a8] sm:$0xff]  ;;  %v6684_v33 = vld [vmem:[%s14521_s1 + $0x30f8] sm:$0xff] }
 0x314   : > { %8451 = vmatpush1.bf16.msra.mxu1 %v8450_v14  ;;  %8405 = vmatprep.subr.bf16.mxu0 %v8404_v57  ;;  %v8424_v14 = vpack.c.bf16 %v6790_v37, %v6782_v42  ;;  %v6781_v57 = vld [vmem:[%s14521_s1 + $0x3400] sm:$0xff]  ;;  %v6682_v42 = vld [vmem:[%s14521_s1 + $0x30e8] sm:$0xff] }
 0x315   : > { %8453 = vmatprep.subr.bf16.mxu1 %v8452_v9  ;;  %v6791_v9 = vld [vmem:[%s14521_s1 + $0x3450] sm:$0xff]  ;;  %v8426_v31 = vpack.c.bf16 %v6789_v32, %v6781_v57  ;;  %v8492_v32 = vpack.c.bf16 %v6682_v42, %v6674_v60  ;;  %v6764_v60 = vld [vmem:[%s14521_s1 + $0x3378] sm:$0xff] }
 0x316   : > { %v6675_v57 = vld [vmem:[%s14521_s1 + $0x30b0] sm:$0xff] }
 0x317   : > { %8407 = vmatpush1.bf16.msra.mxu0 %v8406_v53  ;;  %v8474_v53 = vpack.c.bf16 %v6791_v9, %v6783_v40  ;;  %v6683_v40 = vld [vmem:[%s14521_s1 + $0x30f0] sm:$0xff]  ;;  %v6698_v9 = vld [vmem:[%s14521_s1 + $0x3168] sm:$0xff] }
 0x318   : > { %8455 = vmatpush1.bf16.msra.mxu1 %v8454_v18  ;;  %8409 = vmatprep.subr.bf16.mxu0 %v8408_v55  ;;  %v8428_v18 = vpack.c.bf16 %v6806_v46, %v6798_v0  ;;  %v6797_v55 = vld [vmem:[%s14521_s1 + $0x3480] sm:$0xff]  ;;  %v14202_v0 = vld [vmem:[%s9037_s4 + $0x10] sm:$0xff]  ;;  %v8540_v46 = vpack.c.bf16 %v6684_v33, %v6676_v48 }
 0x319   : > { %8457 = vmatprep.subr.bf16.mxu1 %v8456_v45  ;;  %v6807_v45 = vld [vmem:[%s14521_s1 + $0x34d0] sm:$0xff]  ;;  %v8430_v41 = vpack.c.bf16 %v6805_v43, %v6797_v55  ;;  %v6689_v55 = vld [vmem:[%s14521_s1 + $0x3120] sm:$0xff] }
 0x31a   : > { %v6697_v43 = vld [vmem:[%s14521_s1 + $0x3160] sm:$0xff] }
 0x31b   : > { %8411 = vmatpush1.bf16.msra.mxu0 %v8410_v1  ;;  %v8478_v1 = vpack.c.bf16 %v6807_v45, %v6799_v17  ;;  %v6691_v17 = vld [vmem:[%s14521_s1 + $0x3130] sm:$0xff]  ;;  %v8498_v62 = vpack.c.bf16 %v6697_v43, %v6689_v55  ;;  %v6753_v33 = vld [vmem:[%s14521_s1 + $0x3320] sm:$0xff] }
 0x31c   : > { %8459 = vmatpush1.bf16.msra.mxu1 %v8458_v2  ;;  %8413 = vmatprep.subr.bf16.mxu0 %v8412_v3  ;;  %v8432_v2 = vpack.c.bf16 %v6822_v61, %v6814_v59  ;;  %v6813_v3 = vld [vmem:[%s14521_s1 + $0x3500] sm:$0xff]  ;;  %v6699_v45 = vld [vmem:[%s14521_s1 + $0x3170] sm:$0xff]  ;;  %v6706_v59 = vld [vmem:[%s14521_s1 + $0x31a8] sm:$0xff] }
 0x31d   : > { %8461 = vmatprep.subr.bf16.mxu1 %v8460_v5  ;;  %v6823_v5 = vld [vmem:[%s14521_s1 + $0x3550] sm:$0xff]  ;;  %v8434_v13 = vpack.c.bf16 %v6821_v15, %v6813_v3  ;;  %v6714_v61 = vld [vmem:[%s14521_s1 + $0x31e8] sm:$0xff]  ;;  %v6713_v3 = vld [vmem:[%s14521_s1 + $0x31e0] sm:$0xff] }
 0x31e   : > { %v6707_v15 = vld [vmem:[%s14521_s1 + $0x31b0] sm:$0xff] }
 0x31f   : > { %8415 = vmatpush1.bf16.msra.mxu0 %v8414_v47  ;;  %v8482_v47 = vpack.c.bf16 %v6823_v5, %v6815_v34  ;;  %v6715_v34 = vld [vmem:[%s14521_s1 + $0x31f0] sm:$0xff]  ;;  %v6730_v5 = vld [vmem:[%s14521_s1 + $0x3268] sm:$0xff] }
 0x320   : > { %8463 = vmatpush1.bf16.msra.mxu1 %v8462_v21  ;;  %8417 = vmatprep.subr.bf16.mxu0 %v8416_v44  ;;  %v8436_v21 = vpack.c.bf16 %v6838_v20, %v6830_v7  ;;  %v6829_v44 = vld [vmem:[%s14521_s1 + $0x3580] sm:$0xff]  ;;  %v6724_v7 = vld [vmem:[%s14521_s1 + $0x3238] sm:$0xff]  ;;  %v8550_v12 = vpack.c.bf16 %v6715_v34, %v6707_v15  ;;  %v6779_v43 = vld [vmem:[%s14521_s1 + $0x33f0] sm:$0xff] }
 0x321   : > { %8465 = vmatprep.subr.bf16.mxu1 %v8464_v6  ;;  %v6839_v6 = vld [vmem:[%s14521_s1 + $0x35d0] sm:$0xff]  ;;  %v8438_v29 = vpack.c.bf16 %v6837_v19, %v6829_v44  ;;  %v6732_v20 = vld [vmem:[%s14521_s1 + $0x3278] sm:$0xff]  ;;  %v6802_v15 = vld [vmem:[%s14521_s1 + $0x34a8] sm:$0xff] }
 0x322   : > { %v6723_v44 = vld [vmem:[%s14521_s1 + $0x3230] sm:$0xff]  ;;  %v6804_v34 = vld [vmem:[%s14521_s1 + $0x34b8] sm:$0xff] }
 0x323   : > { %8419 = vmatpush1.bf16.msra.mxu0 %v8418_v26  ;;  %v8486_v26 = vpack.c.bf16 %v6839_v6, %v6831_v22  ;;  %v6731_v19 = vld [vmem:[%s14521_s1 + $0x3270] sm:$0xff]  ;;  %v6738_v22 = vld [vmem:[%s14521_s1 + $0x32a8] sm:$0xff]  ;;  %v6740_v6 = vld [vmem:[%s14521_s1 + $0x32b8] sm:$0xff] }
 0x324   : > { %8467 = vmatpush1.bf16.msra.mxu1 %v8466_v54  ;;  %8421 = vmatprep.subr.bf16.mxu0 %v8420_v35  ;;  %v8488_v54 = vpack.c.bf16 %v6666_v52, %v6658_v27  ;;  %v6657_v35 = vld [vmem:[%s14521_s1 + $0x3020] sm:$0xff]  ;;  %v6748_v27 = vld [vmem:[%s14521_s1 + $0x32f8] sm:$0xff]  ;;  %v8554_v16 = vpack.c.bf16 %v6731_v19, %v6723_v44  ;;  %v6818_v44 = vld [vmem:[%s14521_s1 + $0x3528] sm:$0xff] }
 0x325   : > { %8469 = vmatprep.subr.bf16.mxu1 %v8468_v24  ;;  %v6667_v24 = vld [vmem:[%s14521_s1 + $0x3070] sm:$0xff]  ;;  %v8490_v37 = vpack.c.bf16 %v6665_v30, %v6657_v35  ;;  %v8556_v35 = vpack.c.bf16 %v6748_v27, %v6740_v6  ;;  %v6820_v19 = vld [vmem:[%s14521_s1 + $0x3538] sm:$0xff] }
 0x326   : > { %v6747_v30 = vld [vmem:[%s14521_s1 + $0x32f0] sm:$0xff] }
 0x327   : > { %8423 = vmatpush1.bf16.msra.mxu0 %v8422_v38  ;;  %v8538_v38 = vpack.c.bf16 %v6667_v24, %v6659_v58  ;;  %v6762_v58 = vld [vmem:[%s14521_s1 + $0x3368] sm:$0xff]  ;;  %v6756_v24 = vld [vmem:[%s14521_s1 + $0x3338] sm:$0xff] }
 0x328   : > { %8471 = vmatpush1.bf16.msra.mxu1 %v8470_v39  ;;  %8425 = vmatprep.subr.bf16.mxu0 %v8424_v14  ;;  %v6673_v39 = vld [vmem:[%s14521_s1 + $0x30a0] sm:$0xff] }
 0x329   : > { %8473 = vmatprep.subr.bf16.mxu1 %v8472_v63  ;;  %v6681_v14 = vld [vmem:[%s14521_s1 + $0x30e0] sm:$0xff]  ;;  %v6690_v63 = vld [vmem:[%s14521_s1 + $0x3128] sm:$0xff] }
 0x32b   : > { %8427 = vmatpush1.bf16.msra.mxu0 %v8426_v31  ;;  %v8494_v31 = vpack.c.bf16 %v6681_v14, %v6673_v39  ;;  %v6755_v39 = vld [vmem:[%s14521_s1 + $0x3330] sm:$0xff]  ;;  %v8560_v14 = vpack.c.bf16 %v6764_v60, %v6756_v24 }
 0x32c   : > { %8475 = vmatpush1.bf16.msra.mxu1 %v8474_v53  ;;  %8429 = vmatprep.subr.bf16.mxu0 %v8428_v18  ;;  %v8542_v53 = vpack.c.bf16 %v6683_v40, %v6675_v57  ;;  %v8496_v18 = vpack.c.bf16 %v6698_v9, %v6690_v63  ;;  %v6763_v57 = vld [vmem:[%s14521_s1 + $0x3370] sm:$0xff]  ;;  %v6778_v40 = vld [vmem:[%s14521_s1 + $0x33e8] sm:$0xff]  ;;  %v6772_v63 = vld [vmem:[%s14521_s1 + $0x33b8] sm:$0xff] }
 0x32d   : > { %8477 = vmatprep.subr.bf16.mxu1 %v8476_v56  ;;  %v8544_v56 = vpack.c.bf16 %v6700_v50, %v6692_v49  ;;  %v6780_v9 = vld [vmem:[%s14521_s1 + $0x33f8] sm:$0xff]  ;;  %v8562_v49 = vpack.c.bf16 %v6763_v57, %v6755_v39  ;;  %v8757_v57 = vld [vmem:[%s9037_s4 + $0x28] sm:$0xff] }
 0x32e   : > { %v8564_v55 = vpack.c.bf16 %v6780_v9, %v6772_v63 }
 0x32f   : > { %8431 = vmatpush1.bf16.msra.mxu0 %v8430_v41  ;;  %v8546_v41 = vpack.c.bf16 %v6699_v45, %v6691_v17  ;;  %v6786_v17 = vld [vmem:[%s14521_s1 + $0x3428] sm:$0xff]  ;;  %v6788_v45 = vld [vmem:[%s14521_s1 + $0x3438] sm:$0xff] }
 0x330   : > { %8479 = vmatpush1.bf16.msra.mxu1 %v8478_v1  ;;  %8433 = vmatprep.subr.bf16.mxu0 %v8432_v2  ;;  %v8500_v1 = vpack.c.bf16 %v6714_v61, %v6706_v59  ;;  %v6705_v2 = vld [vmem:[%s14521_s1 + $0x31a0] sm:$0xff]  ;;  %v6796_v59 = vld [vmem:[%s14521_s1 + $0x3478] sm:$0xff] }
 0x331   : > { %8481 = vmatprep.subr.bf16.mxu1 %v8480_v4  ;;  %v6722_v4 = vld [vmem:[%s14521_s1 + $0x3228] sm:$0xff]  ;;  %v8502_v11 = vpack.c.bf16 %v6713_v3, %v6705_v2  ;;  %v8568_v2 = vpack.c.bf16 %v6796_v59, %v6788_v45  ;;  %v6795_v3 = vld [vmem:[%s14521_s1 + $0x3470] sm:$0xff] }
 0x333   : > { %8435 = vmatpush1.bf16.msra.mxu0 %v8434_v13  ;;  %v8504_v13 = vpack.c.bf16 %v6730_v5, %v6722_v4  ;;  %v6812_v4 = vld [vmem:[%s14521_s1 + $0x34f8] sm:$0xff] }
 0x334   : > { %8483 = vmatpush1.bf16.msra.mxu1 %v8482_v47  ;;  %8437 = vmatprep.subr.bf16.mxu0 %v8436_v21  ;;  %v6721_v47 = vld [vmem:[%s14521_s1 + $0x3220] sm:$0xff] }
 0x335   : > { %8485 = vmatprep.subr.bf16.mxu1 %v8484_v23  ;;  %v6729_v21 = vld [vmem:[%s14521_s1 + $0x3260] sm:$0xff]  ;;  %v6746_v23 = vld [vmem:[%s14521_s1 + $0x32e8] sm:$0xff] }
 0x336   : > { %v8506_v52 = vpack.c.bf16 %v6729_v21, %v6721_v47  ;;  %v8508_v28 = vpack.c.bf16 %v6746_v23, %v6738_v22  ;;  %v8572_v47 = vpack.c.bf16 %v6812_v4, %v6804_v34  ;;  %v6811_v21 = vld [vmem:[%s14521_s1 + $0x34f0] sm:$0xff]  ;;  %v6828_v22 = vld [vmem:[%s14521_s1 + $0x3578] sm:$0xff] }
 0x337   : > { %8439 = vmatpush1.bf16.msra.mxu0 %v8438_v29  ;;  %v6737_v29 = vld [vmem:[%s14521_s1 + $0x32a0] sm:$0xff] }
 0x338   : > { %8487 = vmatpush1.bf16.msra.mxu1 %v8486_v26  ;;  %8489 = vmatprep.subr.bf16.mxu0 %v8488_v54  ;;  %v6745_v26 = vld [vmem:[%s14521_s1 + $0x32e0] sm:$0xff]  ;;  %v6739_v54 = vld [vmem:[%s14521_s1 + $0x32b0] sm:$0xff] }
 0x339   : > { %8537 = vmatprep.subr.bf16.mxu1 %v8536_v51  ;;  %v6754_v51 = vld [vmem:[%s14521_s1 + $0x3328] sm:$0xff]  ;;  %v8510_v42 = vpack.c.bf16 %v6745_v26, %v6737_v29  ;;  %v8576_v29 = vpack.c.bf16 %v6828_v22, %v6820_v19  ;;  %v6827_v26 = vld [vmem:[%s14521_s1 + $0x3570] sm:$0xff] }
 0x33a   : > { %4799 = vmatmul.mubr.f32.vlgmr.msra.gmra.mrb[0].mxu0 %v14202_v0  ;;  %v8512_v48 = vpack.c.bf16 %v6762_v58, %v6754_v51  ;;  %v6844_v51 = vld [vmem:[%s14521_s1 + $0x35f8] sm:$0xff] }
 0x33b   : > { %4876 = vmatmul.mubr.f32.vlgmr.msra.gmra.mrb[0].mxu1 %v14202_v0  ;;  %8491 = vmatpush1.bf16.msra.mxu0 %v8490_v37  ;;  %v8558_v37 = vpack.c.bf16 %v6747_v30, %v6739_v54  ;;  %v6834_v54 = vld [vmem:[%s14521_s1 + $0x35a8] sm:$0xff]  ;;  %v6836_v30 = vld [vmem:[%s14521_s1 + $0x35b8] sm:$0xff] }
 0x33c   : > { %8539 = vmatpush1.bf16.msra.mxu1 %v8538_v38  ;;  %6846 = vmatprep.mubr.msk.f32.mxu0 %vm466_vm0, %v13562_v36  ;;  %v6761_v38 = vld [vmem:[%s14521_s1 + $0x3360] sm:$0xff] }
 0x33d   : > { %6848 = vmatprep.mubr.msk.f32.mxu1 %vm466_vm0, %v13562_v36  ;;  %8493 = vmatprep.subr.bf16.mxu0 %v8492_v32  ;;  %v6708_v36 = vld [vmem:[%s14521_s1 + $0x31b8] sm:$0xff]  ;;  %v6770_v32 = vld [vmem:[%s14521_s1 + $0x33a8] sm:$0xff] }
 0x33e   : > { %4805 = vmatmul.mubr.f32.gmra.mrb[2].mxu0 %v13569_v10  ;;  %8541 = vmatprep.subr.bf16.mxu1 %v8540_v46  ;;  %v8514_v46 = vpack.c.bf16 %v6761_v38, %v6753_v33  ;;  %v8516_v50 = vpack.c.bf16 %v6778_v40, %v6770_v32  ;;  %v6835_v33 = vld [vmem:[%s14521_s1 + $0x35b0] sm:$0xff]  ;;  %v8758_v32 = vld [vmem:[%s9037_s4 + $0x20] sm:$0xff]  ;;  %v234_v40 = vlaneseq }
 0x33f   : > { %4882 = vmatmul.mubr.f32.gmra.mrb[2].mxu1 %v13569_v10  ;;  %8495 = vmatpush1.bf16.msra.mxu0 %v8494_v31  ;;  %v8548_v10 = vpack.c.bf16 %v6716_v25, %v6708_v36  ;;  %v6769_v31 = vld [vmem:[%s14521_s1 + $0x33a0] sm:$0xff]  ;;  %v6843_v38 = vld [vmem:[%s14521_s1 + $0x35f0] sm:$0xff] }
 0x340   : > { %8543 = vmatpush1.bf16.msra.mxu1 %v8542_v53  ;;  %8497 = vmatprep.subr.bf16.mxu0 %v8496_v18  ;;  %v6777_v53 = vld [vmem:[%s14521_s1 + $0x33e0] sm:$0xff]  ;;  %v6771_v18 = vld [vmem:[%s14521_s1 + $0x33b0] sm:$0xff]  ;;  %v14456_v63 = vshrl.u32 %v234_v40, 7 }
 0x341   : > { %8545 = vmatprep.subr.bf16.mxu1 %v8544_v56  ;;  %6849 = vmatprep.mubr.msk.f32.mxu0 %vm466_vm0, %v13955_v8  ;;  %v6794_v56 = vld [vmem:[%s14521_s1 + $0x3468] sm:$0xff]  ;;  %v8518_v61 = vpack.c.bf16 %v6777_v53, %v6769_v31  ;;  %v8566_v36 = vpack.c.bf16 %v6779_v43, %v6771_v18  ;;  %v14470_v31 = vld [vmem:[%s14523_s3] sm:$0xff] }
 0x342   : > { %6851 = vmatprep.mubr.msk.f32.mxu1 %vm466_vm0, %v13955_v8  ;;  %v8552_v8 = vpack.c.bf16 %v6732_v20, %v6724_v7  ;;  %v8520_v25 = vpack.c.bf16 %v6794_v56, %v6786_v17  ;;  %v236_v9 = vsub.s32 0, %v14456_v63  ;;  %v264_v40 = vsub.s32 7, %v14456_v63 }
 0x343   : > { %8499 = vmatpush1.bf16.msra.mxu0 %v8498_v62  ;;  %v6785_v62 = vld [vmem:[%s14521_s1 + $0x3420] sm:$0xff] }
 0x344   : > { %8547 = vmatpush1.bf16.msra.mxu1 %v8546_v41  ;;  %8501 = vmatprep.subr.bf16.mxu0 %v8500_v1  ;;  %v6793_v41 = vld [vmem:[%s14521_s1 + $0x3460] sm:$0xff]  ;;  %v6787_v1 = vld [vmem:[%s14521_s1 + $0x3430] sm:$0xff]  ;;  %v5063_v43 = vrot.slane %v14470_v31, %v236_v9 }
 0x345   : > { %8549 = vmatprep.subr.bf16.mxu1 %v8548_v10  ;;  %v6810_v10 = vld [vmem:[%s14521_s1 + $0x34e8] sm:$0xff]  ;;  %v8522_v5 = vpack.c.bf16 %v6793_v41, %v6785_v62  ;;  %v8570_v7 = vpack.c.bf16 %v6795_v3, %v6787_v1  ;;  %v14480_v41 = vstv %s5116_s29 }
 0x346   : > { %v8524_v20 = vpack.c.bf16 %v6810_v10, %v6802_v15 }
 0x347   : > { %8503 = vmatpush1.bf16.msra.mxu0 %v8502_v11  ;;  %v6801_v11 = vld [vmem:[%s14521_s1 + $0x34a0] sm:$0xff] }
 0x348   : > { %8551 = vmatpush1.bf16.msra.mxu1 %v8550_v12  ;;  %8505 = vmatprep.subr.bf16.mxu0 %v8504_v13  ;;  %v6809_v12 = vld [vmem:[%s14521_s1 + $0x34e0] sm:$0xff]  ;;  %v6803_v13 = vld [vmem:[%s14521_s1 + $0x34b0] sm:$0xff] }
 0x349   : > { %8553 = vmatprep.subr.bf16.mxu1 %v8552_v8  ;;  %v6826_v8 = vld [vmem:[%s14521_s1 + $0x3568] sm:$0xff]  ;;  %v8526_v23 = vpack.c.bf16 %v6809_v12, %v6801_v11  ;;  %v8574_v6 = vpack.c.bf16 %v6811_v21, %v6803_v13 }
 0x34a   : > { %v8528_v27 = vpack.c.bf16 %v6826_v8, %v6818_v44 }
 0x34b   : > { %8507 = vmatpush1.bf16.msra.mxu0 %v8506_v52  ;;  %v6817_v52 = vld [vmem:[%s14521_s1 + $0x3520] sm:$0xff] }
 0x34c   : > { %8555 = vmatpush1.bf16.msra.mxu1 %v8554_v16  ;;  %8509 = vmatprep.subr.bf16.mxu0 %v8508_v28  ;;  %v6825_v16 = vld [vmem:[%s14521_s1 + $0x3560] sm:$0xff]  ;;  %v6819_v28 = vld [vmem:[%s14521_s1 + $0x3530] sm:$0xff] }
 0x34d   : > { %8557 = vmatprep.subr.bf16.mxu1 %v8556_v35  ;;  %v6842_v35 = vld [vmem:[%s14521_s1 + $0x35e8] sm:$0xff]  ;;  %v8530_v58 = vpack.c.bf16 %v6825_v16, %v6817_v52  ;;  %v8578_v24 = vpack.c.bf16 %v6827_v26, %v6819_v28 }
 0x34e   : > { %v8532_v60 = vpack.c.bf16 %v6842_v35, %v6834_v54 }
 0x34f   : > { %8511 = vmatpush1.bf16.msra.mxu0 %v8510_v42  ;;  %v6833_v42 = vld [vmem:[%s14521_s1 + $0x35a0] sm:$0xff] }
 0x350   : > { %8559 = vmatpush1.bf16.msra.mxu1 %v8558_v37  ;;  %8513 = vmatprep.subr.bf16.mxu0 %v8512_v48  ;;  %v6841_v37 = vld [vmem:[%s14521_s1 + $0x35e0] sm:$0xff]  ;;  %v8580_v48 = vpack.c.bf16 %v6844_v51, %v6836_v30 }
 0x351   : > { %8561 = vmatprep.subr.bf16.mxu1 %v8560_v14  ;;  %v8534_v39 = vpack.c.bf16 %v6841_v37, %v6833_v42  ;;  %v8582_v14 = vpack.c.bf16 %v6843_v38, %v6835_v33 }
 0x353   : > { %8515 = vmatpush1.bf16.msra.mxu0 %v8514_v46  ;;  %v14462_v46 = vld [vmem:[%s14522_s2] sm:$0xff] }
 0x354   : > { %8563 = vmatpush1.bf16.msra.mxu1 %v8562_v49  ;;  %8517 = vmatprep.subr.bf16.mxu0 %v8516_v50  ;;  %v240_v49 = vsub.s32 1, %v14456_v63  ;;  %v248_v50 = vsub.s32 3, %v14456_v63  ;;  %v237_v53 = vrot.slane %v14462_v46, %v236_v9 }
 0x355   : > { %8565 = vmatprep.subr.bf16.mxu1 %v8564_v55 }
 0x356   : > { %v241_v55 = vrot.slane %v14462_v46, %v240_v49  ;;  %v249_v17 = vrot.slane %v14462_v46, %v248_v50  ;;  %v5067_v59 = vrot.slane %v14470_v31, %v240_v49  ;;  %v5075_v62 = vrot.slane %v14470_v31, %v248_v50 }
 0x357   : > { %8519 = vmatpush1.bf16.msra.mxu0 %v8518_v61 }
 0x358   : > { %8567 = vmatpush1.bf16.msra.mxu1 %v8566_v36  ;;  %8521 = vmatprep.subr.bf16.mxu0 %v8520_v25 }
 0x359   : > { %8569 = vmatprep.subr.bf16.mxu1 %v8568_v2 }
 0x35b   : > { %8523 = vmatpush1.bf16.msra.mxu0 %v8522_v5 }
 0x35c   : > { %8571 = vmatpush1.bf16.msra.mxu1 %v8570_v7  ;;  %8525 = vmatprep.subr.bf16.mxu0 %v8524_v20 }
 0x35d   : > { %8573 = vmatprep.subr.bf16.mxu1 %v8572_v47 }
 0x35f   : > { %8527 = vmatpush1.bf16.msra.mxu0 %v8526_v23 }
 0x360   : > { %8575 = vmatpush1.bf16.msra.mxu1 %v8574_v6  ;;  %8529 = vmatprep.subr.bf16.mxu0 %v8528_v27 }
 0x361   : > { %8577 = vmatprep.subr.bf16.mxu1 %v8576_v29 }
 0x363   : > { %8531 = vmatpush1.bf16.msra.mxu0 %v8530_v58 }
 0x364   : > { %8579 = vmatpush1.bf16.msra.mxu1 %v8578_v24  ;;  %8533 = vmatprep.subr.bf16.mxu0 %v8532_v60 }
 0x365   : > { %8581 = vmatprep.subr.bf16.mxu1 %v8580_v48 }
 0x367   : > { %8535 = vmatpush1.bf16.msra.mxu0 %v8534_v39 }
 0x368   : > { %8583 = vmatpush1.bf16.msra.mxu1 %v8582_v14  ;;  %v252_v14 = vsub.s32 4, %v14456_v63 }
 0x36a   : > { %4953 = vmatmul.mubr.f32.vlgmr.msra.gmra.mrb[4].mxu0 %v14202_v0  ;;  %v253_v9 = vrot.slane %v14462_v46, %v252_v14  ;;  %v5079_v50 = vrot.slane %v14470_v31, %v252_v14 }
 0x36b   : > { %5030 = vmatmul.mubr.f32.vlgmr.msra.gmra.mrb[4].mxu1 %v14202_v0  ;;  %6850 = vmatprep.mubr.msk.f32.mxu0 %vm466_vm0, %v8757_v57  ;;  %v244_v0 = vsub.s32 2, %v14456_v63 }
 0x36c   : > { %6852 = vmatprep.mubr.msk.f32.mxu1 %vm466_vm0, %v8757_v57  ;;  %v260_v57 = vsub.s32 6, %v14456_v63 }
 0x36d   : > { %v245_v18 = vrot.slane %v14462_v46, %v244_v0  ;;  %v5071_v45 = vrot.slane %v14470_v31, %v244_v0 }
 0x36e   : > { %4959 = vmatmul.mubr.f32.gmra.mrb[6].mxu0 %v8758_v32  ;;  %v261_v0 = vrot.slane %v14462_v46, %v260_v57 }
 0x36f   : > { %5036 = vmatmul.mubr.f32.gmra.mrb[6].mxu1 %v8758_v32  ;;  %v256_v32 = vsub.s32 5, %v14456_v63  ;;  %v5091_v63 = vrot.slane %v14470_v31, %v264_v40 }
 0x371   : > { %v257_v49 = vrot.slane %v14462_v46, %v256_v32 }
 0x40d   : > { %v4800_v56 = vpop.f32.mrb[0].mxu0 }
 0x40e   : > { %v8584_v61 = vadd.f32 %v4800_v56, %v237_v53  ;;  %v4877_v36 = vpop.f32.mrb[0].mxu1  ;;  %v4802_v25 = vpop.f32.mrb[1].mxu0 }
 0x40f   : > { %v8588_v1 = vadd.f32 %v4877_v36, %v245_v18  ;;  %v8585_v2 = vadd.f32 %v4802_v25, %v241_v55  ;;  %v4879_v3 = vpop.f32.mrb[1].mxu1 }
 0x410   : > { %v5100_v15 = vmul.f32 %v8584_v61, %v5063_v43  ;;  %v8589_v10 = vadd.f32 %v4879_v3, %v249_v17 }
 0x411   : > { %v5102_v34 = vmul.f32 %v8588_v1, %v5071_v45  ;;  %v5101_v4 = vmul.f32 %v8585_v2, %v5067_v59  ;;  %v4806_v5 = vpop.f32.mrb[2].mxu0 }
 0x412   : > { %vm5117_vm8 = vcmp.ge.f32.partialorder %v5100_v15, 0.0  ;;  %v5134_v7 = vmul.f32 %v14480_v41, %v5100_v15  ;;  %v5103_v20 = vmul.f32 %v8589_v10, %v5075_v62  ;;  %v8586_v11 = vadd.f32 %v4806_v5, %v237_v53  ;;  %v4883_v12 = vpop.f32.mrb[2].mxu1  ;;  %v4808_v13 = vpop.f32.mrb[3].mxu0 }
 0x413   : > { %vm5119_vm9 = vcmp.ge.f32.partialorder %v5102_v34, 0.0  ;;  %v5136_v47 = vmul.f32 %v14480_v41, %v5102_v34  ;;  %vm5118_vm10 = vcmp.ge.f32.partialorder %v5101_v4, 0.0  ;;  %v5135_v21 = vmul.f32 %v14480_v41, %v5101_v4  ;;  %v4885_v44 = vpop.f32.mrb[3].mxu1 }
 0x414   : > { %v5150_v8 = vsel %vm5117_vm8, %v5100_v15, %v5134_v7  ;;  %vm5120_vm11 = vcmp.ge.f32.partialorder %v5103_v20, 0.0  ;;  %v5137_v19 = vmul.f32 %v14480_v41, %v5103_v20  ;;  %v5108_v22 = vmul.f32 %v8586_v11, %v5063_v43 }
 0x415   : > { %v5152_v23 = vsel %vm5119_vm9, %v5102_v34, %v5136_v47  ;;  %v5151_v6 = vsel %vm5118_vm10, %v5101_v4, %v5135_v21  ;;  %v8590_v27 = vadd.f32 %v4883_v12, %v245_v18  ;;  %v8587_v52 = vadd.f32 %v4808_v13, %v241_v55 }
 0x416   : > { %v5166_v16 = vadd.f32 %v5152_v23, %v5150_v8  ;;  %v5153_v28 = vsel %vm5120_vm11, %v5103_v20, %v5137_v19  ;;  %vm5125_vm12 = vcmp.ge.f32.partialorder %v5108_v22, 0.0  ;;  %v5142_v29 = vmul.f32 %v14480_v41, %v5108_v22 }
 0x417   : > { %v5167_v26 = vadd.f32 %v5153_v28, %v5151_v6  ;;  %v5110_v54 = vmul.f32 %v8590_v27, %v5071_v45  ;;  %v5109_v35 = vmul.f32 %v8587_v52, %v5067_v59  ;;  %v8591_v30 = vadd.f32 %v4885_v44, %v249_v17 }
 0x418   : > { %v5158_v51 = vsel %vm5125_vm12, %v5108_v22, %v5142_v29  ;;  %v265_v53 = vrot.slane %v14462_v46, %v264_v40  ;;  %v5087_v55 = vrot.slane %v14470_v31, %v260_v57  ;;  %v5083_v43 = vrot.slane %v14470_v31, %v256_v32 }
 0x419   : > { %vm5127_vm13 = vcmp.ge.f32.partialorder %v5110_v54, 0.0  ;;  %v5144_v58 = vmul.f32 %v14480_v41, %v5110_v54  ;;  %vm5126_vm14 = vcmp.ge.f32.partialorder %v5109_v35, 0.0  ;;  %v5143_v24 = vmul.f32 %v14480_v41, %v5109_v35 }
 0x41a   : > { %v5111_v60 = vmul.f32 %v8591_v30, %v5075_v62 }
 0x41b   : > { %v5160_v42 = vsel %vm5127_vm13, %v5110_v54, %v5144_v58  ;;  %v5159_v48 = vsel %vm5126_vm14, %v5109_v35, %v5143_v24 }
 0x41c   : > { %v5168_v37 = vadd.f32 %v5160_v42, %v5158_v51  ;;  %vm5128_vm15 = vcmp.ge.f32.partialorder %v5111_v60, 0.0  ;;  %v5145_v33 = vmul.f32 %v14480_v41, %v5111_v60 }
 0x41e   : > { %v5161_v38 = vsel %vm5128_vm15, %v5111_v60, %v5145_v33 }
 0x41f   : > { %v14490_v39 = vadd.f32 %v5161_v38, %v5159_v48 }
 0x43d   : > { %v4954_v18 = vpop.f32.mrb[4].mxu0 }
 0x43e   : > { %v8592_v17 = vadd.f32 %v4954_v18, %v253_v9  ;;  %v5031_v56 = vpop.f32.mrb[4].mxu1  ;;  %v4956_v45 = vpop.f32.mrb[5].mxu0 }
 0x43f   : > { %v8596_v59 = vadd.f32 %v5031_v56, %v261_v0  ;;  %v8593_v61 = vadd.f32 %v4956_v45, %v257_v49  ;;  %v5033_v36 = vpop.f32.mrb[5].mxu1 }
 0x440   : > { %v5104_v25 = vmul.f32 %v8592_v17, %v5079_v50  ;;  %v8597_v62 = vadd.f32 %v5033_v36, %v265_v53 }
 0x441   : > { %v5106_v1 = vmul.f32 %v8596_v59, %v5087_v55  ;;  %v5105_v2 = vmul.f32 %v8593_v61, %v5083_v43  ;;  %v4960_v3 = vpop.f32.mrb[6].mxu0 }
 0x442   : > { %vm5121_vm0 = vcmp.ge.f32.partialorder %v5104_v25, 0.0  ;;  %v5138_v46 = vmul.f32 %v14480_v41, %v5104_v25  ;;  %v5107_v15 = vmul.f32 %v8597_v62, %v5091_v63  ;;  %v8594_v10 = vadd.f32 %v4960_v3, %v253_v9  ;;  %v5037_v34 = vpop.f32.mrb[6].mxu1  ;;  %v4962_v4 = vpop.f32.mrb[7].mxu0 }
 0x443   : > { %vm5123_vm1 = vcmp.ge.f32.partialorder %v5106_v1, 0.0  ;;  %v5140_v5 = vmul.f32 %v14480_v41, %v5106_v1  ;;  %vm5122_vm2 = vcmp.ge.f32.partialorder %v5105_v2, 0.0  ;;  %v5139_v31 = vmul.f32 %v14480_v41, %v5105_v2  ;;  %v5039_v7 = vpop.f32.mrb[7].mxu1 }
 0x444   : > { %v5154_v20 = vsel %vm5121_vm0, %v5104_v25, %v5138_v46  ;;  %vm5124_vm3 = vcmp.ge.f32.partialorder %v5107_v15, 0.0  ;;  %v5141_v11 = vmul.f32 %v14480_v41, %v5107_v15  ;;  %v5112_v12 = vmul.f32 %v8594_v10, %v5079_v50 }
 0x445   : > { %v5170_v13 = vadd.f32 %v5166_v16, %v5154_v20  ;;  %v5156_v47 = vsel %vm5123_vm1, %v5106_v1, %v5140_v5  ;;  %v5155_v21 = vsel %vm5122_vm2, %v5105_v2, %v5139_v31  ;;  %v8598_v44 = vadd.f32 %v5037_v34, %v261_v0 }
 0x446   : > { %v5171_v8 = vadd.f32 %v5167_v26, %v5155_v21  ;;  %v5157_v19 = vsel %vm5124_vm3, %v5107_v15, %v5141_v11  ;;  %vm5129_vm4 = vcmp.ge.f32.partialorder %v5112_v12, 0.0  ;;  %v5146_v22 = vmul.f32 %v14480_v41, %v5112_v12 }
 0x447   : > { %v5174_v23 = vadd.f32 %v5170_v13, %v5156_v47  ;;  %v5114_v6 = vmul.f32 %v8598_v44, %v5087_v55  ;;  %v8595_v27 = vadd.f32 %v4962_v4, %v257_v49  ;;  %v8599_v52 = vadd.f32 %v5039_v7, %v265_v53 }
 0x448   : > { %v5175_v28 = vadd.f32 %v5171_v8, %v5157_v19  ;;  %v5162_v29 = vsel %vm5129_vm4, %v5112_v12, %v5146_v22 }
 0x449   : > { %5178 = vst [vmem:[%s225_s21] sm:$0xff] %v5174_v23  ;;  %v5172_v16 = vadd.f32 %v5168_v37, %v5162_v29  ;;  %vm5131_vm5 = vcmp.ge.f32.partialorder %v5114_v6, 0.0  ;;  %v5148_v54 = vmul.f32 %v14480_v41, %v5114_v6  ;;  %v5113_v35 = vmul.f32 %v8595_v27, %v5083_v43 }
 0x44a   : > { %5179 = vst [vmem:[%s225_s21 + $0x8] sm:$0xff] %v5175_v28  ;;  %v5115_v30 = vmul.f32 %v8599_v52, %v5091_v63 }
 0x44b   : > { %v5164_v51 = vsel %vm5131_vm5, %v5114_v6, %v5148_v54  ;;  %vm5130_vm6 = vcmp.ge.f32.partialorder %v5113_v35, 0.0  ;;  %v5147_v26 = vmul.f32 %v14480_v41, %v5113_v35 }
 0x44c   : > { %v5176_v58 = vadd.f32 %v5172_v16, %v5164_v51  ;;  %vm5132_vm7 = vcmp.ge.f32.partialorder %v5115_v30, 0.0  ;;  %v5149_v24 = vmul.f32 %v14480_v41, %v5115_v30 }
 0x44d   : > { %v5163_v60 = vsel %vm5130_vm6, %v5113_v35, %v5147_v26 }
 0x44e   : > { %5180 = vst [vmem:[%s225_s21 + $0x10] sm:$0xff] %v5176_v58  ;;  %v5173_v42 = vadd.f32 %v14490_v39, %v5163_v60  ;;  %v5165_v48 = vsel %vm5132_vm7, %v5115_v30, %v5149_v24 }
 0x450   : > { %v5177_v37 = vadd.f32 %v5173_v42, %v5165_v48 }
 0x452   : > { %5181 = vst [vmem:[%s225_s21 + $0x18] sm:$0xff] %v5177_v37 }
 0x453 PF: > { %s16_s20 = sadd.s32 1, %s8765_s20  }
 0x454   : > { %p13_p4 = scmp.ge.s32.totalorder %s16_s20, 4  }
 0x456   :  { %15 = sbr.rel (!%p13_p4) target bundleno = 2 (0x2), region = 78 }

</bundles_post_ra>
